<compile_context>
chip_gen: v7x
topology: tpu7x:2x2x1
jax: 0.10.0
libtpu: 0.0.40
codegen_flags: <defaults>
</compile_context>

<pallas_src>
import functools

import numpy as np

import jax
import jax.numpy as jnp
from jax.experimental import pallas as pl
from jax.experimental.pallas import tpu as pltpu


# ----------------------------------------------------------------------------
# Pallas kernels
# ----------------------------------------------------------------------------
def _conv_pool_kernel(x_ref, sel_ref, w_ref, b_ref, o_ref, *, k):
    """Fused valid conv(k) + bias + ReLU + 2x2 max-pool for one image.

    x_ref:   (H, W*Cin)            f32   channels-last, lane-dense input slab
    sel_ref: (k+1, Hp, H)          bf16  one-hot row selectors  S_j[i, 2i+j]=1
    w_ref:   (2*k, W*Cin, Wp*Cout) bf16  Toeplitz conv matrices, index q*k+kh
                                         (q = output-column parity)
    b_ref:   (1, Wp*Cout)          f32   bias tiled over pooled W positions
    o_ref:   (Hp, Wp*Cout)         f32   pooled output, channels-last
    """
    xb = x_ref[...].astype(jnp.bfloat16)

    # Row gathers done on the MXU: ys[j][i, :] = x[2*i + j, :]
    # (exact, since the selector rows are one-hot).
    ys = [
        jnp.dot(sel_ref[j], xb,
                preferred_element_type=jnp.float32).astype(jnp.bfloat16)
        for j in range(k + 1)
    ]

    # acc_pq[i, wp*Cout + co] == conv(x)[2i+p, 2wp+q, co]   (pre-bias)
    pooled = None
    for p in range(2):          # output-row parity  (H pooling)
        for q in range(2):      # output-col parity  (W pooling)
            acc = None
            for kh in range(k):
                t = jnp.dot(ys[kh + p], w_ref[q * k + kh],
                            preferred_element_type=jnp.float32)
                acc = t if acc is None else acc + t
            pooled = acc if pooled is None else jnp.maximum(pooled, acc)

    # bias is identical across the four parities and relu is monotone, so
    # max_pq relu(acc_pq + b) == relu(max_pq(acc_pq) + b).
    o_ref[...] = jnp.maximum(pooled + b_ref[...], 0.0).astype(o_ref.dtype)


def _head_kernel(x_ref, w1_ref, b1_ref, w2_ref, b2_ref, o_ref):
    """Fused fc1 + ReLU + (eval dropout) + fc2 + log_softmax."""
    h = jnp.dot(x_ref[...], w1_ref[...], preferred_element_type=jnp.float32)
    h = jnp.maximum(h + b1_ref[...], 0.0)
    # TODO(synk): training-mode dropout (random mask) not implemented; eval-mode
    #             F.dropout is an identity, which is what is computed here.
    logits = jnp.dot(h, w2_ref[...], preferred_element_type=jnp.float32)
    logits = logits + b2_ref[...]
    m = jnp.max(logits, axis=-1, keepdims=True)
    lse = jnp.log(jnp.sum(jnp.exp(logits - m), axis=-1, keepdims=True)) + m
    o_ref[...] = (logits - lse).astype(o_ref.dtype)


# ----------------------------------------------------------------------------
# pallas_call wrappers
# ----------------------------------------------------------------------------
def conv_pool_stage(x, st, k):
    """x: (N, H, W*Cin) f32 -> (N, Hp, Wp*Cout) f32, conv+relu+pool fused."""
    N = x.shape[0]
    H, WCin, Hp, WpCout = st["H"], st["WCin"], st["Hp"], st["WpCout"]
    flops = int(2 * N * ((k + 1) * Hp * H * WCin + 4 * k * Hp * WCin * WpCout))
    bytes_accessed = int(4 * x.size + 2 * st["sel"].size + 2 * st["w"].size
                         + 4 * st["b"].size + 4 * N * Hp * WpCout)
    return pl.pallas_call(
        functools.partial(_conv_pool_kernel, k=k),
        out_shape=jax.ShapeDtypeStruct((N, Hp, WpCout), jnp.float32),
        grid=(N,),
        in_specs=[
            pl.BlockSpec((None, H, WCin), lambda n: (n, 0, 0)),
            pl.BlockSpec((k + 1, Hp, H), lambda n: (0, 0, 0)),
            pl.BlockSpec((2 * k, WCin, WpCout), lambda n: (0, 0, 0)),
            pl.BlockSpec((1, WpCout), lambda n: (0, 0)),
        ],
        out_specs=pl.BlockSpec((None, Hp, WpCout), lambda n: (n, 0, 0)),
        compiler_params=pltpu.CompilerParams(
            dimension_semantics=("parallel",)),
        cost_estimate=pl.CostEstimate(flops=flops, transcendentals=0,
                                      bytes_accessed=bytes_accessed),
    )(x, st["sel"], st["w"], st["b"])


def fc_head(x, w1, b1, w2, b2):
    """x: (N, num_flatten) f32 -> (N, num_classes) log-probabilities."""
    N = x.shape[0]
    vmem = pl.BlockSpec(memory_space=pltpu.MemorySpace.VMEM)
    return pl.pallas_call(
        _head_kernel,
        out_shape=jax.ShapeDtypeStruct((N, w2.shape[1]), jnp.float32),
        in_specs=[vmem] * 5,
        out_specs=vmem,
    )(x, w1, b1, w2, b2)


# ----------------------------------------------------------------------------
# Init-time weight transforms (hoisted out of the forward pass)
# ----------------------------------------------------------------------------
def _toeplitz_conv_mats(wt, W):
    """wt: (Cout, Cin, k, k) -> (2k, W*Cin, Wp*Cout) Toeplitz matrices.

    result[q*k + kh][w*Cin + ci, wp*Cout + co] = wt[co, ci, kh, w - (2*wp + q)]
    (zero outside the kernel support), so one matmul with the (H, W*Cin) slab
    computes all conv outputs of column parity q for kernel row kh.
    """
    Cout, Cin, k, _ = wt.shape
    Wo = W - k + 1
    Wp = Wo // 2
    full = np.zeros((k, W, Cin, Wo, Cout), np.float32)
    for kh in range(k):
        for kw in range(k):
            wt_t = np.ascontiguousarray(np.transpose(wt[:, :, kh, kw]))  # (Cin,Cout)
            for wo in range(Wo):
                full[kh, wo + kw, :, wo, :] = wt_t
    full = full.reshape(k, W * Cin, Wo, Cout)
    even = full[:, :, 0:2 * Wp:2, :].reshape(k, W * Cin, Wp * Cout)
    odd = full[:, :, 1:2 * Wp:2, :].reshape(k, W * Cin, Wp * Cout)
    return np.concatenate([even, odd], axis=0)


def _row_select_mats(Hp, H, k):
    """One-hot selectors S_j (j = 0..k) with S_j[i, 2*i + j] = 1."""
    s = np.zeros((k + 1, Hp, H), np.float32)
    for j in range(k + 1):
        for i in range(Hp):
            s[j, i, 2 * i + j] = 1.0
    return s


def init_params(key, hp):
    C_in, H_in, W_in = hp["input_shape"]
    f = hp["initial_filters"]
    k = hp["size"]
    num_fc1 = hp["num_fc1"]
    num_classes = hp["num_classes"]

    keys = jax.random.split(key, 6)

    def conv_init(kk, cout, cin):
        scale = 1.0 / np.sqrt(cin * k * k)
        kw_, kb_ = jax.random.split(kk)
        w = jax.random.uniform(kw_, (cout, cin, k, k), jnp.float32, -scale, scale)
        b = jax.random.uniform(kb_, (cout,), jnp.float32, -scale, scale)
        return np.asarray(w), np.asarray(b)

    def fc_init(kk, fin, fout):
        scale = 1.0 / np.sqrt(fin)
        kw_, kb_ = jax.random.split(kk)
        w = jax.random.uniform(kw_, (fin, fout), jnp.float32, -scale, scale)
        b = jax.random.uniform(kb_, (fout,), jnp.float32, -scale, scale)
        return w, b

    chans = [C_in, f, 2 * f, 4 * f, 8 * f]
    H, W = H_in, W_in
    stages = []
    for s in range(4):
        cin, cout = chans[s], chans[s + 1]
        wt, bias = conv_init(keys[s], cout, cin)
        Ho, Wo = H - k + 1, W - k + 1            # valid conv, stride 1
        Hp, Wp = Ho // 2, Wo // 2                # 2x2 max-pool, floor
        stages.append(dict(
            w=jnp.asarray(_toeplitz_conv_mats(wt, W), jnp.bfloat16),
            sel=jnp.asarray(_row_select_mats(Hp, H, k), jnp.bfloat16),
            b=jnp.asarray(np.tile(bias, Wp)[None, :], jnp.float32),
            H=H, WCin=W * cin, Hp=Hp, WpCout=Wp * cout,
        ))
        H, W = Hp, Wp

    C_last = chans[4]
    num_flatten = H * W * C_last                 # matches findConv2dOutShape

    w1, b1 = fc_init(keys[4], num_flatten, num_fc1)
    w2, b2 = fc_init(keys[5], num_fc1, num_classes)

    # fc1 rows are defined in PyTorch NCHW-flatten order (c, h, w); the conv
    # stages hand us an NHWC-flattened activation, so permute the rows once.
    hh, ww, cc = np.meshgrid(np.arange(H), np.arange(W), np.arange(C_last),
                             indexing="ij")
    perm = (cc * (H * W) + hh * W + ww).reshape(-1)
    w1 = w1[perm, :]

    return dict(stages=stages, k=k, num_flatten=num_flatten,
                w1=w1, b1=b1.reshape(1, -1), w2=w2, b2=b2.reshape(1, -1))


# ----------------------------------------------------------------------------
# Network forward
# ----------------------------------------------------------------------------
def net_forward(p, x_nchw):
    """x_nchw: (N, C, H, W) f32 -> (N, num_classes) log-probabilities."""
    N, C, H, W = x_nchw.shape
    # NCHW -> channels-last, lane-dense (N, H, W*C); done once at the edge.
    x = jnp.transpose(x_nchw, (0, 2, 3, 1)).reshape(N, H, W * C)
    for st in p["stages"]:
        x = conv_pool_stage(x, st, p["k"])
    # NHWC flatten (fc1 rows were pre-permuted to match PyTorch's NCHW view).
    x = x.reshape(N, p["num_flatten"])
    return fc_head(x, p["w1"], p["b1"], p["w2"], p["b2"])


if __name__ == "__main__":
    hp = {
        "input_shape": (3, 64, 64),
        "initial_filters": 8,
        "num_fc1": 32,
        "num_classes": 4,
        "dropout_rate": 0.25,
        "size": 3,
    }
    key = jax.random.PRNGKey(0)
    k_param, k_x = jax.random.split(key)

    p = init_params(k_param, hp)
    x = jax.random.normal(k_x, (2, 3, 64, 64), jnp.float32)   # NCHW, like PyTorch

    fwd = jax.jit(lambda xx: net_forward(p, xx))
    out = jax.block_until_ready(fwd(x))

    assert out.shape == (2, hp["num_classes"])
    # log_softmax rows should (approximately) exponentiate-sum to 1
    assert jnp.allclose(jnp.sum(jnp.exp(out), axis=1), 1.0, atol=1e-4)
    print("KERNEL_OK")
</pallas_src>

<mosaic_0001>
module attributes {stable_mosaic.version = 11 : i64} {
  func.func @_conv_pool_kernel(%arg0: i32, %arg1: memref<1x64x192xf32, #tpu.memory_space<vmem>>, %arg2: memref<4x31x64xbf16, #tpu.memory_space<vmem>>, %arg3: memref<6x192x248xbf16, #tpu.memory_space<vmem>>, %arg4: memref<1x248xf32, #tpu.memory_space<vmem>>, %arg5: memref<1x31x248xf32, #tpu.memory_space<vmem>>) attributes {dimension_semantics = [#tpu.dimension_semantics<parallel>], iteration_bounds = array<i64: 2>, scalar_prefetch = 0 : i64, scratch_operands = 0 : i64, tpu.core_type = #tpu.core_type<tc>, window_params = [{transform_indices = @transform_0, window_bounds = array<i64: 1, 64, 192>}, {pipeline_mode = #tpu.pipeline_mode<synchronous>, transform_indices = @transform_1, window_bounds = array<i64: 4, 31, 64>}, {pipeline_mode = #tpu.pipeline_mode<synchronous>, transform_indices = @transform_2, window_bounds = array<i64: 6, 192, 248>}, {pipeline_mode = #tpu.pipeline_mode<synchronous>, transform_indices = @transform_3, window_bounds = array<i64: 1, 248>}, {transform_indices = @transform_4, window_bounds = array<i64: 1, 31, 248>}]} {
    %c0 = arith.constant 0 : index
    %c0_0 = arith.constant 0 : index
    %c0_1 = arith.constant 0 : index
    %0 = vector.load %arg1[%c0, %c0_0, %c0_1] : memref<1x64x192xf32, #tpu.memory_space<vmem>>, vector<1x64x192xf32>
    %1 = vector.shape_cast %0 : vector<1x64x192xf32> to vector<64x192xf32>
    %2 = arith.truncf %1 : vector<64x192xf32> to vector<64x192xbf16>
    %c0_2 = arith.constant 0 : index
    %c0_3 = arith.constant 0 : index
    %c0_4 = arith.constant 0 : index
    %3 = vector.load %arg2[%c0_2, %c0_3, %c0_4] : memref<4x31x64xbf16, #tpu.memory_space<vmem>>, vector<1x31x64xbf16>
    %4 = vector.shape_cast %3 : vector<1x31x64xbf16> to vector<31x64xbf16>
    %cst = arith.constant dense<0.000000e+00> : vector<31x192xf32>
    %5 = tpu.matmul %4, %2, %cst {dimension_numbers = #tpu.dot_dimension_numbers<[1], [0], [0], [1], [0, 0, 1, 1], [], []>} : vector<31x64xbf16>, vector<64x192xbf16>, vector<31x192xf32> -> vector<31x192xf32>
    %6 = arith.truncf %5 : vector<31x192xf32> to vector<31x192xbf16>
    %c1 = arith.constant 1 : index
    %c0_5 = arith.constant 0 : index
    %c0_6 = arith.constant 0 : index
    %7 = vector.load %arg2[%c1, %c0_5, %c0_6] : memref<4x31x64xbf16, #tpu.memory_space<vmem>>, vector<1x31x64xbf16>
    %8 = vector.shape_cast %7 : vector<1x31x64xbf16> to vector<31x64xbf16>
    %cst_7 = arith.constant dense<0.000000e+00> : vector<31x192xf32>
    %9 = tpu.matmul %8, %2, %cst_7 {dimension_numbers = #tpu.dot_dimension_numbers<[1], [0], [0], [1], [0, 0, 1, 1], [], []>} : vector<31x64xbf16>, vector<64x192xbf16>, vector<31x192xf32> -> vector<31x192xf32>
    %10 = arith.truncf %9 : vector<31x192xf32> to vector<31x192xbf16>
    %c2 = arith.constant 2 : index
    %c0_8 = arith.constant 0 : index
    %c0_9 = arith.constant 0 : index
    %11 = vector.load %arg2[%c2, %c0_8, %c0_9] : memref<4x31x64xbf16, #tpu.memory_space<vmem>>, vector<1x31x64xbf16>
    %12 = vector.shape_cast %11 : vector<1x31x64xbf16> to vector<31x64xbf16>
    %cst_10 = arith.constant dense<0.000000e+00> : vector<31x192xf32>
    %13 = tpu.matmul %12, %2, %cst_10 {dimension_numbers = #tpu.dot_dimension_numbers<[1], [0], [0], [1], [0, 0, 1, 1], [], []>} : vector<31x64xbf16>, vector<64x192xbf16>, vector<31x192xf32> -> vector<31x192xf32>
    %14 = arith.truncf %13 : vector<31x192xf32> to vector<31x192xbf16>
    %c3 = arith.constant 3 : index
    %c0_11 = arith.constant 0 : index
    %c0_12 = arith.constant 0 : index
    %15 = vector.load %arg2[%c3, %c0_11, %c0_12] : memref<4x31x64xbf16, #tpu.memory_space<vmem>>, vector<1x31x64xbf16>
    %16 = vector.shape_cast %15 : vector<1x31x64xbf16> to vector<31x64xbf16>
    %cst_13 = arith.constant dense<0.000000e+00> : vector<31x192xf32>
    %17 = tpu.matmul %16, %2, %cst_13 {dimension_numbers = #tpu.dot_dimension_numbers<[1], [0], [0], [1], [0, 0, 1, 1], [], []>} : vector<31x64xbf16>, vector<64x192xbf16>, vector<31x192xf32> -> vector<31x192xf32>
    %18 = arith.truncf %17 : vector<31x192xf32> to vector<31x192xbf16>
    %c0_14 = arith.constant 0 : index
    %c0_15 = arith.constant 0 : index
    %c0_16 = arith.constant 0 : index
    %19 = vector.load %arg3[%c0_14, %c0_15, %c0_16] : memref<6x192x248xbf16, #tpu.memory_space<vmem>>, vector<1x192x248xbf16>
    %20 = vector.shape_cast %19 : vector<1x192x248xbf16> to vector<192x248xbf16>
    %cst_17 = arith.constant dense<0.000000e+00> : vector<31x248xf32>
    %21 = tpu.matmul %6, %20, %cst_17 {dimension_numbers = #tpu.dot_dimension_numbers<[1], [0], [0], [1], [0, 0, 1, 1], [], []>} : vector<31x192xbf16>, vector<192x248xbf16>, vector<31x248xf32> -> vector<31x248xf32>
    %c1_18 = arith.constant 1 : index
    %c0_19 = arith.constant 0 : index
    %c0_20 = arith.constant 0 : index
    %22 = vector.load %arg3[%c1_18, %c0_19, %c0_20] : memref<6x192x248xbf16, #tpu.memory_space<vmem>>, vector<1x192x248xbf16>
    %23 = vector.shape_cast %22 : vector<1x192x248xbf16> to vector<192x248xbf16>
    %cst_21 = arith.constant dense<0.000000e+00> : vector<31x248xf32>
    %24 = tpu.matmul %10, %23, %cst_21 {dimension_numbers = #tpu.dot_dimension_numbers<[1], [0], [0], [1], [0, 0, 1, 1], [], []>} : vector<31x192xbf16>, vector<192x248xbf16>, vector<31x248xf32> -> vector<31x248xf32>
    %25 = arith.addf %21, %24 : vector<31x248xf32>
    %c2_22 = arith.constant 2 : index
    %c0_23 = arith.constant 0 : index
    %c0_24 = arith.constant 0 : index
    %26 = vector.load %arg3[%c2_22, %c0_23, %c0_24] : memref<6x192x248xbf16, #tpu.memory_space<vmem>>, vector<1x192x248xbf16>
    %27 = vector.shape_cast %26 : vector<1x192x248xbf16> to vector<192x248xbf16>
    %cst_25 = arith.constant dense<0.000000e+00> : vector<31x248xf32>
    %28 = tpu.matmul %14, %27, %cst_25 {dimension_numbers = #tpu.dot_dimension_numbers<[1], [0], [0], [1], [0, 0, 1, 1], [], []>} : vector<31x192xbf16>, vector<192x248xbf16>, vector<31x248xf32> -> vector<31x248xf32>
    %29 = arith.addf %25, %28 : vector<31x248xf32>
    %c3_26 = arith.constant 3 : index
    %c0_27 = arith.constant 0 : index
    %c0_28 = arith.constant 0 : index
    %30 = vector.load %arg3[%c3_26, %c0_27, %c0_28] : memref<6x192x248xbf16, #tpu.memory_space<vmem>>, vector<1x192x248xbf16>
    %31 = vector.shape_cast %30 : vector<1x192x248xbf16> to vector<192x248xbf16>
    %cst_29 = arith.constant dense<0.000000e+00> : vector<31x248xf32>
    %32 = tpu.matmul %6, %31, %cst_29 {dimension_numbers = #tpu.dot_dimension_numbers<[1], [0], [0], [1], [0, 0, 1, 1], [], []>} : vector<31x192xbf16>, vector<192x248xbf16>, vector<31x248xf32> -> vector<31x248xf32>
    %c4 = arith.constant 4 : index
    %c0_30 = arith.constant 0 : index
    %c0_31 = arith.constant 0 : index
    %33 = vector.load %arg3[%c4, %c0_30, %c0_31] : memref<6x192x248xbf16, #tpu.memory_space<vmem>>, vector<1x192x248xbf16>
    %34 = vector.shape_cast %33 : vector<1x192x248xbf16> to vector<192x248xbf16>
    %cst_32 = arith.constant dense<0.000000e+00> : vector<31x248xf32>
    %35 = tpu.matmul %10, %34, %cst_32 {dimension_numbers = #tpu.dot_dimension_numbers<[1], [0], [0], [1], [0, 0, 1, 1], [], []>} : vector<31x192xbf16>, vector<192x248xbf16>, vector<31x248xf32> -> vector<31x248xf32>
    %36 = arith.addf %32, %35 : vector<31x248xf32>
    %c5 = arith.constant 5 : index
    %c0_33 = arith.constant 0 : index
    %c0_34 = arith.constant 0 : index
    %37 = vector.load %arg3[%c5, %c0_33, %c0_34] : memref<6x192x248xbf16, #tpu.memory_space<vmem>>, vector<1x192x248xbf16>
    %38 = vector.shape_cast %37 : vector<1x192x248xbf16> to vector<192x248xbf16>
    %cst_35 = arith.constant dense<0.000000e+00> : vector<31x248xf32>
    %39 = tpu.matmul %14, %38, %cst_35 {dimension_numbers = #tpu.dot_dimension_numbers<[1], [0], [0], [1], [0, 0, 1, 1], [], []>} : vector<31x192xbf16>, vector<192x248xbf16>, vector<31x248xf32> -> vector<31x248xf32>
    %40 = arith.addf %36, %39 : vector<31x248xf32>
    %41 = arith.maximumf %29, %40 : vector<31x248xf32>
    %c0_36 = arith.constant 0 : index
    %c0_37 = arith.constant 0 : index
    %c0_38 = arith.constant 0 : index
    %42 = vector.load %arg3[%c0_36, %c0_37, %c0_38] : memref<6x192x248xbf16, #tpu.memory_space<vmem>>, vector<1x192x248xbf16>
    %43 = vector.shape_cast %42 : vector<1x192x248xbf16> to vector<192x248xbf16>
    %cst_39 = arith.constant dense<0.000000e+00> : vector<31x248xf32>
    %44 = tpu.matmul %10, %43, %cst_39 {dimension_numbers = #tpu.dot_dimension_numbers<[1], [0], [0], [1], [0, 0, 1, 1], [], []>} : vector<31x192xbf16>, vector<192x248xbf16>, vector<31x248xf32> -> vector<31x248xf32>
    %c1_40 = arith.constant 1 : index
    %c0_41 = arith.constant 0 : index
    %c0_42 = arith.constant 0 : index
    %45 = vector.load %arg3[%c1_40, %c0_41, %c0_42] : memref<6x192x248xbf16, #tpu.memory_space<vmem>>, vector<1x192x248xbf16>
    %46 = vector.shape_cast %45 : vector<1x192x248xbf16> to vector<192x248xbf16>
    %cst_43 = arith.constant dense<0.000000e+00> : vector<31x248xf32>
    %47 = tpu.matmul %14, %46, %cst_43 {dimension_numbers = #tpu.dot_dimension_numbers<[1], [0], [0], [1], [0, 0, 1, 1], [], []>} : vector<31x192xbf16>, vector<192x248xbf16>, vector<31x248xf32> -> vector<31x248xf32>
    %48 = arith.addf %44, %47 : vector<31x248xf32>
    %c2_44 = arith.constant 2 : index
    %c0_45 = arith.constant 0 : index
    %c0_46 = arith.constant 0 : index
    %49 = vector.load %arg3[%c2_44, %c0_45, %c0_46] : memref<6x192x248xbf16, #tpu.memory_space<vmem>>, vector<1x192x248xbf16>
    %50 = vector.shape_cast %49 : vector<1x192x248xbf16> to vector<192x248xbf16>
    %cst_47 = arith.constant dense<0.000000e+00> : vector<31x248xf32>
    %51 = tpu.matmul %18, %50, %cst_47 {dimension_numbers = #tpu.dot_dimension_numbers<[1], [0], [0], [1], [0, 0, 1, 1], [], []>} : vector<31x192xbf16>, vector<192x248xbf16>, vector<31x248xf32> -> vector<31x248xf32>
    %52 = arith.addf %48, %51 : vector<31x248xf32>
    %53 = arith.maximumf %41, %52 : vector<31x248xf32>
    %c3_48 = arith.constant 3 : index
    %c0_49 = arith.constant 0 : index
    %c0_50 = arith.constant 0 : index
    %54 = vector.load %arg3[%c3_48, %c0_49, %c0_50] : memref<6x192x248xbf16, #tpu.memory_space<vmem>>, vector<1x192x248xbf16>
    %55 = vector.shape_cast %54 : vector<1x192x248xbf16> to vector<192x248xbf16>
    %cst_51 = arith.constant dense<0.000000e+00> : vector<31x248xf32>
    %56 = tpu.matmul %10, %55, %cst_51 {dimension_numbers = #tpu.dot_dimension_numbers<[1], [0], [0], [1], [0, 0, 1, 1], [], []>} : vector<31x192xbf16>, vector<192x248xbf16>, vector<31x248xf32> -> vector<31x248xf32>
    %c4_52 = arith.constant 4 : index
    %c0_53 = arith.constant 0 : index
    %c0_54 = arith.constant 0 : index
    %57 = vector.load %arg3[%c4_52, %c0_53, %c0_54] : memref<6x192x248xbf16, #tpu.memory_space<vmem>>, vector<1x192x248xbf16>
    %58 = vector.shape_cast %57 : vector<1x192x248xbf16> to vector<192x248xbf16>
    %cst_55 = arith.constant dense<0.000000e+00> : vector<31x248xf32>
    %59 = tpu.matmul %14, %58, %cst_55 {dimension_numbers = #tpu.dot_dimension_numbers<[1], [0], [0], [1], [0, 0, 1, 1], [], []>} : vector<31x192xbf16>, vector<192x248xbf16>, vector<31x248xf32> -> vector<31x248xf32>
    %60 = arith.addf %56, %59 : vector<31x248xf32>
    %c5_56 = arith.constant 5 : index
    %c0_57 = arith.constant 0 : index
    %c0_58 = arith.constant 0 : index
    %61 = vector.load %arg3[%c5_56, %c0_57, %c0_58] : memref<6x192x248xbf16, #tpu.memory_space<vmem>>, vector<1x192x248xbf16>
    %62 = vector.shape_cast %61 : vector<1x192x248xbf16> to vector<192x248xbf16>
    %cst_59 = arith.constant dense<0.000000e+00> : vector<31x248xf32>
    %63 = tpu.matmul %18, %62, %cst_59 {dimension_numbers = #tpu.dot_dimension_numbers<[1], [0], [0], [1], [0, 0, 1, 1], [], []>} : vector<31x192xbf16>, vector<192x248xbf16>, vector<31x248xf32> -> vector<31x248xf32>
    %64 = arith.addf %60, %63 : vector<31x248xf32>
    %65 = arith.maximumf %53, %64 : vector<31x248xf32>
    %c0_60 = arith.constant 0 : index
    %c0_61 = arith.constant 0 : index
    %66 = vector.load %arg4[%c0_60, %c0_61] : memref<1x248xf32, #tpu.memory_space<vmem>>, vector<1x248xf32>
    %67 = vector.broadcast %66 : vector<1x248xf32> to vector<31x248xf32>
    %68 = arith.addf %65, %67 : vector<31x248xf32>
    %cst_62 = arith.constant 0.000000e+00 : f32
    %69 = vector.broadcast %cst_62 : f32 to vector<31x248xf32>
    %70 = arith.maximumf %68, %69 : vector<31x248xf32>
    %c0_63 = arith.constant 0 : index
    %c0_64 = arith.constant 0 : index
    %c0_65 = arith.constant 0 : index
    %71 = vector.load %arg5[%c0_63, %c0_64, %c0_65] : memref<1x31x248xf32, #tpu.memory_space<vmem>>, vector<1x31x248xf32>
    %72 = vector.shape_cast %71 : vector<1x31x248xf32> to vector<31x248xf32>
    %73 = vector.shape_cast %70 : vector<31x248xf32> to vector<1x31x248xf32>
    tpu.vector_store %arg5[%c0_63, %c0_64, %c0_65], %73 {strides = array<i32>} : memref<1x31x248xf32, #tpu.memory_space<vmem>>, vector<1x31x248xf32>,
    return
  }
  func.func @transform_0(%arg0: i32) -> (i32, i32, i32) {
    %c0_i32 = arith.constant 0 : i32
    %c0_i32_0 = arith.constant 0 : i32
    %c0_i32_1 = arith.constant 0 : i32
    return %arg0, %c0_i32, %c0_i32_0 : i32, i32, i32
  }
  func.func @transform_1(%arg0: i32) -> (i32, i32, i32) {
    %c0_i32 = arith.constant 0 : i32
    %c0_i32_0 = arith.constant 0 : i32
    %c0_i32_1 = arith.constant 0 : i32
    %c0_i32_2 = arith.constant 0 : i32
    return %c0_i32, %c0_i32_0, %c0_i32_1 : i32, i32, i32
  }
  func.func @transform_2(%arg0: i32) -> (i32, i32, i32) {
    %c0_i32 = arith.constant 0 : i32
    %c0_i32_0 = arith.constant 0 : i32
    %c0_i32_1 = arith.constant 0 : i32
    %c0_i32_2 = arith.constant 0 : i32
    return %c0_i32, %c0_i32_0, %c0_i32_1 : i32, i32, i32
  }
  func.func @transform_3(%arg0: i32) -> (i32, i32) {
    %c0_i32 = arith.constant 0 : i32
    %c0_i32_0 = arith.constant 0 : i32
    %c0_i32_1 = arith.constant 0 : i32
    return %c0_i32, %c0_i32_0 : i32, i32
  }
  func.func @transform_4(%arg0: i32) -> (i32, i32, i32) {
    %c0_i32 = arith.constant 0 : i32
    %c0_i32_0 = arith.constant 0 : i32
    %c0_i32_1 = arith.constant 0 : i32
    return %arg0, %c0_i32, %c0_i32_0 : i32, i32, i32
  }
}

module attributes {stable_mosaic.version = 11 : i64} {
  func.func @_conv_pool_kernel(%arg0: i32, %arg1: memref<1x31x248xf32, #tpu.memory_space<vmem>>, %arg2: memref<4x14x31xbf16, #tpu.memory_space<vmem>>, %arg3: memref<6x248x224xbf16, #tpu.memory_space<vmem>>, %arg4: memref<1x224xf32, #tpu.memory_space<vmem>>, %arg5: memref<1x14x224xf32, #tpu.memory_space<vmem>>) attributes {dimension_semantics = [#tpu.dimension_semantics<parallel>], iteration_bounds = array<i64: 2>, scalar_prefetch = 0 : i64, scratch_operands = 0 : i64, tpu.core_type = #tpu.core_type<tc>, window_params = [{transform_indices = @transform_0, window_bounds = array<i64: 1, 31, 248>}, {pipeline_mode = #tpu.pipeline_mode<synchronous>, transform_indices = @transform_1, window_bounds = array<i64: 4, 14, 31>}, {pipeline_mode = #tpu.pipeline_mode<synchronous>, transform_indices = @transform_2, window_bounds = array<i64: 6, 248, 224>}, {pipeline_mode = #tpu.pipeline_mode<synchronous>, transform_indices = @transform_3, window_bounds = array<i64: 1, 224>}, {transform_indices = @transform_4, window_bounds = array<i64: 1, 14, 224>}]} {
    %c0 = arith.constant 0 : index
    %c0_0 = arith.constant 0 : index
    %c0_1 = arith.constant 0 : index
    %0 = vector.load %arg1[%c0, %c0_0, %c0_1] : memref<1x31x248xf32, #tpu.memory_space<vmem>>, vector<1x31x248xf32>
    %1 = vector.shape_cast %0 : vector<1x31x248xf32> to vector<31x248xf32>
    %2 = arith.truncf %1 : vector<31x248xf32> to vector<31x248xbf16>
    %c0_2 = arith.constant 0 : index
    %c0_3 = arith.constant 0 : index
    %c0_4 = arith.constant 0 : index
    %3 = vector.load %arg2[%c0_2, %c0_3, %c0_4] : memref<4x14x31xbf16, #tpu.memory_space<vmem>>, vector<1x14x31xbf16>
    %4 = vector.shape_cast %3 : vector<1x14x31xbf16> to vector<14x31xbf16>
    %cst = arith.constant dense<0.000000e+00> : vector<14x248xf32>
    %5 = tpu.matmul %4, %2, %cst {dimension_numbers = #tpu.dot_dimension_numbers<[1], [0], [0], [1], [0, 0, 1, 1], [], []>} : vector<14x31xbf16>, vector<31x248xbf16>, vector<14x248xf32> -> vector<14x248xf32>
    %6 = arith.truncf %5 : vector<14x248xf32> to vector<14x248xbf16>
    %c1 = arith.constant 1 : index
    %c0_5 = arith.constant 0 : index
    %c0_6 = arith.constant 0 : index
    %7 = vector.load %arg2[%c1, %c0_5, %c0_6] : memref<4x14x31xbf16, #tpu.memory_space<vmem>>, vector<1x14x31xbf16>
    %8 = vector.shape_cast %7 : vector<1x14x31xbf16> to vector<14x31xbf16>
    %cst_7 = arith.constant dense<0.000000e+00> : vector<14x248xf32>
    %9 = tpu.matmul %8, %2, %cst_7 {dimension_numbers = #tpu.dot_dimension_numbers<[1], [0], [0], [1], [0, 0, 1, 1], [], []>} : vector<14x31xbf16>, vector<31x248xbf16>, vector<14x248xf32> -> vector<14x248xf32>
    %10 = arith.truncf %9 : vector<14x248xf32> to vector<14x248xbf16>
    %c2 = arith.constant 2 : index
    %c0_8 = arith.constant 0 : index
    %c0_9 = arith.constant 0 : index
    %11 = vector.load %arg2[%c2, %c0_8, %c0_9] : memref<4x14x31xbf16, #tpu.memory_space<vmem>>, vector<1x14x31xbf16>
    %12 = vector.shape_cast %11 : vector<1x14x31xbf16> to vector<14x31xbf16>
    %cst_10 = arith.constant dense<0.000000e+00> : vector<14x248xf32>
    %13 = tpu.matmul %12, %2, %cst_10 {dimension_numbers = #tpu.dot_dimension_numbers<[1], [0], [0], [1], [0, 0, 1, 1], [], []>} : vector<14x31xbf16>, vector<31x248xbf16>, vector<14x248xf32> -> vector<14x248xf32>
    %14 = arith.truncf %13 : vector<14x248xf32> to vector<14x248xbf16>
    %c3 = arith.constant 3 : index
    %c0_11 = arith.constant 0 : index
    %c0_12 = arith.constant 0 : index
    %15 = vector.load %arg2[%c3, %c0_11, %c0_12] : memref<4x14x31xbf16, #tpu.memory_space<vmem>>, vector<1x14x31xbf16>
    %16 = vector.shape_cast %15 : vector<1x14x31xbf16> to vector<14x31xbf16>
    %cst_13 = arith.constant dense<0.000000e+00> : vector<14x248xf32>
    %17 = tpu.matmul %16, %2, %cst_13 {dimension_numbers = #tpu.dot_dimension_numbers<[1], [0], [0], [1], [0, 0, 1, 1], [], []>} : vector<14x31xbf16>, vector<31x248xbf16>, vector<14x248xf32> -> vector<14x248xf32>
    %18 = arith.truncf %17 : vector<14x248xf32> to vector<14x248xbf16>
    %c0_14 = arith.constant 0 : index
    %c0_15 = arith.constant 0 : index
    %c0_16 = arith.constant 0 : index
    %19 = vector.load %arg3[%c0_14, %c0_15, %c0_16] : memref<6x248x224xbf16, #tpu.memory_space<vmem>>, vector<1x248x224xbf16>
    %20 = vector.shape_cast %19 : vector<1x248x224xbf16> to vector<248x224xbf16>
    %cst_17 = arith.constant dense<0.000000e+00> : vector<14x224xf32>
    %21 = tpu.matmul %6, %20, %cst_17 {dimension_numbers = #tpu.dot_dimension_numbers<[1], [0], [0], [1], [0, 0, 1, 1], [], []>} : vector<14x248xbf16>, vector<248x224xbf16>, vector<14x224xf32> -> vector<14x224xf32>
    %c1_18 = arith.constant 1 : index
    %c0_19 = arith.constant 0 : index
    %c0_20 = arith.constant 0 : index
    %22 = vector.load %arg3[%c1_18, %c0_19, %c0_20] : memref<6x248x224xbf16, #tpu.memory_space<vmem>>, vector<1x248x224xbf16>
    %23 = vector.shape_cast %22 : vector<1x248x224xbf16> to vector<248x224xbf16>
    %cst_21 = arith.constant dense<0.000000e+00> : vector<14x224xf32>
    %24 = tpu.matmul %10, %23, %cst_21 {dimension_numbers = #tpu.dot_dimension_numbers<[1], [0], [0], [1], [0, 0, 1, 1], [], []>} : vector<14x248xbf16>, vector<248x224xbf16>, vector<14x224xf32> -> vector<14x224xf32>
    %25 = arith.addf %21, %24 : vector<14x224xf32>
    %c2_22 = arith.constant 2 : index
    %c0_23 = arith.constant 0 : index
    %c0_24 = arith.constant 0 : index
    %26 = vector.load %arg3[%c2_22, %c0_23, %c0_24] : memref<6x248x224xbf16, #tpu.memory_space<vmem>>, vector<1x248x224xbf16>
    %27 = vector.shape_cast %26 : vector<1x248x224xbf16> to vector<248x224xbf16>
    %cst_25 = arith.constant dense<0.000000e+00> : vector<14x224xf32>
    %28 = tpu.matmul %14, %27, %cst_25 {dimension_numbers = #tpu.dot_dimension_numbers<[1], [0], [0], [1], [0, 0, 1, 1], [], []>} : vector<14x248xbf16>, vector<248x224xbf16>, vector<14x224xf32> -> vector<14x224xf32>
    %29 = arith.addf %25, %28 : vector<14x224xf32>
    %c3_26 = arith.constant 3 : index
    %c0_27 = arith.constant 0 : index
    %c0_28 = arith.constant 0 : index
    %30 = vector.load %arg3[%c3_26, %c0_27, %c0_28] : memref<6x248x224xbf16, #tpu.memory_space<vmem>>, vector<1x248x224xbf16>
    %31 = vector.shape_cast %30 : vector<1x248x224xbf16> to vector<248x224xbf16>
    %cst_29 = arith.constant dense<0.000000e+00> : vector<14x224xf32>
    %32 = tpu.matmul %6, %31, %cst_29 {dimension_numbers = #tpu.dot_dimension_numbers<[1], [0], [0], [1], [0, 0, 1, 1], [], []>} : vector<14x248xbf16>, vector<248x224xbf16>, vector<14x224xf32> -> vector<14x224xf32>
    %c4 = arith.constant 4 : index
    %c0_30 = arith.constant 0 : index
    %c0_31 = arith.constant 0 : index
    %33 = vector.load %arg3[%c4, %c0_30, %c0_31] : memref<6x248x224xbf16, #tpu.memory_space<vmem>>, vector<1x248x224xbf16>
    %34 = vector.shape_cast %33 : vector<1x248x224xbf16> to vector<248x224xbf16>
    %cst_32 = arith.constant dense<0.000000e+00> : vector<14x224xf32>
    %35 = tpu.matmul %10, %34, %cst_32 {dimension_numbers = #tpu.dot_dimension_numbers<[1], [0], [0], [1], [0, 0, 1, 1], [], []>} : vector<14x248xbf16>, vector<248x224xbf16>, vector<14x224xf32> -> vector<14x224xf32>
    %36 = arith.addf %32, %35 : vector<14x224xf32>
    %c5 = arith.constant 5 : index
    %c0_33 = arith.constant 0 : index
    %c0_34 = arith.constant 0 : index
    %37 = vector.load %arg3[%c5, %c0_33, %c0_34] : memref<6x248x224xbf16, #tpu.memory_space<vmem>>, vector<1x248x224xbf16>
    %38 = vector.shape_cast %37 : vector<1x248x224xbf16> to vector<248x224xbf16>
    %cst_35 = arith.constant dense<0.000000e+00> : vector<14x224xf32>
    %39 = tpu.matmul %14, %38, %cst_35 {dimension_numbers = #tpu.dot_dimension_numbers<[1], [0], [0], [1], [0, 0, 1, 1], [], []>} : vector<14x248xbf16>, vector<248x224xbf16>, vector<14x224xf32> -> vector<14x224xf32>
    %40 = arith.addf %36, %39 : vector<14x224xf32>
    %41 = arith.maximumf %29, %40 : vector<14x224xf32>
    %c0_36 = arith.constant 0 : index
    %c0_37 = arith.constant 0 : index
    %c0_38 = arith.constant 0 : index
    %42 = vector.load %arg3[%c0_36, %c0_37, %c0_38] : memref<6x248x224xbf16, #tpu.memory_space<vmem>>, vector<1x248x224xbf16>
    %43 = vector.shape_cast %42 : vector<1x248x224xbf16> to vector<248x224xbf16>
    %cst_39 = arith.constant dense<0.000000e+00> : vector<14x224xf32>
    %44 = tpu.matmul %10, %43, %cst_39 {dimension_numbers = #tpu.dot_dimension_numbers<[1], [0], [0], [1], [0, 0, 1, 1], [], []>} : vector<14x248xbf16>, vector<248x224xbf16>, vector<14x224xf32> -> vector<14x224xf32>
    %c1_40 = arith.constant 1 : index
    %c0_41 = arith.constant 0 : index
    %c0_42 = arith.constant 0 : index
    %45 = vector.load %arg3[%c1_40, %c0_41, %c0_42] : memref<6x248x224xbf16, #tpu.memory_space<vmem>>, vector<1x248x224xbf16>
    %46 = vector.shape_cast %45 : vector<1x248x224xbf16> to vector<248x224xbf16>
    %cst_43 = arith.constant dense<0.000000e+00> : vector<14x224xf32>
    %47 = tpu.matmul %14, %46, %cst_43 {dimension_numbers = #tpu.dot_dimension_numbers<[1], [0], [0], [1], [0, 0, 1, 1], [], []>} : vector<14x248xbf16>, vector<248x224xbf16>, vector<14x224xf32> -> vector<14x224xf32>
    %48 = arith.addf %44, %47 : vector<14x224xf32>
    %c2_44 = arith.constant 2 : index
    %c0_45 = arith.constant 0 : index
    %c0_46 = arith.constant 0 : index
    %49 = vector.load %arg3[%c2_44, %c0_45, %c0_46] : memref<6x248x224xbf16, #tpu.memory_space<vmem>>, vector<1x248x224xbf16>
    %50 = vector.shape_cast %49 : vector<1x248x224xbf16> to vector<248x224xbf16>
    %cst_47 = arith.constant dense<0.000000e+00> : vector<14x224xf32>
    %51 = tpu.matmul %18, %50, %cst_47 {dimension_numbers = #tpu.dot_dimension_numbers<[1], [0], [0], [1], [0, 0, 1, 1], [], []>} : vector<14x248xbf16>, vector<248x224xbf16>, vector<14x224xf32> -> vector<14x224xf32>
    %52 = arith.addf %48, %51 : vector<14x224xf32>
    %53 = arith.maximumf %41, %52 : vector<14x224xf32>
    %c3_48 = arith.constant 3 : index
    %c0_49 = arith.constant 0 : index
    %c0_50 = arith.constant 0 : index
    %54 = vector.load %arg3[%c3_48, %c0_49, %c0_50] : memref<6x248x224xbf16, #tpu.memory_space<vmem>>, vector<1x248x224xbf16>
    %55 = vector.shape_cast %54 : vector<1x248x224xbf16> to vector<248x224xbf16>
    %cst_51 = arith.constant dense<0.000000e+00> : vector<14x224xf32>
    %56 = tpu.matmul %10, %55, %cst_51 {dimension_numbers = #tpu.dot_dimension_numbers<[1], [0], [0], [1], [0, 0, 1, 1], [], []>} : vector<14x248xbf16>, vector<248x224xbf16>, vector<14x224xf32> -> vector<14x224xf32>
    %c4_52 = arith.constant 4 : index
    %c0_53 = arith.constant 0 : index
    %c0_54 = arith.constant 0 : index
    %57 = vector.load %arg3[%c4_52, %c0_53, %c0_54] : memref<6x248x224xbf16, #tpu.memory_space<vmem>>, vector<1x248x224xbf16>
    %58 = vector.shape_cast %57 : vector<1x248x224xbf16> to vector<248x224xbf16>
    %cst_55 = arith.constant dense<0.000000e+00> : vector<14x224xf32>
    %59 = tpu.matmul %14, %58, %cst_55 {dimension_numbers = #tpu.dot_dimension_numbers<[1], [0], [0], [1], [0, 0, 1, 1], [], []>} : vector<14x248xbf16>, vector<248x224xbf16>, vector<14x224xf32> -> vector<14x224xf32>
    %60 = arith.addf %56, %59 : vector<14x224xf32>
    %c5_56 = arith.constant 5 : index
    %c0_57 = arith.constant 0 : index
    %c0_58 = arith.constant 0 : index
    %61 = vector.load %arg3[%c5_56, %c0_57, %c0_58] : memref<6x248x224xbf16, #tpu.memory_space<vmem>>, vector<1x248x224xbf16>
    %62 = vector.shape_cast %61 : vector<1x248x224xbf16> to vector<248x224xbf16>
    %cst_59 = arith.constant dense<0.000000e+00> : vector<14x224xf32>
    %63 = tpu.matmul %18, %62, %cst_59 {dimension_numbers = #tpu.dot_dimension_numbers<[1], [0], [0], [1], [0, 0, 1, 1], [], []>} : vector<14x248xbf16>, vector<248x224xbf16>, vector<14x224xf32> -> vector<14x224xf32>
    %64 = arith.addf %60, %63 : vector<14x224xf32>
    %65 = arith.maximumf %53, %64 : vector<14x224xf32>
    %c0_60 = arith.constant 0 : index
    %c0_61 = arith.constant 0 : index
    %66 = vector.load %arg4[%c0_60, %c0_61] : memref<1x224xf32, #tpu.memory_space<vmem>>, vector<1x224xf32>
    %67 = vector.broadcast %66 : vector<1x224xf32> to vector<14x224xf32>
    %68 = arith.addf %65, %67 : vector<14x224xf32>
    %cst_62 = arith.constant 0.000000e+00 : f32
    %69 = vector.broadcast %cst_62 : f32 to vector<14x224xf32>
    %70 = arith.maximumf %68, %69 : vector<14x224xf32>
    %c0_63 = arith.constant 0 : index
    %c0_64 = arith.constant 0 : index
    %c0_65 = arith.constant 0 : index
    %71 = vector.load %arg5[%c0_63, %c0_64, %c0_65] : memref<1x14x224xf32, #tpu.memory_space<vmem>>, vector<1x14x224xf32>
    %72 = vector.shape_cast %71 : vector<1x14x224xf32> to vector<14x224xf32>
    %73 = vector.shape_cast %70 : vector<14x224xf32> to vector<1x14x224xf32>
    tpu.vector_store %arg5[%c0_63, %c0_64, %c0_65], %73 {strides = array<i32>} : memref<1x14x224xf32, #tpu.memory_space<vmem>>, vector<1x14x224xf32>,
    return
  }
  func.func @transform_0(%arg0: i32) -> (i32, i32, i32) {
    %c0_i32 = arith.constant 0 : i32
    %c0_i32_0 = arith.constant 0 : i32
    %c0_i32_1 = arith.constant 0 : i32
    return %arg0, %c0_i32, %c0_i32_0 : i32, i32, i32
  }
  func.func @transform_1(%arg0: i32) -> (i32, i32, i32) {
    %c0_i32 = arith.constant 0 : i32
    %c0_i32_0 = arith.constant 0 : i32
    %c0_i32_1 = arith.constant 0 : i32
    %c0_i32_2 = arith.constant 0 : i32
    return %c0_i32, %c0_i32_0, %c0_i32_1 : i32, i32, i32
  }
  func.func @transform_2(%arg0: i32) -> (i32, i32, i32) {
    %c0_i32 = arith.constant 0 : i32
    %c0_i32_0 = arith.constant 0 : i32
    %c0_i32_1 = arith.constant 0 : i32
    %c0_i32_2 = arith.constant 0 : i32
    return %c0_i32, %c0_i32_0, %c0_i32_1 : i32, i32, i32
  }
  func.func @transform_3(%arg0: i32) -> (i32, i32) {
    %c0_i32 = arith.constant 0 : i32
    %c0_i32_0 = arith.constant 0 : i32
    %c0_i32_1 = arith.constant 0 : i32
    return %c0_i32, %c0_i32_0 : i32, i32
  }
  func.func @transform_4(%arg0: i32) -> (i32, i32, i32) {
    %c0_i32 = arith.constant 0 : i32
    %c0_i32_0 = arith.constant 0 : i32
    %c0_i32_1 = arith.constant 0 : i32
    return %arg0, %c0_i32, %c0_i32_0 : i32, i32, i32
  }
}

module attributes {stable_mosaic.version = 11 : i64} {
  func.func @_conv_pool_kernel(%arg0: i32, %arg1: memref<1x14x224xf32, #tpu.memory_space<vmem>>, %arg2: memref<4x6x14xbf16, #tpu.memory_space<vmem>>, %arg3: memref<6x224x192xbf16, #tpu.memory_space<vmem>>, %arg4: memref<1x192xf32, #tpu.memory_space<vmem>>, %arg5: memref<1x6x192xf32, #tpu.memory_space<vmem>>) attributes {dimension_semantics = [#tpu.dimension_semantics<parallel>], iteration_bounds = array<i64: 2>, scalar_prefetch = 0 : i64, scratch_operands = 0 : i64, tpu.core_type = #tpu.core_type<tc>, window_params = [{transform_indices = @transform_0, window_bounds = array<i64: 1, 14, 224>}, {pipeline_mode = #tpu.pipeline_mode<synchronous>, transform_indices = @transform_1, window_bounds = array<i64: 4, 6, 14>}, {pipeline_mode = #tpu.pipeline_mode<synchronous>, transform_indices = @transform_2, window_bounds = array<i64: 6, 224, 192>}, {pipeline_mode = #tpu.pipeline_mode<synchronous>, transform_indices = @transform_3, window_bounds = array<i64: 1, 192>}, {transform_indices = @transform_4, window_bounds = array<i64: 1, 6, 192>}]} {
    %c0 = arith.constant 0 : index
    %c0_0 = arith.constant 0 : index
    %c0_1 = arith.constant 0 : index
    %0 = vector.load %arg1[%c0, %c0_0, %c0_1] : memref<1x14x224xf32, #tpu.memory_space<vmem>>, vector<1x14x224xf32>
    %1 = vector.shape_cast %0 : vector<1x14x224xf32> to vector<14x224xf32>
    %2 = arith.truncf %1 : vector<14x224xf32> to vector<14x224xbf16>
    %c0_2 = arith.constant 0 : index
    %c0_3 = arith.constant 0 : index
    %c0_4 = arith.constant 0 : index
    %3 = vector.load %arg2[%c0_2, %c0_3, %c0_4] : memref<4x6x14xbf16, #tpu.memory_space<vmem>>, vector<1x6x14xbf16>
    %4 = vector.shape_cast %3 : vector<1x6x14xbf16> to vector<6x14xbf16>
    %cst = arith.constant dense<0.000000e+00> : vector<6x224xf32>
    %5 = tpu.matmul %4, %2, %cst {dimension_numbers = #tpu.dot_dimension_numbers<[1], [0], [0], [1], [0, 0, 1, 1], [], []>} : vector<6x14xbf16>, vector<14x224xbf16>, vector<6x224xf32> -> vector<6x224xf32>
    %6 = arith.truncf %5 : vector<6x224xf32> to vector<6x224xbf16>
    %c1 = arith.constant 1 : index
    %c0_5 = arith.constant 0 : index
    %c0_6 = arith.constant 0 : index
    %7 = vector.load %arg2[%c1, %c0_5, %c0_6] : memref<4x6x14xbf16, #tpu.memory_space<vmem>>, vector<1x6x14xbf16>
    %8 = vector.shape_cast %7 : vector<1x6x14xbf16> to vector<6x14xbf16>
    %cst_7 = arith.constant dense<0.000000e+00> : vector<6x224xf32>
    %9 = tpu.matmul %8, %2, %cst_7 {dimension_numbers = #tpu.dot_dimension_numbers<[1], [0], [0], [1], [0, 0, 1, 1], [], []>} : vector<6x14xbf16>, vector<14x224xbf16>, vector<6x224xf32> -> vector<6x224xf32>
    %10 = arith.truncf %9 : vector<6x224xf32> to vector<6x224xbf16>
    %c2 = arith.constant 2 : index
    %c0_8 = arith.constant 0 : index
    %c0_9 = arith.constant 0 : index
    %11 = vector.load %arg2[%c2, %c0_8, %c0_9] : memref<4x6x14xbf16, #tpu.memory_space<vmem>>, vector<1x6x14xbf16>
    %12 = vector.shape_cast %11 : vector<1x6x14xbf16> to vector<6x14xbf16>
    %cst_10 = arith.constant dense<0.000000e+00> : vector<6x224xf32>
    %13 = tpu.matmul %12, %2, %cst_10 {dimension_numbers = #tpu.dot_dimension_numbers<[1], [0], [0], [1], [0, 0, 1, 1], [], []>} : vector<6x14xbf16>, vector<14x224xbf16>, vector<6x224xf32> -> vector<6x224xf32>
    %14 = arith.truncf %13 : vector<6x224xf32> to vector<6x224xbf16>
    %c3 = arith.constant 3 : index
    %c0_11 = arith.constant 0 : index
    %c0_12 = arith.constant 0 : index
    %15 = vector.load %arg2[%c3, %c0_11, %c0_12] : memref<4x6x14xbf16, #tpu.memory_space<vmem>>, vector<1x6x14xbf16>
    %16 = vector.shape_cast %15 : vector<1x6x14xbf16> to vector<6x14xbf16>
    %cst_13 = arith.constant dense<0.000000e+00> : vector<6x224xf32>
    %17 = tpu.matmul %16, %2, %cst_13 {dimension_numbers = #tpu.dot_dimension_numbers<[1], [0], [0], [1], [0, 0, 1, 1], [], []>} : vector<6x14xbf16>, vector<14x224xbf16>, vector<6x224xf32> -> vector<6x224xf32>
    %18 = arith.truncf %17 : vector<6x224xf32> to vector<6x224xbf16>
    %c0_14 = arith.constant 0 : index
    %c0_15 = arith.constant 0 : index
    %c0_16 = arith.constant 0 : index
    %19 = vector.load %arg3[%c0_14, %c0_15, %c0_16] : memref<6x224x192xbf16, #tpu.memory_space<vmem>>, vector<1x224x192xbf16>
    %20 = vector.shape_cast %19 : vector<1x224x192xbf16> to vector<224x192xbf16>
    %cst_17 = arith.constant dense<0.000000e+00> : vector<6x192xf32>
    %21 = tpu.matmul %6, %20, %cst_17 {dimension_numbers = #tpu.dot_dimension_numbers<[1], [0], [0], [1], [0, 0, 1, 1], [], []>} : vector<6x224xbf16>, vector<224x192xbf16>, vector<6x192xf32> -> vector<6x192xf32>
    %c1_18 = arith.constant 1 : index
    %c0_19 = arith.constant 0 : index
    %c0_20 = arith.constant 0 : index
    %22 = vector.load %arg3[%c1_18, %c0_19, %c0_20] : memref<6x224x192xbf16, #tpu.memory_space<vmem>>, vector<1x224x192xbf16>
    %23 = vector.shape_cast %22 : vector<1x224x192xbf16> to vector<224x192xbf16>
    %cst_21 = arith.constant dense<0.000000e+00> : vector<6x192xf32>
    %24 = tpu.matmul %10, %23, %cst_21 {dimension_numbers = #tpu.dot_dimension_numbers<[1], [0], [0], [1], [0, 0, 1, 1], [], []>} : vector<6x224xbf16>, vector<224x192xbf16>, vector<6x192xf32> -> vector<6x192xf32>
    %25 = arith.addf %21, %24 : vector<6x192xf32>
    %c2_22 = arith.constant 2 : index
    %c0_23 = arith.constant 0 : index
    %c0_24 = arith.constant 0 : index
    %26 = vector.load %arg3[%c2_22, %c0_23, %c0_24] : memref<6x224x192xbf16, #tpu.memory_space<vmem>>, vector<1x224x192xbf16>
    %27 = vector.shape_cast %26 : vector<1x224x192xbf16> to vector<224x192xbf16>
    %cst_25 = arith.constant dense<0.000000e+00> : vector<6x192xf32>
    %28 = tpu.matmul %14, %27, %cst_25 {dimension_numbers = #tpu.dot_dimension_numbers<[1], [0], [0], [1], [0, 0, 1, 1], [], []>} : vector<6x224xbf16>, vector<224x192xbf16>, vector<6x192xf32> -> vector<6x192xf32>
    %29 = arith.addf %25, %28 : vector<6x192xf32>
    %c3_26 = arith.constant 3 : index
    %c0_27 = arith.constant 0 : index
    %c0_28 = arith.constant 0 : index
    %30 = vector.load %arg3[%c3_26, %c0_27, %c0_28] : memref<6x224x192xbf16, #tpu.memory_space<vmem>>, vector<1x224x192xbf16>
    %31 = vector.shape_cast %30 : vector<1x224x192xbf16> to vector<224x192xbf16>
    %cst_29 = arith.constant dense<0.000000e+00> : vector<6x192xf32>
    %32 = tpu.matmul %6, %31, %cst_29 {dimension_numbers = #tpu.dot_dimension_numbers<[1], [0], [0], [1], [0, 0, 1, 1], [], []>} : vector<6x224xbf16>, vector<224x192xbf16>, vector<6x192xf32> -> vector<6x192xf32>
    %c4 = arith.constant 4 : index
    %c0_30 = arith.constant 0 : index
    %c0_31 = arith.constant 0 : index
    %33 = vector.load %arg3[%c4, %c0_30, %c0_31] : memref<6x224x192xbf16, #tpu.memory_space<vmem>>, vector<1x224x192xbf16>
    %34 = vector.shape_cast %33 : vector<1x224x192xbf16> to vector<224x192xbf16>
    %cst_32 = arith.constant dense<0.000000e+00> : vector<6x192xf32>
    %35 = tpu.matmul %10, %34, %cst_32 {dimension_numbers = #tpu.dot_dimension_numbers<[1], [0], [0], [1], [0, 0, 1, 1], [], []>} : vector<6x224xbf16>, vector<224x192xbf16>, vector<6x192xf32> -> vector<6x192xf32>
    %36 = arith.addf %32, %35 : vector<6x192xf32>
    %c5 = arith.constant 5 : index
    %c0_33 = arith.constant 0 : index
    %c0_34 = arith.constant 0 : index
    %37 = vector.load %arg3[%c5, %c0_33, %c0_34] : memref<6x224x192xbf16, #tpu.memory_space<vmem>>, vector<1x224x192xbf16>
    %38 = vector.shape_cast %37 : vector<1x224x192xbf16> to vector<224x192xbf16>
    %cst_35 = arith.constant dense<0.000000e+00> : vector<6x192xf32>
    %39 = tpu.matmul %14, %38, %cst_35 {dimension_numbers = #tpu.dot_dimension_numbers<[1], [0], [0], [1], [0, 0, 1, 1], [], []>} : vector<6x224xbf16>, vector<224x192xbf16>, vector<6x192xf32> -> vector<6x192xf32>
    %40 = arith.addf %36, %39 : vector<6x192xf32>
    %41 = arith.maximumf %29, %40 : vector<6x192xf32>
    %c0_36 = arith.constant 0 : index
    %c0_37 = arith.constant 0 : index
    %c0_38 = arith.constant 0 : index
    %42 = vector.load %arg3[%c0_36, %c0_37, %c0_38] : memref<6x224x192xbf16, #tpu.memory_space<vmem>>, vector<1x224x192xbf16>
    %43 = vector.shape_cast %42 : vector<1x224x192xbf16> to vector<224x192xbf16>
    %cst_39 = arith.constant dense<0.000000e+00> : vector<6x192xf32>
    %44 = tpu.matmul %10, %43, %cst_39 {dimension_numbers = #tpu.dot_dimension_numbers<[1], [0], [0], [1], [0, 0, 1, 1], [], []>} : vector<6x224xbf16>, vector<224x192xbf16>, vector<6x192xf32> -> vector<6x192xf32>
    %c1_40 = arith.constant 1 : index
    %c0_41 = arith.constant 0 : index
    %c0_42 = arith.constant 0 : index
    %45 = vector.load %arg3[%c1_40, %c0_41, %c0_42] : memref<6x224x192xbf16, #tpu.memory_space<vmem>>, vector<1x224x192xbf16>
    %46 = vector.shape_cast %45 : vector<1x224x192xbf16> to vector<224x192xbf16>
    %cst_43 = arith.constant dense<0.000000e+00> : vector<6x192xf32>
    %47 = tpu.matmul %14, %46, %cst_43 {dimension_numbers = #tpu.dot_dimension_numbers<[1], [0], [0], [1], [0, 0, 1, 1], [], []>} : vector<6x224xbf16>, vector<224x192xbf16>, vector<6x192xf32> -> vector<6x192xf32>
    %48 = arith.addf %44, %47 : vector<6x192xf32>
    %c2_44 = arith.constant 2 : index
    %c0_45 = arith.constant 0 : index
    %c0_46 = arith.constant 0 : index
    %49 = vector.load %arg3[%c2_44, %c0_45, %c0_46] : memref<6x224x192xbf16, #tpu.memory_space<vmem>>, vector<1x224x192xbf16>
    %50 = vector.shape_cast %49 : vector<1x224x192xbf16> to vector<224x192xbf16>
    %cst_47 = arith.constant dense<0.000000e+00> : vector<6x192xf32>
    %51 = tpu.matmul %18, %50, %cst_47 {dimension_numbers = #tpu.dot_dimension_numbers<[1], [0], [0], [1], [0, 0, 1, 1], [], []>} : vector<6x224xbf16>, vector<224x192xbf16>, vector<6x192xf32> -> vector<6x192xf32>
    %52 = arith.addf %48, %51 : vector<6x192xf32>
    %53 = arith.maximumf %41, %52 : vector<6x192xf32>
    %c3_48 = arith.constant 3 : index
    %c0_49 = arith.constant 0 : index
    %c0_50 = arith.constant 0 : index
    %54 = vector.load %arg3[%c3_48, %c0_49, %c0_50] : memref<6x224x192xbf16, #tpu.memory_space<vmem>>, vector<1x224x192xbf16>
    %55 = vector.shape_cast %54 : vector<1x224x192xbf16> to vector<224x192xbf16>
    %cst_51 = arith.constant dense<0.000000e+00> : vector<6x192xf32>
    %56 = tpu.matmul %10, %55, %cst_51 {dimension_numbers = #tpu.dot_dimension_numbers<[1], [0], [0], [1], [0, 0, 1, 1], [], []>} : vector<6x224xbf16>, vector<224x192xbf16>, vector<6x192xf32> -> vector<6x192xf32>
    %c4_52 = arith.constant 4 : index
    %c0_53 = arith.constant 0 : index
    %c0_54 = arith.constant 0 : index
    %57 = vector.load %arg3[%c4_52, %c0_53, %c0_54] : memref<6x224x192xbf16, #tpu.memory_space<vmem>>, vector<1x224x192xbf16>
    %58 = vector.shape_cast %57 : vector<1x224x192xbf16> to vector<224x192xbf16>
    %cst_55 = arith.constant dense<0.000000e+00> : vector<6x192xf32>
    %59 = tpu.matmul %14, %58, %cst_55 {dimension_numbers = #tpu.dot_dimension_numbers<[1], [0], [0], [1], [0, 0, 1, 1], [], []>} : vector<6x224xbf16>, vector<224x192xbf16>, vector<6x192xf32> -> vector<6x192xf32>
    %60 = arith.addf %56, %59 : vector<6x192xf32>
    %c5_56 = arith.constant 5 : index
    %c0_57 = arith.constant 0 : index
    %c0_58 = arith.constant 0 : index
    %61 = vector.load %arg3[%c5_56, %c0_57, %c0_58] : memref<6x224x192xbf16, #tpu.memory_space<vmem>>, vector<1x224x192xbf16>
    %62 = vector.shape_cast %61 : vector<1x224x192xbf16> to vector<224x192xbf16>
    %cst_59 = arith.constant dense<0.000000e+00> : vector<6x192xf32>
    %63 = tpu.matmul %18, %62, %cst_59 {dimension_numbers = #tpu.dot_dimension_numbers<[1], [0], [0], [1], [0, 0, 1, 1], [], []>} : vector<6x224xbf16>, vector<224x192xbf16>, vector<6x192xf32> -> vector<6x192xf32>
    %64 = arith.addf %60, %63 : vector<6x192xf32>
    %65 = arith.maximumf %53, %64 : vector<6x192xf32>
    %c0_60 = arith.constant 0 : index
    %c0_61 = arith.constant 0 : index
    %66 = vector.load %arg4[%c0_60, %c0_61] : memref<1x192xf32, #tpu.memory_space<vmem>>, vector<1x192xf32>
    %67 = vector.broadcast %66 : vector<1x192xf32> to vector<6x192xf32>
    %68 = arith.addf %65, %67 : vector<6x192xf32>
    %cst_62 = arith.constant 0.000000e+00 : f32
    %69 = vector.broadcast %cst_62 : f32 to vector<6x192xf32>
    %70 = arith.maximumf %68, %69 : vector<6x192xf32>
    %c0_63 = arith.constant 0 : index
    %c0_64 = arith.constant 0 : index
    %c0_65 = arith.constant 0 : index
    %71 = vector.load %arg5[%c0_63, %c0_64, %c0_65] : memref<1x6x192xf32, #tpu.memory_space<vmem>>, vector<1x6x192xf32>
    %72 = vector.shape_cast %71 : vector<1x6x192xf32> to vector<6x192xf32>
    %73 = vector.shape_cast %70 : vector<6x192xf32> to vector<1x6x192xf32>
    tpu.vector_store %arg5[%c0_63, %c0_64, %c0_65], %73 {strides = array<i32>} : memref<1x6x192xf32, #tpu.memory_space<vmem>>, vector<1x6x192xf32>,
    return
  }
  func.func @transform_0(%arg0: i32) -> (i32, i32, i32) {
    %c0_i32 = arith.constant 0 : i32
    %c0_i32_0 = arith.constant 0 : i32
    %c0_i32_1 = arith.constant 0 : i32
    return %arg0, %c0_i32, %c0_i32_0 : i32, i32, i32
  }
  func.func @transform_1(%arg0: i32) -> (i32, i32, i32) {
    %c0_i32 = arith.constant 0 : i32
    %c0_i32_0 = arith.constant 0 : i32
    %c0_i32_1 = arith.constant 0 : i32
    %c0_i32_2 = arith.constant 0 : i32
    return %c0_i32, %c0_i32_0, %c0_i32_1 : i32, i32, i32
  }
  func.func @transform_2(%arg0: i32) -> (i32, i32, i32) {
    %c0_i32 = arith.constant 0 : i32
    %c0_i32_0 = arith.constant 0 : i32
    %c0_i32_1 = arith.constant 0 : i32
    %c0_i32_2 = arith.constant 0 : i32
    return %c0_i32, %c0_i32_0, %c0_i32_1 : i32, i32, i32
  }
  func.func @transform_3(%arg0: i32) -> (i32, i32) {
    %c0_i32 = arith.constant 0 : i32
    %c0_i32_0 = arith.constant 0 : i32
    %c0_i32_1 = arith.constant 0 : i32
    return %c0_i32, %c0_i32_0 : i32, i32
  }
  func.func @transform_4(%arg0: i32) -> (i32, i32, i32) {
    %c0_i32 = arith.constant 0 : i32
    %c0_i32_0 = arith.constant 0 : i32
    %c0_i32_1 = arith.constant 0 : i32
    return %arg0, %c0_i32, %c0_i32_0 : i32, i32, i32
  }
}

module attributes {stable_mosaic.version = 11 : i64} {
  func.func @_conv_pool_kernel(%arg0: i32, %arg1: memref<1x6x192xf32, #tpu.memory_space<vmem>>, %arg2: memref<4x2x6xbf16, #tpu.memory_space<vmem>>, %arg3: memref<6x192x128xbf16, #tpu.memory_space<vmem>>, %arg4: memref<1x128xf32, #tpu.memory_space<vmem>>, %arg5: memref<1x2x128xf32, #tpu.memory_space<vmem>>) attributes {dimension_semantics = [#tpu.dimension_semantics<parallel>], iteration_bounds = array<i64: 2>, scalar_prefetch = 0 : i64, scratch_operands = 0 : i64, tpu.core_type = #tpu.core_type<tc>, window_params = [{transform_indices = @transform_0, window_bounds = array<i64: 1, 6, 192>}, {pipeline_mode = #tpu.pipeline_mode<synchronous>, transform_indices = @transform_1, window_bounds = array<i64: 4, 2, 6>}, {pipeline_mode = #tpu.pipeline_mode<synchronous>, transform_indices = @transform_2, window_bounds = array<i64: 6, 192, 128>}, {pipeline_mode = #tpu.pipeline_mode<synchronous>, transform_indices = @transform_3, window_bounds = array<i64: 1, 128>}, {transform_indices = @transform_4, window_bounds = array<i64: 1, 2, 128>}]} {
    %c0 = arith.constant 0 : index
    %c0_0 = arith.constant 0 : index
    %c0_1 = arith.constant 0 : index
    %0 = vector.load %arg1[%c0, %c0_0, %c0_1] : memref<1x6x192xf32, #tpu.memory_space<vmem>>, vector<1x6x192xf32>
    %1 = vector.shape_cast %0 : vector<1x6x192xf32> to vector<6x192xf32>
    %2 = arith.truncf %1 : vector<6x192xf32> to vector<6x192xbf16>
    %c0_2 = arith.constant 0 : index
    %c0_3 = arith.constant 0 : index
    %c0_4 = arith.constant 0 : index
    %3 = vector.load %arg2[%c0_2, %c0_3, %c0_4] : memref<4x2x6xbf16, #tpu.memory_space<vmem>>, vector<1x2x6xbf16>
    %4 = vector.shape_cast %3 : vector<1x2x6xbf16> to vector<2x6xbf16>
    %cst = arith.constant dense<0.000000e+00> : vector<2x192xf32>
    %5 = tpu.matmul %4, %2, %cst {dimension_numbers = #tpu.dot_dimension_numbers<[1], [0], [0], [1], [0, 0, 1, 1], [], []>} : vector<2x6xbf16>, vector<6x192xbf16>, vector<2x192xf32> -> vector<2x192xf32>
    %6 = arith.truncf %5 : vector<2x192xf32> to vector<2x192xbf16>
    %c1 = arith.constant 1 : index
    %c0_5 = arith.constant 0 : index
    %c0_6 = arith.constant 0 : index
    %7 = vector.load %arg2[%c1, %c0_5, %c0_6] : memref<4x2x6xbf16, #tpu.memory_space<vmem>>, vector<1x2x6xbf16>
    %8 = vector.shape_cast %7 : vector<1x2x6xbf16> to vector<2x6xbf16>
    %cst_7 = arith.constant dense<0.000000e+00> : vector<2x192xf32>
    %9 = tpu.matmul %8, %2, %cst_7 {dimension_numbers = #tpu.dot_dimension_numbers<[1], [0], [0], [1], [0, 0, 1, 1], [], []>} : vector<2x6xbf16>, vector<6x192xbf16>, vector<2x192xf32> -> vector<2x192xf32>
    %10 = arith.truncf %9 : vector<2x192xf32> to vector<2x192xbf16>
    %c2 = arith.constant 2 : index
    %c0_8 = arith.constant 0 : index
    %c0_9 = arith.constant 0 : index
    %11 = vector.load %arg2[%c2, %c0_8, %c0_9] : memref<4x2x6xbf16, #tpu.memory_space<vmem>>, vector<1x2x6xbf16>
    %12 = vector.shape_cast %11 : vector<1x2x6xbf16> to vector<2x6xbf16>
    %cst_10 = arith.constant dense<0.000000e+00> : vector<2x192xf32>
    %13 = tpu.matmul %12, %2, %cst_10 {dimension_numbers = #tpu.dot_dimension_numbers<[1], [0], [0], [1], [0, 0, 1, 1], [], []>} : vector<2x6xbf16>, vector<6x192xbf16>, vector<2x192xf32> -> vector<2x192xf32>
    %14 = arith.truncf %13 : vector<2x192xf32> to vector<2x192xbf16>
    %c3 = arith.constant 3 : index
    %c0_11 = arith.constant 0 : index
    %c0_12 = arith.constant 0 : index
    %15 = vector.load %arg2[%c3, %c0_11, %c0_12] : memref<4x2x6xbf16, #tpu.memory_space<vmem>>, vector<1x2x6xbf16>
    %16 = vector.shape_cast %15 : vector<1x2x6xbf16> to vector<2x6xbf16>
    %cst_13 = arith.constant dense<0.000000e+00> : vector<2x192xf32>
    %17 = tpu.matmul %16, %2, %cst_13 {dimension_numbers = #tpu.dot_dimension_numbers<[1], [0], [0], [1], [0, 0, 1, 1], [], []>} : vector<2x6xbf16>, vector<6x192xbf16>, vector<2x192xf32> -> vector<2x192xf32>
    %18 = arith.truncf %17 : vector<2x192xf32> to vector<2x192xbf16>
    %c0_14 = arith.constant 0 : index
    %c0_15 = arith.constant 0 : index
    %c0_16 = arith.constant 0 : index
    %19 = vector.load %arg3[%c0_14, %c0_15, %c0_16] : memref<6x192x128xbf16, #tpu.memory_space<vmem>>, vector<1x192x128xbf16>
    %20 = vector.shape_cast %19 : vector<1x192x128xbf16> to vector<192x128xbf16>
    %cst_17 = arith.constant dense<0.000000e+00> : vector<2x128xf32>
    %21 = tpu.matmul %6, %20, %cst_17 {dimension_numbers = #tpu.dot_dimension_numbers<[1], [0], [0], [1], [0, 0, 1, 1], [], []>} : vector<2x192xbf16>, vector<192x128xbf16>, vector<2x128xf32> -> vector<2x128xf32>
    %c1_18 = arith.constant 1 : index
    %c0_19 = arith.constant 0 : index
    %c0_20 = arith.constant 0 : index
    %22 = vector.load %arg3[%c1_18, %c0_19, %c0_20] : memref<6x192x128xbf16, #tpu.memory_space<vmem>>, vector<1x192x128xbf16>
    %23 = vector.shape_cast %22 : vector<1x192x128xbf16> to vector<192x128xbf16>
    %cst_21 = arith.constant dense<0.000000e+00> : vector<2x128xf32>
    %24 = tpu.matmul %10, %23, %cst_21 {dimension_numbers = #tpu.dot_dimension_numbers<[1], [0], [0], [1], [0, 0, 1, 1], [], []>} : vector<2x192xbf16>, vector<192x128xbf16>, vector<2x128xf32> -> vector<2x128xf32>
    %25 = arith.addf %21, %24 : vector<2x128xf32>
    %c2_22 = arith.constant 2 : index
    %c0_23 = arith.constant 0 : index
    %c0_24 = arith.constant 0 : index
    %26 = vector.load %arg3[%c2_22, %c0_23, %c0_24] : memref<6x192x128xbf16, #tpu.memory_space<vmem>>, vector<1x192x128xbf16>
    %27 = vector.shape_cast %26 : vector<1x192x128xbf16> to vector<192x128xbf16>
    %cst_25 = arith.constant dense<0.000000e+00> : vector<2x128xf32>
    %28 = tpu.matmul %14, %27, %cst_25 {dimension_numbers = #tpu.dot_dimension_numbers<[1], [0], [0], [1], [0, 0, 1, 1], [], []>} : vector<2x192xbf16>, vector<192x128xbf16>, vector<2x128xf32> -> vector<2x128xf32>
    %29 = arith.addf %25, %28 : vector<2x128xf32>
    %c3_26 = arith.constant 3 : index
    %c0_27 = arith.constant 0 : index
    %c0_28 = arith.constant 0 : index
    %30 = vector.load %arg3[%c3_26, %c0_27, %c0_28] : memref<6x192x128xbf16, #tpu.memory_space<vmem>>, vector<1x192x128xbf16>
    %31 = vector.shape_cast %30 : vector<1x192x128xbf16> to vector<192x128xbf16>
    %cst_29 = arith.constant dense<0.000000e+00> : vector<2x128xf32>
    %32 = tpu.matmul %6, %31, %cst_29 {dimension_numbers = #tpu.dot_dimension_numbers<[1], [0], [0], [1], [0, 0, 1, 1], [], []>} : vector<2x192xbf16>, vector<192x128xbf16>, vector<2x128xf32> -> vector<2x128xf32>
    %c4 = arith.constant 4 : index
    %c0_30 = arith.constant 0 : index
    %c0_31 = arith.constant 0 : index
    %33 = vector.load %arg3[%c4, %c0_30, %c0_31] : memref<6x192x128xbf16, #tpu.memory_space<vmem>>, vector<1x192x128xbf16>
    %34 = vector.shape_cast %33 : vector<1x192x128xbf16> to vector<192x128xbf16>
    %cst_32 = arith.constant dense<0.000000e+00> : vector<2x128xf32>
    %35 = tpu.matmul %10, %34, %cst_32 {dimension_numbers = #tpu.dot_dimension_numbers<[1], [0], [0], [1], [0, 0, 1, 1], [], []>} : vector<2x192xbf16>, vector<192x128xbf16>, vector<2x128xf32> -> vector<2x128xf32>
    %36 = arith.addf %32, %35 : vector<2x128xf32>
    %c5 = arith.constant 5 : index
    %c0_33 = arith.constant 0 : index
    %c0_34 = arith.constant 0 : index
    %37 = vector.load %arg3[%c5, %c0_33, %c0_34] : memref<6x192x128xbf16, #tpu.memory_space<vmem>>, vector<1x192x128xbf16>
    %38 = vector.shape_cast %37 : vector<1x192x128xbf16> to vector<192x128xbf16>
    %cst_35 = arith.constant dense<0.000000e+00> : vector<2x128xf32>
    %39 = tpu.matmul %14, %38, %cst_35 {dimension_numbers = #tpu.dot_dimension_numbers<[1], [0], [0], [1], [0, 0, 1, 1], [], []>} : vector<2x192xbf16>, vector<192x128xbf16>, vector<2x128xf32> -> vector<2x128xf32>
    %40 = arith.addf %36, %39 : vector<2x128xf32>
    %41 = arith.maximumf %29, %40 : vector<2x128xf32>
    %c0_36 = arith.constant 0 : index
    %c0_37 = arith.constant 0 : index
    %c0_38 = arith.constant 0 : index
    %42 = vector.load %arg3[%c0_36, %c0_37, %c0_38] : memref<6x192x128xbf16, #tpu.memory_space<vmem>>, vector<1x192x128xbf16>
    %43 = vector.shape_cast %42 : vector<1x192x128xbf16> to vector<192x128xbf16>
    %cst_39 = arith.constant dense<0.000000e+00> : vector<2x128xf32>
    %44 = tpu.matmul %10, %43, %cst_39 {dimension_numbers = #tpu.dot_dimension_numbers<[1], [0], [0], [1], [0, 0, 1, 1], [], []>} : vector<2x192xbf16>, vector<192x128xbf16>, vector<2x128xf32> -> vector<2x128xf32>
    %c1_40 = arith.constant 1 : index
    %c0_41 = arith.constant 0 : index
    %c0_42 = arith.constant 0 : index
    %45 = vector.load %arg3[%c1_40, %c0_41, %c0_42] : memref<6x192x128xbf16, #tpu.memory_space<vmem>>, vector<1x192x128xbf16>
    %46 = vector.shape_cast %45 : vector<1x192x128xbf16> to vector<192x128xbf16>
    %cst_43 = arith.constant dense<0.000000e+00> : vector<2x128xf32>
    %47 = tpu.matmul %14, %46, %cst_43 {dimension_numbers = #tpu.dot_dimension_numbers<[1], [0], [0], [1], [0, 0, 1, 1], [], []>} : vector<2x192xbf16>, vector<192x128xbf16>, vector<2x128xf32> -> vector<2x128xf32>
    %48 = arith.addf %44, %47 : vector<2x128xf32>
    %c2_44 = arith.constant 2 : index
    %c0_45 = arith.constant 0 : index
    %c0_46 = arith.constant 0 : index
    %49 = vector.load %arg3[%c2_44, %c0_45, %c0_46] : memref<6x192x128xbf16, #tpu.memory_space<vmem>>, vector<1x192x128xbf16>
    %50 = vector.shape_cast %49 : vector<1x192x128xbf16> to vector<192x128xbf16>
    %cst_47 = arith.constant dense<0.000000e+00> : vector<2x128xf32>
    %51 = tpu.matmul %18, %50, %cst_47 {dimension_numbers = #tpu.dot_dimension_numbers<[1], [0], [0], [1], [0, 0, 1, 1], [], []>} : vector<2x192xbf16>, vector<192x128xbf16>, vector<2x128xf32> -> vector<2x128xf32>
    %52 = arith.addf %48, %51 : vector<2x128xf32>
    %53 = arith.maximumf %41, %52 : vector<2x128xf32>
    %c3_48 = arith.constant 3 : index
    %c0_49 = arith.constant 0 : index
    %c0_50 = arith.constant 0 : index
    %54 = vector.load %arg3[%c3_48, %c0_49, %c0_50] : memref<6x192x128xbf16, #tpu.memory_space<vmem>>, vector<1x192x128xbf16>
    %55 = vector.shape_cast %54 : vector<1x192x128xbf16> to vector<192x128xbf16>
    %cst_51 = arith.constant dense<0.000000e+00> : vector<2x128xf32>
    %56 = tpu.matmul %10, %55, %cst_51 {dimension_numbers = #tpu.dot_dimension_numbers<[1], [0], [0], [1], [0, 0, 1, 1], [], []>} : vector<2x192xbf16>, vector<192x128xbf16>, vector<2x128xf32> -> vector<2x128xf32>
    %c4_52 = arith.constant 4 : index
    %c0_53 = arith.constant 0 : index
    %c0_54 = arith.constant 0 : index
    %57 = vector.load %arg3[%c4_52, %c0_53, %c0_54] : memref<6x192x128xbf16, #tpu.memory_space<vmem>>, vector<1x192x128xbf16>
    %58 = vector.shape_cast %57 : vector<1x192x128xbf16> to vector<192x128xbf16>
    %cst_55 = arith.constant dense<0.000000e+00> : vector<2x128xf32>
    %59 = tpu.matmul %14, %58, %cst_55 {dimension_numbers = #tpu.dot_dimension_numbers<[1], [0], [0], [1], [0, 0, 1, 1], [], []>} : vector<2x192xbf16>, vector<192x128xbf16>, vector<2x128xf32> -> vector<2x128xf32>
    %60 = arith.addf %56, %59 : vector<2x128xf32>
    %c5_56 = arith.constant 5 : index
    %c0_57 = arith.constant 0 : index
    %c0_58 = arith.constant 0 : index
    %61 = vector.load %arg3[%c5_56, %c0_57, %c0_58] : memref<6x192x128xbf16, #tpu.memory_space<vmem>>, vector<1x192x128xbf16>
    %62 = vector.shape_cast %61 : vector<1x192x128xbf16> to vector<192x128xbf16>
    %cst_59 = arith.constant dense<0.000000e+00> : vector<2x128xf32>
    %63 = tpu.matmul %18, %62, %cst_59 {dimension_numbers = #tpu.dot_dimension_numbers<[1], [0], [0], [1], [0, 0, 1, 1], [], []>} : vector<2x192xbf16>, vector<192x128xbf16>, vector<2x128xf32> -> vector<2x128xf32>
    %64 = arith.addf %60, %63 : vector<2x128xf32>
    %65 = arith.maximumf %53, %64 : vector<2x128xf32>
    %c0_60 = arith.constant 0 : index
    %c0_61 = arith.constant 0 : index
    %66 = vector.load %arg4[%c0_60, %c0_61] : memref<1x128xf32, #tpu.memory_space<vmem>>, vector<1x128xf32>
    %67 = vector.broadcast %66 : vector<1x128xf32> to vector<2x128xf32>
    %68 = arith.addf %65, %67 : vector<2x128xf32>
    %cst_62 = arith.constant 0.000000e+00 : f32
    %69 = vector.broadcast %cst_62 : f32 to vector<2x128xf32>
    %70 = arith.maximumf %68, %69 : vector<2x128xf32>
    %c0_63 = arith.constant 0 : index
    %c0_64 = arith.constant 0 : index
    %c0_65 = arith.constant 0 : index
    %71 = vector.load %arg5[%c0_63, %c0_64, %c0_65] : memref<1x2x128xf32, #tpu.memory_space<vmem>>, vector<1x2x128xf32>
    %72 = vector.shape_cast %71 : vector<1x2x128xf32> to vector<2x128xf32>
    %73 = vector.shape_cast %70 : vector<2x128xf32> to vector<1x2x128xf32>
    tpu.vector_store %arg5[%c0_63, %c0_64, %c0_65], %73 {strides = array<i32>} : memref<1x2x128xf32, #tpu.memory_space<vmem>>, vector<1x2x128xf32>,
    return
  }
  func.func @transform_0(%arg0: i32) -> (i32, i32, i32) {
    %c0_i32 = arith.constant 0 : i32
    %c0_i32_0 = arith.constant 0 : i32
    %c0_i32_1 = arith.constant 0 : i32
    return %arg0, %c0_i32, %c0_i32_0 : i32, i32, i32
  }
  func.func @transform_1(%arg0: i32) -> (i32, i32, i32) {
    %c0_i32 = arith.constant 0 : i32
    %c0_i32_0 = arith.constant 0 : i32
    %c0_i32_1 = arith.constant 0 : i32
    %c0_i32_2 = arith.constant 0 : i32
    return %c0_i32, %c0_i32_0, %c0_i32_1 : i32, i32, i32
  }
  func.func @transform_2(%arg0: i32) -> (i32, i32, i32) {
    %c0_i32 = arith.constant 0 : i32
    %c0_i32_0 = arith.constant 0 : i32
    %c0_i32_1 = arith.constant 0 : i32
    %c0_i32_2 = arith.constant 0 : i32
    return %c0_i32, %c0_i32_0, %c0_i32_1 : i32, i32, i32
  }
  func.func @transform_3(%arg0: i32) -> (i32, i32) {
    %c0_i32 = arith.constant 0 : i32
    %c0_i32_0 = arith.constant 0 : i32
    %c0_i32_1 = arith.constant 0 : i32
    return %c0_i32, %c0_i32_0 : i32, i32
  }
  func.func @transform_4(%arg0: i32) -> (i32, i32, i32) {
    %c0_i32 = arith.constant 0 : i32
    %c0_i32_0 = arith.constant 0 : i32
    %c0_i32_1 = arith.constant 0 : i32
    return %arg0, %c0_i32, %c0_i32_0 : i32, i32, i32
  }
}

module attributes {stable_mosaic.version = 11 : i64} {
  func.func @_head_kernel(%arg0: memref<2x256xf32, #tpu.memory_space<vmem>>, %arg1: memref<256x32xf32, #tpu.memory_space<vmem>>, %arg2: memref<1x32xf32, #tpu.memory_space<vmem>>, %arg3: memref<32x4xf32, #tpu.memory_space<vmem>>, %arg4: memref<1x4xf32, #tpu.memory_space<vmem>>, %arg5: memref<2x4xf32, #tpu.memory_space<vmem>>) attributes {dimension_semantics = [], scalar_prefetch = 0 : i64, scratch_operands = 0 : i64, tpu.core_type = #tpu.core_type<tc>} {
    %c0 = arith.constant 0 : index
    %c0_0 = arith.constant 0 : index
    %0 = vector.load %arg0[%c0, %c0_0] : memref<2x256xf32, #tpu.memory_space<vmem>>, vector<2x256xf32>
    %c0_1 = arith.constant 0 : index
    %c0_2 = arith.constant 0 : index
    %1 = vector.load %arg1[%c0_1, %c0_2] : memref<256x32xf32, #tpu.memory_space<vmem>>, vector<256x32xf32>
    %cst = arith.constant dense<0.000000e+00> : vector<2x32xf32>
    %2 = tpu.matmul %0, %1, %cst {dimension_numbers = #tpu.dot_dimension_numbers<[1], [0], [0], [1], [0, 0, 1, 1], [], []>} : vector<2x256xf32>, vector<256x32xf32>, vector<2x32xf32> -> vector<2x32xf32>
    %c0_3 = arith.constant 0 : index
    %c0_4 = arith.constant 0 : index
    %3 = vector.load %arg2[%c0_3, %c0_4] : memref<1x32xf32, #tpu.memory_space<vmem>>, vector<1x32xf32>
    %4 = vector.broadcast %3 : vector<1x32xf32> to vector<2x32xf32>
    %5 = arith.addf %2, %4 : vector<2x32xf32>
    %cst_5 = arith.constant 0.000000e+00 : f32
    %6 = vector.broadcast %cst_5 : f32 to vector<2x32xf32>
    %7 = arith.maximumf %5, %6 : vector<2x32xf32>
    %c0_6 = arith.constant 0 : index
    %c0_7 = arith.constant 0 : index
    %8 = vector.load %arg3[%c0_6, %c0_7] : memref<32x4xf32, #tpu.memory_space<vmem>>, vector<32x4xf32>
    %cst_8 = arith.constant dense<0.000000e+00> : vector<2x4xf32>
    %9 = tpu.matmul %7, %8, %cst_8 {dimension_numbers = #tpu.dot_dimension_numbers<[1], [0], [0], [1], [0, 0, 1, 1], [], []>} : vector<2x32xf32>, vector<32x4xf32>, vector<2x4xf32> -> vector<2x4xf32>
    %c0_9 = arith.constant 0 : index
    %c0_10 = arith.constant 0 : index
    %10 = vector.load %arg4[%c0_9, %c0_10] : memref<1x4xf32, #tpu.memory_space<vmem>>, vector<1x4xf32>
    %11 = vector.broadcast %10 : vector<1x4xf32> to vector<2x4xf32>
    %12 = arith.addf %9, %11 : vector<2x4xf32>
    %cst_11 = arith.constant dense<0xFF800000> : vector<2xf32>
    %13 = vector.multi_reduction <maximumf>, %12, %cst_11 [1] : vector<2x4xf32> to vector<2xf32>
    %14 = vector.shape_cast %13 : vector<2xf32> to vector<2x1xf32>
    %15 = vector.broadcast %14 : vector<2x1xf32> to vector<2x4xf32>
    %16 = arith.subf %12, %15 : vector<2x4xf32>
    %17 = math.exp %16 : vector<2x4xf32>
    %cst_12 = arith.constant dense<0.000000e+00> : vector<2xf32>
    %18 = vector.multi_reduction <add>, %17, %cst_12 [1] : vector<2x4xf32> to vector<2xf32>
    %19 = vector.shape_cast %18 : vector<2xf32> to vector<2x1xf32>
    %20 = math.log %19 : vector<2x1xf32>
    %21 = arith.addf %20, %14 : vector<2x1xf32>
    %22 = vector.broadcast %21 : vector<2x1xf32> to vector<2x4xf32>
    %23 = arith.subf %12, %22 : vector<2x4xf32>
    %c0_13 = arith.constant 0 : index
    %c0_14 = arith.constant 0 : index
    %24 = vector.load %arg5[%c0_13, %c0_14] : memref<2x4xf32, #tpu.memory_space<vmem>>, vector<2x4xf32>
    tpu.vector_store %arg5[%c0_13, %c0_14], %23 {strides = array<i32>} : memref<2x4xf32, #tpu.memory_space<vmem>>, vector<2x4xf32>,
    return
  }
}

</mosaic_0001>

<bundles_post_ra>
// kernel: _lambda_.6
= control target key start
LH: loop header
LB: loop body
LE: loop exit
PB: predicated region body
PF: predicated region fallthrough
CT: control target
= control target key end

     0   :  { %s3037_s15 = smov 0   ;;  %s4434_s0 = inlined_call_operand.vmem [shape: f32[2,31,248], index: 0, kind: input, shape index: {}]   ;;  %s4435_s1 = inlined_call_operand.vmem [shape: bf16[4,14,31], index: 1, kind: input, shape index: {}]   ;;  %s4436_s2 = inlined_call_operand.vmem [shape: bf16[6,248,224], index: 2, kind: input, shape index: {}]   ;;  %s4437_s3 = inlined_call_operand.vmem [shape: f32[1,224], index: 3, kind: input, shape index: {}]   ;;  %s4438_s4 = inlined_call_operand.vmem [shape: f32[2,14,224], index: 4, kind: output, shape index: {}]  }
   0x1 LB: > { %s2241_s16 = sadd.s32 4294967295, %s3008_s15   ;;  %p2245_p0 = scmp.ge.s32.totalorder %s3008_s15, 1  ;;  %s3008_s15 = sphi %s3037_s15, %s14_s15  }
   0x2   : > { %p162_p1 = scmp.lt.s32.totalorder %s3008_s15, 3 }
   0x4   : > { %p163_p2 = pnand %p2245_p0, %p162_p1 }
   0x6   : > { %166 = sbr.rel (%p163_p2) target bundleno = 791 (0x317), region = 36 }
   0xd   : > { %p188_p3 = scmp.lt.s32.totalorder %s2241_s16, 1  ;;  %vm222_vm0 = vcmask 1046528   ;;  %v3010_v0 = vmov 0   ;;  %vm223_vm1 = vcmask 1047552   ;;  %v3011_v1 = vmov 65535  }
   0xe   : > { %320 = vmatprep.mubr.bf16.mxu1 %v3010_v0  ;;  %264 = vmatprep.mubr.bf16.mxu0 %v3010_v0  ;;  %v224_v2 = vsel %vm222_vm0, 4294967295, %v3011_v1  ;;  %v2681_v18 = vld [vmem:[%s4435_s1 + $0x8] sm:$0x7f]   ;;  %v2682_v19 = vld [vmem:[%s4435_s1] sm:$0x7f]   ;;  %vm218_vm2 = vcmask 252928  }
   0xf   : > { %s4750_s16 = smov (!%p188_p3, %s2241_s16), 1  ;;  %v225_v10 = vsel %vm223_vm1, %v224_v2, 0  ;;  %v2687_v20 = vld [vmem:[%s4436_s2 + $0xfc] ss:$8 sps:$4 sm:$0xff]   ;;  %v2683_v22 = vld [vmem:[%s4435_s1 + $0x10] sm:$0x7f]  }
  0x10   : > { %s2637_s17 = sshll.u32 %s4750_s16, 6  ;;  %v2690_v21 = vld [vmem:[%s4436_s2 + $0x3e4] ss:$8 sps:$4 sm:$0xff]   ;;  %v2684_v23 = vld [vmem:[%s4435_s1 + $0x18] sm:$0x7f]   ;;  %vm667_vm3 = vcmask 1043456  }
  0x11   : > { %s192_s20 = scalar_lea.vmem %s4434_s0, %s2637_s17  ;;  %v2685_v24 = vld [vmem:[%s4436_s2 + $0xf8] ss:$8 sps:$4 sm:$0xff]   ;;  %v2693_v26 = vld [vmem:[%s4436_s2 + $0x10c] ss:$8 sps:$4 sm:$0xff]   ;;  %v2691_v28 = vld [vmem:[%s4436_s2 + $0x108] ss:$8 sps:$4 sm:$0xff]  }
  0x12   : > { %v200_v3 = vld [vmem:[%s192_s20 + $0x8] sm:$0xff]  ;;  %v202_v4 = vld [vmem:[%s192_s20 + $0x18] sm:$0xff]  ;;  %v199_v5 = vld [vmem:[%s192_s20] sm:$0xff]  ;;  %vm663_vm4 = vcmask 982016   ;;  %s2638_s17 = sshll.u32 %s4750_s16, 5  ;;  %vm2181_vm5 = vcmask 785408  }
  0x13   : > { %v208_v6 = vpack.c.bf16 %v202_v4, %v200_v3  ;;  %v201_v7 = vld [vmem:[%s192_s20 + $0x10] sm:$0xff]  ;;  %v204_v8 = vld [vmem:[%s192_s20 + $0x28] sm:$0xff]  ;;  %v206_v9 = vld [vmem:[%s192_s20 + $0x38] sm:$0x7f]  ;;  %vm2184_vm6 = vcmask 783360  }
  0x14   : > { %v207_v11 = vpack.c.bf16 %v201_v7, %v199_v5  ;;  %v210_v12 = vpack.c.bf16 %v206_v9, %v204_v8  ;;  %v203_v13 = vld [vmem:[%s192_s20 + $0x20] sm:$0xff]  ;;  %v205_v14 = vld [vmem:[%s192_s20 + $0x30] sm:$0x7f]  ;;  %s197_s20 = scalar_lea.vmem %s4438_s4, %s2638_s17 }
  0x15   : > { %288 = vmatprep.subr.bf16.mxu1 %v208_v6  ;;  %v209_v15 = vpack.c.bf16 %v205_v14, %v203_v13  ;;  %232 = vmatprep.subr.bf16.mxu0 %v208_v6  ;;  %v2688_v25 = vld [vmem:[%s4436_s2 + $0x3e0] ss:$8 sps:$4 sm:$0xff]   ;;  %v2696_v27 = vld [vmem:[%s4436_s2 + $0x3f4] ss:$8 sps:$4 sm:$0xff]   ;;  %v2694_v29 = vld [vmem:[%s4436_s2 + $0x3f0] ss:$8 sps:$4 sm:$0xff]  }
  0x16   : > { %289 = vmatpush1.bf16.msra.mxu1 %v207_v11  ;;  %v230_v16 = vand.u32 %v225_v10, %v210_v12  ;;  %233 = vmatpush1.bf16.msra.mxu0 %v207_v11  ;;  %v2699_v30 = vld [vmem:[%s4436_s2 + $0x11c] ss:$8 sps:$4 sm:$0xff]   ;;  %v2697_v32 = vld [vmem:[%s4436_s2 + $0x118] ss:$8 sps:$4 sm:$0xff]   ;;  %v2705_v34 = vld [vmem:[%s4436_s2 + $0x12c] ss:$8 sps:$4 sm:$0xff]  }
  0x17   : > { %v227_v17 = vand.u32 %v225_v10, %v209_v15  ;;  %v2702_v31 = vld [vmem:[%s4436_s2 + $0x404] ss:$8 sps:$4 sm:$0xff]   ;;  %v2700_v33 = vld [vmem:[%s4436_s2 + $0x400] ss:$8 sps:$4 sm:$0xff]   ;;  %v2708_v35 = vld [vmem:[%s4436_s2 + $0x414] ss:$8 sps:$4 sm:$0xff]  }
  0x18   : > { %290 = vmatprep.subr.bf16.mxu1 %v230_v16  ;;  %234 = vmatprep.subr.bf16.mxu0 %v230_v16  ;;  %v2703_v36 = vld [vmem:[%s4436_s2 + $0x128] ss:$8 sps:$4 sm:$0xff]   ;;  %v2711_v38 = vld [vmem:[%s4436_s2 + $0x13c] ss:$8 sps:$4 sm:$0xff]   ;;  %v2709_v40 = vld [vmem:[%s4436_s2 + $0x138] ss:$8 sps:$4 sm:$0xff]  }
  0x19   : > { %v2706_v37 = vld [vmem:[%s4436_s2 + $0x410] ss:$8 sps:$4 sm:$0xff]   ;;  %v2714_v39 = vld [vmem:[%s4436_s2 + $0x424] ss:$8 sps:$4 sm:$0xff]   ;;  %v2712_v41 = vld [vmem:[%s4436_s2 + $0x420] ss:$8 sps:$4 sm:$0xff]  }
  0x1a   : > { %291 = vmatpush1.bf16.msra.mxu1 %v227_v17  ;;  %235 = vmatpush1.bf16.msra.mxu0 %v227_v17  ;;  %v2717_v42 = vld [vmem:[%s4436_s2 + $0x14c] ss:$8 sps:$4 sm:$0xff]   ;;  %v2715_v44 = vld [vmem:[%s4436_s2 + $0x148] ss:$8 sps:$4 sm:$0xff]   ;;  %v2723_v46 = vld [vmem:[%s4436_s2 + $0x15c] ss:$8 sps:$4 sm:$0xff]  }
  0x1b   : > { %344 = vmatprep.subr.bf16.mxu0 %v208_v6  ;;  %400 = vmatprep.subr.bf16.mxu1 %v208_v6  ;;  %v2720_v43 = vld [vmem:[%s4436_s2 + $0x434] ss:$8 sps:$4 sm:$0xff]   ;;  %v2718_v45 = vld [vmem:[%s4436_s2 + $0x430] ss:$8 sps:$4 sm:$0xff]   ;;  %v2726_v47 = vld [vmem:[%s4436_s2 + $0x444] ss:$8 sps:$4 sm:$0xff]  }
  0x1c   : > { %v2721_v48 = vld [vmem:[%s4436_s2 + $0x158] ss:$8 sps:$4 sm:$0xff]   ;;  %v2729_v50 = vld [vmem:[%s4436_s2 + $0x16c] ss:$8 sps:$4 sm:$0xff]   ;;  %v2727_v52 = vld [vmem:[%s4436_s2 + $0x168] ss:$8 sps:$4 sm:$0xff]  }
  0x1d   : > { %2255 = vmatmul.mubr.msk.bf16.vlgmr.msra.gmra.mrb[0].mxu1 %vm218_vm2, %v2681_v18  ;;  %2251 = vmatmul.mubr.msk.bf16.vlgmr.msra.gmra.mrb[0].mxu0 %vm218_vm2, %v2682_v19  ;;  %v2724_v49 = vld [vmem:[%s4436_s2 + $0x440] ss:$8 sps:$4 sm:$0xff]   ;;  %v2732_v51 = vld [vmem:[%s4436_s2 + $0x454] ss:$8 sps:$4 sm:$0xff]   ;;  %v2730_v53 = vld [vmem:[%s4436_s2 + $0x450] ss:$8 sps:$4 sm:$0xff]  }
  0x1e   : > { %345 = vmatpush1.bf16.msra.mxu0 %v207_v11  ;;  %376 = vmatprep.mubr.bf16.mxu0 %v3010_v0  ;;  %v2735_v54 = vld [vmem:[%s4436_s2 + $0x17c] ss:$8 sps:$4 sm:$0xff]   ;;  %v2733_v56 = vld [vmem:[%s4436_s2 + $0x178] ss:$8 sps:$4 sm:$0xff]   ;;  %v3180_v58 = vld [vmem:[%s4436_s2 + $0x18c] ss:$8 sps:$4 sm:$0xff]  }
  0x1f   : > { %346 = vmatprep.subr.bf16.mxu0 %v230_v16  ;;  %401 = vmatpush1.bf16.msra.mxu1 %v207_v11  ;;  %v2738_v55 = vld [vmem:[%s4436_s2 + $0x464] ss:$8 sps:$4 sm:$0xff]   ;;  %v3175_v57 = vld [vmem:[%s4436_s2 + $0x460] ss:$8 sps:$4 sm:$0xff]   ;;  %v3185_v59 = vld [vmem:[%s4436_s2 + $0x474] ss:$8 sps:$4 sm:$0xff]  }
  0x20   : > { %402 = vmatprep.subr.bf16.mxu1 %v230_v16  ;;  %432 = vmatprep.mubr.bf16.mxu1 %v3010_v0  ;;  %v3190_v60 = vld [vmem:[%s4436_s2 + $0x188] ss:$8 sps:$4 sm:$0xff]   ;;  %v3200_v62 = vld [vmem:[%s4436_s2 + $0x19c] ss:$8 sps:$4 sm:$0xff]   ;;  %v3213_v0 = vld [vmem:[%s4436_s2 + $0x198] ss:$8 sps:$4 sm:$0xff]  }
  0x21   : > { %v3195_v61 = vld [vmem:[%s4436_s2 + $0x470] ss:$8 sps:$4 sm:$0xff]   ;;  %v3205_v63 = vld [vmem:[%s4436_s2 + $0x484] ss:$8 sps:$4 sm:$0xff]   ;;  %v3218_v1 = vld [vmem:[%s4436_s2 + $0x480] ss:$8 sps:$4 sm:$0xff]  }
  0x22   : > { %347 = vmatpush1.bf16.msra.mxu0 %v227_v17  ;;  %v3223_v2 = vld [vmem:[%s4436_s2 + $0x1ac] ss:$8 sps:$4 sm:$0xff]   ;;  %v3237_v4 = vld [vmem:[%s4436_s2 + $0x1a8] ss:$8 sps:$4 sm:$0xff]   ;;  %v3247_v6 = vld [vmem:[%s4436_s2 + $0x1bc] ss:$8 sps:$4 sm:$0xff]  }
  0x23   : > { %403 = vmatpush1.bf16.msra.mxu1 %v227_v17  ;;  %674 = vmatprep.subr.bf16.mxu0 %v2687_v20  ;;  %v3229_v3 = vld [vmem:[%s4436_s2 + $0x494] ss:$8 sps:$4 sm:$0xff]   ;;  %v3242_v5 = vld [vmem:[%s4436_s2 + $0x490] ss:$8 sps:$4 sm:$0xff]   ;;  %v3253_v7 = vld [vmem:[%s4436_s2 + $0x4a4] ss:$8 sps:$4 sm:$0xff]  }
  0x24   : > { %1392 = vmatprep.subr.bf16.mxu1 %v2690_v21  ;;  %v3261_v8 = vld [vmem:[%s4436_s2 + $0x1b8] ss:$8 sps:$4 sm:$0xff]   ;;  %v3271_v10 = vld [vmem:[%s4436_s2 + $0x1cc] ss:$8 sps:$4 sm:$0xff]   ;;  %v3285_v12 = vld [vmem:[%s4436_s2 + $0x1c8] ss:$8 sps:$4 sm:$0xff]  }
  0x25   : > { %2259 = vmatmul.mubr.msk.bf16.vlgmr.msra.gmra.mrb[4].mxu0 %vm218_vm2, %v2683_v22  ;;  %v3266_v9 = vld [vmem:[%s4436_s2 + $0x4a0] ss:$8 sps:$4 sm:$0xff]   ;;  %v3277_v11 = vld [vmem:[%s4436_s2 + $0x4b4] ss:$8 sps:$4 sm:$0xff]   ;;  %v3290_v13 = vld [vmem:[%s4436_s2 + $0x4b0] ss:$8 sps:$4 sm:$0xff]  }
  0x26   : > { %2263 = vmatmul.mubr.msk.bf16.vlgmr.msra.gmra.mrb[4].mxu1 %vm218_vm2, %v2684_v23  ;;  %675 = vmatpush1.bf16.msra.mxu0 %v2685_v24  ;;  %v3295_v14 = vld [vmem:[%s4436_s2 + $0x1dc] ss:$8 sps:$4 sm:$0xff]   ;;  %v3309_v16 = vld [vmem:[%s4436_s2 + $0x1d8] ss:$8 sps:$4 sm:$0xff]   ;;  %v2294_v18 = vld [vmem:[%s4436_s2 + $0x1e8] sm:$0xff] }
  0x27   : > { %1393 = vmatpush1.bf16.msra.mxu1 %v2688_v25  ;;  %676 = vmatprep.subr.bf16.mxu0 %v2693_v26  ;;  %v3301_v15 = vld [vmem:[%s4436_s2 + $0x4c4] ss:$8 sps:$4 sm:$0xff]   ;;  %v3314_v17 = vld [vmem:[%s4436_s2 + $0x4c0] ss:$8 sps:$4 sm:$0xff]   ;;  %v2489_v19 = vld [vmem:[%s4436_s2 + $0x4d0] sm:$0xff]  ;;  %v3328_v20 = vcombine.high %v2294_v18, %v2294_v18  ;;  %v2325_v22 = vcombine.low %v2294_v18, %v2294_v18 }
  0x28   : > { %1394 = vmatprep.subr.bf16.mxu1 %v2696_v27  ;;  %v3330_v21 = vcombine.high %v2489_v19, %v2489_v19  ;;  %v2520_v23 = vcombine.low %v2489_v19, %v2489_v19  ;;  %v3347_v26 = vld [vmem:[%s4436_s2 + $0x4] ss:$8 sps:$4 sm:$0xff]   ;;  %v3447_v19 = vld [vmem:[%s4436_s2 + $0x30] ss:$8 sps:$4 sm:$0xff]  }
  0x29   : > { %v3337_v24 = vsel %vm667_vm3, %v2325_v22, 0  ;;  %v3352_v27 = vld [vmem:[%s4436_s2 + $0x2ec] ss:$8 sps:$4 sm:$0xff]   ;;  %v3440_v18 = vld [vmem:[%s4436_s2 + $0x31c] ss:$8 sps:$4 sm:$0xff]  }
  0x2a   : > { %677 = vmatpush1.bf16.msra.mxu0 %v2691_v28  ;;  %v3340_v25 = vsel %vm667_vm3, %v2520_v23, 0  ;;  %v3452_v22 = vld [vmem:[%s4436_s2 + $0x318] ss:$8 sps:$4 sm:$0xff]   ;;  %v3459_v23 = vld [vmem:[%s4436_s2 + $0x44] ss:$8 sps:$4 sm:$0xff]  }
  0x2b   : > { %1395 = vmatpush1.bf16.msra.mxu1 %v2694_v29  ;;  %678 = vmatprep.subr.bf16.mxu0 %v2699_v30 }
  0x2c   : > { %1396 = vmatprep.subr.bf16.mxu1 %v2702_v31 }
  0x2e   : > { %679 = vmatpush1.bf16.msra.mxu0 %v2697_v32 }
  0x2f   : > { %1397 = vmatpush1.bf16.msra.mxu1 %v2700_v33  ;;  %680 = vmatprep.subr.bf16.mxu0 %v2705_v34 }
  0x30   : > { %1398 = vmatprep.subr.bf16.mxu1 %v2708_v35 }
  0x32   : > { %681 = vmatpush1.bf16.msra.mxu0 %v2703_v36 }
  0x33   : > { %1399 = vmatpush1.bf16.msra.mxu1 %v2706_v37  ;;  %682 = vmatprep.subr.bf16.mxu0 %v2711_v38 }
  0x34   : > { %1400 = vmatprep.subr.bf16.mxu1 %v2714_v39  ;;  %v3365_v39 = vld [vmem:[%s4436_s2] ss:$8 sps:$4 sm:$0xff]  }
  0x36   : > { %683 = vmatpush1.bf16.msra.mxu0 %v2709_v40  ;;  %v3370_v40 = vld [vmem:[%s4436_s2 + $0x2e8] ss:$8 sps:$4 sm:$0xff]  }
  0x37   : > { %1401 = vmatpush1.bf16.msra.mxu1 %v2712_v41  ;;  %684 = vmatprep.subr.bf16.mxu0 %v2717_v42  ;;  %v3375_v42 = vld [vmem:[%s4436_s2 + $0x14] ss:$8 sps:$4 sm:$0xff]  }
  0x38   : > { %1402 = vmatprep.subr.bf16.mxu1 %v2720_v43  ;;  %v3380_v43 = vld [vmem:[%s4436_s2 + $0x2fc] ss:$8 sps:$4 sm:$0xff]  }
  0x3a   : > { %685 = vmatpush1.bf16.msra.mxu0 %v2715_v44  ;;  %v3393_v44 = vld [vmem:[%s4436_s2 + $0x10] ss:$8 sps:$4 sm:$0xff]  }
  0x3b   : > { %1403 = vmatpush1.bf16.msra.mxu1 %v2718_v45  ;;  %686 = vmatprep.subr.bf16.mxu0 %v2723_v46  ;;  %v3398_v45 = vld [vmem:[%s4436_s2 + $0x2f8] ss:$8 sps:$4 sm:$0xff]  }
  0x3c   : > { %1404 = vmatprep.subr.bf16.mxu1 %v2726_v47  ;;  %v3405_v47 = vld [vmem:[%s4436_s2 + $0x24] ss:$8 sps:$4 sm:$0xff]  }
  0x3e   : > { %687 = vmatpush1.bf16.msra.mxu0 %v2721_v48  ;;  %v3410_v48 = vld [vmem:[%s4436_s2 + $0x30c] ss:$8 sps:$4 sm:$0xff]  }
  0x3f   : > { %1405 = vmatpush1.bf16.msra.mxu1 %v2724_v49  ;;  %688 = vmatprep.subr.bf16.mxu0 %v2729_v50 }
  0x40   : > { %1406 = vmatprep.subr.bf16.mxu1 %v2732_v51 }
  0x42   : > { %689 = vmatpush1.bf16.msra.mxu0 %v2727_v52 }
  0x43   : > { %1407 = vmatpush1.bf16.msra.mxu1 %v2730_v53  ;;  %690 = vmatprep.subr.bf16.mxu0 %v2735_v54  ;;  %v3421_v53 = vld [vmem:[%s4436_s2 + $0x20] ss:$8 sps:$4 sm:$0xff]  }
  0x44   : > { %1408 = vmatprep.subr.bf16.mxu1 %v2738_v55  ;;  %v3426_v54 = vld [vmem:[%s4436_s2 + $0x308] ss:$8 sps:$4 sm:$0xff]  }
  0x46   : > { %691 = vmatpush1.bf16.msra.mxu0 %v2733_v56  ;;  %v3435_v56 = vld [vmem:[%s4436_s2 + $0x34] ss:$8 sps:$4 sm:$0xff]  }
  0x47   : > { %1409 = vmatpush1.bf16.msra.mxu1 %v3175_v57  ;;  %692 = vmatprep.subr.bf16.mxu0 %v3180_v58 }
  0x48   : > { %1410 = vmatprep.subr.bf16.mxu1 %v3185_v59 }
  0x4a   : > { %693 = vmatpush1.bf16.msra.mxu0 %v3190_v60 }
  0x4b   : > { %1411 = vmatpush1.bf16.msra.mxu1 %v3195_v61  ;;  %694 = vmatprep.subr.bf16.mxu0 %v3200_v62 }
  0x4c   : > { %1412 = vmatprep.subr.bf16.mxu1 %v3205_v63 }
  0x4e   : > { %695 = vmatpush1.bf16.msra.mxu0 %v3213_v0 }
  0x4f   : > { %1413 = vmatpush1.bf16.msra.mxu1 %v3218_v1  ;;  %696 = vmatprep.subr.bf16.mxu0 %v3223_v2 }
  0x50   : > { %1414 = vmatprep.subr.bf16.mxu1 %v3229_v3 }
  0x52   : > { %697 = vmatpush1.bf16.msra.mxu0 %v3237_v4 }
  0x53   : > { %1415 = vmatpush1.bf16.msra.mxu1 %v3242_v5  ;;  %698 = vmatprep.subr.bf16.mxu0 %v3247_v6 }
  0x54   : > { %1416 = vmatprep.subr.bf16.mxu1 %v3253_v7 }
  0x56   : > { %699 = vmatpush1.bf16.msra.mxu0 %v3261_v8 }
  0x57   : > { %1417 = vmatpush1.bf16.msra.mxu1 %v3266_v9  ;;  %700 = vmatprep.subr.bf16.mxu0 %v3271_v10 }
  0x58   : > { %1418 = vmatprep.subr.bf16.mxu1 %v3277_v11 }
  0x5a   : > { %701 = vmatpush1.bf16.msra.mxu0 %v3285_v12 }
  0x5b   : > { %1419 = vmatpush1.bf16.msra.mxu1 %v3290_v13  ;;  %702 = vmatprep.subr.bf16.mxu0 %v3295_v14 }
  0x5c   : > { %1420 = vmatprep.subr.bf16.mxu1 %v3301_v15 }
  0x5e   : > { %703 = vmatpush1.bf16.msra.mxu0 %v3309_v16 }
  0x5f   : > { %1421 = vmatpush1.bf16.msra.mxu1 %v3314_v17  ;;  %2327 = vmatprep.subr.msk.bf16.mxu0 %vm667_vm3, %v3328_v20 }
  0x60   : > { %2522 = vmatprep.subr.msk.bf16.mxu1 %vm667_vm3, %v3330_v21 }
  0x62   : > { %705 = vmatpush1.bf16.msra.mxu0 %v3337_v24 }
  0x63   : > { %1423 = vmatpush1.bf16.msra.mxu1 %v3340_v25  ;;  %881 = vmatprep.subr.bf16.mxu0 %v3347_v26 }
  0x64   : > { %1596 = vmatprep.subr.bf16.mxu1 %v3352_v27 }
  0xf0   : > { %v322_v28 = vpop.f32.mrb[0].mxu1  ;;  %v266_v29 = vpop.f32.mrb[0].mxu0 }
  0xf1   : > { %v324_v30 = vpop.f32.mrb[1].mxu1  ;;  %v268_v31 = vpop.f32.mrb[1].mxu0 }
  0xf2   : > { %v326_v32 = vpop.f32.mrb[2].mxu1  ;;  %v270_v33 = vpop.f32.mrb[2].mxu0 }
  0xf3   : > { %v3356_v34 = vpack.c.bf16 %v326_v32, %v322_v28  ;;  %v328_v35 = vpop.f32.mrb[3].mxu1  ;;  %v3358_v36 = vpack.c.bf16 %v270_v33, %v266_v29  ;;  %v272_v37 = vpop.f32.mrb[3].mxu0  ;;  %v3464_v28 = vld [vmem:[%s4436_s2 + $0x32c] ss:$8 sps:$4 sm:$0xff]   ;;  %v3471_v29 = vld [vmem:[%s4436_s2 + $0x40] ss:$8 sps:$4 sm:$0xff]  }
  0xf4   : > { %v3360_v38 = vpack.c.bf16 %v328_v35, %v324_v30  ;;  %v276_v41 = vpack.c.bf16 %v272_v37, %v268_v31  ;;  %v3476_v30 = vld [vmem:[%s4436_s2 + $0x328] ss:$8 sps:$4 sm:$0xff]   ;;  %v3483_v31 = vld [vmem:[%s4436_s2 + $0x54] ss:$8 sps:$4 sm:$0xff]   ;;  %v3500_v35 = vld [vmem:[%s4436_s2 + $0x338] ss:$8 sps:$4 sm:$0xff]  }
  0xf5   : > { %4543 = vst [vmem:[#allocation2_spill] sm:$0xff] %v3356_v34  ;;  %4544 = vst [vmem:[#allocation3_spill] sm:$0xff] %v3476_v30  ;;  %v3488_v32 = vld [vmem:[%s4436_s2 + $0x33c] ss:$8 sps:$4 sm:$0xff]   ;;  %v3495_v33 = vld [vmem:[%s4436_s2 + $0x50] ss:$8 sps:$4 sm:$0xff]  }
  0xf6   : > { %2328 = vmatprep.mubr.msk.bf16.mxu0 %vm663_vm4, %v3360_v38  ;;  %2523 = vmatprep.mubr.msk.bf16.mxu1 %vm663_vm4, %v3360_v38  ;;  %4545 = vst [vmem:[#allocation4_spill] sm:$0xff] %v3483_v31  ;;  %4546 = vst [vmem:[#allocation5_spill] sm:$0xff] %v3488_v32  ;;  %v3507_v37 = vld [vmem:[%s4436_s2 + $0x64] ss:$8 sps:$4 sm:$0xff]  }
  0xf7   : > { %707 = vmatmul.mubr.bf16.vlgmr.msra.gmra.mrb[8].mxu0 %v3356_v34  ;;  %1425 = vmatmul.mubr.bf16.vlgmr.msra.gmra.mrb[8].mxu1 %v3356_v34  ;;  %4547 = vst [vmem:[#allocation6_spill] sm:$0xff] %v3495_v33  ;;  %4548 = vst [vmem:[#allocation7_spill] sm:$0xff] %v3500_v35  ;;  %v3524_v34 = vld [vmem:[%s4436_s2 + $0x348] ss:$8 sps:$4 sm:$0xff]  }
  0xf8   : > { %882 = vmatpush1.bf16.msra.mxu0 %v3365_v39  ;;  %1597 = vmatpush1.bf16.msra.mxu1 %v3370_v40  ;;  %v378_v46 = vpop.f32.mrb[4].mxu0  ;;  %4551 = vst [vmem:[#allocation10_spill] sm:$0xff] %v3524_v34 }
  0xf9   : > { %883 = vmatprep.subr.bf16.mxu0 %v3375_v42  ;;  %1598 = vmatprep.subr.bf16.mxu1 %v3380_v43  ;;  %v380_v49 = vpop.f32.mrb[5].mxu0 }
  0xfa   : > { %2362 = vmatprep.mubr.msk.bf16.mxu0 %vm663_vm4, %v276_v41  ;;  %2557 = vmatprep.mubr.msk.bf16.mxu1 %vm663_vm4, %v276_v41  ;;  %v382_v50 = vpop.f32.mrb[6].mxu0  ;;  %v3512_v41 = vld [vmem:[%s4436_s2 + $0x34c] ss:$8 sps:$4 sm:$0xff]  }
  0xfb   : > { %v3414_v51 = vpack.c.bf16 %v382_v50, %v378_v46  ;;  %v384_v52 = vpop.f32.mrb[7].mxu0  ;;  %4549 = vst [vmem:[#allocation8_spill] sm:$0xff] %v3512_v41  ;;  %v434_v46 = vpop.f32.mrb[4].mxu1 }
  0xfc   : > { %884 = vmatpush1.bf16.msra.mxu0 %v3393_v44  ;;  %1599 = vmatpush1.bf16.msra.mxu1 %v3398_v45  ;;  %v3428_v55 = vpack.c.bf16 %v384_v52, %v380_v49  ;;  %v436_v49 = vpop.f32.mrb[5].mxu1  ;;  %v3519_v52 = vld [vmem:[%s4436_s2 + $0x60] ss:$8 sps:$4 sm:$0xff]  }
  0xfd   : > { %885 = vmatprep.subr.bf16.mxu0 %v3405_v47  ;;  %1600 = vmatprep.subr.bf16.mxu1 %v3410_v48  ;;  %v438_v50 = vpop.f32.mrb[6].mxu1  ;;  %4550 = vst [vmem:[#allocation9_spill] sm:$0xff] %v3519_v52 }
 0x100   : > { %886 = vmatpush1.bf16.msra.mxu0 %v3421_v53  ;;  %1601 = vmatpush1.bf16.msra.mxu1 %v3426_v54 }
 0x101   : > { %887 = vmatprep.subr.bf16.mxu0 %v3435_v56  ;;  %1602 = vmatprep.subr.bf16.mxu1 %v3440_v18 }
 0x104   : > { %888 = vmatpush1.bf16.msra.mxu0 %v3447_v19  ;;  %1603 = vmatpush1.bf16.msra.mxu1 %v3452_v22 }
 0x105   : > { %889 = vmatprep.subr.bf16.mxu0 %v3459_v23  ;;  %1604 = vmatprep.subr.bf16.mxu1 %v3464_v28 }
 0x108   : > { %890 = vmatpush1.bf16.msra.mxu0 %v3471_v29  ;;  %1605 = vmatpush1.bf16.msra.mxu1 %v3476_v30 }
 0x109   : > { %891 = vmatprep.subr.bf16.mxu0 %v3483_v31  ;;  %1606 = vmatprep.subr.bf16.mxu1 %v3488_v32  ;;  %v3526_v32 = vpack.c.bf16 %v438_v50, %v434_v46  ;;  %v440_v31 = vpop.f32.mrb[7].mxu1  ;;  %v3547_v46 = vld [vmem:[%s4436_s2 + $0x70] ss:$8 sps:$4 sm:$0xff]  }
 0x10a   : > { %v3540_v30 = vpack.c.bf16 %v440_v31, %v436_v49  ;;  %4556 = vst [vmem:[#allocation15_spill] sm:$0xff] %v3547_v46  ;;  %v3552_v50 = vld [vmem:[%s4436_s2 + $0x358] ss:$8 sps:$4 sm:$0xff]   ;;  %v3559_v31 = vld [vmem:[%s4436_s2 + $0x84] ss:$8 sps:$4 sm:$0xff]  }
 0x10b   : > { %4552 = vst [vmem:[#allocation11_spill] sm:$0xff] %v3526_v32  ;;  %4557 = vst [vmem:[#allocation16_spill] sm:$0xff] %v3552_v50  ;;  %v3564_v49 = vld [vmem:[%s4436_s2 + $0x36c] ss:$8 sps:$4 sm:$0xff]   ;;  %v3571_v32 = vld [vmem:[%s4436_s2 + $0x80] ss:$8 sps:$4 sm:$0xff]  }
 0x10c   : > { %892 = vmatpush1.bf16.msra.mxu0 %v3495_v33  ;;  %1607 = vmatpush1.bf16.msra.mxu1 %v3500_v35  ;;  %v3533_v35 = vld [vmem:[%s4436_s2 + $0x74] ss:$8 sps:$4 sm:$0xff]   ;;  %4555 = vst [vmem:[#allocation14_spill] sm:$0xff] %v3540_v30  ;;  %4558 = vst [vmem:[#allocation17_spill] sm:$0xff] %v3559_v31  ;;  %v3576_v30 = vld [vmem:[%s4436_s2 + $0x368] ss:$8 sps:$4 sm:$0xff]  }
 0x10d   : > { %893 = vmatprep.subr.bf16.mxu0 %v3507_v37  ;;  %1608 = vmatprep.subr.bf16.mxu1 %v3512_v41  ;;  %4553 = vst [vmem:[#allocation12_spill] sm:$0xff] %v3533_v35  ;;  %v3538_v33 = vld [vmem:[%s4436_s2 + $0x35c] ss:$8 sps:$4 sm:$0xff]   ;;  %4559 = vst [vmem:[#allocation18_spill] sm:$0xff] %v3564_v49 }
 0x10e   : > { %4554 = vst [vmem:[#allocation13_spill] sm:$0xff] %v3538_v33  ;;  %4560 = vst [vmem:[#allocation19_spill] sm:$0xff] %v3571_v32 }
 0x10f   : > { %4561 = vst [vmem:[#allocation20_spill] sm:$0xff] %v3576_v30 }
 0x110   : > { %894 = vmatpush1.bf16.msra.mxu0 %v3519_v52  ;;  %1609 = vmatpush1.bf16.msra.mxu1 %v3524_v34 }
 0x111   : > { %895 = vmatprep.subr.bf16.mxu0 %v3533_v35  ;;  %1610 = vmatprep.subr.bf16.mxu1 %v3538_v33  ;;  %v475_v33 = vld [vmem:[%s4436_s2 + $0xf0] sm:$0xff] }
 0x112   : > { %v3726_v35 = vld [vmem:[%s4436_s2 + $0x3c8] ss:$8 sps:$4 sm:$0xff]   ;;  %v3728_v34 = vcombine.high %v475_v33, %v475_v33 }
 0x113   : > { %4584 = vst [vmem:[#allocation43_spill] sm:$0xff] %v3726_v35 }
 0x114   : > { %896 = vmatpush1.bf16.msra.mxu0 %v3547_v46  ;;  %1611 = vmatpush1.bf16.msra.mxu1 %v3552_v50  ;;  %v3583_v46 = vld [vmem:[%s4436_s2 + $0x94] ss:$8 sps:$4 sm:$0xff]   ;;  %4585 = vst [vmem:[#allocation44_spill] sm:$0xff] %v3728_v34 }
 0x115   : > { %897 = vmatprep.subr.bf16.mxu0 %v3559_v31  ;;  %1612 = vmatprep.subr.bf16.mxu1 %v3564_v49  ;;  %4562 = vst [vmem:[#allocation21_spill] sm:$0xff] %v3583_v46  ;;  %v3588_v50 = vld [vmem:[%s4436_s2 + $0x37c] ss:$8 sps:$4 sm:$0xff]   ;;  %v3595_v31 = vld [vmem:[%s4436_s2 + $0x90] ss:$8 sps:$4 sm:$0xff]  }
 0x116   : > { %4563 = vst [vmem:[#allocation22_spill] sm:$0xff] %v3588_v50  ;;  %4564 = vst [vmem:[#allocation23_spill] sm:$0xff] %v3595_v31  ;;  %v3600_v49 = vld [vmem:[%s4436_s2 + $0x378] ss:$8 sps:$4 sm:$0xff]  }
 0x117   : > { %4565 = vst [vmem:[#allocation24_spill] sm:$0xff] %v3600_v49 }
 0x118   : > { %898 = vmatpush1.bf16.msra.mxu0 %v3571_v32  ;;  %1613 = vmatpush1.bf16.msra.mxu1 %v3576_v30  ;;  %v3607_v32 = vld [vmem:[%s4436_s2 + $0xa4] ss:$8 sps:$4 sm:$0xff]  }
 0x119   : > { %899 = vmatprep.subr.bf16.mxu0 %v3583_v46  ;;  %1614 = vmatprep.subr.bf16.mxu1 %v3588_v50  ;;  %4566 = vst [vmem:[#allocation25_spill] sm:$0xff] %v3607_v32  ;;  %v3612_v30 = vld [vmem:[%s4436_s2 + $0x38c] ss:$8 sps:$4 sm:$0xff]   ;;  %v3619_v46 = vld [vmem:[%s4436_s2 + $0xa0] ss:$8 sps:$4 sm:$0xff]  }
 0x11a   : > { %4567 = vst [vmem:[#allocation26_spill] sm:$0xff] %v3612_v30  ;;  %4568 = vst [vmem:[#allocation27_spill] sm:$0xff] %v3619_v46  ;;  %v3624_v50 = vld [vmem:[%s4436_s2 + $0x388] ss:$8 sps:$4 sm:$0xff]  }
 0x11b   : > { %4569 = vst [vmem:[#allocation28_spill] sm:$0xff] %v3624_v50 }
 0x11c   : > { %900 = vmatpush1.bf16.msra.mxu0 %v3595_v31  ;;  %1615 = vmatpush1.bf16.msra.mxu1 %v3600_v49  ;;  %v3631_v31 = vld [vmem:[%s4436_s2 + $0xb4] ss:$8 sps:$4 sm:$0xff]  }
 0x11d   : > { %901 = vmatprep.subr.bf16.mxu0 %v3607_v32  ;;  %1616 = vmatprep.subr.bf16.mxu1 %v3612_v30  ;;  %4570 = vst [vmem:[#allocation29_spill] sm:$0xff] %v3631_v31  ;;  %v3636_v49 = vld [vmem:[%s4436_s2 + $0x39c] ss:$8 sps:$4 sm:$0xff]   ;;  %v3643_v32 = vld [vmem:[%s4436_s2 + $0xb0] ss:$8 sps:$4 sm:$0xff]  }
 0x11e   : > { %4571 = vst [vmem:[#allocation30_spill] sm:$0xff] %v3636_v49  ;;  %4572 = vst [vmem:[#allocation31_spill] sm:$0xff] %v3643_v32  ;;  %v3648_v30 = vld [vmem:[%s4436_s2 + $0x398] ss:$8 sps:$4 sm:$0xff]  }
 0x11f   : > { %4573 = vst [vmem:[#allocation32_spill] sm:$0xff] %v3648_v30 }
 0x120   : > { %902 = vmatpush1.bf16.msra.mxu0 %v3619_v46  ;;  %1617 = vmatpush1.bf16.msra.mxu1 %v3624_v50  ;;  %v3655_v46 = vld [vmem:[%s4436_s2 + $0xc4] ss:$8 sps:$4 sm:$0xff]  }
 0x121   : > { %903 = vmatprep.subr.bf16.mxu0 %v3631_v31  ;;  %1618 = vmatprep.subr.bf16.mxu1 %v3636_v49  ;;  %4574 = vst [vmem:[#allocation33_spill] sm:$0xff] %v3655_v46  ;;  %v3660_v50 = vld [vmem:[%s4436_s2 + $0x3ac] ss:$8 sps:$4 sm:$0xff]   ;;  %v3667_v31 = vld [vmem:[%s4436_s2 + $0xc0] ss:$8 sps:$4 sm:$0xff]  }
 0x122   : > { %4575 = vst [vmem:[#allocation34_spill] sm:$0xff] %v3660_v50  ;;  %4576 = vst [vmem:[#allocation35_spill] sm:$0xff] %v3667_v31  ;;  %v3672_v49 = vld [vmem:[%s4436_s2 + $0x3a8] ss:$8 sps:$4 sm:$0xff]  }
 0x123   : > { %4577 = vst [vmem:[#allocation36_spill] sm:$0xff] %v3672_v49 }
 0x124   : > { %904 = vmatpush1.bf16.msra.mxu0 %v3643_v32  ;;  %1619 = vmatpush1.bf16.msra.mxu1 %v3648_v30  ;;  %v3679_v32 = vld [vmem:[%s4436_s2 + $0xd4] ss:$8 sps:$4 sm:$0xff]  }
 0x125   : > { %905 = vmatprep.subr.bf16.mxu0 %v3655_v46  ;;  %1620 = vmatprep.subr.bf16.mxu1 %v3660_v50  ;;  %4578 = vst [vmem:[#allocation37_spill] sm:$0xff] %v3679_v32  ;;  %v3684_v30 = vld [vmem:[%s4436_s2 + $0x3bc] ss:$8 sps:$4 sm:$0xff]   ;;  %v3691_v46 = vld [vmem:[%s4436_s2 + $0xd0] ss:$8 sps:$4 sm:$0xff]  }
 0x126   : > { %4579 = vst [vmem:[#allocation38_spill] sm:$0xff] %v3684_v30  ;;  %4580 = vst [vmem:[#allocation39_spill] sm:$0xff] %v3691_v46  ;;  %v3696_v50 = vld [vmem:[%s4436_s2 + $0x3b8] ss:$8 sps:$4 sm:$0xff]  }
 0x127   : > { %4581 = vst [vmem:[#allocation40_spill] sm:$0xff] %v3696_v50 }
 0x128   : > { %906 = vmatpush1.bf16.msra.mxu0 %v3667_v31  ;;  %1621 = vmatpush1.bf16.msra.mxu1 %v3672_v49  ;;  %v3703_v31 = vld [vmem:[%s4436_s2 + $0xe4] ss:$8 sps:$4 sm:$0xff]  }
 0x129   : > { %907 = vmatprep.subr.bf16.mxu0 %v3679_v32  ;;  %1622 = vmatprep.subr.bf16.mxu1 %v3684_v30  ;;  %4582 = vst [vmem:[#allocation41_spill] sm:$0xff] %v3703_v31  ;;  %v3708_v49 = vld [vmem:[%s4436_s2 + $0x3cc] ss:$8 sps:$4 sm:$0xff]   ;;  %v2458_v32 = vld [vmem:[%s4436_s2 + $0x3d8] sm:$0xff]  ;;  %v3721_v30 = vld [vmem:[%s4436_s2 + $0xe0] ss:$8 sps:$4 sm:$0xff]  }
 0x12a   : > { %4583 = vst [vmem:[#allocation42_spill] sm:$0xff] %v3721_v30  ;;  %v3732_v52 = vcombine.high %v2458_v32, %v2458_v32 }
 0x12c   : > { %908 = vmatpush1.bf16.msra.mxu0 %v3691_v46  ;;  %1623 = vmatpush1.bf16.msra.mxu1 %v3696_v50  ;;  %4586 = vst [vmem:[#allocation45_spill] sm:$0xff] %v3732_v52  ;;  %v2359_v46 = vcombine.low %v475_v33, %v475_v33  ;;  %v2554_v50 = vcombine.low %v2458_v32, %v2458_v32  ;;  %v3749_v32 = vld [vmem:[%s4436_s2 + $0x1f4] ss:$8 sps:$4 sm:$0xff]  }
 0x12d   : > { %909 = vmatprep.subr.bf16.mxu0 %v3703_v31  ;;  %1624 = vmatprep.subr.bf16.mxu1 %v3708_v49  ;;  %4589 = vst [vmem:[#allocation48_spill] sm:$0xff] %v3749_v32  ;;  %v3754_v33 = vld [vmem:[%s4436_s2 + $0x4dc] ss:$8 sps:$4 sm:$0xff]  }
 0x12e   : > { %v3741_v41 = vsel %vm667_vm3, %v2359_v46, 0  ;;  %v3744_v31 = vsel %vm667_vm3, %v2554_v50, 0  ;;  %4590 = vst [vmem:[#allocation49_spill] sm:$0xff] %v3754_v33  ;;  %v3761_v46 = vld [vmem:[%s4436_s2 + $0x1f0] ss:$8 sps:$4 sm:$0xff]  }
 0x12f   : > { %4587 = vst [vmem:[#allocation46_spill] sm:$0xff] %v3741_v41  ;;  %4588 = vst [vmem:[#allocation47_spill] sm:$0xff] %v3744_v31  ;;  %v3766_v50 = vld [vmem:[%s4436_s2 + $0x4d8] ss:$8 sps:$4 sm:$0xff]  }
 0x130   : > { %910 = vmatpush1.bf16.msra.mxu0 %v3721_v30  ;;  %1625 = vmatpush1.bf16.msra.mxu1 %v3726_v35  ;;  %4591 = vst [vmem:[#allocation50_spill] sm:$0xff] %v3761_v46  ;;  %4592 = vst [vmem:[#allocation51_spill] sm:$0xff] %v3766_v50 }
 0x131   : > { %2361 = vmatprep.subr.msk.bf16.mxu0 %vm667_vm3, %v3728_v34  ;;  %2556 = vmatprep.subr.msk.bf16.mxu1 %vm667_vm3, %v3732_v52  ;;  %v4114_v52 = vld [vmem:[%s4436_s2 + $0x5b8] ss:$8 sps:$4 sm:$0xff]  }
 0x134   : > { %912 = vmatpush1.bf16.msra.mxu0 %v3741_v41  ;;  %1627 = vmatpush1.bf16.msra.mxu1 %v3744_v31  ;;  %v3773_v41 = vld [vmem:[%s4436_s2 + $0x204] ss:$8 sps:$4 sm:$0xff]  }
 0x135   : > { %1120 = vmatprep.subr.bf16.mxu0 %v3749_v32  ;;  %1832 = vmatprep.subr.bf16.mxu1 %v3754_v33  ;;  %4593 = vst [vmem:[#allocation52_spill] sm:$0xff] %v3773_v41  ;;  %v3778_v31 = vld [vmem:[%s4436_s2 + $0x4ec] ss:$8 sps:$4 sm:$0xff]   ;;  %v3787_v33 = vld [vmem:[%s4436_s2 + $0x200] ss:$8 sps:$4 sm:$0xff]  }
 0x136   : > { %4594 = vst [vmem:[#allocation53_spill] sm:$0xff] %v3778_v31  ;;  %4595 = vst [vmem:[#allocation54_spill] sm:$0xff] %v3787_v33  ;;  %v3792_v32 = vld [vmem:[%s4436_s2 + $0x4e8] ss:$8 sps:$4 sm:$0xff]  }
 0x137   : > { %914 = vmatmul.mubr.bf16.vlgmr.msra.gmra.mrb[8].mxu0 %v3358_v36  ;;  %1629 = vmatmul.mubr.bf16.vlgmr.msra.gmra.mrb[8].mxu1 %v3358_v36  ;;  %4596 = vst [vmem:[#allocation55_spill] sm:$0xff] %v3792_v32  ;;  %v3799_v36 = vld [vmem:[%s4436_s2 + $0x214] ss:$8 sps:$4 sm:$0xff]  }
 0x138   : > { %1121 = vmatpush1.bf16.msra.mxu0 %v3761_v46  ;;  %1833 = vmatpush1.bf16.msra.mxu1 %v3766_v50  ;;  %4597 = vst [vmem:[#allocation56_spill] sm:$0xff] %v3799_v36  ;;  %v3804_v50 = vld [vmem:[%s4436_s2 + $0x4fc] ss:$8 sps:$4 sm:$0xff]  }
 0x139   : > { %1122 = vmatprep.subr.bf16.mxu0 %v3773_v41  ;;  %1834 = vmatprep.subr.bf16.mxu1 %v3778_v31  ;;  %4598 = vst [vmem:[#allocation57_spill] sm:$0xff] %v3804_v50  ;;  %v3815_v31 = vld [vmem:[%s4436_s2 + $0x210] ss:$8 sps:$4 sm:$0xff]   ;;  %v2393_v46 = vld [vmem:[%s4436_s2 + $0x2e0] sm:$0xff] }
 0x13a   : > { %2427 = vmatprep.mubr.msk.bf16.mxu0 %vm663_vm4, %v3428_v55  ;;  %2622 = vmatprep.mubr.msk.bf16.mxu1 %vm663_vm4, %v3428_v55  ;;  %4599 = vst [vmem:[#allocation58_spill] sm:$0xff] %v3815_v31  ;;  %v3820_v41 = vld [vmem:[%s4436_s2 + $0x4f8] ss:$8 sps:$4 sm:$0xff]   ;;  %v4116_v34 = vcombine.high %v2393_v46, %v2393_v46 }
 0x13b   : > { %4600 = vst [vmem:[#allocation59_spill] sm:$0xff] %v3820_v41 }
 0x13c   : > { %1123 = vmatpush1.bf16.msra.mxu0 %v3787_v33  ;;  %1835 = vmatpush1.bf16.msra.mxu1 %v3792_v32  ;;  %v3827_v33 = vld [vmem:[%s4436_s2 + $0x224] ss:$8 sps:$4 sm:$0xff]  }
 0x13d   : > { %1124 = vmatprep.subr.bf16.mxu0 %v3799_v36  ;;  %1836 = vmatprep.subr.bf16.mxu1 %v3804_v50  ;;  %4601 = vst [vmem:[#allocation60_spill] sm:$0xff] %v3827_v33  ;;  %v3832_v32 = vld [vmem:[%s4436_s2 + $0x50c] ss:$8 sps:$4 sm:$0xff]   ;;  %v3839_v36 = vld [vmem:[%s4436_s2 + $0x220] ss:$8 sps:$4 sm:$0xff]  }
 0x13e   : > { %4602 = vst [vmem:[#allocation61_spill] sm:$0xff] %v3832_v32  ;;  %4603 = vst [vmem:[#allocation62_spill] sm:$0xff] %v3839_v36  ;;  %v3844_v50 = vld [vmem:[%s4436_s2 + $0x508] ss:$8 sps:$4 sm:$0xff]  }
 0x13f   : > { %4604 = vst [vmem:[#allocation63_spill] sm:$0xff] %v3844_v50 }
 0x140   : > { %1125 = vmatpush1.bf16.msra.mxu0 %v3815_v31  ;;  %1837 = vmatpush1.bf16.msra.mxu1 %v3820_v41  ;;  %v3851_v31 = vld [vmem:[%s4436_s2 + $0x234] ss:$8 sps:$4 sm:$0xff]  }
 0x141   : > { %1126 = vmatprep.subr.bf16.mxu0 %v3827_v33  ;;  %1838 = vmatprep.subr.bf16.mxu1 %v3832_v32  ;;  %4605 = vst [vmem:[#allocation64_spill] sm:$0xff] %v3851_v31  ;;  %v3856_v41 = vld [vmem:[%s4436_s2 + $0x51c] ss:$8 sps:$4 sm:$0xff]   ;;  %v3863_v33 = vld [vmem:[%s4436_s2 + $0x230] ss:$8 sps:$4 sm:$0xff]  }
 0x142   : > { %4606 = vst [vmem:[#allocation65_spill] sm:$0xff] %v3856_v41  ;;  %4607 = vst [vmem:[#allocation66_spill] sm:$0xff] %v3863_v33  ;;  %v3868_v32 = vld [vmem:[%s4436_s2 + $0x518] ss:$8 sps:$4 sm:$0xff]  }
 0x143   : > { %4608 = vst [vmem:[#allocation67_spill] sm:$0xff] %v3868_v32 }
 0x144   : > { %1127 = vmatpush1.bf16.msra.mxu0 %v3839_v36  ;;  %1839 = vmatpush1.bf16.msra.mxu1 %v3844_v50  ;;  %v3875_v36 = vld [vmem:[%s4436_s2 + $0x244] ss:$8 sps:$4 sm:$0xff]  }
 0x145   : > { %1128 = vmatprep.subr.bf16.mxu0 %v3851_v31  ;;  %1840 = vmatprep.subr.bf16.mxu1 %v3856_v41  ;;  %4609 = vst [vmem:[#allocation68_spill] sm:$0xff] %v3875_v36  ;;  %v3880_v50 = vld [vmem:[%s4436_s2 + $0x52c] ss:$8 sps:$4 sm:$0xff]   ;;  %v3887_v31 = vld [vmem:[%s4436_s2 + $0x240] ss:$8 sps:$4 sm:$0xff]  }
 0x146   : > { %4610 = vst [vmem:[#allocation69_spill] sm:$0xff] %v3880_v50  ;;  %4611 = vst [vmem:[#allocation70_spill] sm:$0xff] %v3887_v31  ;;  %v3892_v41 = vld [vmem:[%s4436_s2 + $0x528] ss:$8 sps:$4 sm:$0xff]  }
 0x147   : > { %4612 = vst [vmem:[#allocation71_spill] sm:$0xff] %v3892_v41 }
 0x148   : > { %1129 = vmatpush1.bf16.msra.mxu0 %v3863_v33  ;;  %1841 = vmatpush1.bf16.msra.mxu1 %v3868_v32  ;;  %v3899_v33 = vld [vmem:[%s4436_s2 + $0x254] ss:$8 sps:$4 sm:$0xff]  }
 0x149   : > { %1130 = vmatprep.subr.bf16.mxu0 %v3875_v36  ;;  %1842 = vmatprep.subr.bf16.mxu1 %v3880_v50  ;;  %4613 = vst [vmem:[#allocation72_spill] sm:$0xff] %v3899_v33  ;;  %v3904_v32 = vld [vmem:[%s4436_s2 + $0x53c] ss:$8 sps:$4 sm:$0xff]   ;;  %v3911_v36 = vld [vmem:[%s4436_s2 + $0x250] ss:$8 sps:$4 sm:$0xff]  }
 0x14a   : > { %4614 = vst [vmem:[#allocation73_spill] sm:$0xff] %v3904_v32  ;;  %4615 = vst [vmem:[#allocation74_spill] sm:$0xff] %v3911_v36  ;;  %v3916_v50 = vld [vmem:[%s4436_s2 + $0x538] ss:$8 sps:$4 sm:$0xff]  }
 0x14b   : > { %4616 = vst [vmem:[#allocation75_spill] sm:$0xff] %v3916_v50 }
 0x14c   : > { %1131 = vmatpush1.bf16.msra.mxu0 %v3887_v31  ;;  %1843 = vmatpush1.bf16.msra.mxu1 %v3892_v41  ;;  %v3923_v31 = vld [vmem:[%s4436_s2 + $0x264] ss:$8 sps:$4 sm:$0xff]  }
 0x14d   : > { %1132 = vmatprep.subr.bf16.mxu0 %v3899_v33  ;;  %1844 = vmatprep.subr.bf16.mxu1 %v3904_v32  ;;  %4617 = vst [vmem:[#allocation76_spill] sm:$0xff] %v3923_v31  ;;  %v3928_v41 = vld [vmem:[%s4436_s2 + $0x54c] ss:$8 sps:$4 sm:$0xff]   ;;  %v3935_v33 = vld [vmem:[%s4436_s2 + $0x260] ss:$8 sps:$4 sm:$0xff]  }
 0x14e   : > { %4618 = vst [vmem:[#allocation77_spill] sm:$0xff] %v3928_v41  ;;  %4619 = vst [vmem:[#allocation78_spill] sm:$0xff] %v3935_v33  ;;  %v3940_v32 = vld [vmem:[%s4436_s2 + $0x548] ss:$8 sps:$4 sm:$0xff]  }
 0x14f   : > { %4620 = vst [vmem:[#allocation79_spill] sm:$0xff] %v3940_v32 }
 0x150   : > { %1133 = vmatpush1.bf16.msra.mxu0 %v3911_v36  ;;  %1845 = vmatpush1.bf16.msra.mxu1 %v3916_v50  ;;  %v3947_v36 = vld [vmem:[%s4436_s2 + $0x274] ss:$8 sps:$4 sm:$0xff]  }
 0x151   : > { %1134 = vmatprep.subr.bf16.mxu0 %v3923_v31  ;;  %1846 = vmatprep.subr.bf16.mxu1 %v3928_v41  ;;  %4621 = vst [vmem:[#allocation80_spill] sm:$0xff] %v3947_v36  ;;  %v3952_v50 = vld [vmem:[%s4436_s2 + $0x55c] ss:$8 sps:$4 sm:$0xff]   ;;  %v3959_v31 = vld [vmem:[%s4436_s2 + $0x270] ss:$8 sps:$4 sm:$0xff]  }
 0x152   : > { %4622 = vst [vmem:[#allocation81_spill] sm:$0xff] %v3952_v50  ;;  %4623 = vst [vmem:[#allocation82_spill] sm:$0xff] %v3959_v31  ;;  %v3964_v41 = vld [vmem:[%s4436_s2 + $0x558] ss:$8 sps:$4 sm:$0xff]  }
 0x153   : > { %4624 = vst [vmem:[#allocation83_spill] sm:$0xff] %v3964_v41 }
 0x154   : > { %1135 = vmatpush1.bf16.msra.mxu0 %v3935_v33  ;;  %1847 = vmatpush1.bf16.msra.mxu1 %v3940_v32  ;;  %v3971_v33 = vld [vmem:[%s4436_s2 + $0x284] ss:$8 sps:$4 sm:$0xff]  }
 0x155   : > { %1136 = vmatprep.subr.bf16.mxu0 %v3947_v36  ;;  %1848 = vmatprep.subr.bf16.mxu1 %v3952_v50  ;;  %4625 = vst [vmem:[#allocation84_spill] sm:$0xff] %v3971_v33  ;;  %v3976_v32 = vld [vmem:[%s4436_s2 + $0x56c] ss:$8 sps:$4 sm:$0xff]   ;;  %v3983_v36 = vld [vmem:[%s4436_s2 + $0x280] ss:$8 sps:$4 sm:$0xff]  }
 0x156   : > { %4626 = vst [vmem:[#allocation85_spill] sm:$0xff] %v3976_v32  ;;  %4627 = vst [vmem:[#allocation86_spill] sm:$0xff] %v3983_v36  ;;  %v3988_v50 = vld [vmem:[%s4436_s2 + $0x568] ss:$8 sps:$4 sm:$0xff]  }
 0x157   : > { %4628 = vst [vmem:[#allocation87_spill] sm:$0xff] %v3988_v50 }
 0x158   : > { %1137 = vmatpush1.bf16.msra.mxu0 %v3959_v31  ;;  %1849 = vmatpush1.bf16.msra.mxu1 %v3964_v41  ;;  %v3995_v31 = vld [vmem:[%s4436_s2 + $0x294] ss:$8 sps:$4 sm:$0xff]  }
 0x159   : > { %1138 = vmatprep.subr.bf16.mxu0 %v3971_v33  ;;  %1850 = vmatprep.subr.bf16.mxu1 %v3976_v32  ;;  %4629 = vst [vmem:[#allocation88_spill] sm:$0xff] %v3995_v31  ;;  %v4000_v41 = vld [vmem:[%s4436_s2 + $0x57c] ss:$8 sps:$4 sm:$0xff]   ;;  %v4007_v33 = vld [vmem:[%s4436_s2 + $0x290] ss:$8 sps:$4 sm:$0xff]  }
 0x15a   : > { %4630 = vst [vmem:[#allocation89_spill] sm:$0xff] %v4000_v41  ;;  %4631 = vst [vmem:[#allocation90_spill] sm:$0xff] %v4007_v33  ;;  %v4012_v32 = vld [vmem:[%s4436_s2 + $0x578] ss:$8 sps:$4 sm:$0xff]  }
 0x15b   : > { %4632 = vst [vmem:[#allocation91_spill] sm:$0xff] %v4012_v32 }
 0x15c   : > { %1139 = vmatpush1.bf16.msra.mxu0 %v3983_v36  ;;  %1851 = vmatpush1.bf16.msra.mxu1 %v3988_v50  ;;  %v4019_v36 = vld [vmem:[%s4436_s2 + $0x2a4] ss:$8 sps:$4 sm:$0xff]  }
 0x15d   : > { %1140 = vmatprep.subr.bf16.mxu0 %v3995_v31  ;;  %1852 = vmatprep.subr.bf16.mxu1 %v4000_v41  ;;  %4633 = vst [vmem:[#allocation92_spill] sm:$0xff] %v4019_v36  ;;  %v4024_v50 = vld [vmem:[%s4436_s2 + $0x58c] ss:$8 sps:$4 sm:$0xff]   ;;  %v4031_v31 = vld [vmem:[%s4436_s2 + $0x2a0] ss:$8 sps:$4 sm:$0xff]  }
 0x15e   : > { %4634 = vst [vmem:[#allocation93_spill] sm:$0xff] %v4024_v50  ;;  %4635 = vst [vmem:[#allocation94_spill] sm:$0xff] %v4031_v31  ;;  %v4036_v41 = vld [vmem:[%s4436_s2 + $0x588] ss:$8 sps:$4 sm:$0xff]  }
 0x15f   : > { %4636 = vst [vmem:[#allocation95_spill] sm:$0xff] %v4036_v41 }
 0x160   : > { %1141 = vmatpush1.bf16.msra.mxu0 %v4007_v33  ;;  %1853 = vmatpush1.bf16.msra.mxu1 %v4012_v32  ;;  %v4043_v33 = vld [vmem:[%s4436_s2 + $0x2b4] ss:$8 sps:$4 sm:$0xff]  }
 0x161   : > { %1142 = vmatprep.subr.bf16.mxu0 %v4019_v36  ;;  %1854 = vmatprep.subr.bf16.mxu1 %v4024_v50  ;;  %4637 = vst [vmem:[#allocation96_spill] sm:$0xff] %v4043_v33  ;;  %v4048_v32 = vld [vmem:[%s4436_s2 + $0x59c] ss:$8 sps:$4 sm:$0xff]   ;;  %v4055_v36 = vld [vmem:[%s4436_s2 + $0x2b0] ss:$8 sps:$4 sm:$0xff]  }
 0x162   : > { %4638 = vst [vmem:[#allocation97_spill] sm:$0xff] %v4048_v32  ;;  %4639 = vst [vmem:[#allocation98_spill] sm:$0xff] %v4055_v36  ;;  %v4060_v50 = vld [vmem:[%s4436_s2 + $0x598] ss:$8 sps:$4 sm:$0xff]  }
 0x163   : > { %4640 = vst [vmem:[#allocation99_spill] sm:$0xff] %v4060_v50 }
 0x164   : > { %1143 = vmatpush1.bf16.msra.mxu0 %v4031_v31  ;;  %1855 = vmatpush1.bf16.msra.mxu1 %v4036_v41  ;;  %v4067_v31 = vld [vmem:[%s4436_s2 + $0x2c4] ss:$8 sps:$4 sm:$0xff]  }
 0x165   : > { %1144 = vmatprep.subr.bf16.mxu0 %v4043_v33  ;;  %1856 = vmatprep.subr.bf16.mxu1 %v4048_v32  ;;  %4641 = vst [vmem:[#allocation100_spill] sm:$0xff] %v4067_v31  ;;  %v4072_v41 = vld [vmem:[%s4436_s2 + $0x5ac] ss:$8 sps:$4 sm:$0xff]   ;;  %v4079_v33 = vld [vmem:[%s4436_s2 + $0x2c0] ss:$8 sps:$4 sm:$0xff]  }
 0x166   : > { %4642 = vst [vmem:[#allocation101_spill] sm:$0xff] %v4072_v41  ;;  %4643 = vst [vmem:[#allocation102_spill] sm:$0xff] %v4079_v33  ;;  %v4084_v32 = vld [vmem:[%s4436_s2 + $0x5a8] ss:$8 sps:$4 sm:$0xff]  }
 0x167   : > { %4644 = vst [vmem:[#allocation103_spill] sm:$0xff] %v4084_v32 }
 0x168   : > { %1145 = vmatpush1.bf16.msra.mxu0 %v4055_v36  ;;  %1857 = vmatpush1.bf16.msra.mxu1 %v4060_v50  ;;  %v4091_v36 = vld [vmem:[%s4436_s2 + $0x2d4] ss:$8 sps:$4 sm:$0xff]  }
 0x169   : > { %1146 = vmatprep.subr.bf16.mxu0 %v4067_v31  ;;  %1858 = vmatprep.subr.bf16.mxu1 %v4072_v41  ;;  %4645 = vst [vmem:[#allocation104_spill] sm:$0xff] %v4091_v36  ;;  %v4096_v50 = vld [vmem:[%s4436_s2 + $0x5bc] ss:$8 sps:$4 sm:$0xff]   ;;  %v2588_v31 = vld [vmem:[%s4436_s2 + $0x5c8] sm:$0xff]  ;;  %v4109_v41 = vld [vmem:[%s4436_s2 + $0x2d0] ss:$8 sps:$4 sm:$0xff]  }
 0x16a   : > { %v4120_v35 = vcombine.high %v2588_v31, %v2588_v31 }
 0x16c   : > { %1147 = vmatpush1.bf16.msra.mxu0 %v4079_v33  ;;  %1859 = vmatpush1.bf16.msra.mxu1 %v4084_v32  ;;  %v2424_v33 = vcombine.low %v2393_v46, %v2393_v46  ;;  %v2619_v32 = vcombine.low %v2588_v31, %v2588_v31  ;;  %v2967_v31 = vld [vmem:[%s4436_s2 + $0xfc] ss:$8 sps:$4 sm:$0xff]  }
 0x16d   : > { %1148 = vmatprep.subr.bf16.mxu0 %v4091_v36  ;;  %1860 = vmatprep.subr.bf16.mxu1 %v4096_v50  ;;  %v2968_v46 = vld [vmem:[%s4436_s2 + $0x3e4] ss:$8 sps:$4 sm:$0xff]  }
 0x16e   : > { %v4129_v30 = vsel %vm667_vm3, %v2424_v33, 0  ;;  %v4132_v36 = vsel %vm667_vm3, %v2619_v32, 0  ;;  %v2969_v32 = vld [vmem:[%s4436_s2 + $0xf8] ss:$8 sps:$4 sm:$0xff]  }
 0x16f   : > { %v2970_v33 = vld [vmem:[%s4436_s2 + $0x3e0] ss:$8 sps:$4 sm:$0xff]  }
 0x170   : > { %1149 = vmatpush1.bf16.msra.mxu0 %v4109_v41  ;;  %1861 = vmatpush1.bf16.msra.mxu1 %v4114_v52 }
 0x171   : > { %2426 = vmatprep.subr.msk.bf16.mxu0 %vm667_vm3, %v4116_v34  ;;  %2621 = vmatprep.subr.msk.bf16.mxu1 %vm667_vm3, %v4120_v35 }
 0x174   : > { %1151 = vmatpush1.bf16.msra.mxu0 %v4129_v30  ;;  %1863 = vmatpush1.bf16.msra.mxu1 %v4132_v36 }
 0x175   : > { %1883 = vmatprep.subr.bf16.mxu0 %v2967_v31  ;;  %2023 = vmatprep.subr.bf16.mxu1 %v2968_v46  ;;  %v2971_v31 = vld [vmem:[%s4436_s2 + $0x10c] ss:$8 sps:$4 sm:$0xff]  }
 0x176   : > { %v2972_v46 = vld [vmem:[%s4436_s2 + $0x3f4] ss:$8 sps:$4 sm:$0xff]  }
 0x177   : > { %1153 = vmatmul.mubr.bf16.vlgmr.msra.gmra.mrb[8].mxu0 %v3414_v51  ;;  %1865 = vmatmul.mubr.bf16.vlgmr.msra.gmra.mrb[8].mxu1 %v3414_v51 }
 0x178   : > { %1884 = vmatpush1.bf16.msra.mxu0 %v2969_v32  ;;  %2624 = vmatprep.mubr.msk.bf16.mxu0 %vm663_vm4, %v3428_v55  ;;  %v2973_v32 = vld [vmem:[%s4436_s2 + $0x108] ss:$8 sps:$4 sm:$0xff]  }
 0x179   : > { %2024 = vmatpush1.bf16.msra.mxu1 %v2970_v33  ;;  %2630 = vmatprep.mubr.msk.bf16.mxu1 %vm663_vm4, %v3428_v55  ;;  %v2974_v33 = vld [vmem:[%s4436_s2 + $0x3f0] ss:$8 sps:$4 sm:$0xff]   ;;  %v2975_v55 = vld [vmem:[%s4436_s2 + $0x11c] ss:$8 sps:$4 sm:$0xff]  }
 0x17a   : > { %1885 = vmatprep.subr.bf16.mxu0 %v2971_v31  ;;  %2025 = vmatprep.subr.bf16.mxu1 %v2972_v46  ;;  %v2976_v31 = vld [vmem:[%s4436_s2 + $0x404] ss:$8 sps:$4 sm:$0xff]   ;;  %v2977_v46 = vld [vmem:[%s4436_s2 + $0x118] ss:$8 sps:$4 sm:$0xff]  }
 0x17c   : > { %1886 = vmatpush1.bf16.msra.mxu0 %v2973_v32  ;;  %v2978_v32 = vld [vmem:[%s4436_s2 + $0x400] ss:$8 sps:$4 sm:$0xff]  }
 0x17d   : > { %2026 = vmatpush1.bf16.msra.mxu1 %v2974_v33  ;;  %1887 = vmatprep.subr.bf16.mxu0 %v2975_v55  ;;  %v2979_v33 = vld [vmem:[%s4436_s2 + $0x12c] ss:$8 sps:$4 sm:$0xff]  }
 0x17e   : > { %2027 = vmatprep.subr.bf16.mxu1 %v2976_v31  ;;  %v2980_v55 = vld [vmem:[%s4436_s2 + $0x414] ss:$8 sps:$4 sm:$0xff]   ;;  %v2981_v31 = vld [vmem:[%s4436_s2 + $0x128] ss:$8 sps:$4 sm:$0xff]  }
 0x180   : > { %1888 = vmatpush1.bf16.msra.mxu0 %v2977_v46  ;;  %v2982_v46 = vld [vmem:[%s4436_s2 + $0x410] ss:$8 sps:$4 sm:$0xff]  }
 0x181   : > { %2028 = vmatpush1.bf16.msra.mxu1 %v2978_v32  ;;  %1889 = vmatprep.subr.bf16.mxu0 %v2979_v33  ;;  %v2983_v32 = vld [vmem:[%s4436_s2 + $0x13c] ss:$8 sps:$4 sm:$0xff]  }
 0x182   : > { %2029 = vmatprep.subr.bf16.mxu1 %v2980_v55  ;;  %v2984_v33 = vld [vmem:[%s4436_s2 + $0x424] ss:$8 sps:$4 sm:$0xff]   ;;  %v2985_v55 = vld [vmem:[%s4436_s2 + $0x138] ss:$8 sps:$4 sm:$0xff]  }
 0x184   : > { %1890 = vmatpush1.bf16.msra.mxu0 %v2981_v31  ;;  %v2986_v31 = vld [vmem:[%s4436_s2 + $0x420] ss:$8 sps:$4 sm:$0xff]  }
 0x185   : > { %2030 = vmatpush1.bf16.msra.mxu1 %v2982_v46  ;;  %1891 = vmatprep.subr.bf16.mxu0 %v2983_v32  ;;  %v2987_v46 = vld [vmem:[%s4436_s2 + $0x14c] ss:$8 sps:$4 sm:$0xff]  }
 0x186   : > { %2031 = vmatprep.subr.bf16.mxu1 %v2984_v33  ;;  %v2988_v32 = vld [vmem:[%s4436_s2 + $0x434] ss:$8 sps:$4 sm:$0xff]   ;;  %v2989_v33 = vld [vmem:[%s4436_s2 + $0x148] ss:$8 sps:$4 sm:$0xff]  }
 0x188   : > { %1892 = vmatpush1.bf16.msra.mxu0 %v2985_v55  ;;  %v2990_v55 = vld [vmem:[%s4436_s2 + $0x430] ss:$8 sps:$4 sm:$0xff]  }
 0x189   : > { %2032 = vmatpush1.bf16.msra.mxu1 %v2986_v31  ;;  %1893 = vmatprep.subr.bf16.mxu0 %v2987_v46  ;;  %v2991_v31 = vld [vmem:[%s4436_s2 + $0x15c] ss:$8 sps:$4 sm:$0xff]  }
 0x18a   : > { %2033 = vmatprep.subr.bf16.mxu1 %v2988_v32  ;;  %v2992_v46 = vld [vmem:[%s4436_s2 + $0x444] ss:$8 sps:$4 sm:$0xff]   ;;  %v2993_v32 = vld [vmem:[%s4436_s2 + $0x158] ss:$8 sps:$4 sm:$0xff]  }
 0x18c   : > { %1894 = vmatpush1.bf16.msra.mxu0 %v2989_v33  ;;  %v2994_v33 = vld [vmem:[%s4436_s2 + $0x440] ss:$8 sps:$4 sm:$0xff]  }
 0x18d   : > { %2034 = vmatpush1.bf16.msra.mxu1 %v2990_v55  ;;  %1895 = vmatprep.subr.bf16.mxu0 %v2991_v31  ;;  %v2995_v55 = vld [vmem:[%s4436_s2 + $0x16c] ss:$8 sps:$4 sm:$0xff]  }
 0x18e   : > { %2035 = vmatprep.subr.bf16.mxu1 %v2992_v46  ;;  %v2996_v31 = vld [vmem:[%s4436_s2 + $0x454] ss:$8 sps:$4 sm:$0xff]   ;;  %v2997_v46 = vld [vmem:[%s4436_s2 + $0x168] ss:$8 sps:$4 sm:$0xff]  }
 0x190   : > { %1896 = vmatpush1.bf16.msra.mxu0 %v2993_v32  ;;  %v2998_v32 = vld [vmem:[%s4436_s2 + $0x450] ss:$8 sps:$4 sm:$0xff]  }
 0x191   : > { %2036 = vmatpush1.bf16.msra.mxu1 %v2994_v33  ;;  %1897 = vmatprep.subr.bf16.mxu0 %v2995_v55  ;;  %v2999_v33 = vld [vmem:[%s4436_s2 + $0x17c] ss:$8 sps:$4 sm:$0xff]  }
 0x192   : > { %2037 = vmatprep.subr.bf16.mxu1 %v2996_v31  ;;  %v3000_v55 = vld [vmem:[%s4436_s2 + $0x464] ss:$8 sps:$4 sm:$0xff]   ;;  %v3001_v31 = vld [vmem:[%s4436_s2 + $0x178] ss:$8 sps:$4 sm:$0xff]  }
 0x194   : > { %1898 = vmatpush1.bf16.msra.mxu0 %v2997_v46  ;;  %v4698_v46 = vld [vmem:[#allocation55_spill] sm:$0xff] }
 0x195   : > { %2038 = vmatpush1.bf16.msra.mxu1 %v2998_v32  ;;  %1899 = vmatprep.subr.bf16.mxu0 %v2999_v33  ;;  %v4699_v32 = vld [vmem:[#allocation56_spill] sm:$0xff]  ;;  %v4700_v33 = vld [vmem:[#allocation57_spill] sm:$0xff] }
 0x196   : > { %2039 = vmatprep.subr.bf16.mxu1 %v3000_v55  ;;  %v4701_v55 = vld [vmem:[#allocation58_spill] sm:$0xff] }
 0x198   : > { %1900 = vmatpush1.bf16.msra.mxu0 %v3001_v31  ;;  %v4702_v31 = vld [vmem:[#allocation59_spill] sm:$0xff] }
 0x199   : > { %2040 = vmatpush1.bf16.msra.mxu1 %v3175_v57  ;;  %1901 = vmatprep.subr.bf16.mxu0 %v3180_v58  ;;  %v4646_v57 = vld [vmem:[#allocation3_spill] sm:$0xff]  ;;  %v4647_v58 = vld [vmem:[#allocation4_spill] sm:$0xff] }
 0x19a   : > { %2041 = vmatprep.subr.bf16.mxu1 %v3185_v59  ;;  %v4648_v59 = vld [vmem:[#allocation5_spill] sm:$0xff] }
 0x19c   : > { %1902 = vmatpush1.bf16.msra.mxu0 %v3190_v60  ;;  %v4649_v60 = vld [vmem:[#allocation6_spill] sm:$0xff] }
 0x19d   : > { %2042 = vmatpush1.bf16.msra.mxu1 %v3195_v61  ;;  %1903 = vmatprep.subr.bf16.mxu0 %v3200_v62  ;;  %v4650_v61 = vld [vmem:[#allocation7_spill] sm:$0xff]  ;;  %v4651_v62 = vld [vmem:[#allocation8_spill] sm:$0xff] }
 0x19e   : > { %2043 = vmatprep.subr.bf16.mxu1 %v3205_v63  ;;  %v4652_v63 = vld [vmem:[#allocation9_spill] sm:$0xff] }
 0x1a0   : > { %1904 = vmatpush1.bf16.msra.mxu0 %v3213_v0  ;;  %v4653_v0 = vld [vmem:[#allocation10_spill] sm:$0xff] }
 0x1a1   : > { %2044 = vmatpush1.bf16.msra.mxu1 %v3218_v1  ;;  %1905 = vmatprep.subr.bf16.mxu0 %v3223_v2  ;;  %v4654_v1 = vld [vmem:[#allocation12_spill] sm:$0xff]  ;;  %v4655_v2 = vld [vmem:[#allocation13_spill] sm:$0xff] }
 0x1a2   : > { %2045 = vmatprep.subr.bf16.mxu1 %v3229_v3  ;;  %v4656_v3 = vld [vmem:[#allocation15_spill] sm:$0xff] }
 0x1a4   : > { %1906 = vmatpush1.bf16.msra.mxu0 %v3237_v4  ;;  %v4657_v4 = vld [vmem:[#allocation16_spill] sm:$0xff] }
 0x1a5   : > { %2046 = vmatpush1.bf16.msra.mxu1 %v3242_v5  ;;  %1907 = vmatprep.subr.bf16.mxu0 %v3247_v6  ;;  %v4658_v5 = vld [vmem:[#allocation17_spill] sm:$0xff]  ;;  %v4659_v6 = vld [vmem:[#allocation18_spill] sm:$0xff] }
 0x1a6   : > { %2047 = vmatprep.subr.bf16.mxu1 %v3253_v7  ;;  %v4660_v7 = vld [vmem:[#allocation19_spill] sm:$0xff] }
 0x1a8   : > { %1908 = vmatpush1.bf16.msra.mxu0 %v3261_v8  ;;  %v4661_v8 = vld [vmem:[#allocation20_spill] sm:$0xff] }
 0x1a9   : > { %2048 = vmatpush1.bf16.msra.mxu1 %v3266_v9  ;;  %1909 = vmatprep.subr.bf16.mxu0 %v3271_v10  ;;  %v4662_v9 = vld [vmem:[#allocation21_spill] sm:$0xff]  ;;  %v4663_v10 = vld [vmem:[#allocation22_spill] sm:$0xff] }
 0x1aa   : > { %2049 = vmatprep.subr.bf16.mxu1 %v3277_v11  ;;  %v4664_v11 = vld [vmem:[#allocation23_spill] sm:$0xff] }
 0x1ac   : > { %1910 = vmatpush1.bf16.msra.mxu0 %v3285_v12  ;;  %v4665_v12 = vld [vmem:[#allocation24_spill] sm:$0xff] }
 0x1ad   : > { %2050 = vmatpush1.bf16.msra.mxu1 %v3290_v13  ;;  %1911 = vmatprep.subr.bf16.mxu0 %v3295_v14  ;;  %v4666_v13 = vld [vmem:[#allocation25_spill] sm:$0xff]  ;;  %v4667_v14 = vld [vmem:[#allocation26_spill] sm:$0xff] }
 0x1ae   : > { %2051 = vmatprep.subr.bf16.mxu1 %v3301_v15  ;;  %v4668_v15 = vld [vmem:[#allocation27_spill] sm:$0xff] }
 0x1b0   : > { %1912 = vmatpush1.bf16.msra.mxu0 %v3309_v16  ;;  %v4669_v16 = vld [vmem:[#allocation28_spill] sm:$0xff] }
 0x1b1   : > { %2052 = vmatpush1.bf16.msra.mxu1 %v3314_v17  ;;  %2623 = vmatprep.subr.msk.bf16.mxu0 %vm667_vm3, %v3328_v20  ;;  %v4670_v17 = vld [vmem:[#allocation29_spill] sm:$0xff]  ;;  %v4671_v20 = vld [vmem:[#allocation30_spill] sm:$0xff] }
 0x1b2   : > { %2629 = vmatprep.subr.msk.bf16.mxu1 %vm667_vm3, %v3330_v21  ;;  %v4672_v21 = vld [vmem:[#allocation31_spill] sm:$0xff] }
 0x1b4   : > { %1914 = vmatpush1.bf16.msra.mxu0 %v3337_v24  ;;  %v4673_v24 = vld [vmem:[#allocation32_spill] sm:$0xff] }
 0x1b5   : > { %2054 = vmatpush1.bf16.msra.mxu1 %v3340_v25  ;;  %1926 = vmatprep.subr.bf16.mxu0 %v3347_v26  ;;  %v4674_v25 = vld [vmem:[#allocation33_spill] sm:$0xff]  ;;  %v4675_v26 = vld [vmem:[#allocation34_spill] sm:$0xff] }
 0x1b6   : > { %2066 = vmatprep.subr.bf16.mxu1 %v3352_v27  ;;  %v4676_v27 = vld [vmem:[#allocation35_spill] sm:$0xff] }
 0x1b7   : > { %1916 = vmatmul.mubr.bf16.vlgmr.msra.gmra.mrb[12].mxu0 %v3414_v51 }
 0x1b8   : > { %2056 = vmatmul.mubr.bf16.vlgmr.msra.gmra.mrb[12].mxu1 %v3414_v51  ;;  %1927 = vmatpush1.bf16.msra.mxu0 %v3365_v39  ;;  %v4678_v39 = vld [vmem:[#allocation37_spill] sm:$0xff] }
 0x1b9   : > { %2626 = vmatprep.mubr.msk.bf16.mxu0 %vm663_vm4, %v3360_v38  ;;  %2067 = vmatpush1.bf16.msra.mxu1 %v3370_v40  ;;  %v4679_v40 = vld [vmem:[#allocation38_spill] sm:$0xff]  ;;  %v4686_v51 = vld [vmem:[#allocation45_spill] sm:$0xff] }
 0x1ba   : > { %2632 = vmatprep.mubr.msk.bf16.mxu1 %vm663_vm4, %v3360_v38  ;;  %1928 = vmatprep.subr.bf16.mxu0 %v3375_v42  ;;  %v4677_v38 = vld [vmem:[#allocation36_spill] sm:$0xff]  ;;  %v4680_v42 = vld [vmem:[#allocation39_spill] sm:$0xff] }
 0x1bb   : > { %2068 = vmatprep.subr.bf16.mxu1 %v3380_v43  ;;  %v4681_v43 = vld [vmem:[#allocation40_spill] sm:$0xff] }
 0x1bc   : > { %1929 = vmatpush1.bf16.msra.mxu0 %v3393_v44  ;;  %v4682_v44 = vld [vmem:[#allocation41_spill] sm:$0xff] }
 0x1bd   : > { %2069 = vmatpush1.bf16.msra.mxu1 %v3398_v45  ;;  %1930 = vmatprep.subr.bf16.mxu0 %v3405_v47  ;;  %v4683_v45 = vld [vmem:[#allocation42_spill] sm:$0xff]  ;;  %v4684_v47 = vld [vmem:[#allocation43_spill] sm:$0xff] }
 0x1be   : > { %2070 = vmatprep.subr.bf16.mxu1 %v3410_v48  ;;  %v4685_v48 = vld [vmem:[#allocation44_spill] sm:$0xff] }
 0x1c0   : > { %1931 = vmatpush1.bf16.msra.mxu0 %v3421_v53  ;;  %v4687_v53 = vld [vmem:[#allocation46_spill] sm:$0xff] }
 0x1c1   : > { %2071 = vmatpush1.bf16.msra.mxu1 %v3426_v54  ;;  %1932 = vmatprep.subr.bf16.mxu0 %v3435_v56  ;;  %v4688_v54 = vld [vmem:[#allocation47_spill] sm:$0xff]  ;;  %v4689_v56 = vld [vmem:[#allocation48_spill] sm:$0xff] }
 0x1c2   : > { %2072 = vmatprep.subr.bf16.mxu1 %v3440_v18  ;;  %v4690_v18 = vld [vmem:[#allocation49_spill] sm:$0xff] }
 0x1c4   : > { %1933 = vmatpush1.bf16.msra.mxu0 %v3447_v19  ;;  %v4691_v19 = vld [vmem:[#allocation2_spill] sm:$0xff] }
 0x1c5   : > { %2073 = vmatpush1.bf16.msra.mxu1 %v3452_v22  ;;  %1934 = vmatprep.subr.bf16.mxu0 %v3459_v23  ;;  %v4692_v22 = vld [vmem:[#allocation50_spill] sm:$0xff] }
 0x1c6   : > { %2074 = vmatprep.subr.bf16.mxu1 %v3464_v28  ;;  %v4693_v23 = vld [vmem:[#allocation14_spill] sm:$0xff]  ;;  %v4694_v28 = vld [vmem:[#allocation51_spill] sm:$0xff] }
 0x1c8   : > { %1935 = vmatpush1.bf16.msra.mxu0 %v3471_v29  ;;  %v4695_v29 = vld [vmem:[#allocation52_spill] sm:$0xff] }
 0x1c9   : > { %2075 = vmatpush1.bf16.msra.mxu1 %v4646_v57  ;;  %1936 = vmatprep.subr.bf16.mxu0 %v4647_v58  ;;  %v4703_v57 = vld [vmem:[#allocation60_spill] sm:$0xff]  ;;  %v4704_v58 = vld [vmem:[#allocation61_spill] sm:$0xff] }
 0x1ca   : > { %2076 = vmatprep.subr.bf16.mxu1 %v4648_v59  ;;  %v4705_v59 = vld [vmem:[#allocation62_spill] sm:$0xff] }
 0x1cc   : > { %1937 = vmatpush1.bf16.msra.mxu0 %v4649_v60  ;;  %v4706_v60 = vld [vmem:[#allocation63_spill] sm:$0xff] }
 0x1cd   : > { %2077 = vmatpush1.bf16.msra.mxu1 %v4650_v61  ;;  %1938 = vmatprep.subr.bf16.mxu0 %v3507_v37  ;;  %v4696_v37 = vld [vmem:[#allocation53_spill] sm:$0xff]  ;;  %v4707_v61 = vld [vmem:[#allocation64_spill] sm:$0xff] }
 0x1ce   : > { %2078 = vmatprep.subr.bf16.mxu1 %v4651_v62  ;;  %v4708_v62 = vld [vmem:[#allocation65_spill] sm:$0xff] }
 0x1d0   : > { %1939 = vmatpush1.bf16.msra.mxu0 %v4652_v63  ;;  %v4709_v63 = vld [vmem:[#allocation66_spill] sm:$0xff] }
 0x1d1   : > { %2079 = vmatpush1.bf16.msra.mxu1 %v4653_v0  ;;  %1940 = vmatprep.subr.bf16.mxu0 %v4654_v1  ;;  %v4710_v0 = vld [vmem:[#allocation67_spill] sm:$0xff]  ;;  %v4711_v1 = vld [vmem:[#allocation68_spill] sm:$0xff] }
 0x1d2   : > { %2080 = vmatprep.subr.bf16.mxu1 %v4655_v2  ;;  %v4712_v2 = vld [vmem:[#allocation69_spill] sm:$0xff] }
 0x1d4   : > { %1941 = vmatpush1.bf16.msra.mxu0 %v4656_v3  ;;  %v4713_v3 = vld [vmem:[#allocation70_spill] sm:$0xff] }
 0x1d5   : > { %2081 = vmatpush1.bf16.msra.mxu1 %v4657_v4  ;;  %1942 = vmatprep.subr.bf16.mxu0 %v4658_v5  ;;  %v4714_v4 = vld [vmem:[#allocation71_spill] sm:$0xff]  ;;  %v4715_v5 = vld [vmem:[#allocation72_spill] sm:$0xff] }
 0x1d6   : > { %2082 = vmatprep.subr.bf16.mxu1 %v4659_v6  ;;  %v4716_v6 = vld [vmem:[#allocation73_spill] sm:$0xff] }
 0x1d8   : > { %1943 = vmatpush1.bf16.msra.mxu0 %v4660_v7  ;;  %v4717_v7 = vld [vmem:[#allocation74_spill] sm:$0xff] }
 0x1d9   : > { %2083 = vmatpush1.bf16.msra.mxu1 %v4661_v8  ;;  %1944 = vmatprep.subr.bf16.mxu0 %v4662_v9  ;;  %v4718_v8 = vld [vmem:[#allocation75_spill] sm:$0xff]  ;;  %v4719_v9 = vld [vmem:[#allocation76_spill] sm:$0xff] }
 0x1da   : > { %2084 = vmatprep.subr.bf16.mxu1 %v4663_v10  ;;  %v4720_v10 = vld [vmem:[#allocation77_spill] sm:$0xff] }
 0x1dc   : > { %1945 = vmatpush1.bf16.msra.mxu0 %v4664_v11  ;;  %v4721_v11 = vld [vmem:[#allocation78_spill] sm:$0xff] }
 0x1dd   : > { %2085 = vmatpush1.bf16.msra.mxu1 %v4665_v12  ;;  %1946 = vmatprep.subr.bf16.mxu0 %v4666_v13  ;;  %v4722_v12 = vld [vmem:[#allocation79_spill] sm:$0xff]  ;;  %v4723_v13 = vld [vmem:[#allocation80_spill] sm:$0xff] }
 0x1de   : > { %2086 = vmatprep.subr.bf16.mxu1 %v4667_v14  ;;  %v4724_v14 = vld [vmem:[#allocation81_spill] sm:$0xff] }
 0x1e0   : > { %1947 = vmatpush1.bf16.msra.mxu0 %v4668_v15  ;;  %v4725_v15 = vld [vmem:[#allocation82_spill] sm:$0xff] }
 0x1e1   : > { %2087 = vmatpush1.bf16.msra.mxu1 %v4669_v16  ;;  %1948 = vmatprep.subr.bf16.mxu0 %v4670_v17  ;;  %v4726_v16 = vld [vmem:[#allocation83_spill] sm:$0xff]  ;;  %v4727_v17 = vld [vmem:[#allocation84_spill] sm:$0xff] }
 0x1e2   : > { %2088 = vmatprep.subr.bf16.mxu1 %v4671_v20  ;;  %v4728_v20 = vld [vmem:[#allocation85_spill] sm:$0xff] }
 0x1e4   : > { %1949 = vmatpush1.bf16.msra.mxu0 %v4672_v21  ;;  %v4729_v21 = vld [vmem:[#allocation86_spill] sm:$0xff] }
 0x1e5   : > { %2089 = vmatpush1.bf16.msra.mxu1 %v4673_v24  ;;  %1950 = vmatprep.subr.bf16.mxu0 %v4674_v25  ;;  %v4730_v24 = vld [vmem:[#allocation87_spill] sm:$0xff]  ;;  %v4731_v25 = vld [vmem:[#allocation88_spill] sm:$0xff] }
 0x1e6   : > { %2090 = vmatprep.subr.bf16.mxu1 %v4675_v26  ;;  %v4732_v26 = vld [vmem:[#allocation89_spill] sm:$0xff] }
 0x1e8   : > { %1951 = vmatpush1.bf16.msra.mxu0 %v4676_v27  ;;  %v4733_v27 = vld [vmem:[#allocation90_spill] sm:$0xff] }
 0x1e9   : > { %2091 = vmatpush1.bf16.msra.mxu1 %v4677_v38  ;;  %1952 = vmatprep.subr.bf16.mxu0 %v4678_v39  ;;  %v4734_v38 = vld [vmem:[#allocation91_spill] sm:$0xff]  ;;  %v4735_v39 = vld [vmem:[#allocation92_spill] sm:$0xff] }
 0x1ea   : > { %2092 = vmatprep.subr.bf16.mxu1 %v4679_v40  ;;  %v4736_v40 = vld [vmem:[#allocation93_spill] sm:$0xff] }
 0x1ec   : > { %1953 = vmatpush1.bf16.msra.mxu0 %v4680_v42  ;;  %v4737_v42 = vld [vmem:[#allocation94_spill] sm:$0xff] }
 0x1ed   : > { %2093 = vmatpush1.bf16.msra.mxu1 %v4681_v43  ;;  %1954 = vmatprep.subr.bf16.mxu0 %v4682_v44  ;;  %v4738_v43 = vld [vmem:[#allocation95_spill] sm:$0xff]  ;;  %v4739_v44 = vld [vmem:[#allocation96_spill] sm:$0xff] }
 0x1ee   : > { %2094 = vmatprep.subr.bf16.mxu1 %v3708_v49  ;;  %v4697_v49 = vld [vmem:[#allocation54_spill] sm:$0xff] }
 0x1f0   : > { %1955 = vmatpush1.bf16.msra.mxu0 %v4683_v45  ;;  %v4740_v45 = vld [vmem:[#allocation97_spill] sm:$0xff] }
 0x1f1   : > { %2095 = vmatpush1.bf16.msra.mxu1 %v4684_v47  ;;  %2625 = vmatprep.subr.msk.bf16.mxu0 %vm667_vm3, %v4685_v48  ;;  %v4741_v47 = vld [vmem:[#allocation98_spill] sm:$0xff]  ;;  %v4742_v48 = vld [vmem:[#allocation99_spill] sm:$0xff] }
 0x1f2   : > { %2631 = vmatprep.subr.msk.bf16.mxu1 %vm667_vm3, %v4686_v51  ;;  %v4743_v51 = vld [vmem:[#allocation100_spill] sm:$0xff] }
 0x1f4   : > { %1957 = vmatpush1.bf16.msra.mxu0 %v4687_v53  ;;  %v4744_v53 = vld [vmem:[#allocation101_spill] sm:$0xff] }
 0x1f5   : > { %2097 = vmatpush1.bf16.msra.mxu1 %v4688_v54  ;;  %1972 = vmatprep.subr.bf16.mxu0 %v4689_v56  ;;  %v4745_v54 = vld [vmem:[#allocation102_spill] sm:$0xff]  ;;  %v4746_v56 = vld [vmem:[#allocation103_spill] sm:$0xff] }
 0x1f6   : > { %2109 = vmatprep.subr.bf16.mxu1 %v4690_v18  ;;  %v4747_v18 = vld [vmem:[#allocation104_spill] sm:$0xff] }
 0x1f7   : > { %1959 = vmatmul.mubr.bf16.vlgmr.msra.gmra.mrb[12].mxu0 %v4691_v19 }
 0x1f8   : > { %2099 = vmatmul.mubr.bf16.vlgmr.msra.gmra.mrb[12].mxu1 %v4691_v19  ;;  %1973 = vmatpush1.bf16.msra.mxu0 %v4692_v22  ;;  %v4748_v19 = vld [vmem:[#allocation11_spill] sm:$0xff] }
 0x1f9   : > { %2628 = vmatprep.mubr.msk.bf16.mxu0 %vm663_vm4, %v4693_v23  ;;  %2110 = vmatpush1.bf16.msra.mxu1 %v4694_v28 }
 0x1fa   : > { %2634 = vmatprep.mubr.msk.bf16.mxu1 %vm663_vm4, %v4693_v23  ;;  %1974 = vmatprep.subr.bf16.mxu0 %v4695_v29 }
 0x1fb   : > { %2111 = vmatprep.subr.bf16.mxu1 %v4696_v37 }
 0x1fc   : > { %1975 = vmatpush1.bf16.msra.mxu0 %v4697_v49 }
 0x1fd   : > { %2112 = vmatpush1.bf16.msra.mxu1 %v4698_v46  ;;  %1976 = vmatprep.subr.bf16.mxu0 %v4699_v32 }
 0x1fe   : > { %2113 = vmatprep.subr.bf16.mxu1 %v4700_v33  ;;  %v2160_v33 = vld [vmem:[%s4437_s3] sm:$0x3] }
 0x200   : > { %1977 = vmatpush1.bf16.msra.mxu0 %v4701_v55 }
 0x201   : > { %2114 = vmatpush1.bf16.msra.mxu1 %v4702_v31  ;;  %1978 = vmatprep.subr.bf16.mxu0 %v4703_v57 }
 0x202   : > { %2115 = vmatprep.subr.bf16.mxu1 %v4704_v58 }
 0x204   : > { %1979 = vmatpush1.bf16.msra.mxu0 %v4705_v59 }
 0x205   : > { %2116 = vmatpush1.bf16.msra.mxu1 %v4706_v60  ;;  %1980 = vmatprep.subr.bf16.mxu0 %v4707_v61 }
 0x206   : > { %2117 = vmatprep.subr.bf16.mxu1 %v4708_v62 }
 0x208   : > { %1981 = vmatpush1.bf16.msra.mxu0 %v4709_v63 }
 0x209   : > { %2118 = vmatpush1.bf16.msra.mxu1 %v4710_v0  ;;  %1982 = vmatprep.subr.bf16.mxu0 %v4711_v1 }
 0x20a   : > { %2119 = vmatprep.subr.bf16.mxu1 %v4712_v2 }
 0x20c   : > { %1983 = vmatpush1.bf16.msra.mxu0 %v4713_v3 }
 0x20d   : > { %2120 = vmatpush1.bf16.msra.mxu1 %v4714_v4  ;;  %1984 = vmatprep.subr.bf16.mxu0 %v4715_v5 }
 0x20e   : > { %2121 = vmatprep.subr.bf16.mxu1 %v4716_v6 }
 0x210   : > { %1985 = vmatpush1.bf16.msra.mxu0 %v4717_v7 }
 0x211   : > { %2122 = vmatpush1.bf16.msra.mxu1 %v4718_v8  ;;  %1986 = vmatprep.subr.bf16.mxu0 %v4719_v9 }
 0x212   : > { %2123 = vmatprep.subr.bf16.mxu1 %v4720_v10 }
 0x214   : > { %1987 = vmatpush1.bf16.msra.mxu0 %v4721_v11 }
 0x215   : > { %2124 = vmatpush1.bf16.msra.mxu1 %v4722_v12  ;;  %1988 = vmatprep.subr.bf16.mxu0 %v4723_v13 }
 0x216   : > { %2125 = vmatprep.subr.bf16.mxu1 %v4724_v14 }
 0x218   : > { %1989 = vmatpush1.bf16.msra.mxu0 %v4725_v15 }
 0x219   : > { %2126 = vmatpush1.bf16.msra.mxu1 %v4726_v16  ;;  %1990 = vmatprep.subr.bf16.mxu0 %v4727_v17 }
 0x21a   : > { %2127 = vmatprep.subr.bf16.mxu1 %v4728_v20 }
 0x21c   : > { %1991 = vmatpush1.bf16.msra.mxu0 %v4729_v21 }
 0x21d   : > { %2128 = vmatpush1.bf16.msra.mxu1 %v4730_v24  ;;  %1992 = vmatprep.subr.bf16.mxu0 %v4731_v25 }
 0x21e   : > { %2129 = vmatprep.subr.bf16.mxu1 %v4732_v26 }
 0x220   : > { %1993 = vmatpush1.bf16.msra.mxu0 %v4733_v27 }
 0x221   : > { %2130 = vmatpush1.bf16.msra.mxu1 %v4734_v38  ;;  %1994 = vmatprep.subr.bf16.mxu0 %v4735_v39 }
 0x222   : > { %2131 = vmatprep.subr.bf16.mxu1 %v4736_v40 }
 0x224   : > { %1995 = vmatpush1.bf16.msra.mxu0 %v4737_v42 }
 0x225   : > { %2132 = vmatpush1.bf16.msra.mxu1 %v4738_v43  ;;  %1996 = vmatprep.subr.bf16.mxu0 %v4739_v44 }
 0x226   : > { %2133 = vmatprep.subr.bf16.mxu1 %v4740_v45 }
 0x228   : > { %1997 = vmatpush1.bf16.msra.mxu0 %v4741_v47 }
 0x229   : > { %2134 = vmatpush1.bf16.msra.mxu1 %v4742_v48  ;;  %1998 = vmatprep.subr.bf16.mxu0 %v4743_v51 }
 0x22a   : > { %2135 = vmatprep.subr.bf16.mxu1 %v4744_v53 }
 0x22c   : > { %1999 = vmatpush1.bf16.msra.mxu0 %v4745_v54 }
 0x22d   : > { %2136 = vmatpush1.bf16.msra.mxu1 %v4746_v56  ;;  %2000 = vmatprep.subr.bf16.mxu0 %v4747_v18 }
 0x22e   : > { %2137 = vmatprep.subr.bf16.mxu1 %v4096_v50 }
 0x230   : > { %2001 = vmatpush1.bf16.msra.mxu0 %v4109_v41 }
 0x231   : > { %2138 = vmatpush1.bf16.msra.mxu1 %v4114_v52  ;;  %2627 = vmatprep.subr.msk.bf16.mxu0 %vm667_vm3, %v4116_v34 }
 0x232   : > { %2633 = vmatprep.subr.msk.bf16.mxu1 %vm667_vm3, %v4120_v35 }
 0x234   : > { %2003 = vmatpush1.bf16.msra.mxu0 %v4129_v30  ;;  %v2162_v30 = vlaneseq }
 0x235   : > { %2140 = vmatpush1.bf16.msra.mxu1 %v4132_v36 }
 0x236   : > { %v2163_v32 = vshrl.u32 %v2162_v30, 7 }
 0x237   : > { %2005 = vmatmul.mubr.bf16.vlgmr.msra.gmra.mrb[12].mxu0 %v4748_v19 }
 0x238   : > { %2142 = vmatmul.mubr.bf16.vlgmr.msra.gmra.mrb[12].mxu1 %v4748_v19  ;;  %v2164_v36 = vsub.s32 0, %v2163_v32  ;;  %v2168_v55 = vsub.s32 1, %v2163_v32 }
 0x23a   : > { %v2165_v59 = vrot.slane %v2160_v33, %v2164_v36  ;;  %v2169_v63 = vrot.slane %v2160_v33, %v2168_v55 }
 0x24a   : > { %v1154_v22 = vpop.f32.mrb[8].mxu0  ;;  %v1866_v50 = vpop.f32.mrb[8].mxu1 }
 0x24b   : > { %v1879_v23 = vmax.f32 %v1154_v22, %v1866_v50  ;;  %v1156_v41 = vpop.f32.mrb[9].mxu0  ;;  %v1868_v28 = vpop.f32.mrb[9].mxu1 }
 0x24c   : > { %v1880_v52 = vmax.f32 %v1156_v41, %v1868_v28  ;;  %v1158_v29 = vpop.f32.mrb[10].mxu0  ;;  %v1870_v37 = vpop.f32.mrb[10].mxu1 }
 0x24d   : > { %v1881_v34 = vmax.f32 %v1158_v29, %v1870_v37  ;;  %v1160_v49 = vpop.f32.mrb[11].mxu0  ;;  %v1872_v46 = vpop.f32.mrb[11].mxu1 }
 0x24e   : > { %v1882_v35 = vmax.f32 %v1160_v49, %v1872_v46 }
 0x30a   : > { %v2006_v31 = vpop.f32.mrb[12].mxu0 }
 0x30b   : > { %v2019_v57 = vmax.f32 %v1879_v23, %v2006_v31  ;;  %v2143_v58 = vpop.f32.mrb[12].mxu1  ;;  %v2008_v60 = vpop.f32.mrb[13].mxu0 }
 0x30c   : > { %v2020_v61 = vmax.f32 %v1880_v52, %v2008_v60  ;;  %v2145_v62 = vpop.f32.mrb[13].mxu1  ;;  %v2010_v0 = vpop.f32.mrb[14].mxu0 }
 0x30d   : > { %v2156_v1 = vmax.f32 %v2019_v57, %v2143_v58  ;;  %v2021_v2 = vmax.f32 %v1881_v34, %v2010_v0  ;;  %v2147_v3 = vpop.f32.mrb[14].mxu1  ;;  %v2012_v4 = vpop.f32.mrb[15].mxu0 }
 0x30e   : > { %v2157_v5 = vmax.f32 %v2020_v61, %v2145_v62  ;;  %v2022_v6 = vmax.f32 %v1882_v35, %v2012_v4  ;;  %v2149_v7 = vpop.f32.mrb[15].mxu1 }
 0x30f   : > { %v2172_v8 = vadd.f32 %v2165_v59, %v2156_v1  ;;  %v2158_v9 = vmax.f32 %v2021_v2, %v2147_v3 }
 0x310   : > { %v2173_v10 = vadd.f32 %v2169_v63, %v2157_v5  ;;  %v2159_v11 = vmax.f32 %v2022_v6, %v2149_v7 }
 0x311   : > { %v2176_v12 = vmax.f32 %v2172_v8, 0.0  ;;  %v2174_v13 = vadd.f32 %v2165_v59, %v2158_v9 }
 0x312   : > { %v2177_v14 = vmax.f32 %v2173_v10, 0.0  ;;  %v2175_v15 = vadd.f32 %v2169_v63, %v2159_v11 }
 0x313   : > { %2180 = vst [vmem:[%s197_s20] sm:$0xff] %v2176_v12  ;;  %v2178_v16 = vmax.f32 %v2174_v13, 0.0 }
 0x314   : > { %2182 = vst.msk [vmem:[%s197_s20 + $0x8] sm:$0xff] %vm2181_vm5, %v2177_v14  ;;  %v2179_v17 = vmax.f32 %v2175_v15, 0.0 }
 0x315   : > { %2183 = vst [vmem:[%s197_s20 + $0x10] sm:$0x3f] %v2178_v16 }
 0x316   : > { %2185 = vst.msk [vmem:[%s197_s20 + $0x18] sm:$0x3f] %vm2184_vm6, %v2179_v17 }
 0x317 PF: > { %s14_s15 = sadd.s32 1, %s3008_s15  }
 0x318   : > { %p11_p4 = scmp.ge.s32.totalorder %s14_s15, 4  }
 0x31a   :  { %13 = sbr.rel (!%p11_p4) target bundleno = 1 (0x1), region = 74 }

// kernel: _lambda_.7
= control target key start
LH: loop header
LB: loop body
LE: loop exit
PB: predicated region body
PF: predicated region fallthrough
CT: control target
= control target key end

     0   :  { %s2687_s15 = smov 0   ;;  %s3953_s0 = inlined_call_operand.vmem [shape: f32[2,14,224], index: 0, kind: input, shape index: {}]   ;;  %s3954_s1 = inlined_call_operand.vmem [shape: bf16[4,6,14], index: 1, kind: input, shape index: {}]   ;;  %s3955_s2 = inlined_call_operand.vmem [shape: bf16[6,224,192], index: 2, kind: input, shape index: {}]   ;;  %s3956_s3 = inlined_call_operand.vmem [shape: f32[1,192], index: 3, kind: input, shape index: {}]   ;;  %s3957_s4 = inlined_call_operand.vmem [shape: f32[2,6,192], index: 4, kind: output, shape index: {}]  }
   0x1 LB: > { %s2010_s16 = sadd.s32 4294967295, %s2659_s15   ;;  %p2014_p0 = scmp.ge.s32.totalorder %s2659_s15, 1  ;;  %s2659_s15 = sphi %s2687_s15, %s14_s15  }
   0x2   : > { %p162_p1 = scmp.lt.s32.totalorder %s2659_s15, 3 }
   0x4   : > { %p163_p2 = pnand %p2014_p0, %p162_p1 }
   0x6   : > { %166 = sbr.rel (%p163_p2) target bundleno = 744 (0x2e8), region = 36 }
   0xd   : > { %p188_p3 = scmp.lt.s32.totalorder %s2010_s16, 1  ;;  %v2661_v0 = vmov 0   ;;  %vm210_vm0 = vcmask 1046528   ;;  %v2021_v8 = vld [vmem:[%s3954_s1 + $0x4] sm:$0x7]  ;;  %vm206_vm1 = vcmask 113664  }
   0xe   : > { %297 = vmatprep.mubr.bf16.mxu1 %v2661_v0  ;;  %249 = vmatprep.mubr.bf16.mxu0 %v2661_v0  ;;  %v205_v9 = vld [vmem:[%s3954_s1] sm:$0x7]  ;;  %v2397_v10 = vld [vmem:[%s3955_s2 + $0xe4] ss:$8 sps:$4 sm:$0xff]   ;;  %v2024_v12 = vld [vmem:[%s3954_s1 + $0x8] sm:$0x7] }
   0xf   : > { %s4280_s16 = smov (!%p188_p3, %s2010_s16), 1  ;;  %v2400_v11 = vld [vmem:[%s3955_s2 + $0x384] ss:$8 sps:$4 sm:$0xff]   ;;  %v2395_v14 = vld [vmem:[%s3955_s2 + $0xe0] ss:$8 sps:$4 sm:$0xff]   ;;  %vm601_vm2 = vcmask 785408  }
  0x10   : > { %s2352_s17 = sshll.u32 %s4280_s16, 5  ;;  %v2027_v13 = vld [vmem:[%s3954_s1 + $0xc] sm:$0x7]  ;;  %v2398_v15 = vld [vmem:[%s3955_s2 + $0x380] ss:$8 sps:$4 sm:$0xff]   ;;  %s2353_s19 = sshll.u32 %s4280_s16, 4 }
  0x11   : > { %s192_s20 = scalar_lea.vmem %s3953_s0, %s2352_s17  ;;  %v2403_v16 = vld [vmem:[%s3955_s2 + $0xf4] ss:$8 sps:$4 sm:$0xff]   ;;  %v2738_v18 = vld [vmem:[%s3955_s2 + $0xf0] ss:$8 sps:$4 sm:$0xff]   ;;  %v2748_v20 = vld [vmem:[%s3955_s2 + $0x104] ss:$8 sps:$4 sm:$0xff]   ;;  %s197_s22 = scalar_lea.vmem %s3957_s4, %s2353_s19 }
  0x12   : > { %v200_v1 = vld [vmem:[%s192_s20 + $0x8] sm:$0xff]  ;;  %v202_v2 = vld [vmem:[%s192_s20 + $0x18] sm:$0x3f]  ;;  %v199_v3 = vld [vmem:[%s192_s20] sm:$0xff]  ;;  %vm1953_vm3 = vcmask 521216  }
  0x13   : > { %v204_v4 = vpack.c.bf16 %v202_v2, %v200_v1  ;;  %v201_v5 = vld [vmem:[%s192_s20 + $0x10] sm:$0x3f]  ;;  %v2753_v21 = vld [vmem:[%s3955_s2 + $0x3a4] ss:$8 sps:$4 sm:$0xff]   ;;  %v2758_v22 = vld [vmem:[%s3955_s2 + $0x100] ss:$8 sps:$4 sm:$0xff]  }
  0x14   : > { %v203_v6 = vpack.c.bf16 %v201_v5, %v199_v3  ;;  %v2406_v17 = vld [vmem:[%s3955_s2 + $0x394] ss:$8 sps:$4 sm:$0xff]   ;;  %v2743_v19 = vld [vmem:[%s3955_s2 + $0x390] ss:$8 sps:$4 sm:$0xff]   ;;  %v2765_v23 = vld [vmem:[%s3955_s2 + $0x3a0] ss:$8 sps:$4 sm:$0xff]  }
  0x15   : > { %2022 = vmatprep.subr.msk.bf16.mxu1 %vm210_vm0, %v204_v4  ;;  %2019 = vmatprep.subr.msk.bf16.mxu0 %vm210_vm0, %v204_v4  ;;  %v2772_v24 = vld [vmem:[%s3955_s2 + $0x114] ss:$8 sps:$4 sm:$0xff]   ;;  %v2782_v26 = vld [vmem:[%s3955_s2 + $0x110] ss:$8 sps:$4 sm:$0xff]   ;;  %v2796_v28 = vld [vmem:[%s3955_s2 + $0x124] ss:$8 sps:$4 sm:$0xff]  }
  0x16   : > { %v212_v7 = vsel %vm210_vm0, %v203_v6, 0  ;;  %v2777_v25 = vld [vmem:[%s3955_s2 + $0x3b4] ss:$8 sps:$4 sm:$0xff]   ;;  %v2789_v27 = vld [vmem:[%s3955_s2 + $0x3b0] ss:$8 sps:$4 sm:$0xff]  }
  0x17   : > { %266 = vmatpush1.bf16.msra.mxu1 %v212_v7  ;;  %218 = vmatpush1.bf16.msra.mxu0 %v212_v7  ;;  %v2801_v29 = vld [vmem:[%s3955_s2 + $0x3c4] ss:$8 sps:$4 sm:$0xff]   ;;  %v2806_v30 = vld [vmem:[%s3955_s2 + $0x120] ss:$8 sps:$4 sm:$0xff]   ;;  %v2820_v32 = vld [vmem:[%s3955_s2 + $0x134] ss:$8 sps:$4 sm:$0xff]  }
  0x18   : > { %2025 = vmatprep.subr.msk.bf16.mxu0 %vm210_vm0, %v204_v4  ;;  %2028 = vmatprep.subr.msk.bf16.mxu1 %vm210_vm0, %v204_v4  ;;  %v2813_v31 = vld [vmem:[%s3955_s2 + $0x3c0] ss:$8 sps:$4 sm:$0xff]   ;;  %v2825_v33 = vld [vmem:[%s3955_s2 + $0x3d4] ss:$8 sps:$4 sm:$0xff]   ;;  %v2830_v34 = vld [vmem:[%s3955_s2 + $0x130] ss:$8 sps:$4 sm:$0xff]  }
  0x19   : > { %v2835_v35 = vld [vmem:[%s3955_s2 + $0x3d0] ss:$8 sps:$4 sm:$0xff]   ;;  %v2840_v36 = vld [vmem:[%s3955_s2 + $0x144] ss:$8 sps:$4 sm:$0xff]   ;;  %v2854_v38 = vld [vmem:[%s3955_s2 + $0x140] ss:$8 sps:$4 sm:$0xff]  }
  0x1a   : > { %2023 = vmatmul.mubr.msk.bf16.vlgmr.msra.gmra.mrb[0].mxu1 %vm206_vm1, %v2021_v8  ;;  %2020 = vmatmul.mubr.msk.bf16.vlgmr.msra.gmra.mrb[0].mxu0 %vm206_vm1, %v205_v9  ;;  %v2845_v37 = vld [vmem:[%s3955_s2 + $0x3e4] ss:$8 sps:$4 sm:$0xff]   ;;  %v2859_v39 = vld [vmem:[%s3955_s2 + $0x3e0] ss:$8 sps:$4 sm:$0xff]   ;;  %v2864_v40 = vld [vmem:[%s3955_s2 + $0x154] ss:$8 sps:$4 sm:$0xff]  }
  0x1b   : > { %314 = vmatpush1.bf16.msra.mxu0 %v212_v7  ;;  %345 = vmatprep.mubr.bf16.mxu0 %v2661_v0  ;;  %v2869_v41 = vld [vmem:[%s3955_s2 + $0x3f4] ss:$8 sps:$4 sm:$0xff]   ;;  %v2878_v42 = vld [vmem:[%s3955_s2 + $0x150] ss:$8 sps:$4 sm:$0xff]   ;;  %v2888_v44 = vld [vmem:[%s3955_s2 + $0x164] ss:$8 sps:$4 sm:$0xff]  }
  0x1c   : > { %362 = vmatpush1.bf16.msra.mxu1 %v212_v7  ;;  %393 = vmatprep.mubr.bf16.mxu1 %v2661_v0  ;;  %v2883_v43 = vld [vmem:[%s3955_s2 + $0x3f0] ss:$8 sps:$4 sm:$0xff]   ;;  %v2893_v45 = vld [vmem:[%s3955_s2 + $0x404] ss:$8 sps:$4 sm:$0xff]   ;;  %v2902_v46 = vld [vmem:[%s3955_s2 + $0x160] ss:$8 sps:$4 sm:$0xff]  }
  0x1d   : > { %605 = vmatprep.subr.bf16.mxu0 %v2397_v10  ;;  %1243 = vmatprep.subr.bf16.mxu1 %v2400_v11  ;;  %v2907_v47 = vld [vmem:[%s3955_s2 + $0x400] ss:$8 sps:$4 sm:$0xff]   ;;  %v2912_v48 = vld [vmem:[%s3955_s2 + $0x174] ss:$8 sps:$4 sm:$0xff]   ;;  %v2926_v50 = vld [vmem:[%s3955_s2 + $0x170] ss:$8 sps:$4 sm:$0xff]  }
  0x1e   : > { %v2917_v49 = vld [vmem:[%s3955_s2 + $0x414] ss:$8 sps:$4 sm:$0xff]   ;;  %v2931_v51 = vld [vmem:[%s3955_s2 + $0x410] ss:$8 sps:$4 sm:$0xff]   ;;  %v2936_v52 = vld [vmem:[%s3955_s2 + $0x184] ss:$8 sps:$4 sm:$0xff]  }
  0x1f   : > { %v2941_v53 = vld [vmem:[%s3955_s2 + $0x424] ss:$8 sps:$4 sm:$0xff]   ;;  %v2950_v54 = vld [vmem:[%s3955_s2 + $0x180] ss:$8 sps:$4 sm:$0xff]   ;;  %v2960_v56 = vld [vmem:[%s3955_s2 + $0x194] ss:$8 sps:$4 sm:$0xff]  }
  0x20   : > { %v2955_v55 = vld [vmem:[%s3955_s2 + $0x420] ss:$8 sps:$4 sm:$0xff]   ;;  %v2965_v57 = vld [vmem:[%s3955_s2 + $0x434] ss:$8 sps:$4 sm:$0xff]   ;;  %v2974_v58 = vld [vmem:[%s3955_s2 + $0x190] ss:$8 sps:$4 sm:$0xff]  }
  0x21   : > { %v2979_v59 = vld [vmem:[%s3955_s2 + $0x430] ss:$8 sps:$4 sm:$0xff]   ;;  %v2984_v60 = vld [vmem:[%s3955_s2 + $0x1a4] ss:$8 sps:$4 sm:$0xff]   ;;  %v2998_v62 = vld [vmem:[%s3955_s2 + $0x1a0] ss:$8 sps:$4 sm:$0xff]  }
  0x22   : > { %2026 = vmatmul.mubr.msk.bf16.vlgmr.msra.gmra.mrb[4].mxu0 %vm206_vm1, %v2024_v12  ;;  %2029 = vmatmul.mubr.msk.bf16.vlgmr.msra.gmra.mrb[4].mxu1 %vm206_vm1, %v2027_v13  ;;  %v2989_v61 = vld [vmem:[%s3955_s2 + $0x444] ss:$8 sps:$4 sm:$0xff]   ;;  %v3003_v63 = vld [vmem:[%s3955_s2 + $0x440] ss:$8 sps:$4 sm:$0xff]   ;;  %v3014_v0 = vld [vmem:[%s3955_s2 + $0x1b4] ss:$8 sps:$4 sm:$0xff]  }
  0x23   : > { %606 = vmatpush1.bf16.msra.mxu0 %v2395_v14  ;;  %1244 = vmatpush1.bf16.msra.mxu1 %v2398_v15  ;;  %v3019_v1 = vld [vmem:[%s3955_s2 + $0x454] ss:$8 sps:$4 sm:$0xff]   ;;  %v3024_v2 = vld [vmem:[%s3955_s2 + $0x1b0] ss:$8 sps:$4 sm:$0xff]   ;;  %v3038_v4 = vld [vmem:[%s3955_s2 + $0x4] ss:$8 sps:$4 sm:$0xff]  }
  0x24   : > { %607 = vmatprep.subr.bf16.mxu0 %v2403_v16  ;;  %1245 = vmatprep.subr.bf16.mxu1 %v2406_v17  ;;  %v3029_v3 = vld [vmem:[%s3955_s2 + $0x450] ss:$8 sps:$4 sm:$0xff]   ;;  %v3043_v5 = vld [vmem:[%s3955_s2 + $0x2a4] ss:$8 sps:$4 sm:$0xff]   ;;  %v3054_v12 = vld [vmem:[%s3955_s2] ss:$8 sps:$4 sm:$0xff]  }
  0x25   : > { %4065 = vst [vmem:[#allocation2_spill] sm:$0xff] %v3043_v5  ;;  %4067 = vst [vmem:[#allocation4_spill] sm:$0xff] %v3054_v12  ;;  %v3059_v13 = vld [vmem:[%s3955_s2 + $0x2a0] ss:$8 sps:$4 sm:$0xff]   ;;  %v3066_v17 = vld [vmem:[%s3955_s2 + $0x14] ss:$8 sps:$4 sm:$0xff]  }
  0x26   : > { %4068 = vst [vmem:[#allocation5_spill] sm:$0xff] %v3059_v13  ;;  %4070 = vst [vmem:[#allocation7_spill] sm:$0xff] %v3066_v17 }
  0x27   : > { %608 = vmatpush1.bf16.msra.mxu0 %v2738_v18  ;;  %1246 = vmatpush1.bf16.msra.mxu1 %v2743_v19 }
  0x28   : > { %609 = vmatprep.subr.bf16.mxu0 %v2748_v20  ;;  %1247 = vmatprep.subr.bf16.mxu1 %v2753_v21 }
  0x2b   : > { %610 = vmatpush1.bf16.msra.mxu0 %v2758_v22  ;;  %1248 = vmatpush1.bf16.msra.mxu1 %v2765_v23 }
  0x2c   : > { %611 = vmatprep.subr.bf16.mxu0 %v2772_v24  ;;  %1249 = vmatprep.subr.bf16.mxu1 %v2777_v25 }
  0x2f   : > { %612 = vmatpush1.bf16.msra.mxu0 %v2782_v26  ;;  %1250 = vmatpush1.bf16.msra.mxu1 %v2789_v27 }
  0x30   : > { %613 = vmatprep.subr.bf16.mxu0 %v2796_v28  ;;  %1251 = vmatprep.subr.bf16.mxu1 %v2801_v29 }
  0x33   : > { %614 = vmatpush1.bf16.msra.mxu0 %v2806_v30  ;;  %1252 = vmatpush1.bf16.msra.mxu1 %v2813_v31 }
  0x34   : > { %615 = vmatprep.subr.bf16.mxu0 %v2820_v32  ;;  %1253 = vmatprep.subr.bf16.mxu1 %v2825_v33 }
  0x37   : > { %616 = vmatpush1.bf16.msra.mxu0 %v2830_v34  ;;  %1254 = vmatpush1.bf16.msra.mxu1 %v2835_v35 }
  0x38   : > { %617 = vmatprep.subr.bf16.mxu0 %v2840_v36  ;;  %1255 = vmatprep.subr.bf16.mxu1 %v2845_v37 }
  0x3b   : > { %618 = vmatpush1.bf16.msra.mxu0 %v2854_v38  ;;  %1256 = vmatpush1.bf16.msra.mxu1 %v2859_v39 }
  0x3c   : > { %619 = vmatprep.subr.bf16.mxu0 %v2864_v40  ;;  %1257 = vmatprep.subr.bf16.mxu1 %v2869_v41 }
  0x3f   : > { %620 = vmatpush1.bf16.msra.mxu0 %v2878_v42  ;;  %1258 = vmatpush1.bf16.msra.mxu1 %v2883_v43 }
  0x40   : > { %621 = vmatprep.subr.bf16.mxu0 %v2888_v44  ;;  %1259 = vmatprep.subr.bf16.mxu1 %v2893_v45 }
  0x43   : > { %622 = vmatpush1.bf16.msra.mxu0 %v2902_v46  ;;  %1260 = vmatpush1.bf16.msra.mxu1 %v2907_v47 }
  0x44   : > { %623 = vmatprep.subr.bf16.mxu0 %v2912_v48  ;;  %1261 = vmatprep.subr.bf16.mxu1 %v2917_v49 }
  0x47   : > { %624 = vmatpush1.bf16.msra.mxu0 %v2926_v50  ;;  %1262 = vmatpush1.bf16.msra.mxu1 %v2931_v51 }
  0x48   : > { %625 = vmatprep.subr.bf16.mxu0 %v2936_v52  ;;  %1263 = vmatprep.subr.bf16.mxu1 %v2941_v53 }
  0x4b   : > { %626 = vmatpush1.bf16.msra.mxu0 %v2950_v54  ;;  %1264 = vmatpush1.bf16.msra.mxu1 %v2955_v55 }
  0x4c   : > { %627 = vmatprep.subr.bf16.mxu0 %v2960_v56  ;;  %1265 = vmatprep.subr.bf16.mxu1 %v2965_v57 }
  0x4f   : > { %628 = vmatpush1.bf16.msra.mxu0 %v2974_v58  ;;  %1266 = vmatpush1.bf16.msra.mxu1 %v2979_v59 }
  0x50   : > { %629 = vmatprep.subr.bf16.mxu0 %v2984_v60  ;;  %1267 = vmatprep.subr.bf16.mxu1 %v2989_v61 }
  0x53   : > { %630 = vmatpush1.bf16.msra.mxu0 %v2998_v62  ;;  %1268 = vmatpush1.bf16.msra.mxu1 %v3003_v63 }
  0x54   : > { %631 = vmatprep.subr.bf16.mxu0 %v3014_v0  ;;  %1269 = vmatprep.subr.bf16.mxu1 %v3019_v1 }
  0x57   : > { %632 = vmatpush1.bf16.msra.mxu0 %v3024_v2  ;;  %1270 = vmatpush1.bf16.msra.mxu1 %v3029_v3 }
  0x58   : > { %789 = vmatprep.subr.bf16.mxu0 %v3038_v4  ;;  %1424 = vmatprep.subr.bf16.mxu1 %v3043_v5 }
  0xed   : > { %v299_v6 = vpop.f32.mrb[0].mxu1  ;;  %v3047_v7 = vpop.f32.mrb[0].mxu0 }
  0xee   : > { %v301_v8 = vpop.f32.mrb[1].mxu1  ;;  %v253_v9 = vpop.f32.mrb[1].mxu0  ;;  %v3061_v15 = vpack.c.bf16 %v299_v6, %v299_v6 }
  0xef   : > { %v3049_v10 = vpack.c.bf16 %v301_v8, %v301_v8  ;;  %v303_v11 = vpop.f32.mrb[2].mxu1  ;;  %v255_v14 = vpop.f32.mrb[2].mxu0  ;;  %v3071_v8 = vld [vmem:[%s3955_s2 + $0x2b4] ss:$8 sps:$4 sm:$0xff]   ;;  %v259_v6 = vpack.c.bf16 %v253_v9, %v253_v9  ;;  %v3096_v9 = vld [vmem:[%s3955_s2 + $0x24] ss:$8 sps:$4 sm:$0xff]  }
  0xf0   : > { %4069 = vst [vmem:[#allocation6_spill] sm:$0xff] %v3061_v15  ;;  %v304_v16 = vpop.f32.mrb[3].mxu1  ;;  %4071 = vst [vmem:[#allocation8_spill] sm:$0xff] %v3071_v8  ;;  %v256_v11 = vpop.f32.mrb[3].mxu0  ;;  %v3084_v14 = vld [vmem:[%s3955_s2 + $0x10] ss:$8 sps:$4 sm:$0xff]  }
  0xf1   : > { %4066 = vst [vmem:[#allocation3_spill] sm:$0xff] %v3049_v10  ;;  %2086 = vmatprep.mubr.msk.bf16.mxu0 %vm601_vm2, %v3049_v10  ;;  %2257 = vmatprep.mubr.msk.bf16.mxu1 %vm601_vm2, %v3049_v10  ;;  %4072 = vst [vmem:[#allocation9_spill] sm:$0xff] %v3084_v14  ;;  %v3089_v16 = vld [vmem:[%s3955_s2 + $0x2b0] ss:$8 sps:$4 sm:$0xff]   ;;  %v3101_v11 = vld [vmem:[%s3955_s2 + $0x2c4] ss:$8 sps:$4 sm:$0xff]  }
  0xf2   : > { %638 = vmatmul.mubr.bf16.vlgmr.msra.gmra.mrb[8].mxu0 %v3061_v15  ;;  %1276 = vmatmul.mubr.bf16.vlgmr.msra.gmra.mrb[8].mxu1 %v3061_v15  ;;  %4073 = vst [vmem:[#allocation10_spill] sm:$0xff] %v3089_v16  ;;  %4074 = vst [vmem:[#allocation11_spill] sm:$0xff] %v3096_v9 }
  0xf3   : > { %790 = vmatpush1.bf16.msra.mxu0 %v3054_v12  ;;  %1425 = vmatpush1.bf16.msra.mxu1 %v3059_v13  ;;  %4075 = vst [vmem:[#allocation12_spill] sm:$0xff] %v3101_v11 }
  0xf4   : > { %791 = vmatprep.subr.bf16.mxu0 %v3066_v17  ;;  %1426 = vmatprep.subr.bf16.mxu1 %v3071_v8  ;;  %v3114_v8 = vld [vmem:[%s3955_s2 + $0x20] ss:$8 sps:$4 sm:$0xff]  }
  0xf5   : > { %2115 = vmatprep.mubr.msk.bf16.mxu0 %vm601_vm2, %v259_v6  ;;  %2286 = vmatprep.mubr.msk.bf16.mxu1 %vm601_vm2, %v259_v6  ;;  %v3105_v15 = vpop.f32.mrb[4].mxu0  ;;  %4076 = vst [vmem:[#allocation13_spill] sm:$0xff] %v3114_v8  ;;  %v3119_v17 = vld [vmem:[%s3955_s2 + $0x2c0] ss:$8 sps:$4 sm:$0xff]   ;;  %v3126_v6 = vld [vmem:[%s3955_s2 + $0x34] ss:$8 sps:$4 sm:$0xff]  }
  0xf6   : > { %v3107_v13 = vpop.f32.mrb[5].mxu0  ;;  %4077 = vst [vmem:[#allocation14_spill] sm:$0xff] %v3119_v17  ;;  %4078 = vst [vmem:[#allocation15_spill] sm:$0xff] %v3126_v6 }
  0xf7   : > { %792 = vmatpush1.bf16.msra.mxu0 %v3084_v14  ;;  %1427 = vmatpush1.bf16.msra.mxu1 %v3089_v16  ;;  %v351_v10 = vpop.f32.mrb[6].mxu0  ;;  %v3131_v16 = vld [vmem:[%s3955_s2 + $0x2d4] ss:$8 sps:$4 sm:$0xff]  }
  0xf8   : > { %793 = vmatprep.subr.bf16.mxu0 %v3096_v9  ;;  %1428 = vmatprep.subr.bf16.mxu1 %v3101_v11  ;;  %4079 = vst [vmem:[#allocation16_spill] sm:$0xff] %v3131_v16  ;;  %v352_v14 = vpop.f32.mrb[7].mxu0  ;;  %v3138_v10 = vld [vmem:[%s3955_s2 + $0x30] ss:$8 sps:$4 sm:$0xff]  }
  0xf9   : > { %4080 = vst [vmem:[#allocation17_spill] sm:$0xff] %v3138_v10  ;;  %v3143_v11 = vld [vmem:[%s3955_s2 + $0x2d0] ss:$8 sps:$4 sm:$0xff]   ;;  %v3150_v14 = vld [vmem:[%s3955_s2 + $0x44] ss:$8 sps:$4 sm:$0xff]  }
  0xfa   : > { %4081 = vst [vmem:[#allocation18_spill] sm:$0xff] %v3143_v11  ;;  %4082 = vst [vmem:[#allocation19_spill] sm:$0xff] %v3150_v14 }
  0xfb   : > { %794 = vmatpush1.bf16.msra.mxu0 %v3114_v8  ;;  %1429 = vmatpush1.bf16.msra.mxu1 %v3119_v17  ;;  %v3155_v17 = vld [vmem:[%s3955_s2 + $0x2e4] ss:$8 sps:$4 sm:$0xff]   ;;  %v3253_v8 = vpop.f32.mrb[4].mxu1 }
  0xfc   : > { %795 = vmatprep.subr.bf16.mxu0 %v3126_v6  ;;  %1430 = vmatprep.subr.bf16.mxu1 %v3131_v16  ;;  %4083 = vst [vmem:[#allocation20_spill] sm:$0xff] %v3155_v17  ;;  %v3162_v6 = vld [vmem:[%s3955_s2 + $0x40] ss:$8 sps:$4 sm:$0xff]   ;;  %4097 = vst [vmem:[#allocation34_spill] sm:$0xff] %v3253_v8  ;;  %v3255_v9 = vpop.f32.mrb[5].mxu1 }
  0xfd   : > { %4084 = vst [vmem:[#allocation21_spill] sm:$0xff] %v3162_v6  ;;  %v3167_v16 = vld [vmem:[%s3955_s2 + $0x2e0] ss:$8 sps:$4 sm:$0xff]   ;;  %4098 = vst [vmem:[#allocation35_spill] sm:$0xff] %v3255_v9  ;;  %v399_v12 = vpop.f32.mrb[6].mxu1 }
  0xfe   : > { %4085 = vst [vmem:[#allocation22_spill] sm:$0xff] %v3167_v16  ;;  %v400_v5 = vpop.f32.mrb[7].mxu1  ;;  %v3274_v12 = vld [vmem:[%s3955_s2 + $0x94] ss:$8 sps:$4 sm:$0xff]   ;;  %v3291_v9 = vld [vmem:[%s3955_s2 + $0x330] ss:$8 sps:$4 sm:$0xff]  }
  0xff   : > { %796 = vmatpush1.bf16.msra.mxu0 %v3138_v10  ;;  %1431 = vmatpush1.bf16.msra.mxu1 %v3143_v11  ;;  %v3174_v10 = vld [vmem:[%s3955_s2 + $0x54] ss:$8 sps:$4 sm:$0xff]   ;;  %4101 = vst [vmem:[#allocation38_spill] sm:$0xff] %v3274_v12  ;;  %v3286_v5 = vld [vmem:[%s3955_s2 + $0x90] ss:$8 sps:$4 sm:$0xff]   ;;  %4104 = vst [vmem:[#allocation41_spill] sm:$0xff] %v3291_v9 }
 0x100   : > { %797 = vmatprep.subr.bf16.mxu0 %v3150_v14  ;;  %1432 = vmatprep.subr.bf16.mxu1 %v3155_v17  ;;  %4086 = vst [vmem:[#allocation23_spill] sm:$0xff] %v3174_v10  ;;  %v3179_v11 = vld [vmem:[%s3955_s2 + $0x2f4] ss:$8 sps:$4 sm:$0xff]   ;;  %v3186_v14 = vld [vmem:[%s3955_s2 + $0x50] ss:$8 sps:$4 sm:$0xff]   ;;  %4103 = vst [vmem:[#allocation40_spill] sm:$0xff] %v3286_v5 }
 0x101   : > { %4087 = vst [vmem:[#allocation24_spill] sm:$0xff] %v3179_v11  ;;  %4088 = vst [vmem:[#allocation25_spill] sm:$0xff] %v3186_v14  ;;  %v3191_v17 = vld [vmem:[%s3955_s2 + $0x2f0] ss:$8 sps:$4 sm:$0xff]   ;;  %v3279_v8 = vld [vmem:[%s3955_s2 + $0x334] ss:$8 sps:$4 sm:$0xff]  }
 0x102   : > { %4089 = vst [vmem:[#allocation26_spill] sm:$0xff] %v3191_v17  ;;  %4102 = vst [vmem:[#allocation39_spill] sm:$0xff] %v3279_v8 }
 0x103   : > { %798 = vmatpush1.bf16.msra.mxu0 %v3162_v6  ;;  %1433 = vmatpush1.bf16.msra.mxu1 %v3167_v16  ;;  %v3198_v6 = vld [vmem:[%s3955_s2 + $0x64] ss:$8 sps:$4 sm:$0xff]  }
 0x104   : > { %799 = vmatprep.subr.bf16.mxu0 %v3174_v10  ;;  %1434 = vmatprep.subr.bf16.mxu1 %v3179_v11  ;;  %4090 = vst [vmem:[#allocation27_spill] sm:$0xff] %v3198_v6  ;;  %v3203_v16 = vld [vmem:[%s3955_s2 + $0x304] ss:$8 sps:$4 sm:$0xff]   ;;  %v3210_v10 = vld [vmem:[%s3955_s2 + $0x60] ss:$8 sps:$4 sm:$0xff]  }
 0x105   : > { %4091 = vst [vmem:[#allocation28_spill] sm:$0xff] %v3203_v16  ;;  %4092 = vst [vmem:[#allocation29_spill] sm:$0xff] %v3210_v10  ;;  %v3215_v11 = vld [vmem:[%s3955_s2 + $0x300] ss:$8 sps:$4 sm:$0xff]  }
 0x106   : > { %4093 = vst [vmem:[#allocation30_spill] sm:$0xff] %v3215_v11 }
 0x107   : > { %800 = vmatpush1.bf16.msra.mxu0 %v3186_v14  ;;  %1435 = vmatpush1.bf16.msra.mxu1 %v3191_v17  ;;  %v3222_v14 = vld [vmem:[%s3955_s2 + $0x74] ss:$8 sps:$4 sm:$0xff]  }
 0x108   : > { %801 = vmatprep.subr.bf16.mxu0 %v3198_v6  ;;  %1436 = vmatprep.subr.bf16.mxu1 %v3203_v16  ;;  %4094 = vst [vmem:[#allocation31_spill] sm:$0xff] %v3222_v14  ;;  %v3227_v17 = vld [vmem:[%s3955_s2 + $0x314] ss:$8 sps:$4 sm:$0xff]   ;;  %v3234_v6 = vld [vmem:[%s3955_s2 + $0x70] ss:$8 sps:$4 sm:$0xff]  }
 0x109   : > { %4095 = vst [vmem:[#allocation32_spill] sm:$0xff] %v3227_v17  ;;  %v3239_v16 = vld [vmem:[%s3955_s2 + $0x310] ss:$8 sps:$4 sm:$0xff]  }
 0x10b   : > { %802 = vmatpush1.bf16.msra.mxu0 %v3210_v10  ;;  %1437 = vmatpush1.bf16.msra.mxu1 %v3215_v11  ;;  %v3246_v10 = vld [vmem:[%s3955_s2 + $0x84] ss:$8 sps:$4 sm:$0xff]  }
 0x10c   : > { %803 = vmatprep.subr.bf16.mxu0 %v3222_v14  ;;  %1438 = vmatprep.subr.bf16.mxu1 %v3227_v17  ;;  %v3251_v11 = vld [vmem:[%s3955_s2 + $0x324] ss:$8 sps:$4 sm:$0xff]   ;;  %v3262_v17 = vld [vmem:[%s3955_s2 + $0x80] ss:$8 sps:$4 sm:$0xff]  }
 0x10d   : > { %4096 = vst [vmem:[#allocation33_spill] sm:$0xff] %v3251_v11  ;;  %4099 = vst [vmem:[#allocation36_spill] sm:$0xff] %v3262_v17  ;;  %v3267_v14 = vld [vmem:[%s3955_s2 + $0x320] ss:$8 sps:$4 sm:$0xff]  }
 0x10e   : > { %4100 = vst [vmem:[#allocation37_spill] sm:$0xff] %v3267_v14 }
 0x10f   : > { %804 = vmatpush1.bf16.msra.mxu0 %v3234_v6  ;;  %1439 = vmatpush1.bf16.msra.mxu1 %v3239_v16 }
 0x110   : > { %805 = vmatprep.subr.bf16.mxu0 %v3246_v10  ;;  %1440 = vmatprep.subr.bf16.mxu1 %v3251_v11  ;;  %v258_v11 = vpack.c.bf16 %v3047_v7, %v3047_v7  ;;  %v3420_v7 = vld [vmem:[%s3955_s2 + $0x1d4] ss:$8 sps:$4 sm:$0xff]  }
 0x111   : > { %4124 = vst [vmem:[#allocation61_spill] sm:$0xff] %v3420_v7 }
 0x113   : > { %806 = vmatpush1.bf16.msra.mxu0 %v3262_v17  ;;  %1441 = vmatpush1.bf16.msra.mxu1 %v3267_v14  ;;  %v3298_v17 = vld [vmem:[%s3955_s2 + $0xa4] ss:$8 sps:$4 sm:$0xff]  }
 0x114   : > { %807 = vmatprep.subr.bf16.mxu0 %v3274_v12  ;;  %1442 = vmatprep.subr.bf16.mxu1 %v3279_v8  ;;  %4105 = vst [vmem:[#allocation42_spill] sm:$0xff] %v3298_v17  ;;  %v3303_v14 = vld [vmem:[%s3955_s2 + $0x344] ss:$8 sps:$4 sm:$0xff]   ;;  %v3310_v12 = vld [vmem:[%s3955_s2 + $0xa0] ss:$8 sps:$4 sm:$0xff]  }
 0x115   : > { %4106 = vst [vmem:[#allocation43_spill] sm:$0xff] %v3303_v14  ;;  %4107 = vst [vmem:[#allocation44_spill] sm:$0xff] %v3310_v12  ;;  %v3315_v8 = vld [vmem:[%s3955_s2 + $0x340] ss:$8 sps:$4 sm:$0xff]  }
 0x116   : > { %4108 = vst [vmem:[#allocation45_spill] sm:$0xff] %v3315_v8 }
 0x117   : > { %808 = vmatpush1.bf16.msra.mxu0 %v3286_v5  ;;  %1443 = vmatpush1.bf16.msra.mxu1 %v3291_v9  ;;  %v3322_v5 = vld [vmem:[%s3955_s2 + $0xb4] ss:$8 sps:$4 sm:$0xff]  }
 0x118   : > { %809 = vmatprep.subr.bf16.mxu0 %v3298_v17  ;;  %1444 = vmatprep.subr.bf16.mxu1 %v3303_v14  ;;  %4109 = vst [vmem:[#allocation46_spill] sm:$0xff] %v3322_v5  ;;  %v3327_v9 = vld [vmem:[%s3955_s2 + $0x354] ss:$8 sps:$4 sm:$0xff]   ;;  %v3334_v17 = vld [vmem:[%s3955_s2 + $0xb0] ss:$8 sps:$4 sm:$0xff]  }
 0x119   : > { %4110 = vst [vmem:[#allocation47_spill] sm:$0xff] %v3327_v9  ;;  %4111 = vst [vmem:[#allocation48_spill] sm:$0xff] %v3334_v17  ;;  %v3339_v14 = vld [vmem:[%s3955_s2 + $0x350] ss:$8 sps:$4 sm:$0xff]  }
 0x11a   : > { %4112 = vst [vmem:[#allocation49_spill] sm:$0xff] %v3339_v14 }
 0x11b   : > { %810 = vmatpush1.bf16.msra.mxu0 %v3310_v12  ;;  %1445 = vmatpush1.bf16.msra.mxu1 %v3315_v8  ;;  %v3346_v12 = vld [vmem:[%s3955_s2 + $0xc4] ss:$8 sps:$4 sm:$0xff]  }
 0x11c   : > { %811 = vmatprep.subr.bf16.mxu0 %v3322_v5  ;;  %1446 = vmatprep.subr.bf16.mxu1 %v3327_v9  ;;  %4113 = vst [vmem:[#allocation50_spill] sm:$0xff] %v3346_v12  ;;  %v3351_v8 = vld [vmem:[%s3955_s2 + $0x364] ss:$8 sps:$4 sm:$0xff]   ;;  %v3358_v5 = vld [vmem:[%s3955_s2 + $0xc0] ss:$8 sps:$4 sm:$0xff]  }
 0x11d   : > { %4114 = vst [vmem:[#allocation51_spill] sm:$0xff] %v3351_v8  ;;  %4115 = vst [vmem:[#allocation52_spill] sm:$0xff] %v3358_v5  ;;  %v3363_v9 = vld [vmem:[%s3955_s2 + $0x360] ss:$8 sps:$4 sm:$0xff]  }
 0x11e   : > { %4116 = vst [vmem:[#allocation53_spill] sm:$0xff] %v3363_v9 }
 0x11f   : > { %812 = vmatpush1.bf16.msra.mxu0 %v3334_v17  ;;  %1447 = vmatpush1.bf16.msra.mxu1 %v3339_v14  ;;  %v3370_v17 = vld [vmem:[%s3955_s2 + $0xd4] ss:$8 sps:$4 sm:$0xff]  }
 0x120   : > { %813 = vmatprep.subr.bf16.mxu0 %v3346_v12  ;;  %1448 = vmatprep.subr.bf16.mxu1 %v3351_v8  ;;  %4117 = vst [vmem:[#allocation54_spill] sm:$0xff] %v3370_v17  ;;  %v3375_v14 = vld [vmem:[%s3955_s2 + $0x374] ss:$8 sps:$4 sm:$0xff]   ;;  %v3382_v12 = vld [vmem:[%s3955_s2 + $0xd0] ss:$8 sps:$4 sm:$0xff]  }
 0x121   : > { %4118 = vst [vmem:[#allocation55_spill] sm:$0xff] %v3375_v14  ;;  %4119 = vst [vmem:[#allocation56_spill] sm:$0xff] %v3382_v12  ;;  %v3387_v8 = vld [vmem:[%s3955_s2 + $0x370] ss:$8 sps:$4 sm:$0xff]  }
 0x122   : > { %4120 = vst [vmem:[#allocation57_spill] sm:$0xff] %v3387_v8 }
 0x123   : > { %814 = vmatpush1.bf16.msra.mxu0 %v3358_v5  ;;  %1449 = vmatpush1.bf16.msra.mxu1 %v3363_v9  ;;  %v3394_v5 = vld [vmem:[%s3955_s2 + $0x1c4] ss:$8 sps:$4 sm:$0xff]  }
 0x124   : > { %815 = vmatprep.subr.bf16.mxu0 %v3370_v17  ;;  %1450 = vmatprep.subr.bf16.mxu1 %v3375_v14  ;;  %4121 = vst [vmem:[#allocation58_spill] sm:$0xff] %v3394_v5  ;;  %v3399_v9 = vld [vmem:[%s3955_s2 + $0x464] ss:$8 sps:$4 sm:$0xff]   ;;  %v3408_v14 = vld [vmem:[%s3955_s2 + $0x1c0] ss:$8 sps:$4 sm:$0xff]  }
 0x125   : > { %4122 = vst [vmem:[#allocation59_spill] sm:$0xff] %v3399_v9  ;;  %v3413_v17 = vld [vmem:[%s3955_s2 + $0x460] ss:$8 sps:$4 sm:$0xff]  }
 0x126   : > { %4123 = vst [vmem:[#allocation60_spill] sm:$0xff] %v3413_v17 }
 0x127   : > { %816 = vmatpush1.bf16.msra.mxu0 %v3382_v12  ;;  %1451 = vmatpush1.bf16.msra.mxu1 %v3387_v8  ;;  %v3425_v8 = vld [vmem:[%s3955_s2 + $0x474] ss:$8 sps:$4 sm:$0xff]   ;;  %v3429_v12 = vpack.c.bf16 %v3107_v13, %v3107_v13  ;;  %v3448_v13 = vld [vmem:[%s3955_s2 + $0x1e4] ss:$8 sps:$4 sm:$0xff]  }
 0x128   : > { %1002 = vmatprep.subr.bf16.mxu0 %v3394_v5  ;;  %1634 = vmatprep.subr.bf16.mxu1 %v3399_v9  ;;  %4125 = vst [vmem:[#allocation62_spill] sm:$0xff] %v3425_v8  ;;  %v3436_v9 = vld [vmem:[%s3955_s2 + $0x1d0] ss:$8 sps:$4 sm:$0xff]   ;;  %4128 = vst [vmem:[#allocation65_spill] sm:$0xff] %v3448_v13 }
 0x129   : > { %4126 = vst [vmem:[#allocation63_spill] sm:$0xff] %v3436_v9  ;;  %v3441_v5 = vld [vmem:[%s3955_s2 + $0x470] ss:$8 sps:$4 sm:$0xff]  }
 0x12a   : > { %822 = vmatmul.mubr.bf16.vlgmr.msra.gmra.mrb[8].mxu0 %v258_v11  ;;  %1457 = vmatmul.mubr.bf16.vlgmr.msra.gmra.mrb[8].mxu1 %v258_v11  ;;  %4127 = vst [vmem:[#allocation64_spill] sm:$0xff] %v3441_v5  ;;  %v3453_v11 = vld [vmem:[%s3955_s2 + $0x484] ss:$8 sps:$4 sm:$0xff]  }
 0x12b   : > { %1003 = vmatpush1.bf16.msra.mxu0 %v3408_v14  ;;  %1635 = vmatpush1.bf16.msra.mxu1 %v3413_v17  ;;  %4129 = vst [vmem:[#allocation66_spill] sm:$0xff] %v3453_v11  ;;  %v3739_v17 = vpack.c.bf16 %v3105_v15, %v3105_v15  ;;  %v2649_v15 = vld [vmem:[%s3955_s2 + $0xe0] ss:$8 sps:$4 sm:$0xff]  }
 0x12c   : > { %1004 = vmatprep.subr.bf16.mxu0 %v3420_v7  ;;  %1636 = vmatprep.subr.bf16.mxu1 %v3425_v8  ;;  %v3464_v8 = vld [vmem:[%s3955_s2 + $0x1e0] ss:$8 sps:$4 sm:$0xff]  }
 0x12d   : > { %2172 = vmatprep.mubr.msk.bf16.mxu0 %vm601_vm2, %v3429_v12  ;;  %2343 = vmatprep.mubr.msk.bf16.mxu1 %vm601_vm2, %v3429_v12  ;;  %4130 = vst [vmem:[#allocation67_spill] sm:$0xff] %v3464_v8  ;;  %v3469_v7 = vld [vmem:[%s3955_s2 + $0x480] ss:$8 sps:$4 sm:$0xff]  }
 0x12e   : > { %4131 = vst [vmem:[#allocation68_spill] sm:$0xff] %v3469_v7 }
 0x12f   : > { %1005 = vmatpush1.bf16.msra.mxu0 %v3436_v9  ;;  %1637 = vmatpush1.bf16.msra.mxu1 %v3441_v5  ;;  %v3476_v9 = vld [vmem:[%s3955_s2 + $0x1f4] ss:$8 sps:$4 sm:$0xff]  }
 0x130   : > { %1006 = vmatprep.subr.bf16.mxu0 %v3448_v13  ;;  %1638 = vmatprep.subr.bf16.mxu1 %v3453_v11  ;;  %4132 = vst [vmem:[#allocation69_spill] sm:$0xff] %v3476_v9  ;;  %v3481_v5 = vld [vmem:[%s3955_s2 + $0x494] ss:$8 sps:$4 sm:$0xff]   ;;  %v3488_v13 = vld [vmem:[%s3955_s2 + $0x1f0] ss:$8 sps:$4 sm:$0xff]  }
 0x131   : > { %4133 = vst [vmem:[#allocation70_spill] sm:$0xff] %v3481_v5  ;;  %4134 = vst [vmem:[#allocation71_spill] sm:$0xff] %v3488_v13  ;;  %v3493_v11 = vld [vmem:[%s3955_s2 + $0x490] ss:$8 sps:$4 sm:$0xff]  }
 0x132   : > { %4135 = vst [vmem:[#allocation72_spill] sm:$0xff] %v3493_v11 }
 0x133   : > { %1007 = vmatpush1.bf16.msra.mxu0 %v3464_v8  ;;  %1639 = vmatpush1.bf16.msra.mxu1 %v3469_v7  ;;  %v3500_v8 = vld [vmem:[%s3955_s2 + $0x204] ss:$8 sps:$4 sm:$0xff]  }
 0x134   : > { %1008 = vmatprep.subr.bf16.mxu0 %v3476_v9  ;;  %1640 = vmatprep.subr.bf16.mxu1 %v3481_v5  ;;  %4136 = vst [vmem:[#allocation73_spill] sm:$0xff] %v3500_v8  ;;  %v3505_v7 = vld [vmem:[%s3955_s2 + $0x4a4] ss:$8 sps:$4 sm:$0xff]   ;;  %v3512_v9 = vld [vmem:[%s3955_s2 + $0x200] ss:$8 sps:$4 sm:$0xff]  }
 0x135   : > { %4137 = vst [vmem:[#allocation74_spill] sm:$0xff] %v3505_v7  ;;  %4138 = vst [vmem:[#allocation75_spill] sm:$0xff] %v3512_v9  ;;  %v3517_v5 = vld [vmem:[%s3955_s2 + $0x4a0] ss:$8 sps:$4 sm:$0xff]  }
 0x136   : > { %4139 = vst [vmem:[#allocation76_spill] sm:$0xff] %v3517_v5 }
 0x137   : > { %1009 = vmatpush1.bf16.msra.mxu0 %v3488_v13  ;;  %1641 = vmatpush1.bf16.msra.mxu1 %v3493_v11  ;;  %v3524_v13 = vld [vmem:[%s3955_s2 + $0x214] ss:$8 sps:$4 sm:$0xff]  }
 0x138   : > { %1010 = vmatprep.subr.bf16.mxu0 %v3500_v8  ;;  %1642 = vmatprep.subr.bf16.mxu1 %v3505_v7  ;;  %4140 = vst [vmem:[#allocation77_spill] sm:$0xff] %v3524_v13  ;;  %v3529_v11 = vld [vmem:[%s3955_s2 + $0x4b4] ss:$8 sps:$4 sm:$0xff]   ;;  %v3536_v8 = vld [vmem:[%s3955_s2 + $0x210] ss:$8 sps:$4 sm:$0xff]  }
 0x139   : > { %4141 = vst [vmem:[#allocation78_spill] sm:$0xff] %v3529_v11  ;;  %4142 = vst [vmem:[#allocation79_spill] sm:$0xff] %v3536_v8  ;;  %v3541_v7 = vld [vmem:[%s3955_s2 + $0x4b0] ss:$8 sps:$4 sm:$0xff]  }
 0x13a   : > { %4143 = vst [vmem:[#allocation80_spill] sm:$0xff] %v3541_v7 }
 0x13b   : > { %1011 = vmatpush1.bf16.msra.mxu0 %v3512_v9  ;;  %1643 = vmatpush1.bf16.msra.mxu1 %v3517_v5  ;;  %v3548_v9 = vld [vmem:[%s3955_s2 + $0x224] ss:$8 sps:$4 sm:$0xff]  }
 0x13c   : > { %1012 = vmatprep.subr.bf16.mxu0 %v3524_v13  ;;  %1644 = vmatprep.subr.bf16.mxu1 %v3529_v11  ;;  %4144 = vst [vmem:[#allocation81_spill] sm:$0xff] %v3548_v9  ;;  %v3553_v5 = vld [vmem:[%s3955_s2 + $0x4c4] ss:$8 sps:$4 sm:$0xff]   ;;  %v3560_v13 = vld [vmem:[%s3955_s2 + $0x220] ss:$8 sps:$4 sm:$0xff]  }
 0x13d   : > { %4145 = vst [vmem:[#allocation82_spill] sm:$0xff] %v3553_v5  ;;  %4146 = vst [vmem:[#allocation83_spill] sm:$0xff] %v3560_v13  ;;  %v3565_v11 = vld [vmem:[%s3955_s2 + $0x4c0] ss:$8 sps:$4 sm:$0xff]  }
 0x13e   : > { %4147 = vst [vmem:[#allocation84_spill] sm:$0xff] %v3565_v11 }
 0x13f   : > { %1013 = vmatpush1.bf16.msra.mxu0 %v3536_v8  ;;  %1645 = vmatpush1.bf16.msra.mxu1 %v3541_v7  ;;  %v3572_v8 = vld [vmem:[%s3955_s2 + $0x234] ss:$8 sps:$4 sm:$0xff]  }
 0x140   : > { %1014 = vmatprep.subr.bf16.mxu0 %v3548_v9  ;;  %1646 = vmatprep.subr.bf16.mxu1 %v3553_v5  ;;  %4148 = vst [vmem:[#allocation85_spill] sm:$0xff] %v3572_v8  ;;  %v3577_v7 = vld [vmem:[%s3955_s2 + $0x4d4] ss:$8 sps:$4 sm:$0xff]   ;;  %v3584_v9 = vld [vmem:[%s3955_s2 + $0x230] ss:$8 sps:$4 sm:$0xff]  }
 0x141   : > { %4149 = vst [vmem:[#allocation86_spill] sm:$0xff] %v3577_v7  ;;  %4150 = vst [vmem:[#allocation87_spill] sm:$0xff] %v3584_v9  ;;  %v3589_v5 = vld [vmem:[%s3955_s2 + $0x4d0] ss:$8 sps:$4 sm:$0xff]  }
 0x142   : > { %4151 = vst [vmem:[#allocation88_spill] sm:$0xff] %v3589_v5 }
 0x143   : > { %1015 = vmatpush1.bf16.msra.mxu0 %v3560_v13  ;;  %1647 = vmatpush1.bf16.msra.mxu1 %v3565_v11  ;;  %v3596_v13 = vld [vmem:[%s3955_s2 + $0x244] ss:$8 sps:$4 sm:$0xff]  }
 0x144   : > { %1016 = vmatprep.subr.bf16.mxu0 %v3572_v8  ;;  %1648 = vmatprep.subr.bf16.mxu1 %v3577_v7  ;;  %4152 = vst [vmem:[#allocation89_spill] sm:$0xff] %v3596_v13  ;;  %v3601_v11 = vld [vmem:[%s3955_s2 + $0x4e4] ss:$8 sps:$4 sm:$0xff]   ;;  %v3608_v8 = vld [vmem:[%s3955_s2 + $0x240] ss:$8 sps:$4 sm:$0xff]  }
 0x145   : > { %4153 = vst [vmem:[#allocation90_spill] sm:$0xff] %v3601_v11  ;;  %4154 = vst [vmem:[#allocation91_spill] sm:$0xff] %v3608_v8  ;;  %v3613_v7 = vld [vmem:[%s3955_s2 + $0x4e0] ss:$8 sps:$4 sm:$0xff]  }
 0x146   : > { %4155 = vst [vmem:[#allocation92_spill] sm:$0xff] %v3613_v7 }
 0x147   : > { %1017 = vmatpush1.bf16.msra.mxu0 %v3584_v9  ;;  %1649 = vmatpush1.bf16.msra.mxu1 %v3589_v5  ;;  %v3620_v9 = vld [vmem:[%s3955_s2 + $0x254] ss:$8 sps:$4 sm:$0xff]  }
 0x148   : > { %1018 = vmatprep.subr.bf16.mxu0 %v3596_v13  ;;  %1650 = vmatprep.subr.bf16.mxu1 %v3601_v11  ;;  %4156 = vst [vmem:[#allocation93_spill] sm:$0xff] %v3620_v9  ;;  %v3625_v5 = vld [vmem:[%s3955_s2 + $0x4f4] ss:$8 sps:$4 sm:$0xff]   ;;  %v3632_v13 = vld [vmem:[%s3955_s2 + $0x250] ss:$8 sps:$4 sm:$0xff]  }
 0x149   : > { %4157 = vst [vmem:[#allocation94_spill] sm:$0xff] %v3625_v5  ;;  %4158 = vst [vmem:[#allocation95_spill] sm:$0xff] %v3632_v13  ;;  %v3637_v11 = vld [vmem:[%s3955_s2 + $0x4f0] ss:$8 sps:$4 sm:$0xff]  }
 0x14a   : > { %4159 = vst [vmem:[#allocation96_spill] sm:$0xff] %v3637_v11 }
 0x14b   : > { %1019 = vmatpush1.bf16.msra.mxu0 %v3608_v8  ;;  %1651 = vmatpush1.bf16.msra.mxu1 %v3613_v7  ;;  %v3644_v8 = vld [vmem:[%s3955_s2 + $0x264] ss:$8 sps:$4 sm:$0xff]  }
 0x14c   : > { %1020 = vmatprep.subr.bf16.mxu0 %v3620_v9  ;;  %1652 = vmatprep.subr.bf16.mxu1 %v3625_v5  ;;  %4160 = vst [vmem:[#allocation97_spill] sm:$0xff] %v3644_v8  ;;  %v3649_v7 = vld [vmem:[%s3955_s2 + $0x504] ss:$8 sps:$4 sm:$0xff]   ;;  %v3656_v9 = vld [vmem:[%s3955_s2 + $0x260] ss:$8 sps:$4 sm:$0xff]  }
 0x14d   : > { %4161 = vst [vmem:[#allocation98_spill] sm:$0xff] %v3649_v7  ;;  %4162 = vst [vmem:[#allocation99_spill] sm:$0xff] %v3656_v9  ;;  %v3661_v5 = vld [vmem:[%s3955_s2 + $0x500] ss:$8 sps:$4 sm:$0xff]  }
 0x14e   : > { %4163 = vst [vmem:[#allocation100_spill] sm:$0xff] %v3661_v5 }
 0x14f   : > { %1021 = vmatpush1.bf16.msra.mxu0 %v3632_v13  ;;  %1653 = vmatpush1.bf16.msra.mxu1 %v3637_v11  ;;  %v3668_v13 = vld [vmem:[%s3955_s2 + $0x274] ss:$8 sps:$4 sm:$0xff]  }
 0x150   : > { %1022 = vmatprep.subr.bf16.mxu0 %v3644_v8  ;;  %1654 = vmatprep.subr.bf16.mxu1 %v3649_v7  ;;  %4164 = vst [vmem:[#allocation101_spill] sm:$0xff] %v3668_v13  ;;  %v3673_v11 = vld [vmem:[%s3955_s2 + $0x514] ss:$8 sps:$4 sm:$0xff]   ;;  %v3680_v8 = vld [vmem:[%s3955_s2 + $0x270] ss:$8 sps:$4 sm:$0xff]  }
 0x151   : > { %4165 = vst [vmem:[#allocation102_spill] sm:$0xff] %v3673_v11  ;;  %4166 = vst [vmem:[#allocation103_spill] sm:$0xff] %v3680_v8  ;;  %v3685_v7 = vld [vmem:[%s3955_s2 + $0x510] ss:$8 sps:$4 sm:$0xff]  }
 0x152   : > { %4167 = vst [vmem:[#allocation104_spill] sm:$0xff] %v3685_v7 }
 0x153   : > { %1023 = vmatpush1.bf16.msra.mxu0 %v3656_v9  ;;  %1655 = vmatpush1.bf16.msra.mxu1 %v3661_v5  ;;  %v3692_v9 = vld [vmem:[%s3955_s2 + $0x284] ss:$8 sps:$4 sm:$0xff]  }
 0x154   : > { %1024 = vmatprep.subr.bf16.mxu0 %v3668_v13  ;;  %1656 = vmatprep.subr.bf16.mxu1 %v3673_v11  ;;  %4168 = vst [vmem:[#allocation105_spill] sm:$0xff] %v3692_v9  ;;  %v3697_v5 = vld [vmem:[%s3955_s2 + $0x524] ss:$8 sps:$4 sm:$0xff]   ;;  %v3704_v13 = vld [vmem:[%s3955_s2 + $0x280] ss:$8 sps:$4 sm:$0xff]  }
 0x155   : > { %4169 = vst [vmem:[#allocation106_spill] sm:$0xff] %v3697_v5  ;;  %4170 = vst [vmem:[#allocation107_spill] sm:$0xff] %v3704_v13  ;;  %v3709_v11 = vld [vmem:[%s3955_s2 + $0x520] ss:$8 sps:$4 sm:$0xff]  }
 0x156   : > { %4171 = vst [vmem:[#allocation108_spill] sm:$0xff] %v3709_v11 }
 0x157   : > { %1025 = vmatpush1.bf16.msra.mxu0 %v3680_v8  ;;  %1657 = vmatpush1.bf16.msra.mxu1 %v3685_v7  ;;  %v3716_v8 = vld [vmem:[%s3955_s2 + $0x294] ss:$8 sps:$4 sm:$0xff]  }
 0x158   : > { %1026 = vmatprep.subr.bf16.mxu0 %v3692_v9  ;;  %1658 = vmatprep.subr.bf16.mxu1 %v3697_v5  ;;  %v3721_v7 = vld [vmem:[%s3955_s2 + $0x534] ss:$8 sps:$4 sm:$0xff]   ;;  %v3728_v9 = vld [vmem:[%s3955_s2 + $0x290] ss:$8 sps:$4 sm:$0xff]  }
 0x159   : > { %v3733_v5 = vld [vmem:[%s3955_s2 + $0x530] ss:$8 sps:$4 sm:$0xff]  }
 0x15b   : > { %1027 = vmatpush1.bf16.msra.mxu0 %v3704_v13  ;;  %1659 = vmatpush1.bf16.msra.mxu1 %v3709_v11  ;;  %v2647_v11 = vld [vmem:[%s3955_s2 + $0xe4] ss:$8 sps:$4 sm:$0xff]  }
 0x15c   : > { %1028 = vmatprep.subr.bf16.mxu0 %v3716_v8  ;;  %1660 = vmatprep.subr.bf16.mxu1 %v3721_v7  ;;  %v2648_v13 = vld [vmem:[%s3955_s2 + $0x384] ss:$8 sps:$4 sm:$0xff]  }
 0x15f   : > { %1029 = vmatpush1.bf16.msra.mxu0 %v3728_v9  ;;  %1661 = vmatpush1.bf16.msra.mxu1 %v3733_v5 }
 0x160   : > { %1679 = vmatprep.subr.bf16.mxu0 %v2647_v11  ;;  %1809 = vmatprep.subr.bf16.mxu1 %v2648_v13  ;;  %v2650_v11 = vld [vmem:[%s3955_s2 + $0x380] ss:$8 sps:$4 sm:$0xff]   ;;  %v2651_v13 = vld [vmem:[%s3955_s2 + $0xf4] ss:$8 sps:$4 sm:$0xff]  }
 0x162   : > { %1035 = vmatmul.mubr.bf16.vlgmr.msra.gmra.mrb[8].mxu0 %v3739_v17  ;;  %1667 = vmatmul.mubr.bf16.vlgmr.msra.gmra.mrb[8].mxu1 %v3739_v17 }
 0x163   : > { %1680 = vmatpush1.bf16.msra.mxu0 %v2649_v15  ;;  %2344 = vmatprep.mubr.msk.bf16.mxu0 %vm601_vm2, %v3429_v12  ;;  %v2652_v15 = vld [vmem:[%s3955_s2 + $0x394] ss:$8 sps:$4 sm:$0xff]  }
 0x164   : > { %1810 = vmatpush1.bf16.msra.mxu1 %v2650_v11  ;;  %2347 = vmatprep.mubr.msk.bf16.mxu1 %vm601_vm2, %v3429_v12  ;;  %v4227_v12 = vld [vmem:[#allocation35_spill] sm:$0xff] }
 0x165   : > { %1681 = vmatprep.subr.bf16.mxu0 %v2651_v13  ;;  %1811 = vmatprep.subr.bf16.mxu1 %v2652_v15  ;;  %v403_v11 = vpack.c.bf16 %v4227_v12, %v4227_v12  ;;  %v4228_v13 = vld [vmem:[#allocation6_spill] sm:$0xff]  ;;  %v4229_v15 = vld [vmem:[#allocation60_spill] sm:$0xff] }
 0x167   : > { %1682 = vmatpush1.bf16.msra.mxu0 %v2738_v18  ;;  %v4172_v18 = vld [vmem:[#allocation2_spill] sm:$0xff] }
 0x168   : > { %1812 = vmatpush1.bf16.msra.mxu1 %v2743_v19  ;;  %1683 = vmatprep.subr.bf16.mxu0 %v2748_v20  ;;  %v4173_v19 = vld [vmem:[#allocation4_spill] sm:$0xff]  ;;  %v4174_v20 = vld [vmem:[#allocation3_spill] sm:$0xff] }
 0x169   : > { %1813 = vmatprep.subr.bf16.mxu1 %v2753_v21  ;;  %v4175_v21 = vld [vmem:[#allocation5_spill] sm:$0xff] }
 0x16b   : > { %1684 = vmatpush1.bf16.msra.mxu0 %v2758_v22  ;;  %v4176_v22 = vld [vmem:[#allocation7_spill] sm:$0xff] }
 0x16c   : > { %1814 = vmatpush1.bf16.msra.mxu1 %v2765_v23  ;;  %1685 = vmatprep.subr.bf16.mxu0 %v2772_v24  ;;  %v4177_v23 = vld [vmem:[#allocation8_spill] sm:$0xff]  ;;  %v4178_v24 = vld [vmem:[#allocation9_spill] sm:$0xff] }
 0x16d   : > { %1815 = vmatprep.subr.bf16.mxu1 %v2777_v25  ;;  %v4179_v25 = vld [vmem:[#allocation10_spill] sm:$0xff] }
 0x16f   : > { %1686 = vmatpush1.bf16.msra.mxu0 %v2782_v26  ;;  %v4180_v26 = vld [vmem:[#allocation11_spill] sm:$0xff] }
 0x170   : > { %1816 = vmatpush1.bf16.msra.mxu1 %v2789_v27  ;;  %1687 = vmatprep.subr.bf16.mxu0 %v2796_v28  ;;  %v4181_v27 = vld [vmem:[#allocation12_spill] sm:$0xff]  ;;  %v4182_v28 = vld [vmem:[#allocation13_spill] sm:$0xff] }
 0x171   : > { %1817 = vmatprep.subr.bf16.mxu1 %v2801_v29  ;;  %v4183_v29 = vld [vmem:[#allocation14_spill] sm:$0xff] }
 0x173   : > { %1688 = vmatpush1.bf16.msra.mxu0 %v2806_v30  ;;  %v4184_v30 = vld [vmem:[#allocation15_spill] sm:$0xff] }
 0x174   : > { %1818 = vmatpush1.bf16.msra.mxu1 %v2813_v31  ;;  %1689 = vmatprep.subr.bf16.mxu0 %v2820_v32  ;;  %v4185_v31 = vld [vmem:[#allocation16_spill] sm:$0xff]  ;;  %v4186_v32 = vld [vmem:[#allocation17_spill] sm:$0xff] }
 0x175   : > { %1819 = vmatprep.subr.bf16.mxu1 %v2825_v33  ;;  %v4187_v33 = vld [vmem:[#allocation18_spill] sm:$0xff] }
 0x177   : > { %1690 = vmatpush1.bf16.msra.mxu0 %v2830_v34  ;;  %v4188_v34 = vld [vmem:[#allocation19_spill] sm:$0xff] }
 0x178   : > { %1820 = vmatpush1.bf16.msra.mxu1 %v2835_v35  ;;  %1691 = vmatprep.subr.bf16.mxu0 %v2840_v36  ;;  %v4189_v35 = vld [vmem:[#allocation20_spill] sm:$0xff]  ;;  %v4190_v36 = vld [vmem:[#allocation21_spill] sm:$0xff] }
 0x179   : > { %1821 = vmatprep.subr.bf16.mxu1 %v2845_v37  ;;  %v4191_v37 = vld [vmem:[#allocation22_spill] sm:$0xff] }
 0x17b   : > { %1692 = vmatpush1.bf16.msra.mxu0 %v2854_v38  ;;  %v4192_v38 = vld [vmem:[#allocation23_spill] sm:$0xff] }
 0x17c   : > { %1822 = vmatpush1.bf16.msra.mxu1 %v2859_v39  ;;  %1693 = vmatprep.subr.bf16.mxu0 %v2864_v40  ;;  %v4193_v39 = vld [vmem:[#allocation24_spill] sm:$0xff]  ;;  %v4194_v40 = vld [vmem:[#allocation25_spill] sm:$0xff] }
 0x17d   : > { %1823 = vmatprep.subr.bf16.mxu1 %v2869_v41  ;;  %v4195_v41 = vld [vmem:[#allocation26_spill] sm:$0xff] }
 0x17f   : > { %1694 = vmatpush1.bf16.msra.mxu0 %v2878_v42  ;;  %v4196_v42 = vld [vmem:[#allocation27_spill] sm:$0xff] }
 0x180   : > { %1824 = vmatpush1.bf16.msra.mxu1 %v2883_v43  ;;  %1695 = vmatprep.subr.bf16.mxu0 %v2888_v44  ;;  %v4197_v43 = vld [vmem:[#allocation28_spill] sm:$0xff]  ;;  %v4198_v44 = vld [vmem:[#allocation29_spill] sm:$0xff] }
 0x181   : > { %1825 = vmatprep.subr.bf16.mxu1 %v2893_v45  ;;  %v4199_v45 = vld [vmem:[#allocation30_spill] sm:$0xff] }
 0x183   : > { %1696 = vmatpush1.bf16.msra.mxu0 %v2902_v46  ;;  %v4200_v46 = vld [vmem:[#allocation31_spill] sm:$0xff] }
 0x184   : > { %1826 = vmatpush1.bf16.msra.mxu1 %v2907_v47  ;;  %1697 = vmatprep.subr.bf16.mxu0 %v2912_v48  ;;  %v4201_v47 = vld [vmem:[#allocation32_spill] sm:$0xff]  ;;  %v4202_v48 = vld [vmem:[#allocation33_spill] sm:$0xff] }
 0x185   : > { %1827 = vmatprep.subr.bf16.mxu1 %v2917_v49  ;;  %v4203_v49 = vld [vmem:[#allocation36_spill] sm:$0xff] }
 0x187   : > { %1698 = vmatpush1.bf16.msra.mxu0 %v2926_v50  ;;  %v4204_v50 = vld [vmem:[#allocation37_spill] sm:$0xff] }
 0x188   : > { %1828 = vmatpush1.bf16.msra.mxu1 %v2931_v51  ;;  %1699 = vmatprep.subr.bf16.mxu0 %v2936_v52  ;;  %v4205_v51 = vld [vmem:[#allocation38_spill] sm:$0xff]  ;;  %v4206_v52 = vld [vmem:[#allocation39_spill] sm:$0xff] }
 0x189   : > { %1829 = vmatprep.subr.bf16.mxu1 %v2941_v53  ;;  %v4207_v53 = vld [vmem:[#allocation40_spill] sm:$0xff] }
 0x18b   : > { %1700 = vmatpush1.bf16.msra.mxu0 %v2950_v54  ;;  %v4208_v54 = vld [vmem:[#allocation41_spill] sm:$0xff] }
 0x18c   : > { %1830 = vmatpush1.bf16.msra.mxu1 %v2955_v55  ;;  %1701 = vmatprep.subr.bf16.mxu0 %v2960_v56  ;;  %v4209_v55 = vld [vmem:[#allocation42_spill] sm:$0xff]  ;;  %v4210_v56 = vld [vmem:[#allocation43_spill] sm:$0xff] }
 0x18d   : > { %1831 = vmatprep.subr.bf16.mxu1 %v2965_v57  ;;  %v4211_v57 = vld [vmem:[#allocation44_spill] sm:$0xff] }
 0x18f   : > { %1702 = vmatpush1.bf16.msra.mxu0 %v2974_v58  ;;  %v4212_v58 = vld [vmem:[#allocation45_spill] sm:$0xff] }
 0x190   : > { %1832 = vmatpush1.bf16.msra.mxu1 %v2979_v59  ;;  %1703 = vmatprep.subr.bf16.mxu0 %v2984_v60  ;;  %v4213_v59 = vld [vmem:[#allocation46_spill] sm:$0xff]  ;;  %v4214_v60 = vld [vmem:[#allocation47_spill] sm:$0xff] }
 0x191   : > { %1833 = vmatprep.subr.bf16.mxu1 %v2989_v61  ;;  %v4215_v61 = vld [vmem:[#allocation48_spill] sm:$0xff] }
 0x193   : > { %1704 = vmatpush1.bf16.msra.mxu0 %v2998_v62  ;;  %v4216_v62 = vld [vmem:[#allocation49_spill] sm:$0xff] }
 0x194   : > { %1834 = vmatpush1.bf16.msra.mxu1 %v3003_v63  ;;  %1705 = vmatprep.subr.bf16.mxu0 %v3014_v0  ;;  %v4217_v63 = vld [vmem:[#allocation50_spill] sm:$0xff]  ;;  %v4218_v0 = vld [vmem:[#allocation51_spill] sm:$0xff] }
 0x195   : > { %1835 = vmatprep.subr.bf16.mxu1 %v3019_v1  ;;  %v4219_v1 = vld [vmem:[#allocation52_spill] sm:$0xff] }
 0x197   : > { %1706 = vmatpush1.bf16.msra.mxu0 %v3024_v2  ;;  %v4220_v2 = vld [vmem:[#allocation53_spill] sm:$0xff] }
 0x198   : > { %1836 = vmatpush1.bf16.msra.mxu1 %v3029_v3  ;;  %1720 = vmatprep.subr.bf16.mxu0 %v3038_v4  ;;  %v4221_v3 = vld [vmem:[#allocation54_spill] sm:$0xff]  ;;  %v4222_v4 = vld [vmem:[#allocation55_spill] sm:$0xff] }
 0x199   : > { %1850 = vmatprep.subr.bf16.mxu1 %v4172_v18  ;;  %v4230_v18 = vld [vmem:[#allocation61_spill] sm:$0xff] }
 0x19a   : > { %1712 = vmatmul.mubr.bf16.vlgmr.msra.gmra.mrb[12].mxu0 %v3739_v17 }
 0x19b   : > { %1842 = vmatmul.mubr.bf16.vlgmr.msra.gmra.mrb[12].mxu1 %v3739_v17  ;;  %1721 = vmatpush1.bf16.msra.mxu0 %v4173_v19  ;;  %v4223_v17 = vld [vmem:[#allocation56_spill] sm:$0xff]  ;;  %v4231_v19 = vld [vmem:[#allocation62_spill] sm:$0xff] }
 0x19c   : > { %2345 = vmatprep.mubr.msk.bf16.mxu0 %vm601_vm2, %v4174_v20  ;;  %1851 = vmatpush1.bf16.msra.mxu1 %v4175_v21  ;;  %v4233_v21 = vld [vmem:[#allocation64_spill] sm:$0xff] }
 0x19d   : > { %2348 = vmatprep.mubr.msk.bf16.mxu1 %vm601_vm2, %v4174_v20  ;;  %1722 = vmatprep.subr.bf16.mxu0 %v4176_v22  ;;  %v4232_v20 = vld [vmem:[#allocation63_spill] sm:$0xff]  ;;  %v4234_v22 = vld [vmem:[#allocation65_spill] sm:$0xff] }
 0x19e   : > { %1852 = vmatprep.subr.bf16.mxu1 %v4177_v23  ;;  %v4235_v23 = vld [vmem:[#allocation66_spill] sm:$0xff] }
 0x19f   : > { %1723 = vmatpush1.bf16.msra.mxu0 %v4178_v24  ;;  %v4236_v24 = vld [vmem:[#allocation67_spill] sm:$0xff] }
 0x1a0   : > { %1853 = vmatpush1.bf16.msra.mxu1 %v4179_v25  ;;  %1724 = vmatprep.subr.bf16.mxu0 %v4180_v26  ;;  %v4238_v25 = vld [vmem:[#allocation69_spill] sm:$0xff]  ;;  %v4239_v26 = vld [vmem:[#allocation70_spill] sm:$0xff] }
 0x1a1   : > { %1854 = vmatprep.subr.bf16.mxu1 %v4181_v27  ;;  %v4240_v27 = vld [vmem:[#allocation71_spill] sm:$0xff] }
 0x1a3   : > { %1725 = vmatpush1.bf16.msra.mxu0 %v4182_v28  ;;  %v4241_v28 = vld [vmem:[#allocation72_spill] sm:$0xff] }
 0x1a4   : > { %1855 = vmatpush1.bf16.msra.mxu1 %v4183_v29  ;;  %1726 = vmatprep.subr.bf16.mxu0 %v4184_v30  ;;  %v4242_v29 = vld [vmem:[#allocation73_spill] sm:$0xff]  ;;  %v4243_v30 = vld [vmem:[#allocation74_spill] sm:$0xff] }
 0x1a5   : > { %1856 = vmatprep.subr.bf16.mxu1 %v4185_v31  ;;  %v4244_v31 = vld [vmem:[#allocation75_spill] sm:$0xff] }
 0x1a7   : > { %1727 = vmatpush1.bf16.msra.mxu0 %v4186_v32  ;;  %v4245_v32 = vld [vmem:[#allocation76_spill] sm:$0xff] }
 0x1a8   : > { %1857 = vmatpush1.bf16.msra.mxu1 %v4187_v33  ;;  %1728 = vmatprep.subr.bf16.mxu0 %v4188_v34  ;;  %v4246_v33 = vld [vmem:[#allocation77_spill] sm:$0xff]  ;;  %v4247_v34 = vld [vmem:[#allocation78_spill] sm:$0xff] }
 0x1a9   : > { %1858 = vmatprep.subr.bf16.mxu1 %v4189_v35  ;;  %v4248_v35 = vld [vmem:[#allocation79_spill] sm:$0xff] }
 0x1ab   : > { %1729 = vmatpush1.bf16.msra.mxu0 %v4190_v36  ;;  %v4249_v36 = vld [vmem:[#allocation80_spill] sm:$0xff] }
 0x1ac   : > { %1859 = vmatpush1.bf16.msra.mxu1 %v4191_v37  ;;  %1730 = vmatprep.subr.bf16.mxu0 %v4192_v38  ;;  %v4250_v37 = vld [vmem:[#allocation81_spill] sm:$0xff]  ;;  %v4251_v38 = vld [vmem:[#allocation82_spill] sm:$0xff] }
 0x1ad   : > { %1860 = vmatprep.subr.bf16.mxu1 %v4193_v39  ;;  %v4252_v39 = vld [vmem:[#allocation83_spill] sm:$0xff] }
 0x1af   : > { %1731 = vmatpush1.bf16.msra.mxu0 %v4194_v40  ;;  %v4253_v40 = vld [vmem:[#allocation84_spill] sm:$0xff] }
 0x1b0   : > { %1861 = vmatpush1.bf16.msra.mxu1 %v4195_v41  ;;  %1732 = vmatprep.subr.bf16.mxu0 %v4196_v42  ;;  %v4254_v41 = vld [vmem:[#allocation85_spill] sm:$0xff]  ;;  %v4255_v42 = vld [vmem:[#allocation86_spill] sm:$0xff] }
 0x1b1   : > { %1862 = vmatprep.subr.bf16.mxu1 %v4197_v43  ;;  %v4256_v43 = vld [vmem:[#allocation87_spill] sm:$0xff] }
 0x1b3   : > { %1733 = vmatpush1.bf16.msra.mxu0 %v4198_v44  ;;  %v4257_v44 = vld [vmem:[#allocation88_spill] sm:$0xff] }
 0x1b4   : > { %1863 = vmatpush1.bf16.msra.mxu1 %v4199_v45  ;;  %1734 = vmatprep.subr.bf16.mxu0 %v4200_v46  ;;  %v4258_v45 = vld [vmem:[#allocation89_spill] sm:$0xff]  ;;  %v4259_v46 = vld [vmem:[#allocation90_spill] sm:$0xff] }
 0x1b5   : > { %1864 = vmatprep.subr.bf16.mxu1 %v4201_v47  ;;  %v4260_v47 = vld [vmem:[#allocation91_spill] sm:$0xff] }
 0x1b7   : > { %1735 = vmatpush1.bf16.msra.mxu0 %v3234_v6  ;;  %v4225_v6 = vld [vmem:[#allocation58_spill] sm:$0xff] }
 0x1b8   : > { %1865 = vmatpush1.bf16.msra.mxu1 %v3239_v16  ;;  %1736 = vmatprep.subr.bf16.mxu0 %v3246_v10  ;;  %v4224_v16 = vld [vmem:[#allocation57_spill] sm:$0xff]  ;;  %v4226_v10 = vld [vmem:[#allocation59_spill] sm:$0xff] }
 0x1b9   : > { %1866 = vmatprep.subr.bf16.mxu1 %v4202_v48  ;;  %v4261_v48 = vld [vmem:[#allocation92_spill] sm:$0xff] }
 0x1bb   : > { %1737 = vmatpush1.bf16.msra.mxu0 %v4203_v49  ;;  %v4262_v49 = vld [vmem:[#allocation93_spill] sm:$0xff] }
 0x1bc   : > { %1867 = vmatpush1.bf16.msra.mxu1 %v4204_v50  ;;  %1738 = vmatprep.subr.bf16.mxu0 %v4205_v51  ;;  %v4263_v50 = vld [vmem:[#allocation94_spill] sm:$0xff]  ;;  %v4264_v51 = vld [vmem:[#allocation95_spill] sm:$0xff] }
 0x1bd   : > { %1868 = vmatprep.subr.bf16.mxu1 %v4206_v52  ;;  %v4265_v52 = vld [vmem:[#allocation96_spill] sm:$0xff] }
 0x1bf   : > { %1739 = vmatpush1.bf16.msra.mxu0 %v4207_v53  ;;  %v4266_v53 = vld [vmem:[#allocation97_spill] sm:$0xff] }
 0x1c0   : > { %1869 = vmatpush1.bf16.msra.mxu1 %v4208_v54  ;;  %1740 = vmatprep.subr.bf16.mxu0 %v4209_v55  ;;  %v4267_v54 = vld [vmem:[#allocation98_spill] sm:$0xff]  ;;  %v4268_v55 = vld [vmem:[#allocation99_spill] sm:$0xff] }
 0x1c1   : > { %1870 = vmatprep.subr.bf16.mxu1 %v4210_v56  ;;  %v4269_v56 = vld [vmem:[#allocation100_spill] sm:$0xff] }
 0x1c3   : > { %1741 = vmatpush1.bf16.msra.mxu0 %v4211_v57  ;;  %v4270_v57 = vld [vmem:[#allocation101_spill] sm:$0xff] }
 0x1c4   : > { %1871 = vmatpush1.bf16.msra.mxu1 %v4212_v58  ;;  %1742 = vmatprep.subr.bf16.mxu0 %v4213_v59  ;;  %v4271_v58 = vld [vmem:[#allocation102_spill] sm:$0xff]  ;;  %v4272_v59 = vld [vmem:[#allocation103_spill] sm:$0xff] }
 0x1c5   : > { %1872 = vmatprep.subr.bf16.mxu1 %v4214_v60  ;;  %v4273_v60 = vld [vmem:[#allocation104_spill] sm:$0xff] }
 0x1c7   : > { %1743 = vmatpush1.bf16.msra.mxu0 %v4215_v61  ;;  %v4274_v61 = vld [vmem:[#allocation105_spill] sm:$0xff] }
 0x1c8   : > { %1873 = vmatpush1.bf16.msra.mxu1 %v4216_v62  ;;  %1744 = vmatprep.subr.bf16.mxu0 %v4217_v63  ;;  %v4275_v62 = vld [vmem:[#allocation106_spill] sm:$0xff]  ;;  %v4276_v63 = vld [vmem:[#allocation107_spill] sm:$0xff] }
 0x1c9   : > { %1874 = vmatprep.subr.bf16.mxu1 %v4218_v0  ;;  %v4277_v0 = vld [vmem:[#allocation108_spill] sm:$0xff] }
 0x1cb   : > { %1745 = vmatpush1.bf16.msra.mxu0 %v4219_v1  ;;  %v4278_v1 = vld [vmem:[#allocation34_spill] sm:$0xff] }
 0x1cc   : > { %1875 = vmatpush1.bf16.msra.mxu1 %v4220_v2  ;;  %1746 = vmatprep.subr.bf16.mxu0 %v4221_v3  ;;  %v402_v2 = vpack.c.bf16 %v4278_v1, %v4278_v1 }
 0x1cd   : > { %1876 = vmatprep.subr.bf16.mxu1 %v4222_v4 }
 0x1cf   : > { %1747 = vmatpush1.bf16.msra.mxu0 %v4223_v17 }
 0x1d0   : > { %1877 = vmatpush1.bf16.msra.mxu1 %v4224_v16  ;;  %1764 = vmatprep.subr.bf16.mxu0 %v4225_v6 }
 0x1d1   : > { %1891 = vmatprep.subr.bf16.mxu1 %v4226_v10 }
 0x1d2   : > { %1753 = vmatmul.mubr.bf16.vlgmr.msra.gmra.mrb[12].mxu0 %v4228_v13 }
 0x1d3   : > { %1883 = vmatmul.mubr.bf16.vlgmr.msra.gmra.mrb[12].mxu1 %v4228_v13  ;;  %1765 = vmatpush1.bf16.msra.mxu0 %v3408_v14  ;;  %v4237_v14 = vld [vmem:[#allocation68_spill] sm:$0xff]  ;;  %v1938_v13 = vlaneseq }
 0x1d4   : > { %2346 = vmatprep.mubr.msk.bf16.mxu0 %vm601_vm2, %v403_v11  ;;  %1892 = vmatpush1.bf16.msra.mxu1 %v4229_v15 }
 0x1d5   : > { %2349 = vmatprep.mubr.msk.bf16.mxu1 %vm601_vm2, %v403_v11  ;;  %1766 = vmatprep.subr.bf16.mxu0 %v4230_v18 }
 0x1d6   : > { %1893 = vmatprep.subr.bf16.mxu1 %v4231_v19 }
 0x1d7   : > { %1767 = vmatpush1.bf16.msra.mxu0 %v4232_v20 }
 0x1d8   : > { %1894 = vmatpush1.bf16.msra.mxu1 %v4233_v21  ;;  %1768 = vmatprep.subr.bf16.mxu0 %v4234_v22 }
 0x1d9   : > { %1895 = vmatprep.subr.bf16.mxu1 %v4235_v23 }
 0x1db   : > { %1769 = vmatpush1.bf16.msra.mxu0 %v4236_v24 }
 0x1dc   : > { %1896 = vmatpush1.bf16.msra.mxu1 %v4237_v14  ;;  %1770 = vmatprep.subr.bf16.mxu0 %v4238_v25 }
 0x1dd   : > { %1897 = vmatprep.subr.bf16.mxu1 %v4239_v26 }
 0x1df   : > { %1771 = vmatpush1.bf16.msra.mxu0 %v4240_v27 }
 0x1e0   : > { %1898 = vmatpush1.bf16.msra.mxu1 %v4241_v28  ;;  %1772 = vmatprep.subr.bf16.mxu0 %v4242_v29 }
 0x1e1   : > { %1899 = vmatprep.subr.bf16.mxu1 %v4243_v30 }
 0x1e3   : > { %1773 = vmatpush1.bf16.msra.mxu0 %v4244_v31 }
 0x1e4   : > { %1900 = vmatpush1.bf16.msra.mxu1 %v4245_v32  ;;  %1774 = vmatprep.subr.bf16.mxu0 %v4246_v33 }
 0x1e5   : > { %1901 = vmatprep.subr.bf16.mxu1 %v4247_v34 }
 0x1e7   : > { %1775 = vmatpush1.bf16.msra.mxu0 %v4248_v35 }
 0x1e8   : > { %1902 = vmatpush1.bf16.msra.mxu1 %v4249_v36  ;;  %1776 = vmatprep.subr.bf16.mxu0 %v4250_v37 }
 0x1e9   : > { %1903 = vmatprep.subr.bf16.mxu1 %v4251_v38 }
 0x1eb   : > { %1777 = vmatpush1.bf16.msra.mxu0 %v4252_v39 }
 0x1ec   : > { %1904 = vmatpush1.bf16.msra.mxu1 %v4253_v40  ;;  %1778 = vmatprep.subr.bf16.mxu0 %v4254_v41 }
 0x1ed   : > { %1905 = vmatprep.subr.bf16.mxu1 %v4255_v42 }
 0x1ef   : > { %1779 = vmatpush1.bf16.msra.mxu0 %v4256_v43 }
 0x1f0   : > { %1906 = vmatpush1.bf16.msra.mxu1 %v4257_v44  ;;  %1780 = vmatprep.subr.bf16.mxu0 %v4258_v45 }
 0x1f1   : > { %1907 = vmatprep.subr.bf16.mxu1 %v4259_v46 }
 0x1f3   : > { %1781 = vmatpush1.bf16.msra.mxu0 %v4260_v47 }
 0x1f4   : > { %1908 = vmatpush1.bf16.msra.mxu1 %v4261_v48  ;;  %1782 = vmatprep.subr.bf16.mxu0 %v4262_v49 }
 0x1f5   : > { %1909 = vmatprep.subr.bf16.mxu1 %v4263_v50 }
 0x1f7   : > { %1783 = vmatpush1.bf16.msra.mxu0 %v4264_v51 }
 0x1f8   : > { %1910 = vmatpush1.bf16.msra.mxu1 %v4265_v52  ;;  %1784 = vmatprep.subr.bf16.mxu0 %v4266_v53 }
 0x1f9   : > { %1911 = vmatprep.subr.bf16.mxu1 %v4267_v54 }
 0x1fb   : > { %1785 = vmatpush1.bf16.msra.mxu0 %v4268_v55 }
 0x1fc   : > { %1912 = vmatpush1.bf16.msra.mxu1 %v4269_v56  ;;  %1786 = vmatprep.subr.bf16.mxu0 %v4270_v57 }
 0x1fd   : > { %1913 = vmatprep.subr.bf16.mxu1 %v4271_v58 }
 0x1ff   : > { %1787 = vmatpush1.bf16.msra.mxu0 %v4272_v59 }
 0x200   : > { %1914 = vmatpush1.bf16.msra.mxu1 %v4273_v60  ;;  %1788 = vmatprep.subr.bf16.mxu0 %v4274_v61 }
 0x201   : > { %1915 = vmatprep.subr.bf16.mxu1 %v4275_v62 }
 0x203   : > { %1789 = vmatpush1.bf16.msra.mxu0 %v4276_v63 }
 0x204   : > { %1916 = vmatpush1.bf16.msra.mxu1 %v4277_v0  ;;  %1790 = vmatprep.subr.bf16.mxu0 %v3716_v8 }
 0x205   : > { %1917 = vmatprep.subr.bf16.mxu1 %v3721_v7 }
 0x207   : > { %1791 = vmatpush1.bf16.msra.mxu0 %v3728_v9  ;;  %v1939_v9 = vshrl.u32 %v1938_v13, 7 }
 0x208   : > { %1918 = vmatpush1.bf16.msra.mxu1 %v3733_v5  ;;  %v1936_v5 = vld [vmem:[%s3956_s3] sm:$0x3] }
 0x209   : > { %v1940_v15 = vsub.s32 0, %v1939_v9  ;;  %v1944_v18 = vsub.s32 1, %v1939_v9 }
 0x20a   : > { %1797 = vmatmul.mubr.bf16.vlgmr.msra.gmra.mrb[12].mxu0 %v402_v2 }
 0x20b   : > { %1924 = vmatmul.mubr.bf16.vlgmr.msra.gmra.mrb[12].mxu1 %v402_v2  ;;  %v1941_v22 = vrot.slane %v1936_v5, %v1940_v15  ;;  %v1945_v25 = vrot.slane %v1936_v5, %v1944_v18 }
 0x235   : > { %v1036_v3 = vpop.f32.mrb[8].mxu0  ;;  %v1668_v4 = vpop.f32.mrb[8].mxu1 }
 0x236   : > { %v1677_v17 = vmax.f32 %v1036_v3, %v1668_v4  ;;  %v1038_v16 = vpop.f32.mrb[9].mxu0  ;;  %v1670_v6 = vpop.f32.mrb[9].mxu1 }
 0x237   : > { %v1678_v10 = vmax.f32 %v1038_v16, %v1670_v6  ;;  %v1040_v12 = vpop.f32.mrb[10].mxu0  ;;  %v1672_v11 = vpop.f32.mrb[10].mxu1 }
 0x238   : > { %v1041_v8 = vpop.f32.mrb[11].mxu0  ;;  %v1673_v7 = vpop.f32.mrb[11].mxu1 }
 0x2dd   : > { %v1798_v19 = vpop.f32.mrb[12].mxu0 }
 0x2de   : > { %v1807_v20 = vmax.f32 %v1677_v17, %v1798_v19  ;;  %v1925_v21 = vpop.f32.mrb[12].mxu1  ;;  %v1800_v23 = vpop.f32.mrb[13].mxu0 }
 0x2df   : > { %v1808_v24 = vmax.f32 %v1678_v10, %v1800_v23  ;;  %v1927_v14 = vpop.f32.mrb[13].mxu1  ;;  %v1802_v26 = vpop.f32.mrb[14].mxu0 }
 0x2e0   : > { %v1934_v27 = vmax.f32 %v1807_v20, %v1925_v21  ;;  %v1929_v28 = vpop.f32.mrb[14].mxu1  ;;  %v1803_v29 = vpop.f32.mrb[15].mxu0 }
 0x2e1   : > { %v1935_v30 = vmax.f32 %v1808_v24, %v1927_v14  ;;  %v1930_v31 = vpop.f32.mrb[15].mxu1 }
 0x2e2   : > { %v1948_v32 = vadd.f32 %v1941_v22, %v1934_v27 }
 0x2e3   : > { %v1949_v33 = vadd.f32 %v1945_v25, %v1935_v30 }
 0x2e4   : > { %v1950_v34 = vmax.f32 %v1948_v32, 0.0 }
 0x2e5   : > { %v1951_v35 = vmax.f32 %v1949_v33, 0.0 }
 0x2e6   : > { %1952 = vst [vmem:[%s197_s22] sm:$0x3f] %v1950_v34 }
 0x2e7   : > { %1954 = vst.msk [vmem:[%s197_s22 + $0x8] sm:$0x3f] %vm1953_vm3, %v1951_v35 }
 0x2e8 PF: > { %s14_s15 = sadd.s32 1, %s2659_s15  }
 0x2e9   : > { %p11_p4 = scmp.ge.s32.totalorder %s14_s15, 4  }
 0x2eb   :  { %13 = sbr.rel (!%p11_p4) target bundleno = 1 (0x1), region = 74 }

// kernel: _lambda_.5
= control target key start
LH: loop header
LB: loop body
LE: loop exit
PB: predicated region body
PF: predicated region fallthrough
CT: control target
= control target key end

     0   :  { %s2873_s15 = smov 0   ;;  %s4076_s0 = inlined_call_operand.vmem [shape: f32[2,64,192], index: 0, kind: input, shape index: {}]   ;;  %s4077_s1 = inlined_call_operand.vmem [shape: bf16[4,31,64], index: 1, kind: input, shape index: {}]   ;;  %s4078_s2 = inlined_call_operand.vmem [shape: bf16[6,192,248], index: 2, kind: input, shape index: {}]   ;;  %s4079_s3 = inlined_call_operand.vmem [shape: f32[1,248], index: 3, kind: input, shape index: {}]   ;;  %s4080_s4 = inlined_call_operand.vmem [shape: f32[2,31,248], index: 4, kind: output, shape index: {}]  }
   0x1 LB: > { %s2213_s16 = sadd.s32 4294967295, %s2845_s15   ;;  %p2217_p0 = scmp.ge.s32.totalorder %s2845_s15, 1  ;;  %s2845_s15 = sphi %s2873_s15, %s14_s15  }
   0x2   : > { %p162_p1 = scmp.lt.s32.totalorder %s2845_s15, 3 }
   0x4   : > { %p163_p2 = pnand %p2217_p0, %p162_p1 }
   0x6   : > { %166 = sbr.rel (%p163_p2) target bundleno = 729 (0x2d9), region = 36 }
   0xd   : > { %p188_p3 = scmp.lt.s32.totalorder %s2213_s16, 1  ;;  %v2847_v0 = vmov 0   ;;  %v2615_v25 = vld [vmem:[%s4077_s1 + $0x10] sm:$0xff]   ;;  %v2617_v26 = vld [vmem:[%s4077_s1] sm:$0xff]   ;;  %vm237_vm0 = vcmask 523264   ;;  %v2616_v27 = vld [vmem:[%s4077_s1 + $0x18] sm:$0xff]  }
   0xe   : > { %354 = vmatprep.mubr.bf16.mxu1 %v2847_v0  ;;  %276 = vmatprep.mubr.bf16.mxu0 %v2847_v0  ;;  %v2618_v28 = vld [vmem:[%s4077_s1 + $0x8] sm:$0xff]   ;;  %v2619_v30 = vld [vmem:[%s4077_s1 + $0x20] sm:$0xff]   ;;  %v2621_v31 = vld [vmem:[%s4077_s1 + $0x30] sm:$0xff]   ;;  %vm2149_vm1 = vcmask 982016   ;;  %vm2156_vm2 = vcmask 980992  }
   0xf   : > { %s4362_s16 = smov (!%p188_p3, %s2213_s16), 1  ;;  %v2929_v29 = vld [vmem:[%s4078_s2 + $0xc4] ss:$8 sps:$4 sm:$0xff]   ;;  %v2946_v33 = vld [vmem:[%s4078_s2 + $0xc0] ss:$8 sps:$4 sm:$0xff]   ;;  %v2682_v44 = vld [vmem:[%s4077_s1 + $0x38] sm:$0xff]  }
  0x10   : > { %s2540_s17 = sshll.u32 %s4362_s16, 7  ;;  %v2941_v32 = vld [vmem:[%s4078_s2 + $0x304] ss:$8 sps:$4 sm:$0xff]   ;;  %v2952_v34 = vld [vmem:[%s4078_s2 + $0xd4] ss:$8 sps:$4 sm:$0xff]   ;;  %s2541_s13 = sshll.u32 %s4362_s16, 6 }
  0x11   : > { %s2889_s20 = scalar_lea.vmem %s4076_s0, %s2540_s17  ;;  %v2957_v35 = vld [vmem:[%s4078_s2 + $0x300] ss:$8 sps:$4 sm:$0xff]   ;;  %v2964_v36 = vld [vmem:[%s4078_s2 + $0xd0] ss:$8 sps:$4 sm:$0xff]   ;;  %v2969_v37 = vld [vmem:[%s4078_s2 + $0x314] ss:$8 sps:$4 sm:$0xff]   ;;  %s4060_s18 = scalar_lea.vmem %s4080_s4, %s2541_s13 }
  0x12   : > { %v200_v1 = vld [vmem:[%s2889_s20 + $0x8] sm:$0xff]  ;;  %v202_v2 = vld [vmem:[%s2889_s20 + $0x18] sm:$0xff]  ;;  %v199_v3 = vld [vmem:[%s2889_s20] sm:$0xff] }
  0x13   : > { %v216_v4 = vpack.c.bf16 %v202_v2, %v200_v1  ;;  %v201_v5 = vld [vmem:[%s2889_s20 + $0x10] sm:$0xff]  ;;  %v204_v6 = vld [vmem:[%s2889_s20 + $0x28] sm:$0xff]  ;;  %v206_v7 = vld [vmem:[%s2889_s20 + $0x38] sm:$0xff] }
  0x14   : > { %v215_v8 = vpack.c.bf16 %v201_v5, %v199_v3  ;;  %v218_v9 = vpack.c.bf16 %v206_v7, %v204_v6  ;;  %v203_v10 = vld [vmem:[%s2889_s20 + $0x20] sm:$0xff]  ;;  %v205_v11 = vld [vmem:[%s2889_s20 + $0x30] sm:$0xff]  ;;  %v208_v12 = vld [vmem:[%s2889_s20 + $0x48] sm:$0xff] }
  0x15   : > { %322 = vmatprep.subr.bf16.mxu1 %v216_v4  ;;  %v210_v13 = vld [vmem:[%s2889_s20 + $0x58] sm:$0xff]  ;;  %244 = vmatprep.subr.bf16.mxu0 %v216_v4  ;;  %v217_v14 = vpack.c.bf16 %v205_v11, %v203_v10  ;;  %v207_v15 = vld [vmem:[%s2889_s20 + $0x40] sm:$0xff]  ;;  %v209_v17 = vld [vmem:[%s2889_s20 + $0x50] sm:$0xff] }
  0x16   : > { %323 = vmatpush1.bf16.msra.mxu1 %v215_v8  ;;  %245 = vmatpush1.bf16.msra.mxu0 %v215_v8  ;;  %v220_v16 = vpack.c.bf16 %v210_v13, %v208_v12  ;;  %v212_v18 = vld [vmem:[%s2889_s20 + $0x68] sm:$0xff]  ;;  %v214_v19 = vld [vmem:[%s2889_s20 + $0x78] sm:$0xff]  ;;  %v219_v20 = vpack.c.bf16 %v209_v17, %v207_v15  ;;  %v211_v21 = vld [vmem:[%s2889_s20 + $0x60] sm:$0xff] }
  0x17   : > { %324 = vmatprep.subr.bf16.mxu1 %v218_v9  ;;  %246 = vmatprep.subr.bf16.mxu0 %v218_v9  ;;  %v222_v22 = vpack.c.bf16 %v214_v19, %v212_v18  ;;  %v213_v23 = vld [vmem:[%s2889_s20 + $0x70] sm:$0xff]  ;;  %v2981_v39 = vld [vmem:[%s4078_s2 + $0xe4] ss:$8 sps:$4 sm:$0xff]   ;;  %v2997_v42 = vld [vmem:[%s4078_s2 + $0xe0] ss:$8 sps:$4 sm:$0xff]  }
  0x18   : > { %v221_v24 = vpack.c.bf16 %v213_v23, %v211_v21  ;;  %v2976_v38 = vld [vmem:[%s4078_s2 + $0x310] ss:$8 sps:$4 sm:$0xff]   ;;  %v2620_v40 = vld [vmem:[%s4077_s1 + $0x28] sm:$0xff]   ;;  %v3004_v43 = vld [vmem:[%s4078_s2 + $0xf4] ss:$8 sps:$4 sm:$0xff]  }
  0x19   : > { %v2991_v41 = vld [vmem:[%s4078_s2 + $0x324] ss:$8 sps:$4 sm:$0xff]   ;;  %v3013_v45 = vld [vmem:[%s4078_s2 + $0x320] ss:$8 sps:$4 sm:$0xff]   ;;  %v3019_v46 = vld [vmem:[%s4078_s2 + $0x334] ss:$8 sps:$4 sm:$0xff]  }
  0x1a   : > { %325 = vmatpush1.bf16.msra.mxu1 %v217_v14  ;;  %247 = vmatpush1.bf16.msra.mxu0 %v217_v14  ;;  %v3025_v47 = vld [vmem:[%s4078_s2 + $0xf0] ss:$8 sps:$4 sm:$0xff]   ;;  %v3032_v48 = vld [vmem:[%s4078_s2 + $0x104] ss:$8 sps:$4 sm:$0xff]   ;;  %v3051_v51 = vld [vmem:[%s4078_s2 + $0x100] ss:$8 sps:$4 sm:$0xff]  }
  0x1b   : > { %326 = vmatprep.subr.bf16.mxu1 %v220_v16  ;;  %248 = vmatprep.subr.bf16.mxu0 %v220_v16  ;;  %v3038_v49 = vld [vmem:[%s4078_s2 + $0x330] ss:$8 sps:$4 sm:$0xff]   ;;  %v3044_v50 = vld [vmem:[%s4078_s2 + $0x344] ss:$8 sps:$4 sm:$0xff]   ;;  %v3057_v52 = vld [vmem:[%s4078_s2 + $0x114] ss:$8 sps:$4 sm:$0xff]  }
  0x1c   : > { %v3063_v53 = vld [vmem:[%s4078_s2 + $0x340] ss:$8 sps:$4 sm:$0xff]   ;;  %v3069_v54 = vld [vmem:[%s4078_s2 + $0x354] ss:$8 sps:$4 sm:$0xff]   ;;  %v3075_v55 = vld [vmem:[%s4078_s2 + $0x110] ss:$8 sps:$4 sm:$0xff]  }
  0x1d   : > { %v3081_v56 = vld [vmem:[%s4078_s2 + $0x124] ss:$8 sps:$4 sm:$0xff]   ;;  %v3087_v57 = vld [vmem:[%s4078_s2 + $0x350] ss:$8 sps:$4 sm:$0xff]   ;;  %v3099_v59 = vld [vmem:[%s4078_s2 + $0x120] ss:$8 sps:$4 sm:$0xff]  }
  0x1e   : > { %327 = vmatpush1.bf16.msra.mxu1 %v219_v20  ;;  %249 = vmatpush1.bf16.msra.mxu0 %v219_v20  ;;  %v3093_v58 = vld [vmem:[%s4078_s2 + $0x364] ss:$8 sps:$4 sm:$0xff]   ;;  %v3105_v60 = vld [vmem:[%s4078_s2 + $0x134] ss:$8 sps:$4 sm:$0xff]   ;;  %v3111_v61 = vld [vmem:[%s4078_s2 + $0x360] ss:$8 sps:$4 sm:$0xff]  }
  0x1f   : > { %328 = vmatprep.subr.bf16.mxu1 %v222_v22  ;;  %250 = vmatprep.subr.bf16.mxu0 %v222_v22  ;;  %v3117_v62 = vld [vmem:[%s4078_s2 + $0x374] ss:$8 sps:$4 sm:$0xff]   ;;  %v3123_v63 = vld [vmem:[%s4078_s2 + $0x130] ss:$8 sps:$4 sm:$0xff]   ;;  %v3141_v2 = vld [vmem:[%s4078_s2 + $0x384] ss:$8 sps:$4 sm:$0xff]  }
  0x20   : > { %v3135_v1 = vld [vmem:[%s4078_s2 + $0x370] ss:$8 sps:$4 sm:$0xff]   ;;  %v3147_v3 = vld [vmem:[%s4078_s2 + $0x140] ss:$8 sps:$4 sm:$0xff]   ;;  %v3165_v6 = vld [vmem:[%s4078_s2 + $0x394] ss:$8 sps:$4 sm:$0xff]  }
  0x21   : > { %v3159_v5 = vld [vmem:[%s4078_s2 + $0x380] ss:$8 sps:$4 sm:$0xff]   ;;  %v3171_v7 = vld [vmem:[%s4078_s2 + $0x150] ss:$8 sps:$4 sm:$0xff]   ;;  %v3191_v10 = vld [vmem:[%s4078_s2 + $0x3a4] ss:$8 sps:$4 sm:$0xff]  }
  0x22   : > { %329 = vmatpush1.bf16.msra.mxu1 %v221_v24  ;;  %251 = vmatpush1.bf16.msra.mxu0 %v221_v24  ;;  %v3197_v11 = vld [vmem:[%s4078_s2 + $0x160] ss:$8 sps:$4 sm:$0xff]   ;;  %v3212_v13 = vld [vmem:[%s4078_s2 + $0x174] ss:$8 sps:$4 sm:$0xff]   ;;  %v3222_v15 = vld [vmem:[%s4078_s2 + $0x170] ss:$8 sps:$4 sm:$0xff]  }
  0x23   : > { %400 = vmatprep.subr.bf16.mxu0 %v216_v4  ;;  %478 = vmatprep.subr.bf16.mxu1 %v216_v4  ;;  %v3153_v4 = vld [vmem:[%s4078_s2 + $0x154] ss:$8 sps:$4 sm:$0xff]   ;;  %v3204_v12 = vld [vmem:[%s4078_s2 + $0x3a0] ss:$8 sps:$4 sm:$0xff]   ;;  %4178 = vst [vmem:[#allocation3_spill] sm:$0xff] %v3222_v15 }
  0x24   : > { %v3236_v17 = vld [vmem:[%s4078_s2 + $0x4] ss:$8 sps:$4 sm:$0xff]  }
  0x25   : > { %2232 = vmatmul.mubr.msk.bf16.vlgmr.msra.gmra.mrb[0].mxu1 %vm237_vm0, %v2615_v25  ;;  %2224 = vmatmul.mubr.msk.bf16.vlgmr.msra.gmra.mrb[0].mxu0 %vm237_vm0, %v2617_v26  ;;  %4180 = vst [vmem:[#allocation5_spill] sm:$0xff] %v3236_v17  ;;  %v3241_v18 = vld [vmem:[%s4078_s2 + $0x244] ss:$8 sps:$4 sm:$0xff]  }
  0x26   : > { %364 = vmatprep.mubr.bf16.mxu1 %v2847_v0  ;;  %401 = vmatpush1.bf16.msra.mxu0 %v215_v8  ;;  %4181 = vst [vmem:[#allocation6_spill] sm:$0xff] %v3241_v18 }
  0x27   : > { %402 = vmatprep.subr.bf16.mxu0 %v218_v9  ;;  %286 = vmatprep.mubr.bf16.mxu0 %v2847_v0 }
  0x28   : > { %479 = vmatpush1.bf16.msra.mxu1 %v215_v8  ;;  %v3177_v8 = vld [vmem:[%s4078_s2 + $0x164] ss:$8 sps:$4 sm:$0xff]  }
  0x29   : > { %480 = vmatprep.subr.bf16.mxu1 %v218_v9  ;;  %v3185_v9 = vld [vmem:[%s4078_s2 + $0x390] ss:$8 sps:$4 sm:$0xff]  }
  0x2a   : > { %403 = vmatpush1.bf16.msra.mxu0 %v217_v14 }
  0x2b   : > { %404 = vmatprep.subr.bf16.mxu0 %v220_v16 }
  0x2c   : > { %481 = vmatpush1.bf16.msra.mxu1 %v217_v14  ;;  %v3217_v14 = vld [vmem:[%s4078_s2 + $0x3b4] ss:$8 sps:$4 sm:$0xff]  }
  0x2d   : > { %2233 = vmatmul.mubr.msk.bf16.gmra.mrb[4].mxu1 %vm237_vm0, %v2616_v27  ;;  %2225 = vmatmul.mubr.msk.bf16.gmra.mrb[4].mxu0 %vm237_vm0, %v2618_v28  ;;  %4177 = vst [vmem:[#allocation2_spill] sm:$0xff] %v3217_v14 }
  0x2e   : > { %405 = vmatpush1.bf16.msra.mxu0 %v219_v20  ;;  %432 = vmatprep.mubr.bf16.mxu0 %v2847_v0 }
  0x2f   : > { %406 = vmatprep.subr.bf16.mxu0 %v222_v22  ;;  %482 = vmatprep.subr.bf16.mxu1 %v220_v16  ;;  %v3227_v16 = vld [vmem:[%s4078_s2 + $0x3b0] ss:$8 sps:$4 sm:$0xff]  }
  0x30   : > { %483 = vmatpush1.bf16.msra.mxu1 %v219_v20  ;;  %510 = vmatprep.mubr.bf16.mxu1 %v2847_v0  ;;  %4179 = vst [vmem:[#allocation4_spill] sm:$0xff] %v3227_v16 }
  0x31   : > { %484 = vmatprep.subr.bf16.mxu1 %v222_v22 }
  0x32   : > { %407 = vmatpush1.bf16.msra.mxu0 %v221_v24 }
  0x33   : > { %710 = vmatprep.subr.bf16.mxu0 %v2929_v29 }
  0x34   : > { %485 = vmatpush1.bf16.msra.mxu1 %v221_v24 }
  0x35   : > { %2240 = vmatmul.mubr.msk.bf16.vlgmr.msra.gmra.mrb[8].mxu0 %vm237_vm0, %v2619_v30  ;;  %1324 = vmatprep.subr.bf16.mxu1 %v2941_v32 }
  0x36   : > { %442 = vmatprep.mubr.bf16.mxu0 %v2847_v0  ;;  %711 = vmatpush1.bf16.msra.mxu0 %v2946_v33 }
  0x37   : > { %2248 = vmatmul.mubr.msk.bf16.vlgmr.msra.gmra.mrb[8].mxu1 %vm237_vm0, %v2621_v31  ;;  %712 = vmatprep.subr.bf16.mxu0 %v2952_v34  ;;  %v3254_v31 = vld [vmem:[%s4078_s2] ss:$8 sps:$4 sm:$0xff]  }
  0x38   : > { %1325 = vmatpush1.bf16.msra.mxu1 %v2957_v35  ;;  %520 = vmatprep.mubr.bf16.mxu1 %v2847_v0  ;;  %v3129_v0 = vld [vmem:[%s4078_s2 + $0x144] ss:$8 sps:$4 sm:$0xff]   ;;  %4184 = vst [vmem:[#allocation9_spill] sm:$0xff] %v3254_v31 }
  0x39   : > { %1326 = vmatprep.subr.bf16.mxu1 %v2969_v37 }
  0x3a   : > { %713 = vmatpush1.bf16.msra.mxu0 %v2964_v36 }
  0x3b   : > { %714 = vmatprep.subr.bf16.mxu0 %v2981_v39 }
  0x3c   : > { %1327 = vmatpush1.bf16.msra.mxu1 %v2976_v38 }
  0x3d   : > { %2241 = vmatmul.mubr.msk.bf16.gmra.mrb[12].mxu0 %vm237_vm0, %v2620_v40  ;;  %1328 = vmatprep.subr.bf16.mxu1 %v2991_v41  ;;  %v3259_v40 = vld [vmem:[%s4078_s2 + $0x240] ss:$8 sps:$4 sm:$0xff]  }
  0x3e   : > { %715 = vmatpush1.bf16.msra.mxu0 %v2997_v42  ;;  %4185 = vst [vmem:[#allocation10_spill] sm:$0xff] %v3259_v40 }
  0x3f   : > { %716 = vmatprep.subr.bf16.mxu0 %v3004_v43  ;;  %2249 = vmatmul.mubr.msk.bf16.gmra.mrb[12].mxu1 %vm237_vm0, %v2682_v44 }
  0x40   : > { %1329 = vmatpush1.bf16.msra.mxu1 %v3013_v45 }
  0x41   : > { %1330 = vmatprep.subr.bf16.mxu1 %v3019_v46 }
  0x42   : > { %717 = vmatpush1.bf16.msra.mxu0 %v3025_v47 }
  0x43   : > { %718 = vmatprep.subr.bf16.mxu0 %v3032_v48 }
  0x44   : > { %1331 = vmatpush1.bf16.msra.mxu1 %v3038_v49 }
  0x45   : > { %1332 = vmatprep.subr.bf16.mxu1 %v3044_v50 }
  0x46   : > { %719 = vmatpush1.bf16.msra.mxu0 %v3051_v51 }
  0x47   : > { %720 = vmatprep.subr.bf16.mxu0 %v3057_v52 }
  0x48   : > { %1333 = vmatpush1.bf16.msra.mxu1 %v3063_v53 }
  0x49   : > { %1334 = vmatprep.subr.bf16.mxu1 %v3069_v54 }
  0x4a   : > { %721 = vmatpush1.bf16.msra.mxu0 %v3075_v55 }
  0x4b   : > { %722 = vmatprep.subr.bf16.mxu0 %v3081_v56 }
  0x4c   : > { %1335 = vmatpush1.bf16.msra.mxu1 %v3087_v57 }
  0x4d   : > { %1336 = vmatprep.subr.bf16.mxu1 %v3093_v58 }
  0x4e   : > { %723 = vmatpush1.bf16.msra.mxu0 %v3099_v59 }
  0x4f   : > { %724 = vmatprep.subr.bf16.mxu0 %v3105_v60 }
  0x50   : > { %1337 = vmatpush1.bf16.msra.mxu1 %v3111_v61 }
  0x51   : > { %1338 = vmatprep.subr.bf16.mxu1 %v3117_v62 }
  0x52   : > { %725 = vmatpush1.bf16.msra.mxu0 %v3123_v63 }
  0x53   : > { %726 = vmatprep.subr.bf16.mxu0 %v3129_v0 }
  0x54   : > { %1339 = vmatpush1.bf16.msra.mxu1 %v3135_v1 }
  0x55   : > { %1340 = vmatprep.subr.bf16.mxu1 %v3141_v2 }
  0x56   : > { %727 = vmatpush1.bf16.msra.mxu0 %v3147_v3 }
  0x57   : > { %728 = vmatprep.subr.bf16.mxu0 %v3153_v4 }
  0x58   : > { %1341 = vmatpush1.bf16.msra.mxu1 %v3159_v5 }
  0x59   : > { %1342 = vmatprep.subr.bf16.mxu1 %v3165_v6 }
  0x5a   : > { %729 = vmatpush1.bf16.msra.mxu0 %v3171_v7 }
  0x5b   : > { %730 = vmatprep.subr.bf16.mxu0 %v3177_v8 }
  0x5c   : > { %1343 = vmatpush1.bf16.msra.mxu1 %v3185_v9 }
  0x5d   : > { %1344 = vmatprep.subr.bf16.mxu1 %v3191_v10 }
  0x5e   : > { %731 = vmatpush1.bf16.msra.mxu0 %v3197_v11 }
  0x5f   : > { %732 = vmatprep.subr.bf16.mxu0 %v3212_v13 }
  0x60   : > { %1345 = vmatpush1.bf16.msra.mxu1 %v3204_v12 }
  0x61   : > { %1346 = vmatprep.subr.bf16.mxu1 %v3217_v14 }
  0x62   : > { %733 = vmatpush1.bf16.msra.mxu0 %v3222_v15  ;;  %v3315_v15 = vld [vmem:[%s4078_s2 + $0x260] ss:$8 sps:$4 sm:$0xff]  }
  0x63   : > { %889 = vmatprep.subr.bf16.mxu0 %v3236_v17  ;;  %4194 = vst [vmem:[#allocation19_spill] sm:$0xff] %v3315_v15 }
  0x64   : > { %1347 = vmatpush1.bf16.msra.mxu1 %v3227_v16  ;;  %v3310_v16 = vld [vmem:[%s4078_s2 + $0x20] ss:$8 sps:$4 sm:$0xff]  }
  0x65   : > { %1497 = vmatprep.subr.bf16.mxu1 %v3241_v18  ;;  %4193 = vst [vmem:[#allocation18_spill] sm:$0xff] %v3310_v16 }
  0xf8   : > { %v356_v19 = vpop.f32.mrb[0].mxu1  ;;  %v278_v20 = vpop.f32.mrb[0].mxu0 }
  0xf9   : > { %v358_v21 = vpop.f32.mrb[1].mxu1  ;;  %v280_v22 = vpop.f32.mrb[1].mxu0 }
  0xfa   : > { %v360_v23 = vpop.f32.mrb[2].mxu1  ;;  %v282_v24 = vpop.f32.mrb[2].mxu0 }
  0xfb   : > { %v3245_v25 = vpack.c.bf16 %v360_v23, %v356_v19  ;;  %v362_v26 = vpop.f32.mrb[3].mxu1  ;;  %v3247_v27 = vpack.c.bf16 %v282_v24, %v278_v20  ;;  %v284_v28 = vpop.f32.mrb[3].mxu0  ;;  %v3264_v19 = vld [vmem:[%s4078_s2 + $0x14] ss:$8 sps:$4 sm:$0xff]  }
  0xfc   : > { %v3249_v30 = vpack.c.bf16 %v362_v26, %v358_v21  ;;  %v298_v44 = vpack.c.bf16 %v284_v28, %v280_v22  ;;  %4186 = vst [vmem:[#allocation11_spill] sm:$0xff] %v3264_v19  ;;  %v3269_v20 = vld [vmem:[%s4078_s2 + $0x254] ss:$8 sps:$4 sm:$0xff]   ;;  %v3282_v21 = vld [vmem:[%s4078_s2 + $0x10] ss:$8 sps:$4 sm:$0xff]  }
  0xfd   : > { %4182 = vst [vmem:[#allocation7_spill] sm:$0xff] %v3245_v25  ;;  %4187 = vst [vmem:[#allocation12_spill] sm:$0xff] %v3269_v20  ;;  %v3287_v22 = vld [vmem:[%s4078_s2 + $0x250] ss:$8 sps:$4 sm:$0xff]   ;;  %v3294_v26 = vld [vmem:[%s4078_s2 + $0x24] ss:$8 sps:$4 sm:$0xff]  }
  0xfe   : > { %4183 = vst [vmem:[#allocation8_spill] sm:$0xff] %v3249_v30  ;;  %2298 = vmatprep.mubr.msk.bf16.mxu0 %vm237_vm0, %v3249_v30  ;;  %2448 = vmatprep.mubr.msk.bf16.mxu1 %vm237_vm0, %v3249_v30  ;;  %4188 = vst [vmem:[#allocation13_spill] sm:$0xff] %v3282_v21  ;;  %v3299_v28 = vld [vmem:[%s4078_s2 + $0x264] ss:$8 sps:$4 sm:$0xff]  }
  0xff   : > { %743 = vmatmul.mubr.bf16.vlgmr.msra.gmra.mrb[16].mxu0 %v3245_v25  ;;  %1357 = vmatmul.mubr.bf16.vlgmr.msra.gmra.mrb[16].mxu1 %v3245_v25  ;;  %4189 = vst [vmem:[#allocation14_spill] sm:$0xff] %v3287_v22  ;;  %4190 = vst [vmem:[#allocation15_spill] sm:$0xff] %v3294_v26 }
 0x100   : > { %890 = vmatpush1.bf16.msra.mxu0 %v3254_v31  ;;  %1498 = vmatpush1.bf16.msra.mxu1 %v3259_v40  ;;  %v366_v23 = vpop.f32.mrb[4].mxu1  ;;  %v288_v24 = vpop.f32.mrb[4].mxu0  ;;  %4191 = vst [vmem:[#allocation16_spill] sm:$0xff] %v3299_v28 }
 0x101   : > { %891 = vmatprep.subr.bf16.mxu0 %v3264_v19  ;;  %1499 = vmatprep.subr.bf16.mxu1 %v3269_v20  ;;  %v368_v25 = vpop.f32.mrb[5].mxu1  ;;  %v290_v30 = vpop.f32.mrb[5].mxu0 }
 0x102   : > { %v370_v40 = vpop.f32.mrb[6].mxu1  ;;  %v292_v31 = vpop.f32.mrb[6].mxu0 }
 0x103   : > { %v3301_v18 = vpack.c.bf16 %v370_v40, %v366_v23  ;;  %v372_v17 = vpop.f32.mrb[7].mxu1  ;;  %v3303_v19 = vpack.c.bf16 %v292_v31, %v288_v24  ;;  %v294_v20 = vpop.f32.mrb[7].mxu0  ;;  %v3326_v31 = vld [vmem:[%s4078_s2 + $0x34] ss:$8 sps:$4 sm:$0xff]  }
 0x104   : > { %892 = vmatpush1.bf16.msra.mxu0 %v3282_v21  ;;  %1500 = vmatpush1.bf16.msra.mxu1 %v3287_v22  ;;  %v3317_v40 = vpack.c.bf16 %v372_v17, %v368_v25  ;;  %v3319_v23 = vpack.c.bf16 %v294_v20, %v290_v30  ;;  %4196 = vst [vmem:[#allocation21_spill] sm:$0xff] %v3326_v31  ;;  %v3331_v24 = vld [vmem:[%s4078_s2 + $0x274] ss:$8 sps:$4 sm:$0xff]   ;;  %v3344_v17 = vld [vmem:[%s4078_s2 + $0x30] ss:$8 sps:$4 sm:$0xff]  }
 0x105   : > { %4192 = vst [vmem:[#allocation17_spill] sm:$0xff] %v3301_v18  ;;  %893 = vmatprep.subr.bf16.mxu0 %v3294_v26  ;;  %1501 = vmatprep.subr.bf16.mxu1 %v3299_v28  ;;  %4197 = vst [vmem:[#allocation22_spill] sm:$0xff] %v3331_v24  ;;  %v3349_v25 = vld [vmem:[%s4078_s2 + $0x270] ss:$8 sps:$4 sm:$0xff]   ;;  %v3356_v20 = vld [vmem:[%s4078_s2 + $0x44] ss:$8 sps:$4 sm:$0xff]  }
 0x106   : > { %4195 = vst [vmem:[#allocation20_spill] sm:$0xff] %v3317_v40  ;;  %2299 = vmatprep.mubr.msk.bf16.mxu0 %vm237_vm0, %v3317_v40  ;;  %2449 = vmatprep.mubr.msk.bf16.mxu1 %vm237_vm0, %v3317_v40  ;;  %4198 = vst [vmem:[#allocation23_spill] sm:$0xff] %v3344_v17  ;;  %v3377_v28 = vld [vmem:[%s4078_s2 + $0x280] ss:$8 sps:$4 sm:$0xff]  }
 0x107   : > { %753 = vmatmul.mubr.bf16.gmra.mrb[20].mxu0 %v3301_v18  ;;  %1367 = vmatmul.mubr.bf16.gmra.mrb[20].mxu1 %v3301_v18  ;;  %4199 = vst [vmem:[#allocation24_spill] sm:$0xff] %v3349_v25  ;;  %4200 = vst [vmem:[#allocation25_spill] sm:$0xff] %v3356_v20  ;;  %v3361_v18 = vld [vmem:[%s4078_s2 + $0x284] ss:$8 sps:$4 sm:$0xff]  }
 0x108   : > { %894 = vmatpush1.bf16.msra.mxu0 %v3310_v16  ;;  %1502 = vmatpush1.bf16.msra.mxu1 %v3315_v15  ;;  %v434_v30 = vpop.f32.mrb[8].mxu0  ;;  %4201 = vst [vmem:[#allocation26_spill] sm:$0xff] %v3361_v18  ;;  %4203 = vst [vmem:[#allocation28_spill] sm:$0xff] %v3377_v28 }
 0x109   : > { %895 = vmatprep.subr.bf16.mxu0 %v3326_v31  ;;  %1503 = vmatprep.subr.bf16.mxu1 %v3331_v24  ;;  %v436_v40 = vpop.f32.mrb[9].mxu0  ;;  %v3372_v24 = vld [vmem:[%s4078_s2 + $0x40] ss:$8 sps:$4 sm:$0xff]  }
 0x10a   : > { %2324 = vmatprep.mubr.msk.bf16.mxu0 %vm237_vm0, %v298_v44  ;;  %2474 = vmatprep.mubr.msk.bf16.mxu1 %vm237_vm0, %v298_v44  ;;  %v438_v15 = vpop.f32.mrb[10].mxu0  ;;  %4202 = vst [vmem:[#allocation27_spill] sm:$0xff] %v3372_v24  ;;  %v3391_v44 = vld [vmem:[%s4078_s2 + $0x294] ss:$8 sps:$4 sm:$0xff]  }
 0x10b   : > { %v3365_v16 = vpack.c.bf16 %v438_v15, %v434_v30  ;;  %v440_v31 = vpop.f32.mrb[11].mxu0  ;;  %v3386_v15 = vld [vmem:[%s4078_s2 + $0x54] ss:$8 sps:$4 sm:$0xff]   ;;  %4205 = vst [vmem:[#allocation30_spill] sm:$0xff] %v3391_v44 }
 0x10c   : > { %896 = vmatpush1.bf16.msra.mxu0 %v3344_v17  ;;  %1504 = vmatpush1.bf16.msra.mxu1 %v3349_v25  ;;  %v3379_v26 = vpack.c.bf16 %v440_v31, %v436_v40  ;;  %4204 = vst [vmem:[#allocation29_spill] sm:$0xff] %v3386_v15  ;;  %v3398_v40 = vld [vmem:[%s4078_s2 + $0x50] ss:$8 sps:$4 sm:$0xff]  }
 0x10d   : > { %897 = vmatprep.subr.bf16.mxu0 %v3356_v20  ;;  %1505 = vmatprep.subr.bf16.mxu1 %v3361_v18  ;;  %4206 = vst [vmem:[#allocation31_spill] sm:$0xff] %v3398_v40  ;;  %v3403_v31 = vld [vmem:[%s4078_s2 + $0x290] ss:$8 sps:$4 sm:$0xff]  }
 0x10e   : > { %4207 = vst [vmem:[#allocation32_spill] sm:$0xff] %v3403_v31 }
 0x110   : > { %898 = vmatpush1.bf16.msra.mxu0 %v3372_v24  ;;  %1506 = vmatpush1.bf16.msra.mxu1 %v3377_v28  ;;  %v444_v30 = vpop.f32.mrb[12].mxu0  ;;  %v3410_v24 = vld [vmem:[%s4078_s2 + $0x64] ss:$8 sps:$4 sm:$0xff]  }
 0x111   : > { %899 = vmatprep.subr.bf16.mxu0 %v3386_v15  ;;  %1507 = vmatprep.subr.bf16.mxu1 %v3391_v44  ;;  %4208 = vst [vmem:[#allocation33_spill] sm:$0xff] %v3410_v24  ;;  %v3415_v28 = vld [vmem:[%s4078_s2 + $0x2a4] ss:$8 sps:$4 sm:$0xff]   ;;  %v446_v18 = vpop.f32.mrb[13].mxu0  ;;  %v3424_v44 = vld [vmem:[%s4078_s2 + $0x60] ss:$8 sps:$4 sm:$0xff]  }
 0x112   : > { %4209 = vst [vmem:[#allocation34_spill] sm:$0xff] %v3415_v28  ;;  %v448_v20 = vpop.f32.mrb[14].mxu0  ;;  %4210 = vst [vmem:[#allocation35_spill] sm:$0xff] %v3424_v44  ;;  %v3429_v15 = vld [vmem:[%s4078_s2 + $0x2a0] ss:$8 sps:$4 sm:$0xff]  }
 0x113   : > { %v3417_v25 = vpack.c.bf16 %v448_v20, %v444_v30  ;;  %v450_v17 = vpop.f32.mrb[15].mxu0  ;;  %4211 = vst [vmem:[#allocation36_spill] sm:$0xff] %v3429_v15  ;;  %v3438_v20 = vld [vmem:[%s4078_s2 + $0x74] ss:$8 sps:$4 sm:$0xff]  }
 0x114   : > { %900 = vmatpush1.bf16.msra.mxu0 %v3398_v40  ;;  %1508 = vmatpush1.bf16.msra.mxu1 %v3403_v31  ;;  %v3431_v22 = vpack.c.bf16 %v450_v17, %v446_v18  ;;  %4212 = vst [vmem:[#allocation37_spill] sm:$0xff] %v3438_v20  ;;  %v3443_v30 = vld [vmem:[%s4078_s2 + $0x2b4] ss:$8 sps:$4 sm:$0xff]   ;;  %v3450_v18 = vld [vmem:[%s4078_s2 + $0x70] ss:$8 sps:$4 sm:$0xff]  }
 0x115   : > { %901 = vmatprep.subr.bf16.mxu0 %v3410_v24  ;;  %1509 = vmatprep.subr.bf16.mxu1 %v3415_v28  ;;  %4213 = vst [vmem:[#allocation38_spill] sm:$0xff] %v3443_v30  ;;  %4214 = vst [vmem:[#allocation39_spill] sm:$0xff] %v3450_v18  ;;  %v3455_v17 = vld [vmem:[%s4078_s2 + $0x2b0] ss:$8 sps:$4 sm:$0xff]   ;;  %v512_v28 = vpop.f32.mrb[8].mxu1 }
 0x116   : > { %4215 = vst [vmem:[#allocation40_spill] sm:$0xff] %v3455_v17  ;;  %v514_v24 = vpop.f32.mrb[9].mxu1 }
 0x117   : > { %v516_v31 = vpop.f32.mrb[10].mxu1 }
 0x118   : > { %902 = vmatpush1.bf16.msra.mxu0 %v3424_v44  ;;  %1510 = vmatpush1.bf16.msra.mxu1 %v3429_v15  ;;  %v3462_v44 = vld [vmem:[%s4078_s2 + $0x84] ss:$8 sps:$4 sm:$0xff]   ;;  %v3541_v40 = vpack.c.bf16 %v516_v31, %v512_v28  ;;  %v518_v21 = vpop.f32.mrb[11].mxu1  ;;  %v3579_v31 = vld [vmem:[%s4078_s2 + $0x3c0] ss:$8 sps:$4 sm:$0xff]  }
 0x119   : > { %903 = vmatprep.subr.bf16.mxu0 %v3438_v20  ;;  %1511 = vmatprep.subr.bf16.mxu1 %v3443_v30  ;;  %4216 = vst [vmem:[#allocation41_spill] sm:$0xff] %v3462_v44  ;;  %v3467_v15 = vld [vmem:[%s4078_s2 + $0x2c4] ss:$8 sps:$4 sm:$0xff]   ;;  %v3474_v20 = vld [vmem:[%s4078_s2 + $0x80] ss:$8 sps:$4 sm:$0xff]   ;;  %v3543_v14 = vpack.c.bf16 %v518_v21, %v514_v24  ;;  %4234 = vst [vmem:[#allocation59_spill] sm:$0xff] %v3579_v31 }
 0x11a   : > { %4217 = vst [vmem:[#allocation42_spill] sm:$0xff] %v3467_v15  ;;  %4218 = vst [vmem:[#allocation43_spill] sm:$0xff] %v3474_v20  ;;  %v3479_v30 = vld [vmem:[%s4078_s2 + $0x2c0] ss:$8 sps:$4 sm:$0xff]   ;;  %v3562_v21 = vld [vmem:[%s4078_s2 + $0x184] ss:$8 sps:$4 sm:$0xff]  }
 0x11b   : > { %4219 = vst [vmem:[#allocation44_spill] sm:$0xff] %v3479_v30  ;;  %4227 = vst [vmem:[#allocation52_spill] sm:$0xff] %v3541_v40  ;;  %v3567_v28 = vld [vmem:[%s4078_s2 + $0x3c4] ss:$8 sps:$4 sm:$0xff]   ;;  %v3574_v24 = vld [vmem:[%s4078_s2 + $0x180] ss:$8 sps:$4 sm:$0xff]  }
 0x11c   : > { %904 = vmatpush1.bf16.msra.mxu0 %v3450_v18  ;;  %1512 = vmatpush1.bf16.msra.mxu1 %v3455_v17  ;;  %v3486_v18 = vld [vmem:[%s4078_s2 + $0x94] ss:$8 sps:$4 sm:$0xff]   ;;  %4228 = vst [vmem:[#allocation53_spill] sm:$0xff] %v3543_v14  ;;  %4231 = vst [vmem:[#allocation56_spill] sm:$0xff] %v3562_v21 }
 0x11d   : > { %905 = vmatprep.subr.bf16.mxu0 %v3462_v44  ;;  %1513 = vmatprep.subr.bf16.mxu1 %v3467_v15  ;;  %4220 = vst [vmem:[#allocation45_spill] sm:$0xff] %v3486_v18  ;;  %v3491_v17 = vld [vmem:[%s4078_s2 + $0x2d4] ss:$8 sps:$4 sm:$0xff]   ;;  %v3498_v44 = vld [vmem:[%s4078_s2 + $0x90] ss:$8 sps:$4 sm:$0xff]   ;;  %4232 = vst [vmem:[#allocation57_spill] sm:$0xff] %v3567_v28 }
 0x11e   : > { %4221 = vst [vmem:[#allocation46_spill] sm:$0xff] %v3491_v17  ;;  %4222 = vst [vmem:[#allocation47_spill] sm:$0xff] %v3498_v44  ;;  %v3503_v15 = vld [vmem:[%s4078_s2 + $0x2d0] ss:$8 sps:$4 sm:$0xff]   ;;  %v3586_v40 = vld [vmem:[%s4078_s2 + $0x194] ss:$8 sps:$4 sm:$0xff]  }
 0x11f   : > { %4223 = vst [vmem:[#allocation48_spill] sm:$0xff] %v3503_v15  ;;  %4233 = vst [vmem:[#allocation58_spill] sm:$0xff] %v3574_v24  ;;  %v3591_v14 = vld [vmem:[%s4078_s2 + $0x3d4] ss:$8 sps:$4 sm:$0xff]  }
 0x120   : > { %906 = vmatpush1.bf16.msra.mxu0 %v3474_v20  ;;  %1514 = vmatpush1.bf16.msra.mxu1 %v3479_v30  ;;  %v3510_v20 = vld [vmem:[%s4078_s2 + $0xa4] ss:$8 sps:$4 sm:$0xff]   ;;  %4235 = vst [vmem:[#allocation60_spill] sm:$0xff] %v3586_v40  ;;  %4236 = vst [vmem:[#allocation61_spill] sm:$0xff] %v3591_v14 }
 0x121   : > { %907 = vmatprep.subr.bf16.mxu0 %v3486_v18  ;;  %1515 = vmatprep.subr.bf16.mxu1 %v3491_v17  ;;  %4224 = vst [vmem:[#allocation49_spill] sm:$0xff] %v3510_v20  ;;  %v3515_v30 = vld [vmem:[%s4078_s2 + $0x2e4] ss:$8 sps:$4 sm:$0xff]   ;;  %v3522_v17 = vld [vmem:[%s4078_s2 + $0xa0] ss:$8 sps:$4 sm:$0xff]  }
 0x122   : > { %4225 = vst [vmem:[#allocation50_spill] sm:$0xff] %v3515_v30  ;;  %v3527_v18 = vld [vmem:[%s4078_s2 + $0x2e0] ss:$8 sps:$4 sm:$0xff]  }
 0x124   : > { %908 = vmatpush1.bf16.msra.mxu0 %v3498_v44  ;;  %1516 = vmatpush1.bf16.msra.mxu1 %v3503_v15  ;;  %v3534_v44 = vld [vmem:[%s4078_s2 + $0xb4] ss:$8 sps:$4 sm:$0xff]  }
 0x125   : > { %909 = vmatprep.subr.bf16.mxu0 %v3510_v20  ;;  %1517 = vmatprep.subr.bf16.mxu1 %v3515_v30  ;;  %v3539_v15 = vld [vmem:[%s4078_s2 + $0x2f4] ss:$8 sps:$4 sm:$0xff]   ;;  %v3550_v30 = vld [vmem:[%s4078_s2 + $0xb0] ss:$8 sps:$4 sm:$0xff]  }
 0x126   : > { %4226 = vst [vmem:[#allocation51_spill] sm:$0xff] %v3539_v15  ;;  %4229 = vst [vmem:[#allocation54_spill] sm:$0xff] %v3550_v30  ;;  %v3555_v20 = vld [vmem:[%s4078_s2 + $0x2f0] ss:$8 sps:$4 sm:$0xff]  }
 0x127   : > { %4230 = vst [vmem:[#allocation55_spill] sm:$0xff] %v3555_v20 }
 0x128   : > { %910 = vmatpush1.bf16.msra.mxu0 %v3522_v17  ;;  %1518 = vmatpush1.bf16.msra.mxu1 %v3527_v18 }
 0x129   : > { %911 = vmatprep.subr.bf16.mxu0 %v3534_v44  ;;  %1519 = vmatprep.subr.bf16.mxu1 %v3539_v15 }
 0x12c   : > { %912 = vmatpush1.bf16.msra.mxu0 %v3550_v30  ;;  %1520 = vmatpush1.bf16.msra.mxu1 %v3555_v20 }
 0x12d   : > { %1093 = vmatprep.subr.bf16.mxu0 %v3562_v21  ;;  %1695 = vmatprep.subr.bf16.mxu1 %v3567_v28  ;;  %v3600_v28 = vld [vmem:[%s4078_s2 + $0x190] ss:$8 sps:$4 sm:$0xff]  }
 0x12e   : > { %4237 = vst [vmem:[#allocation62_spill] sm:$0xff] %v3600_v28  ;;  %v3605_v21 = vld [vmem:[%s4078_s2 + $0x3d0] ss:$8 sps:$4 sm:$0xff]  }
 0x12f   : > { %922 = vmatmul.mubr.bf16.vlgmr.msra.gmra.mrb[16].mxu0 %v3247_v27  ;;  %1530 = vmatmul.mubr.bf16.vlgmr.msra.gmra.mrb[16].mxu1 %v3247_v27  ;;  %4238 = vst [vmem:[#allocation63_spill] sm:$0xff] %v3605_v21  ;;  %v3612_v27 = vld [vmem:[%s4078_s2 + $0x1a4] ss:$8 sps:$4 sm:$0xff]  }
 0x130   : > { %1094 = vmatpush1.bf16.msra.mxu0 %v3574_v24  ;;  %1696 = vmatpush1.bf16.msra.mxu1 %v3579_v31  ;;  %4239 = vst [vmem:[#allocation64_spill] sm:$0xff] %v3612_v27  ;;  %v3617_v31 = vld [vmem:[%s4078_s2 + $0x3e4] ss:$8 sps:$4 sm:$0xff]  }
 0x131   : > { %1095 = vmatprep.subr.bf16.mxu0 %v3586_v40  ;;  %1697 = vmatprep.subr.bf16.mxu1 %v3591_v14  ;;  %4240 = vst [vmem:[#allocation65_spill] sm:$0xff] %v3617_v31  ;;  %v3628_v14 = vld [vmem:[%s4078_s2 + $0x1a0] ss:$8 sps:$4 sm:$0xff]  }
 0x132   : > { %2325 = vmatprep.mubr.msk.bf16.mxu0 %vm237_vm0, %v3319_v23  ;;  %2475 = vmatprep.mubr.msk.bf16.mxu1 %vm237_vm0, %v3319_v23  ;;  %4241 = vst [vmem:[#allocation66_spill] sm:$0xff] %v3628_v14  ;;  %v3633_v40 = vld [vmem:[%s4078_s2 + $0x3e0] ss:$8 sps:$4 sm:$0xff]   ;;  %v3640_v23 = vld [vmem:[%s4078_s2 + $0x1b4] ss:$8 sps:$4 sm:$0xff]  }
 0x133   : > { %4242 = vst [vmem:[#allocation67_spill] sm:$0xff] %v3633_v40  ;;  %4243 = vst [vmem:[#allocation68_spill] sm:$0xff] %v3640_v23 }
 0x134   : > { %1096 = vmatpush1.bf16.msra.mxu0 %v3600_v28  ;;  %1698 = vmatpush1.bf16.msra.mxu1 %v3605_v21  ;;  %v3645_v21 = vld [vmem:[%s4078_s2 + $0x3f4] ss:$8 sps:$4 sm:$0xff]  }
 0x135   : > { %1097 = vmatprep.subr.bf16.mxu0 %v3612_v27  ;;  %1699 = vmatprep.subr.bf16.mxu1 %v3617_v31  ;;  %4244 = vst [vmem:[#allocation69_spill] sm:$0xff] %v3645_v21  ;;  %v3654_v31 = vld [vmem:[%s4078_s2 + $0x1b0] ss:$8 sps:$4 sm:$0xff]  }
 0x136   : > { %4245 = vst [vmem:[#allocation70_spill] sm:$0xff] %v3654_v31  ;;  %v3659_v27 = vld [vmem:[%s4078_s2 + $0x3f0] ss:$8 sps:$4 sm:$0xff]  }
 0x137   : > { %932 = vmatmul.mubr.bf16.gmra.mrb[20].mxu0 %v3303_v19  ;;  %1540 = vmatmul.mubr.bf16.gmra.mrb[20].mxu1 %v3303_v19  ;;  %4246 = vst [vmem:[#allocation71_spill] sm:$0xff] %v3659_v27  ;;  %v3666_v19 = vld [vmem:[%s4078_s2 + $0x1c4] ss:$8 sps:$4 sm:$0xff]  }
 0x138   : > { %1098 = vmatpush1.bf16.msra.mxu0 %v3628_v14  ;;  %1700 = vmatpush1.bf16.msra.mxu1 %v3633_v40  ;;  %4247 = vst [vmem:[#allocation72_spill] sm:$0xff] %v3666_v19  ;;  %v3671_v40 = vld [vmem:[%s4078_s2 + $0x404] ss:$8 sps:$4 sm:$0xff]   ;;  %v522_v14 = vpop.f32.mrb[12].mxu1 }
 0x139   : > { %1099 = vmatprep.subr.bf16.mxu0 %v3640_v23  ;;  %1701 = vmatprep.subr.bf16.mxu1 %v3645_v21  ;;  %4248 = vst [vmem:[#allocation73_spill] sm:$0xff] %v3671_v40  ;;  %v3682_v21 = vld [vmem:[%s4078_s2 + $0x1c0] ss:$8 sps:$4 sm:$0xff]   ;;  %v524_v28 = vpop.f32.mrb[13].mxu1 }
 0x13a   : > { %2374 = vmatprep.mubr.msk.bf16.mxu0 %vm237_vm0, %v3379_v26  ;;  %2524 = vmatprep.mubr.msk.bf16.mxu1 %vm237_vm0, %v3379_v26  ;;  %4249 = vst [vmem:[#allocation74_spill] sm:$0xff] %v3682_v21  ;;  %v3687_v23 = vld [vmem:[%s4078_s2 + $0x400] ss:$8 sps:$4 sm:$0xff]   ;;  %v526_v24 = vpop.f32.mrb[14].mxu1 }
 0x13b   : > { %4250 = vst [vmem:[#allocation75_spill] sm:$0xff] %v3687_v23  ;;  %v3797_v20 = vpack.c.bf16 %v526_v24, %v522_v14  ;;  %v528_v30 = vpop.f32.mrb[15].mxu1  ;;  %v3818_v14 = vld [vmem:[%s4078_s2 + $0x224] ss:$8 sps:$4 sm:$0xff]  }
 0x13c   : > { %1100 = vmatpush1.bf16.msra.mxu0 %v3654_v31  ;;  %1702 = vmatpush1.bf16.msra.mxu1 %v3659_v27  ;;  %v3694_v31 = vld [vmem:[%s4078_s2 + $0x1d4] ss:$8 sps:$4 sm:$0xff]   ;;  %v3811_v15 = vpack.c.bf16 %v528_v30, %v524_v28  ;;  %4267 = vst [vmem:[#allocation92_spill] sm:$0xff] %v3818_v14  ;;  %v3823_v24 = vld [vmem:[%s4078_s2 + $0x464] ss:$8 sps:$4 sm:$0xff]  }
 0x13d   : > { %1101 = vmatprep.subr.bf16.mxu0 %v3666_v19  ;;  %1703 = vmatprep.subr.bf16.mxu1 %v3671_v40  ;;  %4251 = vst [vmem:[#allocation76_spill] sm:$0xff] %v3694_v31  ;;  %v3699_v27 = vld [vmem:[%s4078_s2 + $0x414] ss:$8 sps:$4 sm:$0xff]   ;;  %v3706_v19 = vld [vmem:[%s4078_s2 + $0x1d0] ss:$8 sps:$4 sm:$0xff]   ;;  %4265 = vst [vmem:[#allocation90_spill] sm:$0xff] %v3797_v20 }
 0x13e   : > { %4252 = vst [vmem:[#allocation77_spill] sm:$0xff] %v3699_v27  ;;  %4253 = vst [vmem:[#allocation78_spill] sm:$0xff] %v3706_v19  ;;  %v3711_v40 = vld [vmem:[%s4078_s2 + $0x410] ss:$8 sps:$4 sm:$0xff]   ;;  %v3830_v30 = vld [vmem:[%s4078_s2 + $0x220] ss:$8 sps:$4 sm:$0xff]  }
 0x13f   : > { %4254 = vst [vmem:[#allocation79_spill] sm:$0xff] %v3711_v40  ;;  %4266 = vst [vmem:[#allocation91_spill] sm:$0xff] %v3811_v15  ;;  %v3835_v28 = vld [vmem:[%s4078_s2 + $0x460] ss:$8 sps:$4 sm:$0xff]   ;;  %v3842_v20 = vld [vmem:[%s4078_s2 + $0x234] ss:$8 sps:$4 sm:$0xff]  }
 0x140   : > { %1102 = vmatpush1.bf16.msra.mxu0 %v3682_v21  ;;  %1704 = vmatpush1.bf16.msra.mxu1 %v3687_v23  ;;  %v3718_v21 = vld [vmem:[%s4078_s2 + $0x1e4] ss:$8 sps:$4 sm:$0xff]   ;;  %4268 = vst [vmem:[#allocation93_spill] sm:$0xff] %v3823_v24  ;;  %v3847_v15 = vld [vmem:[%s4078_s2 + $0x474] ss:$8 sps:$4 sm:$0xff]  }
 0x141   : > { %1103 = vmatprep.subr.bf16.mxu0 %v3694_v31  ;;  %1705 = vmatprep.subr.bf16.mxu1 %v3699_v27  ;;  %4255 = vst [vmem:[#allocation80_spill] sm:$0xff] %v3718_v21  ;;  %v3723_v23 = vld [vmem:[%s4078_s2 + $0x424] ss:$8 sps:$4 sm:$0xff]   ;;  %v3730_v31 = vld [vmem:[%s4078_s2 + $0x1e0] ss:$8 sps:$4 sm:$0xff]  }
 0x142   : > { %4256 = vst [vmem:[#allocation81_spill] sm:$0xff] %v3723_v23  ;;  %4257 = vst [vmem:[#allocation82_spill] sm:$0xff] %v3730_v31  ;;  %v3735_v27 = vld [vmem:[%s4078_s2 + $0x420] ss:$8 sps:$4 sm:$0xff]  }
 0x143   : > { %4258 = vst [vmem:[#allocation83_spill] sm:$0xff] %v3735_v27 }
 0x144   : > { %1104 = vmatpush1.bf16.msra.mxu0 %v3706_v19  ;;  %1706 = vmatpush1.bf16.msra.mxu1 %v3711_v40  ;;  %v3742_v19 = vld [vmem:[%s4078_s2 + $0x1f4] ss:$8 sps:$4 sm:$0xff]  }
 0x145   : > { %1105 = vmatprep.subr.bf16.mxu0 %v3718_v21  ;;  %1707 = vmatprep.subr.bf16.mxu1 %v3723_v23  ;;  %4259 = vst [vmem:[#allocation84_spill] sm:$0xff] %v3742_v19  ;;  %v3747_v40 = vld [vmem:[%s4078_s2 + $0x434] ss:$8 sps:$4 sm:$0xff]   ;;  %v3754_v21 = vld [vmem:[%s4078_s2 + $0x1f0] ss:$8 sps:$4 sm:$0xff]  }
 0x146   : > { %4260 = vst [vmem:[#allocation85_spill] sm:$0xff] %v3747_v40  ;;  %4261 = vst [vmem:[#allocation86_spill] sm:$0xff] %v3754_v21  ;;  %v3759_v23 = vld [vmem:[%s4078_s2 + $0x430] ss:$8 sps:$4 sm:$0xff]  }
 0x147   : > { %4262 = vst [vmem:[#allocation87_spill] sm:$0xff] %v3759_v23 }
 0x148   : > { %1106 = vmatpush1.bf16.msra.mxu0 %v3730_v31  ;;  %1708 = vmatpush1.bf16.msra.mxu1 %v3735_v27  ;;  %v3766_v31 = vld [vmem:[%s4078_s2 + $0x204] ss:$8 sps:$4 sm:$0xff]  }
 0x149   : > { %1107 = vmatprep.subr.bf16.mxu0 %v3742_v19  ;;  %1709 = vmatprep.subr.bf16.mxu1 %v3747_v40  ;;  %4263 = vst [vmem:[#allocation88_spill] sm:$0xff] %v3766_v31  ;;  %v3771_v27 = vld [vmem:[%s4078_s2 + $0x444] ss:$8 sps:$4 sm:$0xff]   ;;  %v3778_v19 = vld [vmem:[%s4078_s2 + $0x200] ss:$8 sps:$4 sm:$0xff]  }
 0x14a   : > { %4264 = vst [vmem:[#allocation89_spill] sm:$0xff] %v3771_v27  ;;  %v3783_v40 = vld [vmem:[%s4078_s2 + $0x440] ss:$8 sps:$4 sm:$0xff]  }
 0x14c   : > { %1108 = vmatpush1.bf16.msra.mxu0 %v3754_v21  ;;  %1710 = vmatpush1.bf16.msra.mxu1 %v3759_v23  ;;  %v3790_v21 = vld [vmem:[%s4078_s2 + $0x214] ss:$8 sps:$4 sm:$0xff]  }
 0x14d   : > { %1109 = vmatprep.subr.bf16.mxu0 %v3766_v31  ;;  %1711 = vmatprep.subr.bf16.mxu1 %v3771_v27  ;;  %v3795_v23 = vld [vmem:[%s4078_s2 + $0x454] ss:$8 sps:$4 sm:$0xff]   ;;  %v3804_v27 = vld [vmem:[%s4078_s2 + $0x210] ss:$8 sps:$4 sm:$0xff]  }
 0x14e   : > { %v3809_v31 = vld [vmem:[%s4078_s2 + $0x450] ss:$8 sps:$4 sm:$0xff]  }
 0x150   : > { %1110 = vmatpush1.bf16.msra.mxu0 %v3778_v19  ;;  %1712 = vmatpush1.bf16.msra.mxu1 %v3783_v40 }
 0x151   : > { %1111 = vmatprep.subr.bf16.mxu0 %v3790_v21  ;;  %1713 = vmatprep.subr.bf16.mxu1 %v3795_v23 }
 0x154   : > { %1112 = vmatpush1.bf16.msra.mxu0 %v3804_v27  ;;  %1714 = vmatpush1.bf16.msra.mxu1 %v3809_v31 }
 0x155   : > { %1113 = vmatprep.subr.bf16.mxu0 %v3818_v14  ;;  %1715 = vmatprep.subr.bf16.mxu1 %v3823_v24  ;;  %v3854_v14 = vld [vmem:[%s4078_s2 + $0x230] ss:$8 sps:$4 sm:$0xff]  }
 0x156   : > { %v3859_v24 = vld [vmem:[%s4078_s2 + $0x470] ss:$8 sps:$4 sm:$0xff]  }
 0x158   : > { %1114 = vmatpush1.bf16.msra.mxu0 %v3830_v30  ;;  %1716 = vmatpush1.bf16.msra.mxu1 %v3835_v28 }
 0x159   : > { %1115 = vmatprep.subr.bf16.mxu0 %v3842_v20  ;;  %1717 = vmatprep.subr.bf16.mxu1 %v3847_v15 }
 0x15c   : > { %1116 = vmatpush1.bf16.msra.mxu0 %v3854_v14  ;;  %1718 = vmatpush1.bf16.msra.mxu1 %v3859_v24 }
 0x15d   : > { %1764 = vmatprep.subr.bf16.mxu0 %v2929_v29  ;;  %1945 = vmatprep.subr.bf16.mxu1 %v2941_v32  ;;  %v4269_v29 = vld [vmem:[#allocation2_spill] sm:$0xff]  ;;  %v4270_v32 = vld [vmem:[#allocation3_spill] sm:$0xff] }
 0x15f   : > { %1126 = vmatmul.mubr.bf16.vlgmr.msra.gmra.mrb[16].mxu0 %v3365_v16  ;;  %1728 = vmatmul.mubr.bf16.vlgmr.msra.gmra.mrb[16].mxu1 %v3365_v16 }
 0x160   : > { %1765 = vmatpush1.bf16.msra.mxu0 %v2946_v33  ;;  %1946 = vmatpush1.bf16.msra.mxu1 %v2957_v35  ;;  %v4271_v33 = vld [vmem:[#allocation4_spill] sm:$0xff]  ;;  %v4273_v35 = vld [vmem:[#allocation6_spill] sm:$0xff] }
 0x161   : > { %1766 = vmatprep.subr.bf16.mxu0 %v2952_v34  ;;  %1947 = vmatprep.subr.bf16.mxu1 %v2969_v37  ;;  %v4272_v34 = vld [vmem:[#allocation5_spill] sm:$0xff]  ;;  %v4275_v37 = vld [vmem:[#allocation10_spill] sm:$0xff] }
 0x162   : > { %2375 = vmatprep.mubr.msk.bf16.mxu0 %vm237_vm0, %v3431_v22  ;;  %2525 = vmatprep.mubr.msk.bf16.mxu1 %vm237_vm0, %v3431_v22 }
 0x164   : > { %1767 = vmatpush1.bf16.msra.mxu0 %v2964_v36  ;;  %1948 = vmatpush1.bf16.msra.mxu1 %v2976_v38  ;;  %v4274_v36 = vld [vmem:[#allocation9_spill] sm:$0xff]  ;;  %v4276_v38 = vld [vmem:[#allocation11_spill] sm:$0xff] }
 0x165   : > { %1768 = vmatprep.subr.bf16.mxu0 %v2981_v39  ;;  %1949 = vmatprep.subr.bf16.mxu1 %v2991_v41  ;;  %v4277_v39 = vld [vmem:[#allocation12_spill] sm:$0xff]  ;;  %v4278_v41 = vld [vmem:[#allocation13_spill] sm:$0xff] }
 0x167   : > { %1136 = vmatmul.mubr.bf16.gmra.mrb[20].mxu0 %v3417_v25  ;;  %1738 = vmatmul.mubr.bf16.gmra.mrb[20].mxu1 %v3417_v25 }
 0x168   : > { %1769 = vmatpush1.bf16.msra.mxu0 %v2997_v42  ;;  %2526 = vmatprep.mubr.msk.bf16.mxu0 %vm237_vm0, %v3379_v26  ;;  %v4279_v42 = vld [vmem:[#allocation14_spill] sm:$0xff] }
 0x169   : > { %1950 = vmatpush1.bf16.msra.mxu1 %v3013_v45  ;;  %2532 = vmatprep.mubr.msk.bf16.mxu1 %vm237_vm0, %v3379_v26  ;;  %v4281_v45 = vld [vmem:[#allocation16_spill] sm:$0xff]  ;;  %v4316_v26 = vld [vmem:[#allocation54_spill] sm:$0xff] }
 0x16a   : > { %1770 = vmatprep.subr.bf16.mxu0 %v3004_v43  ;;  %1951 = vmatprep.subr.bf16.mxu1 %v3019_v46  ;;  %v4280_v43 = vld [vmem:[#allocation15_spill] sm:$0xff]  ;;  %v4282_v46 = vld [vmem:[#allocation8_spill] sm:$0xff] }
 0x16c   : > { %1771 = vmatpush1.bf16.msra.mxu0 %v3025_v47  ;;  %v4283_v47 = vld [vmem:[#allocation18_spill] sm:$0xff] }
 0x16d   : > { %1952 = vmatpush1.bf16.msra.mxu1 %v3038_v49  ;;  %1772 = vmatprep.subr.bf16.mxu0 %v3032_v48  ;;  %v4284_v48 = vld [vmem:[#allocation19_spill] sm:$0xff]  ;;  %v4285_v49 = vld [vmem:[#allocation21_spill] sm:$0xff] }
 0x16e   : > { %1953 = vmatprep.subr.bf16.mxu1 %v3044_v50  ;;  %v4286_v50 = vld [vmem:[#allocation22_spill] sm:$0xff] }
 0x170   : > { %1773 = vmatpush1.bf16.msra.mxu0 %v3051_v51  ;;  %v4287_v51 = vld [vmem:[#allocation23_spill] sm:$0xff] }
 0x171   : > { %1954 = vmatpush1.bf16.msra.mxu1 %v3063_v53  ;;  %1774 = vmatprep.subr.bf16.mxu0 %v3057_v52  ;;  %v4288_v52 = vld [vmem:[#allocation24_spill] sm:$0xff]  ;;  %v4289_v53 = vld [vmem:[#allocation25_spill] sm:$0xff] }
 0x172   : > { %1955 = vmatprep.subr.bf16.mxu1 %v3069_v54  ;;  %v4290_v54 = vld [vmem:[#allocation26_spill] sm:$0xff] }
 0x174   : > { %1775 = vmatpush1.bf16.msra.mxu0 %v3075_v55  ;;  %v4291_v55 = vld [vmem:[#allocation27_spill] sm:$0xff] }
 0x175   : > { %1956 = vmatpush1.bf16.msra.mxu1 %v3087_v57  ;;  %1776 = vmatprep.subr.bf16.mxu0 %v3081_v56  ;;  %v4292_v56 = vld [vmem:[#allocation28_spill] sm:$0xff]  ;;  %v4293_v57 = vld [vmem:[#allocation29_spill] sm:$0xff] }
 0x176   : > { %1957 = vmatprep.subr.bf16.mxu1 %v3093_v58  ;;  %v4294_v58 = vld [vmem:[#allocation30_spill] sm:$0xff] }
 0x178   : > { %1777 = vmatpush1.bf16.msra.mxu0 %v3099_v59  ;;  %v4295_v59 = vld [vmem:[#allocation31_spill] sm:$0xff] }
 0x179   : > { %1958 = vmatpush1.bf16.msra.mxu1 %v3111_v61  ;;  %1778 = vmatprep.subr.bf16.mxu0 %v3105_v60  ;;  %v4296_v60 = vld [vmem:[#allocation32_spill] sm:$0xff]  ;;  %v4297_v61 = vld [vmem:[#allocation33_spill] sm:$0xff] }
 0x17a   : > { %1959 = vmatprep.subr.bf16.mxu1 %v3117_v62  ;;  %v4298_v62 = vld [vmem:[#allocation34_spill] sm:$0xff] }
 0x17c   : > { %1779 = vmatpush1.bf16.msra.mxu0 %v3123_v63  ;;  %v4299_v63 = vld [vmem:[#allocation35_spill] sm:$0xff] }
 0x17d   : > { %1960 = vmatpush1.bf16.msra.mxu1 %v3135_v1  ;;  %1780 = vmatprep.subr.bf16.mxu0 %v3129_v0  ;;  %v4300_v0 = vld [vmem:[#allocation36_spill] sm:$0xff]  ;;  %v4301_v1 = vld [vmem:[#allocation37_spill] sm:$0xff] }
 0x17e   : > { %1961 = vmatprep.subr.bf16.mxu1 %v3141_v2  ;;  %v4302_v2 = vld [vmem:[#allocation38_spill] sm:$0xff] }
 0x180   : > { %1781 = vmatpush1.bf16.msra.mxu0 %v3147_v3  ;;  %v4303_v3 = vld [vmem:[#allocation39_spill] sm:$0xff] }
 0x181   : > { %1962 = vmatpush1.bf16.msra.mxu1 %v3159_v5  ;;  %1782 = vmatprep.subr.bf16.mxu0 %v3153_v4  ;;  %v4304_v4 = vld [vmem:[#allocation40_spill] sm:$0xff]  ;;  %v4305_v5 = vld [vmem:[#allocation41_spill] sm:$0xff] }
 0x182   : > { %1963 = vmatprep.subr.bf16.mxu1 %v3165_v6  ;;  %v4306_v6 = vld [vmem:[#allocation42_spill] sm:$0xff] }
 0x184   : > { %1783 = vmatpush1.bf16.msra.mxu0 %v3171_v7  ;;  %v4307_v7 = vld [vmem:[#allocation43_spill] sm:$0xff] }
 0x185   : > { %1964 = vmatpush1.bf16.msra.mxu1 %v3185_v9  ;;  %1784 = vmatprep.subr.bf16.mxu0 %v3177_v8  ;;  %v4308_v8 = vld [vmem:[#allocation44_spill] sm:$0xff]  ;;  %v4309_v9 = vld [vmem:[#allocation45_spill] sm:$0xff] }
 0x186   : > { %1965 = vmatprep.subr.bf16.mxu1 %v3191_v10  ;;  %v4310_v10 = vld [vmem:[#allocation46_spill] sm:$0xff] }
 0x188   : > { %1785 = vmatpush1.bf16.msra.mxu0 %v3197_v11  ;;  %v4311_v11 = vld [vmem:[#allocation47_spill] sm:$0xff] }
 0x189   : > { %1966 = vmatpush1.bf16.msra.mxu1 %v3204_v12  ;;  %1786 = vmatprep.subr.bf16.mxu0 %v3212_v13  ;;  %v4312_v12 = vld [vmem:[#allocation48_spill] sm:$0xff]  ;;  %v4313_v13 = vld [vmem:[#allocation49_spill] sm:$0xff] }
 0x18a   : > { %1967 = vmatprep.subr.bf16.mxu1 %v4269_v29  ;;  %v4318_v29 = vld [vmem:[#allocation56_spill] sm:$0xff] }
 0x18c   : > { %1787 = vmatpush1.bf16.msra.mxu0 %v4270_v32  ;;  %v4319_v32 = vld [vmem:[#allocation57_spill] sm:$0xff] }
 0x18d   : > { %1968 = vmatpush1.bf16.msra.mxu1 %v4271_v33  ;;  %1817 = vmatprep.subr.bf16.mxu0 %v4272_v34  ;;  %v4320_v33 = vld [vmem:[#allocation7_spill] sm:$0xff]  ;;  %v4321_v34 = vld [vmem:[#allocation20_spill] sm:$0xff] }
 0x18e   : > { %1998 = vmatprep.subr.bf16.mxu1 %v4273_v35  ;;  %v4325_v35 = vld [vmem:[#allocation61_spill] sm:$0xff] }
 0x18f   : > { %1797 = vmatmul.mubr.bf16.vlgmr.msra.gmra.mrb[24].mxu0 %v3365_v16 }
 0x190   : > { %1978 = vmatmul.mubr.bf16.vlgmr.msra.gmra.mrb[24].mxu1 %v3365_v16  ;;  %2527 = vmatprep.mubr.msk.bf16.mxu0 %vm237_vm0, %v3431_v22  ;;  %v4314_v16 = vld [vmem:[#allocation50_spill] sm:$0xff] }
 0x191   : > { %1818 = vmatpush1.bf16.msra.mxu0 %v4274_v36  ;;  %2533 = vmatprep.mubr.msk.bf16.mxu1 %vm237_vm0, %v3431_v22  ;;  %v4315_v22 = vld [vmem:[#allocation51_spill] sm:$0xff]  ;;  %v4326_v36 = vld [vmem:[#allocation62_spill] sm:$0xff] }
 0x192   : > { %1999 = vmatpush1.bf16.msra.mxu1 %v4275_v37  ;;  %1819 = vmatprep.subr.bf16.mxu0 %v4276_v38  ;;  %v4327_v37 = vld [vmem:[#allocation63_spill] sm:$0xff]  ;;  %v4328_v38 = vld [vmem:[#allocation64_spill] sm:$0xff] }
 0x193   : > { %2000 = vmatprep.subr.bf16.mxu1 %v4277_v39  ;;  %v4329_v39 = vld [vmem:[#allocation17_spill] sm:$0xff] }
 0x195   : > { %1820 = vmatpush1.bf16.msra.mxu0 %v4278_v41  ;;  %v4330_v41 = vld [vmem:[#allocation65_spill] sm:$0xff] }
 0x196   : > { %2001 = vmatpush1.bf16.msra.mxu1 %v4279_v42  ;;  %1821 = vmatprep.subr.bf16.mxu0 %v4280_v43  ;;  %v4331_v42 = vld [vmem:[#allocation53_spill] sm:$0xff]  ;;  %v4332_v43 = vld [vmem:[#allocation66_spill] sm:$0xff] }
 0x197   : > { %1807 = vmatmul.mubr.bf16.gmra.mrb[28].mxu0 %v3417_v25  ;;  %2002 = vmatprep.subr.bf16.mxu1 %v4281_v45  ;;  %v4333_v45 = vld [vmem:[#allocation67_spill] sm:$0xff] }
 0x198   : > { %1988 = vmatmul.mubr.bf16.gmra.mrb[28].mxu1 %v3417_v25  ;;  %2528 = vmatprep.mubr.msk.bf16.mxu0 %vm237_vm0, %v4282_v46  ;;  %v4317_v25 = vld [vmem:[#allocation55_spill] sm:$0xff] }
 0x199   : > { %1822 = vmatpush1.bf16.msra.mxu0 %v4283_v47  ;;  %2534 = vmatprep.mubr.msk.bf16.mxu1 %vm237_vm0, %v4282_v46  ;;  %v4334_v46 = vld [vmem:[#allocation68_spill] sm:$0xff]  ;;  %v4335_v47 = vld [vmem:[#allocation69_spill] sm:$0xff] }
 0x19a   : > { %2003 = vmatpush1.bf16.msra.mxu1 %v4284_v48  ;;  %1823 = vmatprep.subr.bf16.mxu0 %v4285_v49  ;;  %v4336_v48 = vld [vmem:[#allocation70_spill] sm:$0xff]  ;;  %v4337_v49 = vld [vmem:[#allocation71_spill] sm:$0xff] }
 0x19b   : > { %2004 = vmatprep.subr.bf16.mxu1 %v4286_v50  ;;  %v4338_v50 = vld [vmem:[#allocation72_spill] sm:$0xff] }
 0x19d   : > { %1824 = vmatpush1.bf16.msra.mxu0 %v4287_v51  ;;  %v4339_v51 = vld [vmem:[#allocation73_spill] sm:$0xff] }
 0x19e   : > { %2005 = vmatpush1.bf16.msra.mxu1 %v4288_v52  ;;  %1825 = vmatprep.subr.bf16.mxu0 %v4289_v53  ;;  %v4340_v52 = vld [vmem:[#allocation74_spill] sm:$0xff]  ;;  %v4341_v53 = vld [vmem:[#allocation75_spill] sm:$0xff] }
 0x19f   : > { %2006 = vmatprep.subr.bf16.mxu1 %v4290_v54  ;;  %v4342_v54 = vld [vmem:[#allocation76_spill] sm:$0xff] }
 0x1a1   : > { %1826 = vmatpush1.bf16.msra.mxu0 %v4291_v55  ;;  %v4343_v55 = vld [vmem:[#allocation77_spill] sm:$0xff] }
 0x1a2   : > { %2007 = vmatpush1.bf16.msra.mxu1 %v4292_v56  ;;  %1827 = vmatprep.subr.bf16.mxu0 %v4293_v57  ;;  %v4344_v56 = vld [vmem:[#allocation78_spill] sm:$0xff]  ;;  %v4345_v57 = vld [vmem:[#allocation79_spill] sm:$0xff] }
 0x1a3   : > { %2008 = vmatprep.subr.bf16.mxu1 %v4294_v58  ;;  %v4346_v58 = vld [vmem:[#allocation80_spill] sm:$0xff] }
 0x1a5   : > { %1828 = vmatpush1.bf16.msra.mxu0 %v4295_v59  ;;  %v4347_v59 = vld [vmem:[#allocation81_spill] sm:$0xff] }
 0x1a6   : > { %2009 = vmatpush1.bf16.msra.mxu1 %v4296_v60  ;;  %1829 = vmatprep.subr.bf16.mxu0 %v4297_v61  ;;  %v4348_v60 = vld [vmem:[#allocation82_spill] sm:$0xff]  ;;  %v4349_v61 = vld [vmem:[#allocation83_spill] sm:$0xff] }
 0x1a7   : > { %2010 = vmatprep.subr.bf16.mxu1 %v4298_v62  ;;  %v4350_v62 = vld [vmem:[#allocation84_spill] sm:$0xff] }
 0x1a9   : > { %1830 = vmatpush1.bf16.msra.mxu0 %v4299_v63  ;;  %v4351_v63 = vld [vmem:[#allocation85_spill] sm:$0xff] }
 0x1aa   : > { %2011 = vmatpush1.bf16.msra.mxu1 %v4300_v0  ;;  %1831 = vmatprep.subr.bf16.mxu0 %v4301_v1  ;;  %v4352_v0 = vld [vmem:[#allocation86_spill] sm:$0xff]  ;;  %v4353_v1 = vld [vmem:[#allocation87_spill] sm:$0xff] }
 0x1ab   : > { %2012 = vmatprep.subr.bf16.mxu1 %v4302_v2  ;;  %v4354_v2 = vld [vmem:[#allocation88_spill] sm:$0xff] }
 0x1ad   : > { %1832 = vmatpush1.bf16.msra.mxu0 %v4303_v3  ;;  %v4355_v3 = vld [vmem:[#allocation89_spill] sm:$0xff] }
 0x1ae   : > { %2013 = vmatpush1.bf16.msra.mxu1 %v4304_v4  ;;  %1833 = vmatprep.subr.bf16.mxu0 %v4305_v5  ;;  %v4356_v4 = vld [vmem:[#allocation92_spill] sm:$0xff]  ;;  %v4357_v5 = vld [vmem:[#allocation93_spill] sm:$0xff] }
 0x1af   : > { %2014 = vmatprep.subr.bf16.mxu1 %v4306_v6 }
 0x1b1   : > { %1834 = vmatpush1.bf16.msra.mxu0 %v4307_v7 }
 0x1b2   : > { %2015 = vmatpush1.bf16.msra.mxu1 %v4308_v8  ;;  %1835 = vmatprep.subr.bf16.mxu0 %v4309_v9 }
 0x1b3   : > { %2016 = vmatprep.subr.bf16.mxu1 %v4310_v10 }
 0x1b5   : > { %1836 = vmatpush1.bf16.msra.mxu0 %v4311_v11 }
 0x1b6   : > { %2017 = vmatpush1.bf16.msra.mxu1 %v4312_v12  ;;  %1837 = vmatprep.subr.bf16.mxu0 %v4313_v13 }
 0x1b7   : > { %2018 = vmatprep.subr.bf16.mxu1 %v4314_v16 }
 0x1b9   : > { %1838 = vmatpush1.bf16.msra.mxu0 %v3522_v17  ;;  %v4324_v17 = vld [vmem:[#allocation60_spill] sm:$0xff] }
 0x1ba   : > { %2019 = vmatpush1.bf16.msra.mxu1 %v3527_v18  ;;  %1839 = vmatprep.subr.bf16.mxu0 %v3534_v44  ;;  %v4322_v18 = vld [vmem:[#allocation58_spill] sm:$0xff]  ;;  %v4323_v44 = vld [vmem:[#allocation59_spill] sm:$0xff] }
 0x1bb   : > { %2020 = vmatprep.subr.bf16.mxu1 %v4315_v22 }
 0x1bd   : > { %1840 = vmatpush1.bf16.msra.mxu0 %v4316_v26 }
 0x1be   : > { %2021 = vmatpush1.bf16.msra.mxu1 %v4317_v25  ;;  %1876 = vmatprep.subr.bf16.mxu0 %v4318_v29 }
 0x1bf   : > { %2051 = vmatprep.subr.bf16.mxu1 %v4319_v32 }
 0x1c0   : > { %1850 = vmatmul.mubr.bf16.vlgmr.msra.gmra.mrb[24].mxu0 %v4320_v33 }
 0x1c1   : > { %2031 = vmatmul.mubr.bf16.vlgmr.msra.gmra.mrb[24].mxu1 %v4320_v33  ;;  %2529 = vmatprep.mubr.msk.bf16.mxu0 %vm237_vm0, %v4321_v34 }
 0x1c2   : > { %1877 = vmatpush1.bf16.msra.mxu0 %v4322_v18  ;;  %2535 = vmatprep.mubr.msk.bf16.mxu1 %vm237_vm0, %v4321_v34  ;;  %v2122_v34 = vlaneseq }
 0x1c3   : > { %2052 = vmatpush1.bf16.msra.mxu1 %v4323_v44  ;;  %1878 = vmatprep.subr.bf16.mxu0 %v4324_v17  ;;  %v2120_v17 = vld [vmem:[%s4079_s3] sm:$0x3] }
 0x1c4   : > { %2053 = vmatprep.subr.bf16.mxu1 %v4325_v35  ;;  %v2123_v18 = vshrl.u32 %v2122_v34, 7 }
 0x1c6   : > { %1879 = vmatpush1.bf16.msra.mxu0 %v4326_v36  ;;  %v2124_v44 = vsub.s32 0, %v2123_v18  ;;  %v2128_v35 = vsub.s32 1, %v2123_v18 }
 0x1c7   : > { %2054 = vmatpush1.bf16.msra.mxu1 %v4327_v37  ;;  %1880 = vmatprep.subr.bf16.mxu0 %v4328_v38 }
 0x1c8   : > { %1860 = vmatmul.mubr.bf16.gmra.mrb[28].mxu0 %v4329_v39  ;;  %2055 = vmatprep.subr.bf16.mxu1 %v4330_v41 }
 0x1c9   : > { %2041 = vmatmul.mubr.bf16.gmra.mrb[28].mxu1 %v4329_v39  ;;  %2530 = vmatprep.mubr.msk.bf16.mxu0 %vm237_vm0, %v4331_v42  ;;  %v2125_v39 = vrot.slane %v2120_v17, %v2124_v44 }
 0x1ca   : > { %1881 = vmatpush1.bf16.msra.mxu0 %v4332_v43  ;;  %2536 = vmatprep.mubr.msk.bf16.mxu1 %vm237_vm0, %v4331_v42 }
 0x1cb   : > { %2056 = vmatpush1.bf16.msra.mxu1 %v4333_v45  ;;  %1882 = vmatprep.subr.bf16.mxu0 %v4334_v46  ;;  %v2129_v45 = vrot.slane %v2120_v17, %v2128_v35 }
 0x1cc   : > { %2057 = vmatprep.subr.bf16.mxu1 %v4335_v47 }
 0x1ce   : > { %1883 = vmatpush1.bf16.msra.mxu0 %v4336_v48 }
 0x1cf   : > { %2058 = vmatpush1.bf16.msra.mxu1 %v4337_v49  ;;  %1884 = vmatprep.subr.bf16.mxu0 %v4338_v50 }
 0x1d0   : > { %2059 = vmatprep.subr.bf16.mxu1 %v4339_v51 }
 0x1d2   : > { %1885 = vmatpush1.bf16.msra.mxu0 %v4340_v52 }
 0x1d3   : > { %2060 = vmatpush1.bf16.msra.mxu1 %v4341_v53  ;;  %1886 = vmatprep.subr.bf16.mxu0 %v4342_v54 }
 0x1d4   : > { %2061 = vmatprep.subr.bf16.mxu1 %v4343_v55 }
 0x1d6   : > { %1887 = vmatpush1.bf16.msra.mxu0 %v4344_v56 }
 0x1d7   : > { %2062 = vmatpush1.bf16.msra.mxu1 %v4345_v57  ;;  %1888 = vmatprep.subr.bf16.mxu0 %v4346_v58 }
 0x1d8   : > { %2063 = vmatprep.subr.bf16.mxu1 %v4347_v59 }
 0x1da   : > { %1889 = vmatpush1.bf16.msra.mxu0 %v4348_v60 }
 0x1db   : > { %2064 = vmatpush1.bf16.msra.mxu1 %v4349_v61  ;;  %1890 = vmatprep.subr.bf16.mxu0 %v4350_v62 }
 0x1dc   : > { %2065 = vmatprep.subr.bf16.mxu1 %v4351_v63 }
 0x1de   : > { %1891 = vmatpush1.bf16.msra.mxu0 %v4352_v0 }
 0x1df   : > { %2066 = vmatpush1.bf16.msra.mxu1 %v4353_v1  ;;  %1892 = vmatprep.subr.bf16.mxu0 %v4354_v2 }
 0x1e0   : > { %2067 = vmatprep.subr.bf16.mxu1 %v4355_v3 }
 0x1e2   : > { %1893 = vmatpush1.bf16.msra.mxu0 %v3778_v19 }
 0x1e3   : > { %2068 = vmatpush1.bf16.msra.mxu1 %v3783_v40  ;;  %1894 = vmatprep.subr.bf16.mxu0 %v3790_v21  ;;  %v4358_v40 = vld [vmem:[#allocation52_spill] sm:$0xff]  ;;  %v4359_v21 = vld [vmem:[#allocation91_spill] sm:$0xff] }
 0x1e4   : > { %2069 = vmatprep.subr.bf16.mxu1 %v3795_v23 }
 0x1e6   : > { %1895 = vmatpush1.bf16.msra.mxu0 %v3804_v27 }
 0x1e7   : > { %2070 = vmatpush1.bf16.msra.mxu1 %v3809_v31  ;;  %1896 = vmatprep.subr.bf16.mxu0 %v4356_v4  ;;  %v4360_v31 = vld [vmem:[#allocation90_spill] sm:$0xff] }
 0x1e8   : > { %2071 = vmatprep.subr.bf16.mxu1 %v4357_v5 }
 0x1ea   : > { %1897 = vmatpush1.bf16.msra.mxu0 %v3830_v30 }
 0x1eb   : > { %2072 = vmatpush1.bf16.msra.mxu1 %v3835_v28  ;;  %1898 = vmatprep.subr.bf16.mxu0 %v3842_v20 }
 0x1ec   : > { %2073 = vmatprep.subr.bf16.mxu1 %v3847_v15 }
 0x1ee   : > { %1899 = vmatpush1.bf16.msra.mxu0 %v3854_v14 }
 0x1ef   : > { %2074 = vmatpush1.bf16.msra.mxu1 %v3859_v24 }
 0x1f1   : > { %1909 = vmatmul.mubr.bf16.vlgmr.msra.gmra.mrb[24].mxu0 %v4358_v40 }
 0x1f2   : > { %2084 = vmatmul.mubr.bf16.vlgmr.msra.gmra.mrb[24].mxu1 %v4358_v40  ;;  %2531 = vmatprep.mubr.msk.bf16.mxu0 %vm237_vm0, %v4359_v21 }
 0x1f3   : > { %2537 = vmatprep.mubr.msk.bf16.mxu1 %vm237_vm0, %v4359_v21 }
 0x1f9   : > { %1919 = vmatmul.mubr.bf16.gmra.mrb[28].mxu0 %v4360_v31 }
 0x1fa   : > { %2094 = vmatmul.mubr.bf16.gmra.mrb[28].mxu1 %v4360_v31 }
 0x232   : > { %v1127_v20 = vpop.f32.mrb[16].mxu0  ;;  %v1729_v15 = vpop.f32.mrb[16].mxu1 }
 0x233   : > { %v1756_v27 = vmax.f32 %v1127_v20, %v1729_v15  ;;  %v1129_v23 = vpop.f32.mrb[17].mxu0  ;;  %v1731_v19 = vpop.f32.mrb[17].mxu1 }
 0x234   : > { %v1757_v14 = vmax.f32 %v1129_v23, %v1731_v19  ;;  %v1131_v24 = vpop.f32.mrb[18].mxu0  ;;  %v1733_v30 = vpop.f32.mrb[18].mxu1 }
 0x235   : > { %v1758_v28 = vmax.f32 %v1131_v24, %v1733_v30  ;;  %v1133_v6 = vpop.f32.mrb[19].mxu0  ;;  %v1735_v7 = vpop.f32.mrb[19].mxu1 }
 0x236   : > { %v1759_v8 = vmax.f32 %v1133_v6, %v1735_v7 }
 0x23a   : > { %v1137_v9 = vpop.f32.mrb[20].mxu0  ;;  %v1739_v10 = vpop.f32.mrb[20].mxu1 }
 0x23b   : > { %v1760_v11 = vmax.f32 %v1137_v9, %v1739_v10  ;;  %v1139_v12 = vpop.f32.mrb[21].mxu0  ;;  %v1741_v13 = vpop.f32.mrb[21].mxu1 }
 0x23c   : > { %v1761_v16 = vmax.f32 %v1139_v12, %v1741_v13  ;;  %v1141_v22 = vpop.f32.mrb[22].mxu0  ;;  %v1743_v26 = vpop.f32.mrb[22].mxu1 }
 0x23d   : > { %v1762_v25 = vmax.f32 %v1141_v22, %v1743_v26  ;;  %v1143_v29 = vpop.f32.mrb[23].mxu0  ;;  %v1745_v32 = vpop.f32.mrb[23].mxu1 }
 0x23e   : > { %v1763_v33 = vmax.f32 %v1143_v29, %v1745_v32 }
 0x2c4   : > { %v1910_v36 = vpop.f32.mrb[24].mxu0 }
 0x2c5   : > { %v1937_v37 = vmax.f32 %v1756_v27, %v1910_v36  ;;  %v2085_v38 = vpop.f32.mrb[24].mxu1  ;;  %v1912_v41 = vpop.f32.mrb[25].mxu0 }
 0x2c6   : > { %v1938_v42 = vmax.f32 %v1757_v14, %v1912_v41  ;;  %v2087_v43 = vpop.f32.mrb[25].mxu1  ;;  %v1914_v46 = vpop.f32.mrb[26].mxu0 }
 0x2c7   : > { %v2112_v47 = vmax.f32 %v1937_v37, %v2085_v38  ;;  %v1939_v48 = vmax.f32 %v1758_v28, %v1914_v46  ;;  %v2089_v49 = vpop.f32.mrb[26].mxu1  ;;  %v1916_v50 = vpop.f32.mrb[27].mxu0 }
 0x2c8   : > { %v2113_v51 = vmax.f32 %v1938_v42, %v2087_v43  ;;  %v1940_v52 = vmax.f32 %v1759_v8, %v1916_v50  ;;  %v2091_v53 = vpop.f32.mrb[27].mxu1 }
 0x2c9   : > { %v2132_v54 = vadd.f32 %v2125_v39, %v2112_v47  ;;  %v2114_v55 = vmax.f32 %v1939_v48, %v2089_v49 }
 0x2ca   : > { %v2133_v56 = vadd.f32 %v2129_v45, %v2113_v51  ;;  %v2115_v57 = vmax.f32 %v1940_v52, %v2091_v53 }
 0x2cb   : > { %v2140_v58 = vmax.f32 %v2132_v54, 0.0  ;;  %v2134_v59 = vadd.f32 %v2125_v39, %v2114_v55 }
 0x2cc   : > { %v2141_v60 = vmax.f32 %v2133_v56, 0.0  ;;  %v2135_v61 = vadd.f32 %v2129_v45, %v2115_v57  ;;  %v1920_v62 = vpop.f32.mrb[28].mxu0 }
 0x2cd   : > { %2148 = vst [vmem:[%s4060_s18] sm:$0xff] %v2140_v58  ;;  %v2142_v63 = vmax.f32 %v2134_v59, 0.0  ;;  %v1941_v0 = vmax.f32 %v1760_v11, %v1920_v62  ;;  %v2095_v1 = vpop.f32.mrb[28].mxu1  ;;  %v1922_v2 = vpop.f32.mrb[29].mxu0 }
 0x2ce   : > { %2150 = vst.msk [vmem:[%s4060_s18 + $0x8] sm:$0xff] %vm2149_vm1, %v2141_v60  ;;  %v2143_v3 = vmax.f32 %v2135_v61, 0.0  ;;  %v1942_v4 = vmax.f32 %v1761_v16, %v1922_v2  ;;  %v2097_v5 = vpop.f32.mrb[29].mxu1  ;;  %v1924_v40 = vpop.f32.mrb[30].mxu0 }
 0x2cf   : > { %2151 = vst [vmem:[%s4060_s18 + $0x10] sm:$0xff] %v2142_v63  ;;  %v2116_v21 = vmax.f32 %v1941_v0, %v2095_v1  ;;  %v1943_v31 = vmax.f32 %v1762_v25, %v1924_v40  ;;  %v2099_v20 = vpop.f32.mrb[30].mxu1  ;;  %v1926_v15 = vpop.f32.mrb[31].mxu0 }
 0x2d0   : > { %2152 = vst.msk [vmem:[%s4060_s18 + $0x18] sm:$0xff] %vm2149_vm1, %v2143_v3  ;;  %v2117_v27 = vmax.f32 %v1942_v4, %v2097_v5  ;;  %v1944_v23 = vmax.f32 %v1763_v33, %v1926_v15  ;;  %v2101_v19 = vpop.f32.mrb[31].mxu1 }
 0x2d1   : > { %v2136_v14 = vadd.f32 %v2125_v39, %v2116_v21  ;;  %v2118_v24 = vmax.f32 %v1943_v31, %v2099_v20 }
 0x2d2   : > { %v2137_v30 = vadd.f32 %v2129_v45, %v2117_v27  ;;  %v2119_v28 = vmax.f32 %v1944_v23, %v2101_v19 }
 0x2d3   : > { %v2144_v6 = vmax.f32 %v2136_v14, 0.0  ;;  %v2138_v7 = vadd.f32 %v2125_v39, %v2118_v24 }
 0x2d4   : > { %v2145_v8 = vmax.f32 %v2137_v30, 0.0  ;;  %v2139_v9 = vadd.f32 %v2129_v45, %v2119_v28 }
 0x2d5   : > { %2153 = vst [vmem:[%s4060_s18 + $0x20] sm:$0xff] %v2144_v6  ;;  %v2146_v10 = vmax.f32 %v2138_v7, 0.0 }
 0x2d6   : > { %2154 = vst.msk [vmem:[%s4060_s18 + $0x28] sm:$0xff] %vm2149_vm1, %v2145_v8  ;;  %v2147_v11 = vmax.f32 %v2139_v9, 0.0 }
 0x2d7   : > { %2155 = vst [vmem:[%s4060_s18 + $0x30] sm:$0x7f] %v2146_v10 }
 0x2d8   : > { %2157 = vst.msk [vmem:[%s4060_s18 + $0x38] sm:$0x7f] %vm2156_vm2, %v2147_v11 }
 0x2d9 PF: > { %s14_s15 = sadd.s32 1, %s2845_s15  }
 0x2da   : > { %p11_p4 = scmp.ge.s32.totalorder %s14_s15, 4  }
 0x2dc   :  { %13 = sbr.rel (!%p11_p4) target bundleno = 1 (0x1), region = 74 }

// kernel: _lambda_.8
= control target key start
LH: loop header
LB: loop body
LE: loop exit
PB: predicated region body
PF: predicated region fallthrough
CT: control target
= control target key end

     0   :  { %s1918_s15 = smov 0   ;;  %s2660_s0 = inlined_call_operand.vmem [shape: f32[2,6,192], index: 0, kind: input, shape index: {}]   ;;  %s2661_s1 = inlined_call_operand.vmem [shape: bf16[4,2,6], index: 1, kind: input, shape index: {}]   ;;  %s2662_s2 = inlined_call_operand.vmem [shape: bf16[6,192,128], index: 2, kind: input, shape index: {}]   ;;  %s2663_s3 = inlined_call_operand.vmem [shape: f32[1,128], index: 3, kind: input, shape index: {}]   ;;  %s2664_s4 = inlined_call_operand.vmem [shape: f32[2,2,128], index: 4, kind: output, shape index: {}]  }
   0x1 LB: > { %s1544_s16 = sadd.s32 4294967295, %s1890_s15   ;;  %p1548_p0 = scmp.ge.s32.totalorder %s1890_s15, 1  ;;  %s1890_s15 = sphi %s1918_s15, %s14_s15  }
   0x2   : > { %p162_p1 = scmp.lt.s32.totalorder %s1890_s15, 3 }
   0x4   : > { %p163_p2 = pnand %p1548_p0, %p162_p1 }
   0x6   : > { %166 = sbr.rel (%p163_p2) target bundleno = 702 (0x2be), region = 36 }
   0xd   : > { %p187_p3 = scmp.lt.s32.totalorder %s1544_s16, 1  ;;  %v1892_v0 = vmov 0   ;;  %vm206_vm0 = vcmask 1042432   ;;  %v1554_v5 = vld [vmem:[%s2661_s1 + $0x1] sm:$0x1]  ;;  %vm202_vm1 = vcmask 48128  }
   0xe   : > { %293 = vmatprep.mubr.bf16.mxu1 %v1892_v0  ;;  %245 = vmatprep.mubr.bf16.mxu0 %v1892_v0  ;;  %v201_v7 = vld [vmem:[%s2661_s1] sm:$0x1]  ;;  %v1557_v8 = vld [vmem:[%s2661_s1 + $0x2] sm:$0x1]  ;;  %v1560_v9 = vld [vmem:[%s2661_s1 + $0x3] sm:$0x1] }
   0xf   : > { %s2713_s16 = smov (!%p187_p3, %s1544_s16), 1  ;;  %v1955_v10 = vld [vmem:[%s2662_s2 + $0x60] sm:$0xff]   ;;  %v1967_v12 = vld [vmem:[%s2662_s2 + $0x68] sm:$0xff]   ;;  %v1981_v14 = vld [vmem:[%s2662_s2 + $0x70] sm:$0xff]   ;;  %vm521_vm2 = vcmask 523264  }
  0x10   : > { %s1770_s17 = sshll.u32 %s2713_s16, 4  ;;  %v1960_v11 = vld [vmem:[%s2662_s2 + $0x180] sm:$0xff]   ;;  %v1974_v13 = vld [vmem:[%s2662_s2 + $0x188] sm:$0xff]   ;;  %v1986_v15 = vld [vmem:[%s2662_s2 + $0x190] sm:$0xff]   ;;  %s1551_s5 = sshll.u32 %s2713_s16, 1 }
  0x11   : > { %s191_s20 = scalar_lea.vmem %s2660_s0, %s1770_s17  ;;  %v1995_v16 = vld [vmem:[%s2662_s2 + $0x78] sm:$0xff]   ;;  %v2009_v18 = vld [vmem:[%s2662_s2 + $0x80] sm:$0xff]   ;;  %v2023_v20 = vld [vmem:[%s2662_s2 + $0x88] sm:$0xff]   ;;  %s195_s8 = scalar_lea.vmem %s2664_s4, %s1551_s5 }
  0x12   : > { %v198_v1 = vld [vmem:[%s191_s20 + $0x8] sm:$0x3f]  ;;  %v197_v2 = vld [vmem:[%s191_s20] sm:$0x3f]  ;;  %v2000_v17 = vld [vmem:[%s2662_s2 + $0x198] sm:$0xff]  }
  0x13   : > { %v200_v3 = vpack.c.bf16 %v198_v1, %v198_v1  ;;  %v199_v4 = vpack.c.bf16 %v197_v2, %v197_v2  ;;  %v2014_v19 = vld [vmem:[%s2662_s2 + $0x1a0] sm:$0xff]   ;;  %v2028_v21 = vld [vmem:[%s2662_s2 + $0x1a8] sm:$0xff]   ;;  %v2037_v22 = vld [vmem:[%s2662_s2 + $0x90] sm:$0xff]  }
  0x14   : > { %v2042_v23 = vld [vmem:[%s2662_s2 + $0x1b0] sm:$0xff]   ;;  %v2051_v24 = vld [vmem:[%s2662_s2 + $0x98] sm:$0xff]   ;;  %v2065_v26 = vld [vmem:[%s2662_s2 + $0xa0] sm:$0xff]  }
  0x15   : > { %1555 = vmatprep.subr.msk.bf16.mxu1 %vm206_vm0, %v200_v3  ;;  %v208_v6 = vsel %vm206_vm0, %v199_v4, 0  ;;  %1552 = vmatprep.subr.msk.bf16.mxu0 %vm206_vm0, %v200_v3  ;;  %v2056_v25 = vld [vmem:[%s2662_s2 + $0x1b8] sm:$0xff]   ;;  %v2070_v27 = vld [vmem:[%s2662_s2 + $0x1c0] sm:$0xff]   ;;  %v2079_v28 = vld [vmem:[%s2662_s2 + $0xa8] sm:$0xff]  }
  0x16   : > { %262 = vmatpush1.bf16.msra.mxu1 %v208_v6  ;;  %214 = vmatpush1.bf16.msra.mxu0 %v208_v6  ;;  %v2084_v29 = vld [vmem:[%s2662_s2 + $0x1c8] sm:$0xff]   ;;  %v2095_v30 = vld [vmem:[%s2662_s2 + $0xb0] sm:$0xff]   ;;  %v2111_v32 = vld [vmem:[%s2662_s2 + $0xb8] sm:$0xff]  }
  0x17   : > { %1558 = vmatprep.subr.msk.bf16.mxu0 %vm206_vm0, %v200_v3  ;;  %1561 = vmatprep.subr.msk.bf16.mxu1 %vm206_vm0, %v200_v3  ;;  %v2100_v31 = vld [vmem:[%s2662_s2 + $0x1d0] sm:$0xff]   ;;  %v2116_v33 = vld [vmem:[%s2662_s2 + $0x1d8] sm:$0xff]   ;;  %v2129_v40 = vld [vmem:[%s2662_s2] sm:$0xff]  }
  0x18   : > { %v2134_v41 = vld [vmem:[%s2662_s2 + $0x120] sm:$0xff]   ;;  %v2149_v47 = vld [vmem:[%s2662_s2 + $0x8] sm:$0xff]   ;;  %v2169_v51 = vld [vmem:[%s2662_s2 + $0x10] sm:$0xff]  }
  0x19   : > { %1556 = vmatmul.mubr.msk.bf16.vlgmr.msra.gmra.mrb[0].mxu1 %vm202_vm1, %v1554_v5  ;;  %1553 = vmatmul.mubr.msk.bf16.vlgmr.msra.gmra.mrb[0].mxu0 %vm202_vm1, %v201_v7  ;;  %v2154_v48 = vld [vmem:[%s2662_s2 + $0x128] sm:$0xff]   ;;  %v2174_v52 = vld [vmem:[%s2662_s2 + $0x130] sm:$0xff]   ;;  %v2183_v55 = vld [vmem:[%s2662_s2 + $0x18] sm:$0xff]  }
  0x1a   : > { %310 = vmatpush1.bf16.msra.mxu0 %v208_v6  ;;  %341 = vmatprep.mubr.bf16.mxu0 %v1892_v0  ;;  %v2188_v56 = vld [vmem:[%s2662_s2 + $0x138] sm:$0xff]   ;;  %v2197_v57 = vld [vmem:[%s2662_s2 + $0x20] sm:$0xff]   ;;  %v2211_v59 = vld [vmem:[%s2662_s2 + $0x28] sm:$0xff]  }
  0x1b   : > { %358 = vmatpush1.bf16.msra.mxu1 %v208_v6  ;;  %389 = vmatprep.mubr.bf16.mxu1 %v1892_v0  ;;  %v2202_v58 = vld [vmem:[%s2662_s2 + $0x140] sm:$0xff]   ;;  %v2216_v60 = vld [vmem:[%s2662_s2 + $0x148] sm:$0xff]   ;;  %v2225_v61 = vld [vmem:[%s2662_s2 + $0x30] sm:$0xff]  }
  0x1c   : > { %525 = vmatprep.subr.bf16.mxu0 %v1892_v0  ;;  %943 = vmatprep.subr.bf16.mxu1 %v1892_v0  ;;  %v2230_v62 = vld [vmem:[%s2662_s2 + $0x150] sm:$0xff]   ;;  %v2239_v63 = vld [vmem:[%s2662_s2 + $0x38] sm:$0xff]   ;;  %v2253_v2 = vld [vmem:[%s2662_s2 + $0x40] sm:$0xff]  }
  0x1d   : > { %v2244_v1 = vld [vmem:[%s2662_s2 + $0x158] sm:$0xff]   ;;  %v2258_v3 = vld [vmem:[%s2662_s2 + $0x160] sm:$0xff]   ;;  %v2267_v4 = vld [vmem:[%s2662_s2 + $0x48] sm:$0xff]  }
  0x1e   : > { %v2272_v5 = vld [vmem:[%s2662_s2 + $0x168] sm:$0xff]  }
  0x21   : > { %1559 = vmatmul.mubr.msk.bf16.vlgmr.msra.gmra.mrb[4].mxu0 %vm202_vm1, %v1557_v8  ;;  %1562 = vmatmul.mubr.msk.bf16.vlgmr.msra.gmra.mrb[4].mxu1 %vm202_vm1, %v1560_v9  ;;  %v2285_v9 = vld [vmem:[%s2662_s2 + $0x50] sm:$0xff]  }
  0x22   : > { %526 = vmatpush1.bf16.msra.mxu0 %v1955_v10  ;;  %944 = vmatpush1.bf16.msra.mxu1 %v1960_v11 }
  0x23   : > { %527 = vmatprep.subr.bf16.mxu0 %v1892_v0  ;;  %945 = vmatprep.subr.bf16.mxu1 %v1892_v0 }
  0x26   : > { %528 = vmatpush1.bf16.msra.mxu0 %v1967_v12  ;;  %946 = vmatpush1.bf16.msra.mxu1 %v1974_v13 }
  0x27   : > { %529 = vmatprep.subr.bf16.mxu0 %v1892_v0  ;;  %947 = vmatprep.subr.bf16.mxu1 %v1892_v0 }
  0x2a   : > { %530 = vmatpush1.bf16.msra.mxu0 %v1981_v14  ;;  %948 = vmatpush1.bf16.msra.mxu1 %v1986_v15 }
  0x2b   : > { %531 = vmatprep.subr.bf16.mxu0 %v1892_v0  ;;  %949 = vmatprep.subr.bf16.mxu1 %v1892_v0 }
  0x2e   : > { %532 = vmatpush1.bf16.msra.mxu0 %v1995_v16  ;;  %950 = vmatpush1.bf16.msra.mxu1 %v2000_v17 }
  0x2f   : > { %533 = vmatprep.subr.bf16.mxu0 %v1892_v0  ;;  %951 = vmatprep.subr.bf16.mxu1 %v1892_v0 }
  0x32   : > { %534 = vmatpush1.bf16.msra.mxu0 %v2009_v18  ;;  %952 = vmatpush1.bf16.msra.mxu1 %v2014_v19 }
  0x33   : > { %535 = vmatprep.subr.bf16.mxu0 %v1892_v0  ;;  %953 = vmatprep.subr.bf16.mxu1 %v1892_v0 }
  0x36   : > { %536 = vmatpush1.bf16.msra.mxu0 %v2023_v20  ;;  %954 = vmatpush1.bf16.msra.mxu1 %v2028_v21 }
  0x37   : > { %537 = vmatprep.subr.bf16.mxu0 %v1892_v0  ;;  %955 = vmatprep.subr.bf16.mxu1 %v1892_v0 }
  0x3a   : > { %538 = vmatpush1.bf16.msra.mxu0 %v2037_v22  ;;  %956 = vmatpush1.bf16.msra.mxu1 %v2042_v23 }
  0x3b   : > { %539 = vmatprep.subr.bf16.mxu0 %v1892_v0  ;;  %957 = vmatprep.subr.bf16.mxu1 %v1892_v0 }
  0x3e   : > { %540 = vmatpush1.bf16.msra.mxu0 %v2051_v24  ;;  %958 = vmatpush1.bf16.msra.mxu1 %v2056_v25 }
  0x3f   : > { %541 = vmatprep.subr.bf16.mxu0 %v1892_v0  ;;  %959 = vmatprep.subr.bf16.mxu1 %v1892_v0 }
  0x42   : > { %542 = vmatpush1.bf16.msra.mxu0 %v2065_v26  ;;  %960 = vmatpush1.bf16.msra.mxu1 %v2070_v27 }
  0x43   : > { %543 = vmatprep.subr.bf16.mxu0 %v1892_v0  ;;  %961 = vmatprep.subr.bf16.mxu1 %v1892_v0 }
  0x46   : > { %544 = vmatpush1.bf16.msra.mxu0 %v2079_v28  ;;  %962 = vmatpush1.bf16.msra.mxu1 %v2084_v29 }
  0x47   : > { %545 = vmatprep.subr.bf16.mxu0 %v1892_v0  ;;  %963 = vmatprep.subr.bf16.mxu1 %v1892_v0 }
  0x4a   : > { %546 = vmatpush1.bf16.msra.mxu0 %v2095_v30  ;;  %964 = vmatpush1.bf16.msra.mxu1 %v2100_v31 }
  0x4b   : > { %547 = vmatprep.subr.bf16.mxu0 %v1892_v0  ;;  %965 = vmatprep.subr.bf16.mxu1 %v1892_v0 }
  0x4e   : > { %548 = vmatpush1.bf16.msra.mxu0 %v2111_v32  ;;  %966 = vmatpush1.bf16.msra.mxu1 %v2116_v33 }
  0x4f   : > { %640 = vmatprep.subr.bf16.mxu0 %v1892_v0  ;;  %1055 = vmatprep.subr.bf16.mxu1 %v1892_v0 }
  0xec   : > { %v295_v34 = vpop.f32.mrb[0].mxu1  ;;  %v2122_v35 = vpop.f32.mrb[0].mxu0 }
  0xed   : > { %v297_v36 = vpop.f32.mrb[1].mxu1  ;;  %v249_v37 = vpop.f32.mrb[1].mxu0  ;;  %v2136_v43 = vpack.c.bf16 %v295_v34, %v295_v34  ;;  %v2290_v34 = vld [vmem:[%s2662_s2 + $0x170] sm:$0xff]  }
  0xee   : > { %v2124_v38 = vpack.c.bf16 %v297_v36, %v297_v36  ;;  %v299_v39 = vpop.f32.mrb[2].mxu1  ;;  %v251_v42 = vpop.f32.mrb[2].mxu0  ;;  %v255_v46 = vpack.c.bf16 %v249_v37, %v249_v37  ;;  %v2299_v37 = vld [vmem:[%s2662_s2 + $0x58] sm:$0xff]  }
  0xef   : > { %v300_v44 = vpop.f32.mrb[3].mxu1  ;;  %v252_v45 = vpop.f32.mrb[3].mxu0  ;;  %v2304_v39 = vld [vmem:[%s2662_s2 + $0x178] sm:$0xff]   ;;  %v254_v42 = vpack.c.bf16 %v2122_v35, %v2122_v35 }
  0xf0   : > { %1599 = vmatprep.mubr.msk.bf16.mxu0 %vm521_vm2, %v2124_v38  ;;  %1710 = vmatprep.mubr.msk.bf16.mxu1 %vm521_vm2, %v2124_v38  ;;  %v2315_v44 = vld [vmem:[%s2662_s2 + $0xc0] sm:$0xff]  }
  0xf1   : > { %558 = vmatmul.mubr.bf16.vlgmr.msra.gmra.mrb[8].mxu0 %v2136_v43  ;;  %976 = vmatmul.mubr.bf16.vlgmr.msra.gmra.mrb[8].mxu1 %v2136_v43  ;;  %v2320_v45 = vld [vmem:[%s2662_s2 + $0x1e0] sm:$0xff]  }
  0xf2   : > { %641 = vmatpush1.bf16.msra.mxu0 %v2129_v40  ;;  %1056 = vmatpush1.bf16.msra.mxu1 %v2134_v41 }
  0xf3   : > { %642 = vmatprep.subr.bf16.mxu0 %v1892_v0  ;;  %1057 = vmatprep.subr.bf16.mxu1 %v1892_v0 }
  0xf4   : > { %1612 = vmatprep.mubr.msk.bf16.mxu0 %vm521_vm2, %v255_v46  ;;  %1723 = vmatprep.mubr.msk.bf16.mxu1 %vm521_vm2, %v255_v46  ;;  %v2160_v49 = vpop.f32.mrb[4].mxu0  ;;  %v2276_v6 = vpop.f32.mrb[4].mxu1  ;;  %v2333_v46 = vld [vmem:[%s2662_s2 + $0xc8] sm:$0xff]  }
  0xf5   : > { %v2162_v50 = vpop.f32.mrb[5].mxu0  ;;  %2680 = vst [vmem:[#allocation2_spill] sm:$0xff] %v2276_v6  ;;  %v2278_v7 = vpop.f32.mrb[5].mxu1  ;;  %v2384_v6 = vld [vmem:[%s2662_s2 + $0x200] sm:$0xff]  }
  0xf6   : > { %643 = vmatpush1.bf16.msra.mxu0 %v2149_v47  ;;  %1058 = vmatpush1.bf16.msra.mxu1 %v2154_v48  ;;  %v347_v53 = vpop.f32.mrb[6].mxu0  ;;  %v395_v8 = vpop.f32.mrb[6].mxu1  ;;  %v2326_v35 = vpack.c.bf16 %v2162_v50, %v2162_v50  ;;  %v2351_v50 = vld [vmem:[%s2662_s2 + $0xd0] sm:$0xff]   ;;  %2685 = vst [vmem:[#allocation7_spill] sm:$0xff] %v2384_v6 }
  0xf7   : > { %644 = vmatprep.subr.bf16.mxu0 %v1892_v0  ;;  %1059 = vmatprep.subr.bf16.mxu1 %v1892_v0  ;;  %v348_v54 = vpop.f32.mrb[7].mxu0  ;;  %v396_v36 = vpop.f32.mrb[7].mxu1  ;;  %v2338_v53 = vld [vmem:[%s2662_s2 + $0x1e8] sm:$0xff]   ;;  %v2365_v8 = vld [vmem:[%s2662_s2 + $0xd8] sm:$0xff]  }
  0xf8   : > { %v2356_v54 = vld [vmem:[%s2662_s2 + $0x1f0] sm:$0xff]   ;;  %2682 = vst [vmem:[#allocation4_spill] sm:$0xff] %v2365_v8  ;;  %v2370_v36 = vld [vmem:[%s2662_s2 + $0x1f8] sm:$0xff]  }
  0xf9   : > { %2681 = vst [vmem:[#allocation3_spill] sm:$0xff] %v2356_v54  ;;  %2683 = vst [vmem:[#allocation5_spill] sm:$0xff] %v2370_v36 }
  0xfa   : > { %645 = vmatpush1.bf16.msra.mxu0 %v2169_v51  ;;  %1060 = vmatpush1.bf16.msra.mxu1 %v2174_v52 }
  0xfb   : > { %646 = vmatprep.subr.bf16.mxu0 %v1892_v0  ;;  %1061 = vmatprep.subr.bf16.mxu1 %v1892_v0 }
  0xfe   : > { %647 = vmatpush1.bf16.msra.mxu0 %v2183_v55  ;;  %1062 = vmatpush1.bf16.msra.mxu1 %v2188_v56 }
  0xff   : > { %648 = vmatprep.subr.bf16.mxu0 %v1892_v0  ;;  %1063 = vmatprep.subr.bf16.mxu1 %v1892_v0 }
 0x102   : > { %649 = vmatpush1.bf16.msra.mxu0 %v2197_v57  ;;  %1064 = vmatpush1.bf16.msra.mxu1 %v2202_v58 }
 0x103   : > { %650 = vmatprep.subr.bf16.mxu0 %v1892_v0  ;;  %1065 = vmatprep.subr.bf16.mxu1 %v1892_v0 }
 0x106   : > { %651 = vmatpush1.bf16.msra.mxu0 %v2211_v59  ;;  %1066 = vmatpush1.bf16.msra.mxu1 %v2216_v60 }
 0x107   : > { %652 = vmatprep.subr.bf16.mxu0 %v1892_v0  ;;  %1067 = vmatprep.subr.bf16.mxu1 %v1892_v0 }
 0x10a   : > { %653 = vmatpush1.bf16.msra.mxu0 %v2225_v61  ;;  %1068 = vmatpush1.bf16.msra.mxu1 %v2230_v62 }
 0x10b   : > { %654 = vmatprep.subr.bf16.mxu0 %v1892_v0  ;;  %1069 = vmatprep.subr.bf16.mxu1 %v1892_v0 }
 0x10e   : > { %655 = vmatpush1.bf16.msra.mxu0 %v2239_v63  ;;  %1070 = vmatpush1.bf16.msra.mxu1 %v2244_v1 }
 0x10f   : > { %656 = vmatprep.subr.bf16.mxu0 %v1892_v0  ;;  %1071 = vmatprep.subr.bf16.mxu1 %v1892_v0 }
 0x112   : > { %657 = vmatpush1.bf16.msra.mxu0 %v2253_v2  ;;  %1072 = vmatpush1.bf16.msra.mxu1 %v2258_v3 }
 0x113   : > { %658 = vmatprep.subr.bf16.mxu0 %v1892_v0  ;;  %1073 = vmatprep.subr.bf16.mxu1 %v1892_v0 }
 0x116   : > { %659 = vmatpush1.bf16.msra.mxu0 %v2267_v4  ;;  %1074 = vmatpush1.bf16.msra.mxu1 %v2272_v5 }
 0x117   : > { %660 = vmatprep.subr.bf16.mxu0 %v1892_v0  ;;  %1075 = vmatprep.subr.bf16.mxu1 %v1892_v0 }
 0x11a   : > { %661 = vmatpush1.bf16.msra.mxu0 %v2285_v9  ;;  %1076 = vmatpush1.bf16.msra.mxu1 %v2290_v34 }
 0x11b   : > { %662 = vmatprep.subr.bf16.mxu0 %v1892_v0  ;;  %1077 = vmatprep.subr.bf16.mxu1 %v1892_v0 }
 0x11e   : > { %663 = vmatpush1.bf16.msra.mxu0 %v2299_v37  ;;  %1078 = vmatpush1.bf16.msra.mxu1 %v2304_v39 }
 0x11f   : > { %780 = vmatprep.subr.bf16.mxu0 %v1892_v0  ;;  %1192 = vmatprep.subr.bf16.mxu1 %v1892_v0 }
 0x121   : > { %673 = vmatmul.mubr.bf16.vlgmr.msra.gmra.mrb[8].mxu0 %v254_v42  ;;  %1088 = vmatmul.mubr.bf16.vlgmr.msra.gmra.mrb[8].mxu1 %v254_v42  ;;  %v2379_v42 = vld [vmem:[%s2662_s2 + $0xe0] sm:$0xff]  }
 0x122   : > { %781 = vmatpush1.bf16.msra.mxu0 %v2315_v44  ;;  %1193 = vmatpush1.bf16.msra.mxu1 %v2320_v45  ;;  %2684 = vst [vmem:[#allocation6_spill] sm:$0xff] %v2379_v42 }
 0x123   : > { %782 = vmatprep.subr.bf16.mxu0 %v1892_v0  ;;  %1194 = vmatprep.subr.bf16.mxu1 %v1892_v0 }
 0x124   : > { %1649 = vmatprep.mubr.msk.bf16.mxu0 %vm521_vm2, %v2326_v35  ;;  %1760 = vmatprep.mubr.msk.bf16.mxu1 %vm521_vm2, %v2326_v35 }
 0x126   : > { %783 = vmatpush1.bf16.msra.mxu0 %v2333_v46  ;;  %1195 = vmatpush1.bf16.msra.mxu1 %v2338_v53 }
 0x127   : > { %784 = vmatprep.subr.bf16.mxu0 %v1892_v0  ;;  %1196 = vmatprep.subr.bf16.mxu1 %v1892_v0 }
 0x12a   : > { %785 = vmatpush1.bf16.msra.mxu0 %v2351_v50  ;;  %1197 = vmatpush1.bf16.msra.mxu1 %v2356_v54  ;;  %v350_v54 = vpack.c.bf16 %v2160_v49, %v2160_v49  ;;  %v1767_v49 = vld [vmem:[%s2663_s3] ss:$0 sm:$0xff] }
 0x12b   : > { %786 = vmatprep.subr.bf16.mxu0 %v1892_v0  ;;  %1198 = vmatprep.subr.bf16.mxu1 %v1892_v0 }
 0x12e   : > { %787 = vmatpush1.bf16.msra.mxu0 %v2365_v8  ;;  %1199 = vmatpush1.bf16.msra.mxu1 %v2370_v36  ;;  %v2393_v36 = vld [vmem:[%s2662_s2 + $0xe8] sm:$0xff]  }
 0x12f   : > { %788 = vmatprep.subr.bf16.mxu0 %v1892_v0  ;;  %1200 = vmatprep.subr.bf16.mxu1 %v1892_v0  ;;  %2686 = vst [vmem:[#allocation8_spill] sm:$0xff] %v2393_v36  ;;  %v2398_v8 = vld [vmem:[%s2662_s2 + $0x208] sm:$0xff]  }
 0x130   : > { %2687 = vst [vmem:[#allocation9_spill] sm:$0xff] %v2398_v8 }
 0x132   : > { %789 = vmatpush1.bf16.msra.mxu0 %v2379_v42  ;;  %1201 = vmatpush1.bf16.msra.mxu1 %v2384_v6  ;;  %v2407_v6 = vld [vmem:[%s2662_s2 + $0xf0] sm:$0xff]  }
 0x133   : > { %790 = vmatprep.subr.bf16.mxu0 %v1892_v0  ;;  %1202 = vmatprep.subr.bf16.mxu1 %v1892_v0  ;;  %2688 = vst [vmem:[#allocation10_spill] sm:$0xff] %v2407_v6  ;;  %v2412_v42 = vld [vmem:[%s2662_s2 + $0x210] sm:$0xff]  }
 0x134   : > { %2689 = vst [vmem:[#allocation11_spill] sm:$0xff] %v2412_v42 }
 0x136   : > { %791 = vmatpush1.bf16.msra.mxu0 %v2393_v36  ;;  %1203 = vmatpush1.bf16.msra.mxu1 %v2398_v8  ;;  %v2421_v8 = vld [vmem:[%s2662_s2 + $0xf8] sm:$0xff]  }
 0x137   : > { %792 = vmatprep.subr.bf16.mxu0 %v1892_v0  ;;  %1204 = vmatprep.subr.bf16.mxu1 %v1892_v0  ;;  %2690 = vst [vmem:[#allocation12_spill] sm:$0xff] %v2421_v8  ;;  %v2426_v36 = vld [vmem:[%s2662_s2 + $0x218] sm:$0xff]  }
 0x138   : > { %2691 = vst [vmem:[#allocation13_spill] sm:$0xff] %v2426_v36 }
 0x13a   : > { %793 = vmatpush1.bf16.msra.mxu0 %v2407_v6  ;;  %1205 = vmatpush1.bf16.msra.mxu1 %v2412_v42  ;;  %v2435_v42 = vld [vmem:[%s2662_s2 + $0x100] sm:$0xff]  }
 0x13b   : > { %794 = vmatprep.subr.bf16.mxu0 %v1892_v0  ;;  %1206 = vmatprep.subr.bf16.mxu1 %v1892_v0  ;;  %2692 = vst [vmem:[#allocation14_spill] sm:$0xff] %v2435_v42  ;;  %v2440_v6 = vld [vmem:[%s2662_s2 + $0x220] sm:$0xff]  }
 0x13c   : > { %2693 = vst [vmem:[#allocation15_spill] sm:$0xff] %v2440_v6 }
 0x13e   : > { %795 = vmatpush1.bf16.msra.mxu0 %v2421_v8  ;;  %1207 = vmatpush1.bf16.msra.mxu1 %v2426_v36  ;;  %v2449_v36 = vld [vmem:[%s2662_s2 + $0x108] sm:$0xff]  }
 0x13f   : > { %796 = vmatprep.subr.bf16.mxu0 %v1892_v0  ;;  %1208 = vmatprep.subr.bf16.mxu1 %v1892_v0  ;;  %2694 = vst [vmem:[#allocation16_spill] sm:$0xff] %v2449_v36  ;;  %v2454_v8 = vld [vmem:[%s2662_s2 + $0x228] sm:$0xff]  }
 0x140   : > { %2695 = vst [vmem:[#allocation17_spill] sm:$0xff] %v2454_v8 }
 0x142   : > { %797 = vmatpush1.bf16.msra.mxu0 %v2435_v42  ;;  %1209 = vmatpush1.bf16.msra.mxu1 %v2440_v6  ;;  %v2463_v6 = vld [vmem:[%s2662_s2 + $0x110] sm:$0xff]  }
 0x143   : > { %798 = vmatprep.subr.bf16.mxu0 %v1892_v0  ;;  %1210 = vmatprep.subr.bf16.mxu1 %v1892_v0  ;;  %v2468_v42 = vld [vmem:[%s2662_s2 + $0x230] sm:$0xff]  }
 0x146   : > { %799 = vmatpush1.bf16.msra.mxu0 %v2449_v36  ;;  %1211 = vmatpush1.bf16.msra.mxu1 %v2454_v8  ;;  %v2477_v8 = vld [vmem:[%s2662_s2 + $0x118] sm:$0xff]  }
 0x147   : > { %800 = vmatprep.subr.bf16.mxu0 %v1892_v0  ;;  %1212 = vmatprep.subr.bf16.mxu1 %v1892_v0  ;;  %v2482_v36 = vld [vmem:[%s2662_s2 + $0x238] sm:$0xff]  }
 0x14a   : > { %801 = vmatpush1.bf16.msra.mxu0 %v2463_v6  ;;  %1213 = vmatpush1.bf16.msra.mxu1 %v2468_v42 }
 0x14b   : > { %802 = vmatprep.subr.bf16.mxu0 %v1892_v0  ;;  %1214 = vmatprep.subr.bf16.mxu1 %v1892_v0 }
 0x14e   : > { %803 = vmatpush1.bf16.msra.mxu0 %v2477_v8  ;;  %1215 = vmatpush1.bf16.msra.mxu1 %v2482_v36 }
 0x14f   : > { %1234 = vmatprep.subr.bf16.mxu0 %v1892_v0  ;;  %1359 = vmatprep.subr.bf16.mxu1 %v1892_v0 }
 0x151   : > { %813 = vmatmul.mubr.bf16.vlgmr.msra.gmra.mrb[8].mxu0 %v350_v54  ;;  %1225 = vmatmul.mubr.bf16.vlgmr.msra.gmra.mrb[8].mxu1 %v350_v54 }
 0x152   : > { %1235 = vmatpush1.bf16.msra.mxu0 %v1955_v10  ;;  %1761 = vmatprep.mubr.msk.bf16.mxu0 %vm521_vm2, %v2326_v35  ;;  %v399_v10 = vpack.c.bf16 %v2278_v7, %v2278_v7 }
 0x153   : > { %1360 = vmatpush1.bf16.msra.mxu1 %v1960_v11  ;;  %1764 = vmatprep.mubr.msk.bf16.mxu1 %vm521_vm2, %v2326_v35  ;;  %v2696_v11 = vld [vmem:[#allocation3_spill] sm:$0xff] }
 0x154   : > { %1236 = vmatprep.subr.bf16.mxu0 %v1892_v0  ;;  %1361 = vmatprep.subr.bf16.mxu1 %v1892_v0 }
 0x156   : > { %1237 = vmatpush1.bf16.msra.mxu0 %v1967_v12  ;;  %v2697_v12 = vld [vmem:[#allocation4_spill] sm:$0xff] }
 0x157   : > { %1362 = vmatpush1.bf16.msra.mxu1 %v1974_v13  ;;  %1238 = vmatprep.subr.bf16.mxu0 %v1892_v0  ;;  %v2698_v13 = vld [vmem:[#allocation5_spill] sm:$0xff] }
 0x158   : > { %1363 = vmatprep.subr.bf16.mxu1 %v1892_v0 }
 0x15a   : > { %1239 = vmatpush1.bf16.msra.mxu0 %v1981_v14  ;;  %v2699_v14 = vld [vmem:[#allocation6_spill] sm:$0xff] }
 0x15b   : > { %1364 = vmatpush1.bf16.msra.mxu1 %v1986_v15  ;;  %1240 = vmatprep.subr.bf16.mxu0 %v1892_v0  ;;  %v2700_v15 = vld [vmem:[#allocation7_spill] sm:$0xff] }
 0x15c   : > { %1365 = vmatprep.subr.bf16.mxu1 %v1892_v0 }
 0x15e   : > { %1241 = vmatpush1.bf16.msra.mxu0 %v1995_v16  ;;  %v2701_v16 = vld [vmem:[#allocation8_spill] sm:$0xff] }
 0x15f   : > { %1366 = vmatpush1.bf16.msra.mxu1 %v2000_v17  ;;  %1242 = vmatprep.subr.bf16.mxu0 %v1892_v0  ;;  %v2702_v17 = vld [vmem:[#allocation9_spill] sm:$0xff] }
 0x160   : > { %1367 = vmatprep.subr.bf16.mxu1 %v1892_v0 }
 0x162   : > { %1243 = vmatpush1.bf16.msra.mxu0 %v2009_v18  ;;  %v2703_v18 = vld [vmem:[#allocation10_spill] sm:$0xff] }
 0x163   : > { %1368 = vmatpush1.bf16.msra.mxu1 %v2014_v19  ;;  %1244 = vmatprep.subr.bf16.mxu0 %v1892_v0  ;;  %v2704_v19 = vld [vmem:[#allocation11_spill] sm:$0xff] }
 0x164   : > { %1369 = vmatprep.subr.bf16.mxu1 %v1892_v0 }
 0x166   : > { %1245 = vmatpush1.bf16.msra.mxu0 %v2023_v20  ;;  %v2705_v20 = vld [vmem:[#allocation12_spill] sm:$0xff] }
 0x167   : > { %1370 = vmatpush1.bf16.msra.mxu1 %v2028_v21  ;;  %1246 = vmatprep.subr.bf16.mxu0 %v1892_v0  ;;  %v2706_v21 = vld [vmem:[#allocation13_spill] sm:$0xff] }
 0x168   : > { %1371 = vmatprep.subr.bf16.mxu1 %v1892_v0 }
 0x16a   : > { %1247 = vmatpush1.bf16.msra.mxu0 %v2037_v22  ;;  %v2707_v22 = vld [vmem:[#allocation14_spill] sm:$0xff] }
 0x16b   : > { %1372 = vmatpush1.bf16.msra.mxu1 %v2042_v23  ;;  %1248 = vmatprep.subr.bf16.mxu0 %v1892_v0  ;;  %v2708_v23 = vld [vmem:[#allocation15_spill] sm:$0xff] }
 0x16c   : > { %1373 = vmatprep.subr.bf16.mxu1 %v1892_v0 }
 0x16e   : > { %1249 = vmatpush1.bf16.msra.mxu0 %v2051_v24  ;;  %v2709_v24 = vld [vmem:[#allocation16_spill] sm:$0xff] }
 0x16f   : > { %1374 = vmatpush1.bf16.msra.mxu1 %v2056_v25  ;;  %1250 = vmatprep.subr.bf16.mxu0 %v1892_v0  ;;  %v2710_v25 = vld [vmem:[#allocation17_spill] sm:$0xff] }
 0x170   : > { %1375 = vmatprep.subr.bf16.mxu1 %v1892_v0 }
 0x172   : > { %1251 = vmatpush1.bf16.msra.mxu0 %v2065_v26  ;;  %v2711_v26 = vld [vmem:[#allocation2_spill] sm:$0xff] }
 0x173   : > { %1376 = vmatpush1.bf16.msra.mxu1 %v2070_v27  ;;  %1252 = vmatprep.subr.bf16.mxu0 %v1892_v0  ;;  %v398_v27 = vpack.c.bf16 %v2711_v26, %v2711_v26 }
 0x174   : > { %1377 = vmatprep.subr.bf16.mxu1 %v1892_v0 }
 0x176   : > { %1253 = vmatpush1.bf16.msra.mxu0 %v2079_v28 }
 0x177   : > { %1378 = vmatpush1.bf16.msra.mxu1 %v2084_v29  ;;  %1254 = vmatprep.subr.bf16.mxu0 %v1892_v0 }
 0x178   : > { %1379 = vmatprep.subr.bf16.mxu1 %v1892_v0 }
 0x17a   : > { %1255 = vmatpush1.bf16.msra.mxu0 %v2095_v30 }
 0x17b   : > { %1380 = vmatpush1.bf16.msra.mxu1 %v2100_v31  ;;  %1256 = vmatprep.subr.bf16.mxu0 %v1892_v0 }
 0x17c   : > { %1381 = vmatprep.subr.bf16.mxu1 %v1892_v0 }
 0x17e   : > { %1257 = vmatpush1.bf16.msra.mxu0 %v2111_v32 }
 0x17f   : > { %1382 = vmatpush1.bf16.msra.mxu1 %v2116_v33  ;;  %1274 = vmatprep.subr.bf16.mxu0 %v1892_v0 }
 0x180   : > { %1399 = vmatprep.subr.bf16.mxu1 %v1892_v0 }
 0x181   : > { %1267 = vmatmul.mubr.bf16.vlgmr.msra.gmra.mrb[12].mxu0 %v350_v54 }
 0x182   : > { %1392 = vmatmul.mubr.bf16.vlgmr.msra.gmra.mrb[12].mxu1 %v350_v54  ;;  %1275 = vmatpush1.bf16.msra.mxu0 %v2129_v40 }
 0x183   : > { %1762 = vmatprep.mubr.msk.bf16.mxu0 %vm521_vm2, %v2124_v38  ;;  %1400 = vmatpush1.bf16.msra.mxu1 %v2134_v41 }
 0x184   : > { %1765 = vmatprep.mubr.msk.bf16.mxu1 %vm521_vm2, %v2124_v38  ;;  %1276 = vmatprep.subr.bf16.mxu0 %v1892_v0 }
 0x185   : > { %1401 = vmatprep.subr.bf16.mxu1 %v1892_v0 }
 0x186   : > { %1277 = vmatpush1.bf16.msra.mxu0 %v2149_v47 }
 0x187   : > { %1402 = vmatpush1.bf16.msra.mxu1 %v2154_v48  ;;  %1278 = vmatprep.subr.bf16.mxu0 %v1892_v0 }
 0x188   : > { %1403 = vmatprep.subr.bf16.mxu1 %v1892_v0 }
 0x18a   : > { %1279 = vmatpush1.bf16.msra.mxu0 %v2169_v51 }
 0x18b   : > { %1404 = vmatpush1.bf16.msra.mxu1 %v2174_v52  ;;  %1280 = vmatprep.subr.bf16.mxu0 %v1892_v0 }
 0x18c   : > { %1405 = vmatprep.subr.bf16.mxu1 %v1892_v0 }
 0x18e   : > { %1281 = vmatpush1.bf16.msra.mxu0 %v2183_v55 }
 0x18f   : > { %1406 = vmatpush1.bf16.msra.mxu1 %v2188_v56  ;;  %1282 = vmatprep.subr.bf16.mxu0 %v1892_v0 }
 0x190   : > { %1407 = vmatprep.subr.bf16.mxu1 %v1892_v0 }
 0x192   : > { %1283 = vmatpush1.bf16.msra.mxu0 %v2197_v57 }
 0x193   : > { %1408 = vmatpush1.bf16.msra.mxu1 %v2202_v58  ;;  %1284 = vmatprep.subr.bf16.mxu0 %v1892_v0 }
 0x194   : > { %1409 = vmatprep.subr.bf16.mxu1 %v1892_v0 }
 0x196   : > { %1285 = vmatpush1.bf16.msra.mxu0 %v2211_v59 }
 0x197   : > { %1410 = vmatpush1.bf16.msra.mxu1 %v2216_v60  ;;  %1286 = vmatprep.subr.bf16.mxu0 %v1892_v0 }
 0x198   : > { %1411 = vmatprep.subr.bf16.mxu1 %v1892_v0 }
 0x19a   : > { %1287 = vmatpush1.bf16.msra.mxu0 %v2225_v61 }
 0x19b   : > { %1412 = vmatpush1.bf16.msra.mxu1 %v2230_v62  ;;  %1288 = vmatprep.subr.bf16.mxu0 %v1892_v0 }
 0x19c   : > { %1413 = vmatprep.subr.bf16.mxu1 %v1892_v0 }
 0x19e   : > { %1289 = vmatpush1.bf16.msra.mxu0 %v2239_v63 }
 0x19f   : > { %1414 = vmatpush1.bf16.msra.mxu1 %v2244_v1  ;;  %1290 = vmatprep.subr.bf16.mxu0 %v1892_v0 }
 0x1a0   : > { %1415 = vmatprep.subr.bf16.mxu1 %v1892_v0 }
 0x1a2   : > { %1291 = vmatpush1.bf16.msra.mxu0 %v2253_v2 }
 0x1a3   : > { %1416 = vmatpush1.bf16.msra.mxu1 %v2258_v3  ;;  %1292 = vmatprep.subr.bf16.mxu0 %v1892_v0 }
 0x1a4   : > { %1417 = vmatprep.subr.bf16.mxu1 %v1892_v0 }
 0x1a6   : > { %1293 = vmatpush1.bf16.msra.mxu0 %v2267_v4 }
 0x1a7   : > { %1418 = vmatpush1.bf16.msra.mxu1 %v2272_v5  ;;  %1294 = vmatprep.subr.bf16.mxu0 %v1892_v0 }
 0x1a8   : > { %1419 = vmatprep.subr.bf16.mxu1 %v1892_v0 }
 0x1aa   : > { %1295 = vmatpush1.bf16.msra.mxu0 %v2285_v9 }
 0x1ab   : > { %1420 = vmatpush1.bf16.msra.mxu1 %v2290_v34  ;;  %1296 = vmatprep.subr.bf16.mxu0 %v1892_v0 }
 0x1ac   : > { %1421 = vmatprep.subr.bf16.mxu1 %v1892_v0 }
 0x1ae   : > { %1297 = vmatpush1.bf16.msra.mxu0 %v2299_v37 }
 0x1af   : > { %1422 = vmatpush1.bf16.msra.mxu1 %v2304_v39  ;;  %1317 = vmatprep.subr.bf16.mxu0 %v1892_v0 }
 0x1b0   : > { %1439 = vmatprep.subr.bf16.mxu1 %v1892_v0 }
 0x1b1   : > { %1307 = vmatmul.mubr.bf16.vlgmr.msra.gmra.mrb[12].mxu0 %v2136_v43 }
 0x1b2   : > { %1432 = vmatmul.mubr.bf16.vlgmr.msra.gmra.mrb[12].mxu1 %v2136_v43  ;;  %1318 = vmatpush1.bf16.msra.mxu0 %v2315_v44 }
 0x1b3   : > { %1763 = vmatprep.mubr.msk.bf16.mxu0 %vm521_vm2, %v399_v10  ;;  %1440 = vmatpush1.bf16.msra.mxu1 %v2320_v45 }
 0x1b4   : > { %1766 = vmatprep.mubr.msk.bf16.mxu1 %vm521_vm2, %v399_v10  ;;  %1319 = vmatprep.subr.bf16.mxu0 %v1892_v0 }
 0x1b5   : > { %1441 = vmatprep.subr.bf16.mxu1 %v1892_v0 }
 0x1b6   : > { %1320 = vmatpush1.bf16.msra.mxu0 %v2333_v46 }
 0x1b7   : > { %1442 = vmatpush1.bf16.msra.mxu1 %v2338_v53  ;;  %1321 = vmatprep.subr.bf16.mxu0 %v1892_v0 }
 0x1b8   : > { %1443 = vmatprep.subr.bf16.mxu1 %v1892_v0 }
 0x1ba   : > { %1322 = vmatpush1.bf16.msra.mxu0 %v2351_v50 }
 0x1bb   : > { %1444 = vmatpush1.bf16.msra.mxu1 %v2696_v11  ;;  %1323 = vmatprep.subr.bf16.mxu0 %v1892_v0 }
 0x1bc   : > { %1445 = vmatprep.subr.bf16.mxu1 %v1892_v0 }
 0x1be   : > { %1324 = vmatpush1.bf16.msra.mxu0 %v2697_v12 }
 0x1bf   : > { %1446 = vmatpush1.bf16.msra.mxu1 %v2698_v13  ;;  %1325 = vmatprep.subr.bf16.mxu0 %v1892_v0 }
 0x1c0   : > { %1447 = vmatprep.subr.bf16.mxu1 %v1892_v0 }
 0x1c2   : > { %1326 = vmatpush1.bf16.msra.mxu0 %v2699_v14 }
 0x1c3   : > { %1448 = vmatpush1.bf16.msra.mxu1 %v2700_v15  ;;  %1327 = vmatprep.subr.bf16.mxu0 %v1892_v0 }
 0x1c4   : > { %1449 = vmatprep.subr.bf16.mxu1 %v1892_v0 }
 0x1c6   : > { %1328 = vmatpush1.bf16.msra.mxu0 %v2701_v16 }
 0x1c7   : > { %1450 = vmatpush1.bf16.msra.mxu1 %v2702_v17  ;;  %1329 = vmatprep.subr.bf16.mxu0 %v1892_v0 }
 0x1c8   : > { %1451 = vmatprep.subr.bf16.mxu1 %v1892_v0 }
 0x1ca   : > { %1330 = vmatpush1.bf16.msra.mxu0 %v2703_v18 }
 0x1cb   : > { %1452 = vmatpush1.bf16.msra.mxu1 %v2704_v19  ;;  %1331 = vmatprep.subr.bf16.mxu0 %v1892_v0 }
 0x1cc   : > { %1453 = vmatprep.subr.bf16.mxu1 %v1892_v0 }
 0x1ce   : > { %1332 = vmatpush1.bf16.msra.mxu0 %v2705_v20 }
 0x1cf   : > { %1454 = vmatpush1.bf16.msra.mxu1 %v2706_v21  ;;  %1333 = vmatprep.subr.bf16.mxu0 %v1892_v0 }
 0x1d0   : > { %1455 = vmatprep.subr.bf16.mxu1 %v1892_v0 }
 0x1d2   : > { %1334 = vmatpush1.bf16.msra.mxu0 %v2707_v22 }
 0x1d3   : > { %1456 = vmatpush1.bf16.msra.mxu1 %v2708_v23  ;;  %1335 = vmatprep.subr.bf16.mxu0 %v1892_v0 }
 0x1d4   : > { %1457 = vmatprep.subr.bf16.mxu1 %v1892_v0 }
 0x1d6   : > { %1336 = vmatpush1.bf16.msra.mxu0 %v2709_v24 }
 0x1d7   : > { %1458 = vmatpush1.bf16.msra.mxu1 %v2710_v25  ;;  %1337 = vmatprep.subr.bf16.mxu0 %v1892_v0 }
 0x1d8   : > { %1459 = vmatprep.subr.bf16.mxu1 %v1892_v0 }
 0x1da   : > { %1338 = vmatpush1.bf16.msra.mxu0 %v2463_v6 }
 0x1db   : > { %1460 = vmatpush1.bf16.msra.mxu1 %v2468_v42  ;;  %1339 = vmatprep.subr.bf16.mxu0 %v1892_v0 }
 0x1dc   : > { %1461 = vmatprep.subr.bf16.mxu1 %v1892_v0 }
 0x1de   : > { %1340 = vmatpush1.bf16.msra.mxu0 %v2477_v8 }
 0x1df   : > { %1462 = vmatpush1.bf16.msra.mxu1 %v2482_v36 }
 0x1e1   : > { %1350 = vmatmul.mubr.bf16.vlgmr.msra.gmra.mrb[12].mxu0 %v398_v27 }
 0x1e2   : > { %1472 = vmatmul.mubr.bf16.vlgmr.msra.gmra.mrb[12].mxu1 %v398_v27 }
 0x224   : > { %v814_v28 = vpop.f32.mrb[8].mxu0  ;;  %v1226_v29 = vpop.f32.mrb[8].mxu1 }
 0x225   : > { %v1233_v30 = vmax.f32 %v814_v28, %v1226_v29  ;;  %v816_v31 = vpop.f32.mrb[9].mxu0  ;;  %v1228_v32 = vpop.f32.mrb[9].mxu1 }
 0x226   : > { %v817_v33 = vpop.f32.mrb[10].mxu0  ;;  %v1229_v38 = vpop.f32.mrb[10].mxu1 }
 0x227   : > { %v818_v40 = vpop.f32.mrb[11].mxu0  ;;  %v1230_v41 = vpop.f32.mrb[11].mxu1 }
 0x2b4   : > { %v1351_v0 = vpop.f32.mrb[12].mxu0 }
 0x2b5   : > { %v1358_v43 = vmax.f32 %v1233_v30, %v1351_v0  ;;  %v1473_v47 = vpop.f32.mrb[12].mxu1  ;;  %v1353_v48 = vpop.f32.mrb[13].mxu0 }
 0x2b6   : > { %v1475_v51 = vpop.f32.mrb[13].mxu1  ;;  %v1354_v52 = vpop.f32.mrb[14].mxu0 }
 0x2b7   : > { %v1480_v55 = vmax.f32 %v1358_v43, %v1473_v47  ;;  %v1476_v56 = vpop.f32.mrb[14].mxu1  ;;  %v1355_v57 = vpop.f32.mrb[15].mxu0 }
 0x2b8   : > { %v1477_v58 = vpop.f32.mrb[15].mxu1 }
 0x2b9   : > { %v1488_v59 = vadd.f32 %v1767_v49, %v1480_v55 }
 0x2bb   : > { %v1489_v60 = vmax.f32 %v1488_v59, 0.0 }
 0x2bd   : > { %1490 = vst [vmem:[%s195_s8] sm:$0x3] %v1489_v60 }
 0x2be PF: > { %s14_s15 = sadd.s32 1, %s1890_s15  }
 0x2bf   : > { %p11_p4 = scmp.ge.s32.totalorder %s14_s15, 4  }
 0x2c1   :  { %13 = sbr.rel (!%p11_p4) target bundleno = 1 (0x1), region = 74 }

// kernel: _lambda_.9
= control target key start
LH: loop header
LB: loop body
LE: loop exit
PB: predicated region body
PF: predicated region fallthrough
CT: control target
= control target key end

     0   :  { %s548_s0 = inlined_call_operand.vmem [shape: f32[2,256], index: 0, kind: input, shape index: {}]   ;;  %s549_s1 = inlined_call_operand.vmem [shape: f32[256,32], index: 1, kind: input, shape index: {}]   ;;  %s550_s2 = inlined_call_operand.vmem [shape: f32[1,32], index: 2, kind: input, shape index: {}]   ;;  %s551_s3 = inlined_call_operand.vmem [shape: f32[32,4], index: 3, kind: input, shape index: {}]   ;;  %s552_s4 = inlined_call_operand.vmem [shape: f32[1,4], index: 4, kind: input, shape index: {}]   ;;  %s553_s5 = inlined_call_operand.hbm [shape: f32[2,4], index: 5, kind: output, shape index: {}]  }
   0x1   :  { %v38_v0 = vld [vmem:[%s549_s1 + $0x80] sm:$0xff]  ;;  %v39_v1 = vld [vmem:[%s549_s1 + $0x88] sm:$0xff]  ;;  %v40_v5 = vld [vmem:[%s549_s1 + $0x90] sm:$0xff] }
   0x2   :  { %v22_v2 = vld [vmem:[%s549_s1] sm:$0xff]  ;;  %v312_v3 = vpack.c.bf16 %v39_v1, %v38_v0  ;;  %v23_v4 = vld [vmem:[%s549_s1 + $0x8] sm:$0xff]  ;;  %v41_v6 = vld [vmem:[%s549_s1 + $0x98] sm:$0xff] }
   0x3   :  { %v314_v7 = vpack.c.bf16 %v23_v4, %v22_v2  ;;  %v316_v8 = vpack.c.bf16 %v41_v6, %v40_v5  ;;  %v24_v9 = vld [vmem:[%s549_s1 + $0x10] sm:$0xff]  ;;  %v25_v10 = vld [vmem:[%s549_s1 + $0x18] sm:$0xff]  ;;  %v42_v11 = vld [vmem:[%s549_s1 + $0xa0] sm:$0xff] }
   0x4   :  { %313 = vmatprep.subr.bf16.mxu0 %v312_v3  ;;  %v43_v12 = vld [vmem:[%s549_s1 + $0xa8] sm:$0xff]  ;;  %v318_v13 = vpack.c.bf16 %v25_v10, %v24_v9  ;;  %v26_v15 = vld [vmem:[%s549_s1 + $0x20] sm:$0xff]  ;;  %v44_v17 = vld [vmem:[%s549_s1 + $0xb0] sm:$0xff] }
   0x5   :  { %315 = vmatpush3.bf16.msra.mxu0 %v314_v7  ;;  %v320_v14 = vpack.c.bf16 %v43_v12, %v42_v11  ;;  %v27_v16 = vld [vmem:[%s549_s1 + $0x28] sm:$0xff]  ;;  %v45_v18 = vld [vmem:[%s549_s1 + $0xb8] sm:$0xff]  ;;  %v28_v21 = vld [vmem:[%s549_s1 + $0x30] sm:$0xff] }
   0x6   :  { %317 = vmatprep.subr.bf16.mxu0 %v316_v8  ;;  %v322_v19 = vpack.c.bf16 %v27_v16, %v26_v15  ;;  %v324_v20 = vpack.c.bf16 %v45_v18, %v44_v17  ;;  %v29_v22 = vld [vmem:[%s549_s1 + $0x38] sm:$0xff]  ;;  %v46_v23 = vld [vmem:[%s549_s1 + $0xc0] sm:$0xff]  ;;  %v47_v24 = vld [vmem:[%s549_s1 + $0xc8] sm:$0xff] }
   0x7   :  { %v258_v25 = vld.sshfl [vmem:[%s548_s0] sm:$0x33 pattern:$0x76325410] }
   0x8   :  { %v69_v26 = vcombine.high %v258_v25, %v258_v25 }
   0x9   :  { %319 = vmatpush3.bf16.msra.mxu0 %v318_v13 }
   0xa   :  { %321 = vmatprep.subr.bf16.mxu0 %v320_v14 }
   0xb   :  { %10 = vsyncpa [#allocation3], 0  ;;  %v326_v27 = vpack.c.bf16 %v29_v22, %v28_v21  ;;  %v328_v28 = vpack.c.bf16 %v47_v24, %v46_v23  ;;  %v30_v29 = vld [vmem:[%s549_s1 + $0x40] sm:$0xff]  ;;  %v31_v30 = vld [vmem:[%s549_s1 + $0x48] sm:$0xff]  ;;  %136 = vmatprep.mubr.f32.mxu0 %v69_v26  ;;  %v382_v53 = vmov 0.0|0.0   ;;  %vm383_vm0 = vmmov 0  }
   0xc   :  { %v48_v31 = vld [vmem:[%s549_s1 + $0xd0] sm:$0xff]  ;;  %v49_v32 = vld [vmem:[%s549_s1 + $0xd8] sm:$0xff]  ;;  %v330_v33 = vpack.c.bf16 %v31_v30, %v30_v29  ;;  %v50_v37 = vld [vmem:[%s549_s1 + $0xe0] sm:$0xff]  ;;  %344 = vmatprep.subr.bf16.mxu1 %v382_v53  ;;  %v384_v57 = vmov 0.0   ;;  %vm154_vm1 = vcmask 261120   ;;  %vm228_vm2 = vcmask 25600  }
   0xd   :  { %323 = vmatpush3.bf16.msra.mxu0 %v322_v19  ;;  %v332_v34 = vpack.c.bf16 %v49_v32, %v48_v31  ;;  %v32_v35 = vld [vmem:[%s549_s1 + $0x50] sm:$0xff]  ;;  %v33_v36 = vld [vmem:[%s549_s1 + $0x58] sm:$0xff]  ;;  %v51_v38 = vld [vmem:[%s549_s1 + $0xe8] sm:$0xff]  ;;  %309 = vmatprep.mubr.msk.f32.mxu1 %vm383_vm0, %v384_v57 }
   0xe   :  { %325 = vmatprep.subr.bf16.mxu0 %v324_v20  ;;  %v334_v39 = vpack.c.bf16 %v33_v36, %v32_v35  ;;  %v336_v40 = vpack.c.bf16 %v51_v38, %v50_v37  ;;  %v34_v41 = vld [vmem:[%s549_s1 + $0x60] sm:$0xff]  ;;  %v35_v42 = vld [vmem:[%s549_s1 + $0x68] sm:$0xff]  ;;  %v52_v43 = vld [vmem:[%s549_s1 + $0xf0] sm:$0xff] }
   0xf   :  { %v53_v44 = vld [vmem:[%s549_s1 + $0xf8] sm:$0xff]  ;;  %v338_v45 = vpack.c.bf16 %v35_v42, %v34_v41  ;;  %v36_v47 = vld [vmem:[%s549_s1 + $0x70] sm:$0xff]  ;;  %v143_v50 = vld [vmem:[%s551_s3] sm:$0xff] }
  0x10   :  { %v340_v46 = vpack.c.bf16 %v53_v44, %v52_v43  ;;  %v37_v48 = vld [vmem:[%s549_s1 + $0x78] sm:$0xff]  ;;  %v144_v51 = vld [vmem:[%s551_s3 + $0x8] sm:$0xff]  ;;  %v145_v54 = vld [vmem:[%s551_s3 + $0x10] sm:$0xff] }
  0x11   :  { %327 = vmatpush3.bf16.msra.mxu0 %v326_v27  ;;  %v342_v49 = vpack.c.bf16 %v37_v48, %v36_v47  ;;  %v345_v52 = vpack.c.bf16 %v144_v51, %v143_v50  ;;  %v146_v55 = vld [vmem:[%s551_s3 + $0x18] sm:$0xff]  ;;  %v257_v59 = vld [vmem:[%s550_s2] ss:$0 sm:$0xff]  ;;  %s385_s2 = smov [#allocation2]  }
  0x12   :  { %329 = vmatprep.subr.bf16.mxu0 %v328_v28  ;;  %v348_v56 = vpack.c.bf16 %v146_v55, %v145_v54  ;;  %v259_v0 = vld [vmem:[%s552_s4] ss:$0 sm:$0xff]  ;;  %s249_s3 = sshll.u32 %s385_s2, 4  ;;  %s250_s3 = int_to_ptr.vmem [resolvable:$true] %s249_s3 }
  0x13   :  { %346 = vmatpush3.bf16.msra.mxu1 %v345_v52  ;;  %s358_s4 = scalar_lea.vmem %s250_s3, 32  ;;  %p363_p1 = scmp.lt.s32.totalorder %s250_s3, %s250_s3 }
  0x14   :  { %347 = vmatprep.subr.bf16.mxu1 %v382_v53  ;;  %p359_p0 = scmp.ne.s32.totalorder %s250_s3, %s358_s4  ;;  %p364_p2 = scmp.lt.s32.totalorder %s358_s4, %s358_s4 }
  0x15   :  { %331 = vmatpush3.bf16.msra.mxu0 %v330_v33 }
  0x16   :  { %333 = vmatprep.subr.bf16.mxu0 %v332_v34  ;;  %p365_p3 = por %p364_p2, %p363_p1 }
  0x17   :  { %349 = vmatpush3.bf16.msra.mxu1 %v348_v56 }
  0x18   :  { %p366_p4 = pnand %p365_p3, %p359_p0 }
  0x19   :  { %335 = vmatpush3.bf16.msra.mxu0 %v334_v39 }
  0x1a   :  { %337 = vmatprep.subr.bf16.mxu0 %v336_v40 }
  0x1d   :  { %339 = vmatpush3.bf16.msra.mxu0 %v338_v45 }
  0x1e   :  { %341 = vmatprep.subr.bf16.mxu0 %v340_v46 }
  0x21   :  { %343 = vmatpush3.bf16.msra.mxu0 %v342_v49 }
  0x24   :  { %137 = vmatmul.mubr.f32.vlgmr.msra.gmra.mrb[0].mxu0 %v258_v25 }
  0xf7   :  { %v293_v58 = vpop.f32.mrb[0].mxu0 }
  0xf8   :  { %v294_v60 = vpop.f32.mrb[1].mxu0 }
  0xf9   :  { %v295_v61 = vadd.f32 %v294_v60, %v293_v58 }
  0xfb   :  { %v139_v62 = vadd.f32 %v295_v61, %v257_v59 }
  0xfd   :  { %v142_v63 = vmax.f32 %v139_v62, 0.0 }
  0xff   :  { %310 = vmatmul.mubr.msk.f32.vlgmr.msra.gmra.mrb[0].mxu1 %vm154_vm1, %v142_v63 }
 0x1d2   :  { %v224_v1 = vpop.f32.mrb[0].mxu1 }
 0x1d3   :  { %v225_v2 = vadd.f32 %v259_v0, %v224_v1  ;;  %v311_v3 = vpop.f32.mrb[1].mxu1 }
 0x1d5   :  { %v229_v4 = vsel %vm228_vm2, %v225_v2, -inf }
 0x1d6   :  { %230 = vmax.xlane.f32.xlu0 %v229_v4 }
 0x263   :  { %v231_v5 = vpop.xlane.xlu0 %230 }
 0x264   :  { %v232_v6 = vsub.f32 %v225_v2, %v231_v5 }
 0x266   :  { %v233_v7 = vmul.f32 1.442695, %v232_v6 }
 0x268   :  { %354 = vpow2.f32 %v233_v7 }
 0x272   :  { %v355_v8 = vpop.eup %354 }
 0x273   :  { %v235_v9 = vsel %vm228_vm2, %v355_v8, 0.0 }
 0x274   :  { %236 = vadd.xlane.f32.xlu0 %v235_v9 }
 0x301   :  { %v237_v10 = vpop.xlane.xlu0 %236 }
 0x302   :  { %356 = vlog2.f32 %v237_v10 }
 0x30c   :  { %v357_v11 = vpop.eup %356 }
 0x30d   :  { %v239_v12 = vmul.f32 0.6931472, %v357_v11 }
 0x30f   :  { %v240_v13 = vadd.f32 %v239_v12, %v231_v5 }
 0x311   :  { %v241_v14 = vsub.f32 %v225_v2, %v240_v13 }
 0x313   :  { %242 = vst.msk [vmem:[#allocation2] sm:$0x3] %vm228_vm2, %v241_v14 }
 0x314   :  { %369 = shalt.err (!%p366_p4)
}
 0x315   :  { %s370_s20 = scalar_lea.hbm %s553_s5, 32 }
 0x316   :  { %p371_p5 = scmp.ne.s32.totalorder %s553_s5, %s370_s20  ;;  %p374_p6 = scmp.lt.u32.totalorder %s370_s20, %s553_s5 }
 0x318   :  { %p376_p7 = pnand %p374_p6, %p371_p5 }
 0x31a   :  { %379 = shalt.err (!%p376_p7)
}
 0x31b   :  { %252 = dma.vmem_to_hbm [thread:$0]  %s250_s3, 32, %s553_s5, [#allocation3]  }
 0x31c   :  { %380 = dma.done.wait [#allocation3], 32  }
 0x31d   :  { %381 = vsyncadd [#allocation3], 4294967264 }
 0x31e   :  { %256 = vsyncpa [#allocation3], 1 }

</bundles_post_ra>
